<compile_context>
chip_gen: v7x
topology: tpu7x:2x2x1
jax: 0.10.0
libtpu: 0.0.40
codegen_flags: <defaults>
</compile_context>

<pallas_src>
import functools

import jax
import jax.numpy as jnp
from jax.experimental import pallas as pl
from jax.experimental.pallas import tpu as pltpu


# ----------------------------------------------------------------------------
# Pallas kernels
# ----------------------------------------------------------------------------
def _mm_bn_kernel(p_ref, w_ref, s_ref, b_ref, o_ref, acc_ref, *, relu):
    """K-tiled matmul, f32 accumulate; BN affine (+ReLU) epilogue on last K."""
    @pl.when(pl.program_id(2) == 0)
    def _init():
        acc_ref[...] = jnp.zeros_like(acc_ref)

    acc_ref[...] += jnp.dot(p_ref[...], w_ref[...],
                            preferred_element_type=jnp.float32)

    @pl.when(pl.program_id(2) == pl.num_programs(2) - 1)
    def _epilogue():
        y = acc_ref[...] * s_ref[...] + b_ref[...]
        if relu:
            y = jnp.maximum(y, 0.0)
        o_ref[...] = y


def _mm_bn_res_kernel(p_ref, w_ref, s_ref, b_ref, r_ref, o_ref, acc_ref, *,
                      relu):
    """Same as above + residual add in the epilogue (BasicBlock tail)."""
    @pl.when(pl.program_id(2) == 0)
    def _init():
        acc_ref[...] = jnp.zeros_like(acc_ref)

    acc_ref[...] += jnp.dot(p_ref[...], w_ref[...],
                            preferred_element_type=jnp.float32)

    @pl.when(pl.program_id(2) == pl.num_programs(2) - 1)
    def _epilogue():
        y = acc_ref[...] * s_ref[...] + b_ref[...] + r_ref[...]
        if relu:
            y = jnp.maximum(y, 0.0)
        o_ref[...] = y


def _avgpool_kernel(x_ref, o_ref):
    """x_ref: (N, H*W, C) -> global average pool over the spatial axis."""
    o_ref[...] = jnp.mean(x_ref[...], axis=1)


# ----------------------------------------------------------------------------
# Tiled fused matmul + folded-BN (+ residual) (+ ReLU)
# ----------------------------------------------------------------------------
def _round_up(x, m):
    return (x + m - 1) // m * m


def _pick_tile(dim, prefs):
    for p in prefs:
        if p <= dim and dim % p == 0:
            return p
    return dim  # fall back to the full dimension (always legal)


def fused_matmul_bn(patches, w, scale, bias, residual=None, relu=True):
    """(M,K)x(K,Cout) on the MXU with bf16 operands, f32 accum + BN epilogue."""
    M, K = patches.shape
    Kw, Cout = w.shape
    assert K == Kw, (K, Kw)

    patches = patches.astype(jnp.bfloat16)
    w = w.astype(jnp.bfloat16)

    # Pad K to a multiple of 128 (zero rows contribute nothing) -> aligned MXU
    # tiles; this also fixes conv1's ragged K = 7*7*3 = 147.
    Kp = _round_up(K, 128)
    if Kp != K:
        patches = jnp.pad(patches, ((0, 0), (0, Kp - K)))
        w = jnp.pad(w, ((0, Kp - K), (0, 0)))

    tm = _pick_tile(M, (256, 128, 64, 32, 16, 8))
    tn = _pick_tile(Cout, (256, 128))
    tk = _pick_tile(Kp, (512, 256, 128))
    grid = (M // tm, Cout // tn, Kp // tk)

    s2 = scale.reshape(1, Cout).astype(jnp.float32)
    b2 = bias.reshape(1, Cout).astype(jnp.float32)

    in_specs = [
        pl.BlockSpec((tm, tk), lambda i, j, k: (i, k)),   # patches tile
        pl.BlockSpec((tk, tn), lambda i, j, k: (k, j)),   # weight tile
        pl.BlockSpec((1, tn), lambda i, j, k: (0, j)),    # BN scale
        pl.BlockSpec((1, tn), lambda i, j, k: (0, j)),    # BN bias
    ]
    inputs = [patches, w, s2, b2]

    if residual is not None:
        # Residual tiled exactly like the output; only read in the epilogue.
        in_specs.append(pl.BlockSpec((tm, tn), lambda i, j, k: (i, j)))
        inputs.append(residual.astype(jnp.float32))
        kern = functools.partial(_mm_bn_res_kernel, relu=relu)
    else:
        kern = functools.partial(_mm_bn_kernel, relu=relu)

    return pl.pallas_call(
        kern,
        out_shape=jax.ShapeDtypeStruct((M, Cout), jnp.float32),
        grid_spec=pltpu.PrefetchScalarGridSpec(
            num_scalar_prefetch=0,
            grid=grid,
            in_specs=in_specs,
            out_specs=pl.BlockSpec((tm, tn), lambda i, j, k: (i, j)),
            scratch_shapes=[pltpu.VMEM((tm, tn), jnp.float32)],
        ),
        compiler_params=pltpu.CompilerParams(
            dimension_semantics=("parallel", "parallel", "arbitrary")),
    )(*inputs)


# ----------------------------------------------------------------------------
# JAX-side glue: im2col, conv+bn wrapper, pooling
# ----------------------------------------------------------------------------
def _im2col(x, kh, kw, stride, pad):
    """x: NHWC -> (N*OH*OW, kh*kw*C) patches, row order (n, oh, ow)."""
    N, H, W, C = x.shape
    xp = jnp.pad(x, ((0, 0), (pad, pad), (pad, pad), (0, 0)))
    OH = (H + 2 * pad - kh) // stride + 1
    OW = (W + 2 * pad - kw) // stride + 1
    cols = []
    for i in range(kh):
        for j in range(kw):
            cols.append(xp[:, i:i + stride * OH:stride,
                           j:j + stride * OW:stride, :])
    patches = jnp.stack(cols, axis=3)  # (N, OH, OW, kh*kw, C)
    return patches.reshape(N * OH * OW, kh * kw * C), OH, OW


def conv_bn(x, w_flat, scale, bias, kh, kw, stride, pad, relu=True,
            residual=None):
    """Conv (im2col + tiled Pallas matmul) + folded BN (+ residual) (+ ReLU)."""
    N = x.shape[0]
    # Cast activations to bf16 up front so the patch materialization is bf16.
    patches, OH, OW = _im2col(x.astype(jnp.bfloat16), kh, kw, stride, pad)
    cout = w_flat.shape[1]
    res2 = None if residual is None else residual.reshape(-1, cout)
    y = fused_matmul_bn(patches, w_flat, scale, bias, residual=res2, relu=relu)
    return y.reshape(N, OH, OW, cout)


def maxpool(x, k=3, stride=2, pad=1):
    """3x3/s2 max-pool: fold max over shifted strided slices (no k*k stack)."""
    N, H, W, C = x.shape
    xp = jnp.pad(x, ((0, 0), (pad, pad), (pad, pad), (0, 0)),
                 constant_values=-jnp.inf)
    OH = (H + 2 * pad - k) // stride + 1
    OW = (W + 2 * pad - k) // stride + 1
    out = None
    for i in range(k):
        for j in range(k):
            v = xp[:, i:i + stride * OH:stride, j:j + stride * OW:stride, :]
            out = v if out is None else jnp.maximum(out, v)
    return out


def global_avgpool(x):
    N, H, W, C = x.shape
    xr = x.reshape(N, H * W, C)
    return pl.pallas_call(
        _avgpool_kernel,
        out_shape=jax.ShapeDtypeStruct((N, C), jnp.float32),
        grid=(1,),
        in_specs=[pl.BlockSpec((N, H * W, C), lambda i: (0, 0, 0))],
        out_specs=pl.BlockSpec((N, C), lambda i: (0, 0)),
    )(xr)


# ----------------------------------------------------------------------------
# Deterministic synthetic parameters for a ResNet-18 trunk
# ----------------------------------------------------------------------------
def _conv_bn_params(key, kh, kw, cin, cout):
    k1, k2, k3, k4, k5 = jax.random.split(key, 5)
    fan_in = kh * kw * cin
    w = jax.random.normal(k1, (kh, kw, cin, cout), jnp.float32) * (2.0 / fan_in) ** 0.5
    gamma = 1.0 + 0.02 * jax.random.normal(k2, (cout,), jnp.float32)
    beta = 0.02 * jax.random.normal(k3, (cout,), jnp.float32)
    rmean = 0.1 * jax.random.normal(k4, (cout,), jnp.float32)
    rvar = 1.0 + 0.1 * jax.random.uniform(k5, (cout,), jnp.float32)
    eps = 1e-5
    scale = gamma / jnp.sqrt(rvar + eps)
    bias = beta - rmean * scale
    return {"w": w.reshape(kh * kw * cin, cout).astype(jnp.bfloat16),
            "scale": scale, "bias": bias}


def make_resnet18_params(key):
    keys = iter(jax.random.split(key, 64))
    params = {"conv1": _conv_bn_params(next(keys), 7, 7, 3, 64)}
    layers = []
    cin = 64
    for cout, nblocks, stride1 in [(64, 2, 1), (128, 2, 2), (256, 2, 2), (512, 2, 2)]:
        layer = []
        for b in range(nblocks):
            stride = stride1 if b == 0 else 1
            blk = {
                "conv1": _conv_bn_params(next(keys), 3, 3, cin, cout),
                "conv2": _conv_bn_params(next(keys), 3, 3, cout, cout),
                "down": None,
            }
            if stride != 1 or cin != cout:
                blk["down"] = _conv_bn_params(next(keys), 1, 1, cin, cout)
            layer.append(blk)
            cin = cout
        layers.append(layer)
    params["layers"] = layers
    return params


# ----------------------------------------------------------------------------
# Forward pass (mirrors ResNet.forward: trunk up to avgpool, then global pool)
# ----------------------------------------------------------------------------
@jax.jit
def resnet_forward(x_nchw, params):
    x = jnp.transpose(x_nchw, (0, 2, 3, 1))  # NCHW (PyTorch) -> NHWC (kernel)

    p = params["conv1"]
    x = conv_bn(x, p["w"], p["scale"], p["bias"], 7, 7, 2, 3, relu=True)
    x = maxpool(x, k=3, stride=2, pad=1)

    for li, layer in enumerate(params["layers"]):
        for bi, blk in enumerate(layer):
            stride = 2 if (li > 0 and bi == 0) else 1
            identity = x
            if blk["down"] is not None:
                d = blk["down"]
                identity = conv_bn(x, d["w"], d["scale"], d["bias"],
                                   1, 1, stride, 0, relu=False)
            p1 = blk["conv1"]
            out = conv_bn(x, p1["w"], p1["scale"], p1["bias"],
                          3, 3, stride, 1, relu=True)
            p2 = blk["conv2"]
            x = conv_bn(out, p2["w"], p2["scale"], p2["bias"],
                        3, 3, 1, 1, relu=True, residual=identity)

    # pool5 = F.avg_pool2d(x, x.size()[2:]); pool5 = pool5.view(N, -1)
    pool5 = global_avgpool(x)  # (N, 512)
    return pool5


if __name__ == "__main__":
    key = jax.random.PRNGKey(0)
    kx, kp = jax.random.split(key)
    # Small input consistent with the module: NCHW RGB images.
    x = jax.random.normal(kx, (2, 3, 64, 64), jnp.float32)
    params = make_resnet18_params(kp)

    out = resnet_forward(x, params)
    out = jax.block_until_ready(out)

    assert out.shape == (2, 512), out.shape
    assert out.dtype == jnp.float32
    assert bool(jnp.all(jnp.isfinite(out)))
    print("KERNEL_OK")
</pallas_src>

<mosaic_0001>
module attributes {stable_mosaic.version = 11 : i64} {
  func.func @_mm_bn_kernel(%arg0: i32, %arg1: i32, %arg2: i32, %arg3: memref<256x256xbf16, #tpu.memory_space<vmem>>, %arg4: memref<256x64xbf16, #tpu.memory_space<vmem>>, %arg5: memref<1x64xf32, #tpu.memory_space<vmem>>, %arg6: memref<1x64xf32, #tpu.memory_space<vmem>>, %arg7: memref<256x64xf32, #tpu.memory_space<vmem>>, %arg8: memref<256x64xf32, #tpu.memory_space<vmem>>) attributes {dimension_semantics = [#tpu.dimension_semantics<parallel>, #tpu.dimension_semantics<parallel>, #tpu.dimension_semantics<arbitrary>], iteration_bounds = array<i64: 8, 1, 1>, scalar_prefetch = 0 : i64, scratch_operands = 1 : i64, tpu.core_type = #tpu.core_type<tc>, window_params = [{transform_indices = @transform_0, window_bounds = array<i64: 256, 256>}, {transform_indices = @transform_1, window_bounds = array<i64: 256, 64>}, {transform_indices = @transform_2, window_bounds = array<i64: 1, 64>}, {transform_indices = @transform_3, window_bounds = array<i64: 1, 64>}, {transform_indices = @transform_4, window_bounds = array<i64: 256, 64>}]} {
    %c0_i32 = arith.constant 0 : i32
    %0 = arith.cmpi eq, %arg2, %c0_i32 : i32
    %1 = arith.extui %0 : i1 to i32
    %c0_i32_0 = arith.constant 0 : i32
    %2 = arith.cmpi ne, %1, %c0_i32_0 : i32
    scf.if %2 {
      %cst_10 = arith.constant 0.000000e+00 : f32
      %12 = vector.broadcast %cst_10 : f32 to vector<256x64xf32>
      %c0_11 = arith.constant 0 : index
      %c0_12 = arith.constant 0 : index
      %13 = vector.load %arg8[%c0_11, %c0_12] : memref<256x64xf32, #tpu.memory_space<vmem>>, vector<256x64xf32>
      tpu.vector_store %arg8[%c0_11, %c0_12], %12 {strides = array<i32>} : memref<256x64xf32, #tpu.memory_space<vmem>>, vector<256x64xf32>,
    } else {
    }
    %c0 = arith.constant 0 : index
    %c0_1 = arith.constant 0 : index
    %3 = vector.load %arg8[%c0, %c0_1] : memref<256x64xf32, #tpu.memory_space<vmem>>, vector<256x64xf32>
    %c0_2 = arith.constant 0 : index
    %c0_3 = arith.constant 0 : index
    %4 = vector.load %arg3[%c0_2, %c0_3] : memref<256x256xbf16, #tpu.memory_space<vmem>>, vector<256x256xbf16>
    %c0_4 = arith.constant 0 : index
    %c0_5 = arith.constant 0 : index
    %5 = vector.load %arg4[%c0_4, %c0_5] : memref<256x64xbf16, #tpu.memory_space<vmem>>, vector<256x64xbf16>
    %cst = arith.constant dense<0.000000e+00> : vector<256x64xf32>
    %6 = tpu.matmul %4, %5, %cst {dimension_numbers = #tpu.dot_dimension_numbers<[1], [0], [0], [1], [0, 0, 1, 1], [], []>} : vector<256x256xbf16>, vector<256x64xbf16>, vector<256x64xf32> -> vector<256x64xf32>
    %7 = arith.addf %3, %6 : vector<256x64xf32>
    %c0_6 = arith.constant 0 : index
    %c0_7 = arith.constant 0 : index
    %8 = vector.load %arg8[%c0_6, %c0_7] : memref<256x64xf32, #tpu.memory_space<vmem>>, vector<256x64xf32>
    tpu.vector_store %arg8[%c0_6, %c0_7], %7 {strides = array<i32>} : memref<256x64xf32, #tpu.memory_space<vmem>>, vector<256x64xf32>,
    %c0_i32_8 = arith.constant 0 : i32
    %9 = arith.cmpi eq, %arg2, %c0_i32_8 : i32
    %10 = arith.extui %9 : i1 to i32
    %c0_i32_9 = arith.constant 0 : i32
    %11 = arith.cmpi ne, %10, %c0_i32_9 : i32
    scf.if %11 {
      %c0_10 = arith.constant 0 : index
      %c0_11 = arith.constant 0 : index
      %12 = vector.load %arg8[%c0_10, %c0_11] : memref<256x64xf32, #tpu.memory_space<vmem>>, vector<256x64xf32>
      %c0_12 = arith.constant 0 : index
      %c0_13 = arith.constant 0 : index
      %13 = vector.load %arg5[%c0_12, %c0_13] : memref<1x64xf32, #tpu.memory_space<vmem>>, vector<1x64xf32>
      %14 = vector.broadcast %13 : vector<1x64xf32> to vector<256x64xf32>
      %15 = arith.mulf %12, %14 : vector<256x64xf32>
      %c0_14 = arith.constant 0 : index
      %c0_15 = arith.constant 0 : index
      %16 = vector.load %arg6[%c0_14, %c0_15] : memref<1x64xf32, #tpu.memory_space<vmem>>, vector<1x64xf32>
      %17 = vector.broadcast %16 : vector<1x64xf32> to vector<256x64xf32>
      %18 = arith.addf %15, %17 : vector<256x64xf32>
      %cst_16 = arith.constant 0.000000e+00 : f32
      %19 = vector.broadcast %cst_16 : f32 to vector<256x64xf32>
      %20 = arith.maximumf %18, %19 : vector<256x64xf32>
      %c0_17 = arith.constant 0 : index
      %c0_18 = arith.constant 0 : index
      %21 = vector.load %arg7[%c0_17, %c0_18] : memref<256x64xf32, #tpu.memory_space<vmem>>, vector<256x64xf32>
      tpu.vector_store %arg7[%c0_17, %c0_18], %20 {strides = array<i32>} : memref<256x64xf32, #tpu.memory_space<vmem>>, vector<256x64xf32>,
    } else {
    }
    return
  }
  func.func @transform_0(%arg0: i32, %arg1: i32, %arg2: i32) -> (i32, i32) {
    %c0_i32 = arith.constant 0 : i32
    return %arg0, %arg2 : i32, i32
  }
  func.func @transform_1(%arg0: i32, %arg1: i32, %arg2: i32) -> (i32, i32) {
    %c0_i32 = arith.constant 0 : i32
    return %arg2, %arg1 : i32, i32
  }
  func.func @transform_2(%arg0: i32, %arg1: i32, %arg2: i32) -> (i32, i32) {
    %c0_i32 = arith.constant 0 : i32
    %c0_i32_0 = arith.constant 0 : i32
    return %c0_i32, %arg1 : i32, i32
  }
  func.func @transform_3(%arg0: i32, %arg1: i32, %arg2: i32) -> (i32, i32) {
    %c0_i32 = arith.constant 0 : i32
    %c0_i32_0 = arith.constant 0 : i32
    return %c0_i32, %arg1 : i32, i32
  }
  func.func @transform_4(%arg0: i32, %arg1: i32, %arg2: i32) -> (i32, i32) {
    %c0_i32 = arith.constant 0 : i32
    return %arg0, %arg1 : i32, i32
  }
}

module attributes {stable_mosaic.version = 11 : i64} {
  func.func @_mm_bn_kernel(%arg0: i32, %arg1: i32, %arg2: i32, %arg3: memref<256x128xbf16, #tpu.memory_space<vmem>>, %arg4: memref<128x64xbf16, #tpu.memory_space<vmem>>, %arg5: memref<1x64xf32, #tpu.memory_space<vmem>>, %arg6: memref<1x64xf32, #tpu.memory_space<vmem>>, %arg7: memref<256x64xf32, #tpu.memory_space<vmem>>, %arg8: memref<256x64xf32, #tpu.memory_space<vmem>>) attributes {dimension_semantics = [#tpu.dimension_semantics<parallel>, #tpu.dimension_semantics<parallel>, #tpu.dimension_semantics<arbitrary>], iteration_bounds = array<i64: 2, 1, 5>, scalar_prefetch = 0 : i64, scratch_operands = 1 : i64, tpu.core_type = #tpu.core_type<tc>, window_params = [{transform_indices = @transform_0, window_bounds = array<i64: 256, 128>}, {transform_indices = @transform_1, window_bounds = array<i64: 128, 64>}, {transform_indices = @transform_2, window_bounds = array<i64: 1, 64>}, {transform_indices = @transform_3, window_bounds = array<i64: 1, 64>}, {transform_indices = @transform_4, window_bounds = array<i64: 256, 64>}]} {
    %c0_i32 = arith.constant 0 : i32
    %0 = arith.cmpi eq, %arg2, %c0_i32 : i32
    %1 = arith.extui %0 : i1 to i32
    %c0_i32_0 = arith.constant 0 : i32
    %2 = arith.cmpi ne, %1, %c0_i32_0 : i32
    scf.if %2 {
      %cst_9 = arith.constant 0.000000e+00 : f32
      %12 = vector.broadcast %cst_9 : f32 to vector<256x64xf32>
      %c0_10 = arith.constant 0 : index
      %c0_11 = arith.constant 0 : index
      %13 = vector.load %arg8[%c0_10, %c0_11] : memref<256x64xf32, #tpu.memory_space<vmem>>, vector<256x64xf32>
      tpu.vector_store %arg8[%c0_10, %c0_11], %12 {strides = array<i32>} : memref<256x64xf32, #tpu.memory_space<vmem>>, vector<256x64xf32>,
    } else {
    }
    %c0 = arith.constant 0 : index
    %c0_1 = arith.constant 0 : index
    %3 = vector.load %arg8[%c0, %c0_1] : memref<256x64xf32, #tpu.memory_space<vmem>>, vector<256x64xf32>
    %c0_2 = arith.constant 0 : index
    %c0_3 = arith.constant 0 : index
    %4 = vector.load %arg3[%c0_2, %c0_3] : memref<256x128xbf16, #tpu.memory_space<vmem>>, vector<256x128xbf16>
    %c0_4 = arith.constant 0 : index
    %c0_5 = arith.constant 0 : index
    %5 = vector.load %arg4[%c0_4, %c0_5] : memref<128x64xbf16, #tpu.memory_space<vmem>>, vector<128x64xbf16>
    %cst = arith.constant dense<0.000000e+00> : vector<256x64xf32>
    %6 = tpu.matmul %4, %5, %cst {dimension_numbers = #tpu.dot_dimension_numbers<[1], [0], [0], [1], [0, 0, 1, 1], [], []>} : vector<256x128xbf16>, vector<128x64xbf16>, vector<256x64xf32> -> vector<256x64xf32>
    %7 = arith.addf %3, %6 : vector<256x64xf32>
    %c0_6 = arith.constant 0 : index
    %c0_7 = arith.constant 0 : index
    %8 = vector.load %arg8[%c0_6, %c0_7] : memref<256x64xf32, #tpu.memory_space<vmem>>, vector<256x64xf32>
    tpu.vector_store %arg8[%c0_6, %c0_7], %7 {strides = array<i32>} : memref<256x64xf32, #tpu.memory_space<vmem>>, vector<256x64xf32>,
    %c4_i32 = arith.constant 4 : i32
    %9 = arith.cmpi eq, %arg2, %c4_i32 : i32
    %10 = arith.extui %9 : i1 to i32
    %c0_i32_8 = arith.constant 0 : i32
    %11 = arith.cmpi ne, %10, %c0_i32_8 : i32
    scf.if %11 {
      %c0_9 = arith.constant 0 : index
      %c0_10 = arith.constant 0 : index
      %12 = vector.load %arg8[%c0_9, %c0_10] : memref<256x64xf32, #tpu.memory_space<vmem>>, vector<256x64xf32>
      %c0_11 = arith.constant 0 : index
      %c0_12 = arith.constant 0 : index
      %13 = vector.load %arg5[%c0_11, %c0_12] : memref<1x64xf32, #tpu.memory_space<vmem>>, vector<1x64xf32>
      %14 = vector.broadcast %13 : vector<1x64xf32> to vector<256x64xf32>
      %15 = arith.mulf %12, %14 : vector<256x64xf32>
      %c0_13 = arith.constant 0 : index
      %c0_14 = arith.constant 0 : index
      %16 = vector.load %arg6[%c0_13, %c0_14] : memref<1x64xf32, #tpu.memory_space<vmem>>, vector<1x64xf32>
      %17 = vector.broadcast %16 : vector<1x64xf32> to vector<256x64xf32>
      %18 = arith.addf %15, %17 : vector<256x64xf32>
      %cst_15 = arith.constant 0.000000e+00 : f32
      %19 = vector.broadcast %cst_15 : f32 to vector<256x64xf32>
      %20 = arith.maximumf %18, %19 : vector<256x64xf32>
      %c0_16 = arith.constant 0 : index
      %c0_17 = arith.constant 0 : index
      %21 = vector.load %arg7[%c0_16, %c0_17] : memref<256x64xf32, #tpu.memory_space<vmem>>, vector<256x64xf32>
      tpu.vector_store %arg7[%c0_16, %c0_17], %20 {strides = array<i32>} : memref<256x64xf32, #tpu.memory_space<vmem>>, vector<256x64xf32>,
    } else {
    }
    return
  }
  func.func @transform_0(%arg0: i32, %arg1: i32, %arg2: i32) -> (i32, i32) {
    %c0_i32 = arith.constant 0 : i32
    return %arg0, %arg2 : i32, i32
  }
  func.func @transform_1(%arg0: i32, %arg1: i32, %arg2: i32) -> (i32, i32) {
    %c0_i32 = arith.constant 0 : i32
    return %arg2, %arg1 : i32, i32
  }
  func.func @transform_2(%arg0: i32, %arg1: i32, %arg2: i32) -> (i32, i32) {
    %c0_i32 = arith.constant 0 : i32
    %c0_i32_0 = arith.constant 0 : i32
    return %c0_i32, %arg1 : i32, i32
  }
  func.func @transform_3(%arg0: i32, %arg1: i32, %arg2: i32) -> (i32, i32) {
    %c0_i32 = arith.constant 0 : i32
    %c0_i32_0 = arith.constant 0 : i32
    return %c0_i32, %arg1 : i32, i32
  }
  func.func @transform_4(%arg0: i32, %arg1: i32, %arg2: i32) -> (i32, i32) {
    %c0_i32 = arith.constant 0 : i32
    return %arg0, %arg1 : i32, i32
  }
}

module attributes {stable_mosaic.version = 11 : i64} {
  func.func @_mm_bn_res_kernel(%arg0: i32, %arg1: i32, %arg2: i32, %arg3: memref<256x128xbf16, #tpu.memory_space<vmem>>, %arg4: memref<128x64xbf16, #tpu.memory_space<vmem>>, %arg5: memref<1x64xf32, #tpu.memory_space<vmem>>, %arg6: memref<1x64xf32, #tpu.memory_space<vmem>>, %arg7: memref<256x64xf32, #tpu.memory_space<vmem>>, %arg8: memref<256x64xf32, #tpu.memory_space<vmem>>, %arg9: memref<256x64xf32, #tpu.memory_space<vmem>>) attributes {dimension_semantics = [#tpu.dimension_semantics<parallel>, #tpu.dimension_semantics<parallel>, #tpu.dimension_semantics<arbitrary>], iteration_bounds = array<i64: 2, 1, 5>, scalar_prefetch = 0 : i64, scratch_operands = 1 : i64, tpu.core_type = #tpu.core_type<tc>, window_params = [{transform_indices = @transform_0, window_bounds = array<i64: 256, 128>}, {transform_indices = @transform_1, window_bounds = array<i64: 128, 64>}, {transform_indices = @transform_2, window_bounds = array<i64: 1, 64>}, {transform_indices = @transform_3, window_bounds = array<i64: 1, 64>}, {transform_indices = @transform_4, window_bounds = array<i64: 256, 64>}, {transform_indices = @transform_5, window_bounds = array<i64: 256, 64>}]} {
    %c0_i32 = arith.constant 0 : i32
    %0 = arith.cmpi eq, %arg2, %c0_i32 : i32
    %1 = arith.extui %0 : i1 to i32
    %c0_i32_0 = arith.constant 0 : i32
    %2 = arith.cmpi ne, %1, %c0_i32_0 : i32
    scf.if %2 {
      %cst_9 = arith.constant 0.000000e+00 : f32
      %12 = vector.broadcast %cst_9 : f32 to vector<256x64xf32>
      %c0_10 = arith.constant 0 : index
      %c0_11 = arith.constant 0 : index
      %13 = vector.load %arg9[%c0_10, %c0_11] : memref<256x64xf32, #tpu.memory_space<vmem>>, vector<256x64xf32>
      tpu.vector_store %arg9[%c0_10, %c0_11], %12 {strides = array<i32>} : memref<256x64xf32, #tpu.memory_space<vmem>>, vector<256x64xf32>,
    } else {
    }
    %c0 = arith.constant 0 : index
    %c0_1 = arith.constant 0 : index
    %3 = vector.load %arg9[%c0, %c0_1] : memref<256x64xf32, #tpu.memory_space<vmem>>, vector<256x64xf32>
    %c0_2 = arith.constant 0 : index
    %c0_3 = arith.constant 0 : index
    %4 = vector.load %arg3[%c0_2, %c0_3] : memref<256x128xbf16, #tpu.memory_space<vmem>>, vector<256x128xbf16>
    %c0_4 = arith.constant 0 : index
    %c0_5 = arith.constant 0 : index
    %5 = vector.load %arg4[%c0_4, %c0_5] : memref<128x64xbf16, #tpu.memory_space<vmem>>, vector<128x64xbf16>
    %cst = arith.constant dense<0.000000e+00> : vector<256x64xf32>
    %6 = tpu.matmul %4, %5, %cst {dimension_numbers = #tpu.dot_dimension_numbers<[1], [0], [0], [1], [0, 0, 1, 1], [], []>} : vector<256x128xbf16>, vector<128x64xbf16>, vector<256x64xf32> -> vector<256x64xf32>
    %7 = arith.addf %3, %6 : vector<256x64xf32>
    %c0_6 = arith.constant 0 : index
    %c0_7 = arith.constant 0 : index
    %8 = vector.load %arg9[%c0_6, %c0_7] : memref<256x64xf32, #tpu.memory_space<vmem>>, vector<256x64xf32>
    tpu.vector_store %arg9[%c0_6, %c0_7], %7 {strides = array<i32>} : memref<256x64xf32, #tpu.memory_space<vmem>>, vector<256x64xf32>,
    %c4_i32 = arith.constant 4 : i32
    %9 = arith.cmpi eq, %arg2, %c4_i32 : i32
    %10 = arith.extui %9 : i1 to i32
    %c0_i32_8 = arith.constant 0 : i32
    %11 = arith.cmpi ne, %10, %c0_i32_8 : i32
    scf.if %11 {
      %c0_9 = arith.constant 0 : index
      %c0_10 = arith.constant 0 : index
      %12 = vector.load %arg9[%c0_9, %c0_10] : memref<256x64xf32, #tpu.memory_space<vmem>>, vector<256x64xf32>
      %c0_11 = arith.constant 0 : index
      %c0_12 = arith.constant 0 : index
      %13 = vector.load %arg5[%c0_11, %c0_12] : memref<1x64xf32, #tpu.memory_space<vmem>>, vector<1x64xf32>
      %14 = vector.broadcast %13 : vector<1x64xf32> to vector<256x64xf32>
      %15 = arith.mulf %12, %14 : vector<256x64xf32>
      %c0_13 = arith.constant 0 : index
      %c0_14 = arith.constant 0 : index
      %16 = vector.load %arg6[%c0_13, %c0_14] : memref<1x64xf32, #tpu.memory_space<vmem>>, vector<1x64xf32>
      %17 = vector.broadcast %16 : vector<1x64xf32> to vector<256x64xf32>
      %18 = arith.addf %15, %17 : vector<256x64xf32>
      %c0_15 = arith.constant 0 : index
      %c0_16 = arith.constant 0 : index
      %19 = vector.load %arg7[%c0_15, %c0_16] : memref<256x64xf32, #tpu.memory_space<vmem>>, vector<256x64xf32>
      %20 = arith.addf %18, %19 : vector<256x64xf32>
      %cst_17 = arith.constant 0.000000e+00 : f32
      %21 = vector.broadcast %cst_17 : f32 to vector<256x64xf32>
      %22 = arith.maximumf %20, %21 : vector<256x64xf32>
      %c0_18 = arith.constant 0 : index
      %c0_19 = arith.constant 0 : index
      %23 = vector.load %arg8[%c0_18, %c0_19] : memref<256x64xf32, #tpu.memory_space<vmem>>, vector<256x64xf32>
      tpu.vector_store %arg8[%c0_18, %c0_19], %22 {strides = array<i32>} : memref<256x64xf32, #tpu.memory_space<vmem>>, vector<256x64xf32>,
    } else {
    }
    return
  }
  func.func @transform_0(%arg0: i32, %arg1: i32, %arg2: i32) -> (i32, i32) {
    %c0_i32 = arith.constant 0 : i32
    return %arg0, %arg2 : i32, i32
  }
  func.func @transform_1(%arg0: i32, %arg1: i32, %arg2: i32) -> (i32, i32) {
    %c0_i32 = arith.constant 0 : i32
    return %arg2, %arg1 : i32, i32
  }
  func.func @transform_2(%arg0: i32, %arg1: i32, %arg2: i32) -> (i32, i32) {
    %c0_i32 = arith.constant 0 : i32
    %c0_i32_0 = arith.constant 0 : i32
    return %c0_i32, %arg1 : i32, i32
  }
  func.func @transform_3(%arg0: i32, %arg1: i32, %arg2: i32) -> (i32, i32) {
    %c0_i32 = arith.constant 0 : i32
    %c0_i32_0 = arith.constant 0 : i32
    return %c0_i32, %arg1 : i32, i32
  }
  func.func @transform_4(%arg0: i32, %arg1: i32, %arg2: i32) -> (i32, i32) {
    %c0_i32 = arith.constant 0 : i32
    return %arg0, %arg1 : i32, i32
  }
  func.func @transform_5(%arg0: i32, %arg1: i32, %arg2: i32) -> (i32, i32) {
    %c0_i32 = arith.constant 0 : i32
    return %arg0, %arg1 : i32, i32
  }
}

module attributes {stable_mosaic.version = 11 : i64} {
  func.func @_mm_bn_kernel(%arg0: i32, %arg1: i32, %arg2: i32, %arg3: memref<128x128xbf16, #tpu.memory_space<vmem>>, %arg4: memref<128x128xbf16, #tpu.memory_space<vmem>>, %arg5: memref<1x128xf32, #tpu.memory_space<vmem>>, %arg6: memref<1x128xf32, #tpu.memory_space<vmem>>, %arg7: memref<128x128xf32, #tpu.memory_space<vmem>>, %arg8: memref<128x128xf32, #tpu.memory_space<vmem>>) attributes {dimension_semantics = [#tpu.dimension_semantics<parallel>, #tpu.dimension_semantics<parallel>, #tpu.dimension_semantics<arbitrary>], iteration_bounds = array<i64: 1, 1, 5>, scalar_prefetch = 0 : i64, scratch_operands = 1 : i64, tpu.core_type = #tpu.core_type<tc>, window_params = [{transform_indices = @transform_0, window_bounds = array<i64: 128, 128>}, {transform_indices = @transform_1, window_bounds = array<i64: 128, 128>}, {transform_indices = @transform_2, window_bounds = array<i64: 1, 128>}, {transform_indices = @transform_3, window_bounds = array<i64: 1, 128>}, {transform_indices = @transform_4, window_bounds = array<i64: 128, 128>}]} {
    %c0_i32 = arith.constant 0 : i32
    %0 = arith.cmpi eq, %arg2, %c0_i32 : i32
    %1 = arith.extui %0 : i1 to i32
    %c0_i32_0 = arith.constant 0 : i32
    %2 = arith.cmpi ne, %1, %c0_i32_0 : i32
    scf.if %2 {
      %cst_9 = arith.constant 0.000000e+00 : f32
      %12 = vector.broadcast %cst_9 : f32 to vector<128x128xf32>
      %c0_10 = arith.constant 0 : index
      %c0_11 = arith.constant 0 : index
      %13 = vector.load %arg8[%c0_10, %c0_11] : memref<128x128xf32, #tpu.memory_space<vmem>>, vector<128x128xf32>
      tpu.vector_store %arg8[%c0_10, %c0_11], %12 {strides = array<i32>} : memref<128x128xf32, #tpu.memory_space<vmem>>, vector<128x128xf32>,
    } else {
    }
    %c0 = arith.constant 0 : index
    %c0_1 = arith.constant 0 : index
    %3 = vector.load %arg8[%c0, %c0_1] : memref<128x128xf32, #tpu.memory_space<vmem>>, vector<128x128xf32>
    %c0_2 = arith.constant 0 : index
    %c0_3 = arith.constant 0 : index
    %4 = vector.load %arg3[%c0_2, %c0_3] : memref<128x128xbf16, #tpu.memory_space<vmem>>, vector<128x128xbf16>
    %c0_4 = arith.constant 0 : index
    %c0_5 = arith.constant 0 : index
    %5 = vector.load %arg4[%c0_4, %c0_5] : memref<128x128xbf16, #tpu.memory_space<vmem>>, vector<128x128xbf16>
    %cst = arith.constant dense<0.000000e+00> : vector<128x128xf32>
    %6 = tpu.matmul %4, %5, %cst {dimension_numbers = #tpu.dot_dimension_numbers<[1], [0], [0], [1], [0, 0, 1, 1], [], []>} : vector<128x128xbf16>, vector<128x128xbf16>, vector<128x128xf32> -> vector<128x128xf32>
    %7 = arith.addf %3, %6 : vector<128x128xf32>
    %c0_6 = arith.constant 0 : index
    %c0_7 = arith.constant 0 : index
    %8 = vector.load %arg8[%c0_6, %c0_7] : memref<128x128xf32, #tpu.memory_space<vmem>>, vector<128x128xf32>
    tpu.vector_store %arg8[%c0_6, %c0_7], %7 {strides = array<i32>} : memref<128x128xf32, #tpu.memory_space<vmem>>, vector<128x128xf32>,
    %c4_i32 = arith.constant 4 : i32
    %9 = arith.cmpi eq, %arg2, %c4_i32 : i32
    %10 = arith.extui %9 : i1 to i32
    %c0_i32_8 = arith.constant 0 : i32
    %11 = arith.cmpi ne, %10, %c0_i32_8 : i32
    scf.if %11 {
      %c0_9 = arith.constant 0 : index
      %c0_10 = arith.constant 0 : index
      %12 = vector.load %arg8[%c0_9, %c0_10] : memref<128x128xf32, #tpu.memory_space<vmem>>, vector<128x128xf32>
      %c0_11 = arith.constant 0 : index
      %c0_12 = arith.constant 0 : index
      %13 = vector.load %arg5[%c0_11, %c0_12] : memref<1x128xf32, #tpu.memory_space<vmem>>, vector<1x128xf32>
      %14 = vector.broadcast %13 : vector<1x128xf32> to vector<128x128xf32>
      %15 = arith.mulf %12, %14 : vector<128x128xf32>
      %c0_13 = arith.constant 0 : index
      %c0_14 = arith.constant 0 : index
      %16 = vector.load %arg6[%c0_13, %c0_14] : memref<1x128xf32, #tpu.memory_space<vmem>>, vector<1x128xf32>
      %17 = vector.broadcast %16 : vector<1x128xf32> to vector<128x128xf32>
      %18 = arith.addf %15, %17 : vector<128x128xf32>
      %cst_15 = arith.constant 0.000000e+00 : f32
      %19 = vector.broadcast %cst_15 : f32 to vector<128x128xf32>
      %20 = arith.maximumf %18, %19 : vector<128x128xf32>
      %c0_16 = arith.constant 0 : index
      %c0_17 = arith.constant 0 : index
      %21 = vector.load %arg7[%c0_16, %c0_17] : memref<128x128xf32, #tpu.memory_space<vmem>>, vector<128x128xf32>
      tpu.vector_store %arg7[%c0_16, %c0_17], %20 {strides = array<i32>} : memref<128x128xf32, #tpu.memory_space<vmem>>, vector<128x128xf32>,
    } else {
    }
    return
  }
  func.func @transform_0(%arg0: i32, %arg1: i32, %arg2: i32) -> (i32, i32) {
    %c0_i32 = arith.constant 0 : i32
    return %arg0, %arg2 : i32, i32
  }
  func.func @transform_1(%arg0: i32, %arg1: i32, %arg2: i32) -> (i32, i32) {
    %c0_i32 = arith.constant 0 : i32
    return %arg2, %arg1 : i32, i32
  }
  func.func @transform_2(%arg0: i32, %arg1: i32, %arg2: i32) -> (i32, i32) {
    %c0_i32 = arith.constant 0 : i32
    %c0_i32_0 = arith.constant 0 : i32
    return %c0_i32, %arg1 : i32, i32
  }
  func.func @transform_3(%arg0: i32, %arg1: i32, %arg2: i32) -> (i32, i32) {
    %c0_i32 = arith.constant 0 : i32
    %c0_i32_0 = arith.constant 0 : i32
    return %c0_i32, %arg1 : i32, i32
  }
  func.func @transform_4(%arg0: i32, %arg1: i32, %arg2: i32) -> (i32, i32) {
    %c0_i32 = arith.constant 0 : i32
    return %arg0, %arg1 : i32, i32
  }
}

module attributes {stable_mosaic.version = 11 : i64} {
  func.func @_mm_bn_res_kernel(%arg0: i32, %arg1: i32, %arg2: i32, %arg3: memref<128x128xbf16, #tpu.memory_space<vmem>>, %arg4: memref<128x128xbf16, #tpu.memory_space<vmem>>, %arg5: memref<1x128xf32, #tpu.memory_space<vmem>>, %arg6: memref<1x128xf32, #tpu.memory_space<vmem>>, %arg7: memref<128x128xf32, #tpu.memory_space<vmem>>, %arg8: memref<128x128xf32, #tpu.memory_space<vmem>>, %arg9: memref<128x128xf32, #tpu.memory_space<vmem>>) attributes {dimension_semantics = [#tpu.dimension_semantics<parallel>, #tpu.dimension_semantics<parallel>, #tpu.dimension_semantics<arbitrary>], iteration_bounds = array<i64: 1, 1, 9>, scalar_prefetch = 0 : i64, scratch_operands = 1 : i64, tpu.core_type = #tpu.core_type<tc>, window_params = [{transform_indices = @transform_0, window_bounds = array<i64: 128, 128>}, {transform_indices = @transform_1, window_bounds = array<i64: 128, 128>}, {transform_indices = @transform_2, window_bounds = array<i64: 1, 128>}, {transform_indices = @transform_3, window_bounds = array<i64: 1, 128>}, {transform_indices = @transform_4, window_bounds = array<i64: 128, 128>}, {transform_indices = @transform_5, window_bounds = array<i64: 128, 128>}]} {
    %c0_i32 = arith.constant 0 : i32
    %0 = arith.cmpi eq, %arg2, %c0_i32 : i32
    %1 = arith.extui %0 : i1 to i32
    %c0_i32_0 = arith.constant 0 : i32
    %2 = arith.cmpi ne, %1, %c0_i32_0 : i32
    scf.if %2 {
      %cst_9 = arith.constant 0.000000e+00 : f32
      %12 = vector.broadcast %cst_9 : f32 to vector<128x128xf32>
      %c0_10 = arith.constant 0 : index
      %c0_11 = arith.constant 0 : index
      %13 = vector.load %arg9[%c0_10, %c0_11] : memref<128x128xf32, #tpu.memory_space<vmem>>, vector<128x128xf32>
      tpu.vector_store %arg9[%c0_10, %c0_11], %12 {strides = array<i32>} : memref<128x128xf32, #tpu.memory_space<vmem>>, vector<128x128xf32>,
    } else {
    }
    %c0 = arith.constant 0 : index
    %c0_1 = arith.constant 0 : index
    %3 = vector.load %arg9[%c0, %c0_1] : memref<128x128xf32, #tpu.memory_space<vmem>>, vector<128x128xf32>
    %c0_2 = arith.constant 0 : index
    %c0_3 = arith.constant 0 : index
    %4 = vector.load %arg3[%c0_2, %c0_3] : memref<128x128xbf16, #tpu.memory_space<vmem>>, vector<128x128xbf16>
    %c0_4 = arith.constant 0 : index
    %c0_5 = arith.constant 0 : index
    %5 = vector.load %arg4[%c0_4, %c0_5] : memref<128x128xbf16, #tpu.memory_space<vmem>>, vector<128x128xbf16>
    %cst = arith.constant dense<0.000000e+00> : vector<128x128xf32>
    %6 = tpu.matmul %4, %5, %cst {dimension_numbers = #tpu.dot_dimension_numbers<[1], [0], [0], [1], [0, 0, 1, 1], [], []>} : vector<128x128xbf16>, vector<128x128xbf16>, vector<128x128xf32> -> vector<128x128xf32>
    %7 = arith.addf %3, %6 : vector<128x128xf32>
    %c0_6 = arith.constant 0 : index
    %c0_7 = arith.constant 0 : index
    %8 = vector.load %arg9[%c0_6, %c0_7] : memref<128x128xf32, #tpu.memory_space<vmem>>, vector<128x128xf32>
    tpu.vector_store %arg9[%c0_6, %c0_7], %7 {strides = array<i32>} : memref<128x128xf32, #tpu.memory_space<vmem>>, vector<128x128xf32>,
    %c8_i32 = arith.constant 8 : i32
    %9 = arith.cmpi eq, %arg2, %c8_i32 : i32
    %10 = arith.extui %9 : i1 to i32
    %c0_i32_8 = arith.constant 0 : i32
    %11 = arith.cmpi ne, %10, %c0_i32_8 : i32
    scf.if %11 {
      %c0_9 = arith.constant 0 : index
      %c0_10 = arith.constant 0 : index
      %12 = vector.load %arg9[%c0_9, %c0_10] : memref<128x128xf32, #tpu.memory_space<vmem>>, vector<128x128xf32>
      %c0_11 = arith.constant 0 : index
      %c0_12 = arith.constant 0 : index
      %13 = vector.load %arg5[%c0_11, %c0_12] : memref<1x128xf32, #tpu.memory_space<vmem>>, vector<1x128xf32>
      %14 = vector.broadcast %13 : vector<1x128xf32> to vector<128x128xf32>
      %15 = arith.mulf %12, %14 : vector<128x128xf32>
      %c0_13 = arith.constant 0 : index
      %c0_14 = arith.constant 0 : index
      %16 = vector.load %arg6[%c0_13, %c0_14] : memref<1x128xf32, #tpu.memory_space<vmem>>, vector<1x128xf32>
      %17 = vector.broadcast %16 : vector<1x128xf32> to vector<128x128xf32>
      %18 = arith.addf %15, %17 : vector<128x128xf32>
      %c0_15 = arith.constant 0 : index
      %c0_16 = arith.constant 0 : index
      %19 = vector.load %arg7[%c0_15, %c0_16] : memref<128x128xf32, #tpu.memory_space<vmem>>, vector<128x128xf32>
      %20 = arith.addf %18, %19 : vector<128x128xf32>
      %cst_17 = arith.constant 0.000000e+00 : f32
      %21 = vector.broadcast %cst_17 : f32 to vector<128x128xf32>
      %22 = arith.maximumf %20, %21 : vector<128x128xf32>
      %c0_18 = arith.constant 0 : index
      %c0_19 = arith.constant 0 : index
      %23 = vector.load %arg8[%c0_18, %c0_19] : memref<128x128xf32, #tpu.memory_space<vmem>>, vector<128x128xf32>
      tpu.vector_store %arg8[%c0_18, %c0_19], %22 {strides = array<i32>} : memref<128x128xf32, #tpu.memory_space<vmem>>, vector<128x128xf32>,
    } else {
    }
    return
  }
  func.func @transform_0(%arg0: i32, %arg1: i32, %arg2: i32) -> (i32, i32) {
    %c0_i32 = arith.constant 0 : i32
    return %arg0, %arg2 : i32, i32
  }
  func.func @transform_1(%arg0: i32, %arg1: i32, %arg2: i32) -> (i32, i32) {
    %c0_i32 = arith.constant 0 : i32
    return %arg2, %arg1 : i32, i32
  }
  func.func @transform_2(%arg0: i32, %arg1: i32, %arg2: i32) -> (i32, i32) {
    %c0_i32 = arith.constant 0 : i32
    %c0_i32_0 = arith.constant 0 : i32
    return %c0_i32, %arg1 : i32, i32
  }
  func.func @transform_3(%arg0: i32, %arg1: i32, %arg2: i32) -> (i32, i32) {
    %c0_i32 = arith.constant 0 : i32
    %c0_i32_0 = arith.constant 0 : i32
    return %c0_i32, %arg1 : i32, i32
  }
  func.func @transform_4(%arg0: i32, %arg1: i32, %arg2: i32) -> (i32, i32) {
    %c0_i32 = arith.constant 0 : i32
    return %arg0, %arg1 : i32, i32
  }
  func.func @transform_5(%arg0: i32, %arg1: i32, %arg2: i32) -> (i32, i32) {
    %c0_i32 = arith.constant 0 : i32
    return %arg0, %arg1 : i32, i32
  }
}

module attributes {stable_mosaic.version = 11 : i64} {
  func.func @_mm_bn_kernel(%arg0: i32, %arg1: i32, %arg2: i32, %arg3: memref<128x128xbf16, #tpu.memory_space<vmem>>, %arg4: memref<128x128xbf16, #tpu.memory_space<vmem>>, %arg5: memref<1x128xf32, #tpu.memory_space<vmem>>, %arg6: memref<1x128xf32, #tpu.memory_space<vmem>>, %arg7: memref<128x128xf32, #tpu.memory_space<vmem>>, %arg8: memref<128x128xf32, #tpu.memory_space<vmem>>) attributes {dimension_semantics = [#tpu.dimension_semantics<parallel>, #tpu.dimension_semantics<parallel>, #tpu.dimension_semantics<arbitrary>], iteration_bounds = array<i64: 1, 1, 1>, scalar_prefetch = 0 : i64, scratch_operands = 1 : i64, tpu.core_type = #tpu.core_type<tc>, window_params = [{transform_indices = @transform_0, window_bounds = array<i64: 128, 128>}, {transform_indices = @transform_1, window_bounds = array<i64: 128, 128>}, {transform_indices = @transform_2, window_bounds = array<i64: 1, 128>}, {transform_indices = @transform_3, window_bounds = array<i64: 1, 128>}, {transform_indices = @transform_4, window_bounds = array<i64: 128, 128>}]} {
    %c0_i32 = arith.constant 0 : i32
    %0 = arith.cmpi eq, %arg2, %c0_i32 : i32
    %1 = arith.extui %0 : i1 to i32
    %c0_i32_0 = arith.constant 0 : i32
    %2 = arith.cmpi ne, %1, %c0_i32_0 : i32
    scf.if %2 {
      %cst_10 = arith.constant 0.000000e+00 : f32
      %12 = vector.broadcast %cst_10 : f32 to vector<128x128xf32>
      %c0_11 = arith.constant 0 : index
      %c0_12 = arith.constant 0 : index
      %13 = vector.load %arg8[%c0_11, %c0_12] : memref<128x128xf32, #tpu.memory_space<vmem>>, vector<128x128xf32>
      tpu.vector_store %arg8[%c0_11, %c0_12], %12 {strides = array<i32>} : memref<128x128xf32, #tpu.memory_space<vmem>>, vector<128x128xf32>,
    } else {
    }
    %c0 = arith.constant 0 : index
    %c0_1 = arith.constant 0 : index
    %3 = vector.load %arg8[%c0, %c0_1] : memref<128x128xf32, #tpu.memory_space<vmem>>, vector<128x128xf32>
    %c0_2 = arith.constant 0 : index
    %c0_3 = arith.constant 0 : index
    %4 = vector.load %arg3[%c0_2, %c0_3] : memref<128x128xbf16, #tpu.memory_space<vmem>>, vector<128x128xbf16>
    %c0_4 = arith.constant 0 : index
    %c0_5 = arith.constant 0 : index
    %5 = vector.load %arg4[%c0_4, %c0_5] : memref<128x128xbf16, #tpu.memory_space<vmem>>, vector<128x128xbf16>
    %cst = arith.constant dense<0.000000e+00> : vector<128x128xf32>
    %6 = tpu.matmul %4, %5, %cst {dimension_numbers = #tpu.dot_dimension_numbers<[1], [0], [0], [1], [0, 0, 1, 1], [], []>} : vector<128x128xbf16>, vector<128x128xbf16>, vector<128x128xf32> -> vector<128x128xf32>
    %7 = arith.addf %3, %6 : vector<128x128xf32>
    %c0_6 = arith.constant 0 : index
    %c0_7 = arith.constant 0 : index
    %8 = vector.load %arg8[%c0_6, %c0_7] : memref<128x128xf32, #tpu.memory_space<vmem>>, vector<128x128xf32>
    tpu.vector_store %arg8[%c0_6, %c0_7], %7 {strides = array<i32>} : memref<128x128xf32, #tpu.memory_space<vmem>>, vector<128x128xf32>,
    %c0_i32_8 = arith.constant 0 : i32
    %9 = arith.cmpi eq, %arg2, %c0_i32_8 : i32
    %10 = arith.extui %9 : i1 to i32
    %c0_i32_9 = arith.constant 0 : i32
    %11 = arith.cmpi ne, %10, %c0_i32_9 : i32
    scf.if %11 {
      %c0_10 = arith.constant 0 : index
      %c0_11 = arith.constant 0 : index
      %12 = vector.load %arg8[%c0_10, %c0_11] : memref<128x128xf32, #tpu.memory_space<vmem>>, vector<128x128xf32>
      %c0_12 = arith.constant 0 : index
      %c0_13 = arith.constant 0 : index
      %13 = vector.load %arg5[%c0_12, %c0_13] : memref<1x128xf32, #tpu.memory_space<vmem>>, vector<1x128xf32>
      %14 = vector.broadcast %13 : vector<1x128xf32> to vector<128x128xf32>
      %15 = arith.mulf %12, %14 : vector<128x128xf32>
      %c0_14 = arith.constant 0 : index
      %c0_15 = arith.constant 0 : index
      %16 = vector.load %arg6[%c0_14, %c0_15] : memref<1x128xf32, #tpu.memory_space<vmem>>, vector<1x128xf32>
      %17 = vector.broadcast %16 : vector<1x128xf32> to vector<128x128xf32>
      %18 = arith.addf %15, %17 : vector<128x128xf32>
      %c0_16 = arith.constant 0 : index
      %c0_17 = arith.constant 0 : index
      %19 = vector.load %arg7[%c0_16, %c0_17] : memref<128x128xf32, #tpu.memory_space<vmem>>, vector<128x128xf32>
      tpu.vector_store %arg7[%c0_16, %c0_17], %18 {strides = array<i32>} : memref<128x128xf32, #tpu.memory_space<vmem>>, vector<128x128xf32>,
    } else {
    }
    return
  }
  func.func @transform_0(%arg0: i32, %arg1: i32, %arg2: i32) -> (i32, i32) {
    %c0_i32 = arith.constant 0 : i32
    return %arg0, %arg2 : i32, i32
  }
  func.func @transform_1(%arg0: i32, %arg1: i32, %arg2: i32) -> (i32, i32) {
    %c0_i32 = arith.constant 0 : i32
    return %arg2, %arg1 : i32, i32
  }
  func.func @transform_2(%arg0: i32, %arg1: i32, %arg2: i32) -> (i32, i32) {
    %c0_i32 = arith.constant 0 : i32
    %c0_i32_0 = arith.constant 0 : i32
    return %c0_i32, %arg1 : i32, i32
  }
  func.func @transform_3(%arg0: i32, %arg1: i32, %arg2: i32) -> (i32, i32) {
    %c0_i32 = arith.constant 0 : i32
    %c0_i32_0 = arith.constant 0 : i32
    return %c0_i32, %arg1 : i32, i32
  }
  func.func @transform_4(%arg0: i32, %arg1: i32, %arg2: i32) -> (i32, i32) {
    %c0_i32 = arith.constant 0 : i32
    return %arg0, %arg1 : i32, i32
  }
}

module attributes {stable_mosaic.version = 11 : i64} {
  func.func @_mm_bn_kernel(%arg0: i32, %arg1: i32, %arg2: i32, %arg3: memref<128x128xbf16, #tpu.memory_space<vmem>>, %arg4: memref<128x128xbf16, #tpu.memory_space<vmem>>, %arg5: memref<1x128xf32, #tpu.memory_space<vmem>>, %arg6: memref<1x128xf32, #tpu.memory_space<vmem>>, %arg7: memref<128x128xf32, #tpu.memory_space<vmem>>, %arg8: memref<128x128xf32, #tpu.memory_space<vmem>>) attributes {dimension_semantics = [#tpu.dimension_semantics<parallel>, #tpu.dimension_semantics<parallel>, #tpu.dimension_semantics<arbitrary>], iteration_bounds = array<i64: 1, 1, 9>, scalar_prefetch = 0 : i64, scratch_operands = 1 : i64, tpu.core_type = #tpu.core_type<tc>, window_params = [{transform_indices = @transform_0, window_bounds = array<i64: 128, 128>}, {transform_indices = @transform_1, window_bounds = array<i64: 128, 128>}, {transform_indices = @transform_2, window_bounds = array<i64: 1, 128>}, {transform_indices = @transform_3, window_bounds = array<i64: 1, 128>}, {transform_indices = @transform_4, window_bounds = array<i64: 128, 128>}]} {
    %c0_i32 = arith.constant 0 : i32
    %0 = arith.cmpi eq, %arg2, %c0_i32 : i32
    %1 = arith.extui %0 : i1 to i32
    %c0_i32_0 = arith.constant 0 : i32
    %2 = arith.cmpi ne, %1, %c0_i32_0 : i32
    scf.if %2 {
      %cst_9 = arith.constant 0.000000e+00 : f32
      %12 = vector.broadcast %cst_9 : f32 to vector<128x128xf32>
      %c0_10 = arith.constant 0 : index
      %c0_11 = arith.constant 0 : index
      %13 = vector.load %arg8[%c0_10, %c0_11] : memref<128x128xf32, #tpu.memory_space<vmem>>, vector<128x128xf32>
      tpu.vector_store %arg8[%c0_10, %c0_11], %12 {strides = array<i32>} : memref<128x128xf32, #tpu.memory_space<vmem>>, vector<128x128xf32>,
    } else {
    }
    %c0 = arith.constant 0 : index
    %c0_1 = arith.constant 0 : index
    %3 = vector.load %arg8[%c0, %c0_1] : memref<128x128xf32, #tpu.memory_space<vmem>>, vector<128x128xf32>
    %c0_2 = arith.constant 0 : index
    %c0_3 = arith.constant 0 : index
    %4 = vector.load %arg3[%c0_2, %c0_3] : memref<128x128xbf16, #tpu.memory_space<vmem>>, vector<128x128xbf16>
    %c0_4 = arith.constant 0 : index
    %c0_5 = arith.constant 0 : index
    %5 = vector.load %arg4[%c0_4, %c0_5] : memref<128x128xbf16, #tpu.memory_space<vmem>>, vector<128x128xbf16>
    %cst = arith.constant dense<0.000000e+00> : vector<128x128xf32>
    %6 = tpu.matmul %4, %5, %cst {dimension_numbers = #tpu.dot_dimension_numbers<[1], [0], [0], [1], [0, 0, 1, 1], [], []>} : vector<128x128xbf16>, vector<128x128xbf16>, vector<128x128xf32> -> vector<128x128xf32>
    %7 = arith.addf %3, %6 : vector<128x128xf32>
    %c0_6 = arith.constant 0 : index
    %c0_7 = arith.constant 0 : index
    %8 = vector.load %arg8[%c0_6, %c0_7] : memref<128x128xf32, #tpu.memory_space<vmem>>, vector<128x128xf32>
    tpu.vector_store %arg8[%c0_6, %c0_7], %7 {strides = array<i32>} : memref<128x128xf32, #tpu.memory_space<vmem>>, vector<128x128xf32>,
    %c8_i32 = arith.constant 8 : i32
    %9 = arith.cmpi eq, %arg2, %c8_i32 : i32
    %10 = arith.extui %9 : i1 to i32
    %c0_i32_8 = arith.constant 0 : i32
    %11 = arith.cmpi ne, %10, %c0_i32_8 : i32
    scf.if %11 {
      %c0_9 = arith.constant 0 : index
      %c0_10 = arith.constant 0 : index
      %12 = vector.load %arg8[%c0_9, %c0_10] : memref<128x128xf32, #tpu.memory_space<vmem>>, vector<128x128xf32>
      %c0_11 = arith.constant 0 : index
      %c0_12 = arith.constant 0 : index
      %13 = vector.load %arg5[%c0_11, %c0_12] : memref<1x128xf32, #tpu.memory_space<vmem>>, vector<1x128xf32>
      %14 = vector.broadcast %13 : vector<1x128xf32> to vector<128x128xf32>
      %15 = arith.mulf %12, %14 : vector<128x128xf32>
      %c0_13 = arith.constant 0 : index
      %c0_14 = arith.constant 0 : index
      %16 = vector.load %arg6[%c0_13, %c0_14] : memref<1x128xf32, #tpu.memory_space<vmem>>, vector<1x128xf32>
      %17 = vector.broadcast %16 : vector<1x128xf32> to vector<128x128xf32>
      %18 = arith.addf %15, %17 : vector<128x128xf32>
      %cst_15 = arith.constant 0.000000e+00 : f32
      %19 = vector.broadcast %cst_15 : f32 to vector<128x128xf32>
      %20 = arith.maximumf %18, %19 : vector<128x128xf32>
      %c0_16 = arith.constant 0 : index
      %c0_17 = arith.constant 0 : index
      %21 = vector.load %arg7[%c0_16, %c0_17] : memref<128x128xf32, #tpu.memory_space<vmem>>, vector<128x128xf32>
      tpu.vector_store %arg7[%c0_16, %c0_17], %20 {strides = array<i32>} : memref<128x128xf32, #tpu.memory_space<vmem>>, vector<128x128xf32>,
    } else {
    }
    return
  }
  func.func @transform_0(%arg0: i32, %arg1: i32, %arg2: i32) -> (i32, i32) {
    %c0_i32 = arith.constant 0 : i32
    return %arg0, %arg2 : i32, i32
  }
  func.func @transform_1(%arg0: i32, %arg1: i32, %arg2: i32) -> (i32, i32) {
    %c0_i32 = arith.constant 0 : i32
    return %arg2, %arg1 : i32, i32
  }
  func.func @transform_2(%arg0: i32, %arg1: i32, %arg2: i32) -> (i32, i32) {
    %c0_i32 = arith.constant 0 : i32
    %c0_i32_0 = arith.constant 0 : i32
    return %c0_i32, %arg1 : i32, i32
  }
  func.func @transform_3(%arg0: i32, %arg1: i32, %arg2: i32) -> (i32, i32) {
    %c0_i32 = arith.constant 0 : i32
    %c0_i32_0 = arith.constant 0 : i32
    return %c0_i32, %arg1 : i32, i32
  }
  func.func @transform_4(%arg0: i32, %arg1: i32, %arg2: i32) -> (i32, i32) {
    %c0_i32 = arith.constant 0 : i32
    return %arg0, %arg1 : i32, i32
  }
}

module attributes {stable_mosaic.version = 11 : i64} {
  func.func @_mm_bn_kernel(%arg0: i32, %arg1: i32, %arg2: i32, %arg3: memref<32x128xbf16, #tpu.memory_space<vmem>>, %arg4: memref<128x256xbf16, #tpu.memory_space<vmem>>, %arg5: memref<1x256xf32, #tpu.memory_space<vmem>>, %arg6: memref<1x256xf32, #tpu.memory_space<vmem>>, %arg7: memref<32x256xf32, #tpu.memory_space<vmem>>, %arg8: memref<32x256xf32, #tpu.memory_space<vmem>>) attributes {dimension_semantics = [#tpu.dimension_semantics<parallel>, #tpu.dimension_semantics<parallel>, #tpu.dimension_semantics<arbitrary>], iteration_bounds = array<i64: 1, 1, 9>, scalar_prefetch = 0 : i64, scratch_operands = 1 : i64, tpu.core_type = #tpu.core_type<tc>, window_params = [{transform_indices = @transform_0, window_bounds = array<i64: 32, 128>}, {transform_indices = @transform_1, window_bounds = array<i64: 128, 256>}, {transform_indices = @transform_2, window_bounds = array<i64: 1, 256>}, {transform_indices = @transform_3, window_bounds = array<i64: 1, 256>}, {transform_indices = @transform_4, window_bounds = array<i64: 32, 256>}]} {
    %c0_i32 = arith.constant 0 : i32
    %0 = arith.cmpi eq, %arg2, %c0_i32 : i32
    %1 = arith.extui %0 : i1 to i32
    %c0_i32_0 = arith.constant 0 : i32
    %2 = arith.cmpi ne, %1, %c0_i32_0 : i32
    scf.if %2 {
      %cst_9 = arith.constant 0.000000e+00 : f32
      %12 = vector.broadcast %cst_9 : f32 to vector<32x256xf32>
      %c0_10 = arith.constant 0 : index
      %c0_11 = arith.constant 0 : index
      %13 = vector.load %arg8[%c0_10, %c0_11] : memref<32x256xf32, #tpu.memory_space<vmem>>, vector<32x256xf32>
      tpu.vector_store %arg8[%c0_10, %c0_11], %12 {strides = array<i32>} : memref<32x256xf32, #tpu.memory_space<vmem>>, vector<32x256xf32>,
    } else {
    }
    %c0 = arith.constant 0 : index
    %c0_1 = arith.constant 0 : index
    %3 = vector.load %arg8[%c0, %c0_1] : memref<32x256xf32, #tpu.memory_space<vmem>>, vector<32x256xf32>
    %c0_2 = arith.constant 0 : index
    %c0_3 = arith.constant 0 : index
    %4 = vector.load %arg3[%c0_2, %c0_3] : memref<32x128xbf16, #tpu.memory_space<vmem>>, vector<32x128xbf16>
    %c0_4 = arith.constant 0 : index
    %c0_5 = arith.constant 0 : index
    %5 = vector.load %arg4[%c0_4, %c0_5] : memref<128x256xbf16, #tpu.memory_space<vmem>>, vector<128x256xbf16>
    %cst = arith.constant dense<0.000000e+00> : vector<32x256xf32>
    %6 = tpu.matmul %4, %5, %cst {dimension_numbers = #tpu.dot_dimension_numbers<[1], [0], [0], [1], [0, 0, 1, 1], [], []>} : vector<32x128xbf16>, vector<128x256xbf16>, vector<32x256xf32> -> vector<32x256xf32>
    %7 = arith.addf %3, %6 : vector<32x256xf32>
    %c0_6 = arith.constant 0 : index
    %c0_7 = arith.constant 0 : index
    %8 = vector.load %arg8[%c0_6, %c0_7] : memref<32x256xf32, #tpu.memory_space<vmem>>, vector<32x256xf32>
    tpu.vector_store %arg8[%c0_6, %c0_7], %7 {strides = array<i32>} : memref<32x256xf32, #tpu.memory_space<vmem>>, vector<32x256xf32>,
    %c8_i32 = arith.constant 8 : i32
    %9 = arith.cmpi eq, %arg2, %c8_i32 : i32
    %10 = arith.extui %9 : i1 to i32
    %c0_i32_8 = arith.constant 0 : i32
    %11 = arith.cmpi ne, %10, %c0_i32_8 : i32
    scf.if %11 {
      %c0_9 = arith.constant 0 : index
      %c0_10 = arith.constant 0 : index
      %12 = vector.load %arg8[%c0_9, %c0_10] : memref<32x256xf32, #tpu.memory_space<vmem>>, vector<32x256xf32>
      %c0_11 = arith.constant 0 : index
      %c0_12 = arith.constant 0 : index
      %13 = vector.load %arg5[%c0_11, %c0_12] : memref<1x256xf32, #tpu.memory_space<vmem>>, vector<1x256xf32>
      %14 = vector.broadcast %13 : vector<1x256xf32> to vector<32x256xf32>
      %15 = arith.mulf %12, %14 : vector<32x256xf32>
      %c0_13 = arith.constant 0 : index
      %c0_14 = arith.constant 0 : index
      %16 = vector.load %arg6[%c0_13, %c0_14] : memref<1x256xf32, #tpu.memory_space<vmem>>, vector<1x256xf32>
      %17 = vector.broadcast %16 : vector<1x256xf32> to vector<32x256xf32>
      %18 = arith.addf %15, %17 : vector<32x256xf32>
      %cst_15 = arith.constant 0.000000e+00 : f32
      %19 = vector.broadcast %cst_15 : f32 to vector<32x256xf32>
      %20 = arith.maximumf %18, %19 : vector<32x256xf32>
      %c0_16 = arith.constant 0 : index
      %c0_17 = arith.constant 0 : index
      %21 = vector.load %arg7[%c0_16, %c0_17] : memref<32x256xf32, #tpu.memory_space<vmem>>, vector<32x256xf32>
      tpu.vector_store %arg7[%c0_16, %c0_17], %20 {strides = array<i32>} : memref<32x256xf32, #tpu.memory_space<vmem>>, vector<32x256xf32>,
    } else {
    }
    return
  }
  func.func @transform_0(%arg0: i32, %arg1: i32, %arg2: i32) -> (i32, i32) {
    %c0_i32 = arith.constant 0 : i32
    return %arg0, %arg2 : i32, i32
  }
  func.func @transform_1(%arg0: i32, %arg1: i32, %arg2: i32) -> (i32, i32) {
    %c0_i32 = arith.constant 0 : i32
    return %arg2, %arg1 : i32, i32
  }
  func.func @transform_2(%arg0: i32, %arg1: i32, %arg2: i32) -> (i32, i32) {
    %c0_i32 = arith.constant 0 : i32
    %c0_i32_0 = arith.constant 0 : i32
    return %c0_i32, %arg1 : i32, i32
  }
  func.func @transform_3(%arg0: i32, %arg1: i32, %arg2: i32) -> (i32, i32) {
    %c0_i32 = arith.constant 0 : i32
    %c0_i32_0 = arith.constant 0 : i32
    return %c0_i32, %arg1 : i32, i32
  }
  func.func @transform_4(%arg0: i32, %arg1: i32, %arg2: i32) -> (i32, i32) {
    %c0_i32 = arith.constant 0 : i32
    return %arg0, %arg1 : i32, i32
  }
}

module attributes {stable_mosaic.version = 11 : i64} {
  func.func @_mm_bn_kernel(%arg0: i32, %arg1: i32, %arg2: i32, %arg3: memref<32x128xbf16, #tpu.memory_space<vmem>>, %arg4: memref<128x256xbf16, #tpu.memory_space<vmem>>, %arg5: memref<1x256xf32, #tpu.memory_space<vmem>>, %arg6: memref<1x256xf32, #tpu.memory_space<vmem>>, %arg7: memref<32x256xf32, #tpu.memory_space<vmem>>, %arg8: memref<32x256xf32, #tpu.memory_space<vmem>>) attributes {dimension_semantics = [#tpu.dimension_semantics<parallel>, #tpu.dimension_semantics<parallel>, #tpu.dimension_semantics<arbitrary>], iteration_bounds = array<i64: 1, 1, 1>, scalar_prefetch = 0 : i64, scratch_operands = 1 : i64, tpu.core_type = #tpu.core_type<tc>, window_params = [{transform_indices = @transform_0, window_bounds = array<i64: 32, 128>}, {transform_indices = @transform_1, window_bounds = array<i64: 128, 256>}, {transform_indices = @transform_2, window_bounds = array<i64: 1, 256>}, {transform_indices = @transform_3, window_bounds = array<i64: 1, 256>}, {transform_indices = @transform_4, window_bounds = array<i64: 32, 256>}]} {
    %c0_i32 = arith.constant 0 : i32
    %0 = arith.cmpi eq, %arg2, %c0_i32 : i32
    %1 = arith.extui %0 : i1 to i32
    %c0_i32_0 = arith.constant 0 : i32
    %2 = arith.cmpi ne, %1, %c0_i32_0 : i32
    scf.if %2 {
      %cst_10 = arith.constant 0.000000e+00 : f32
      %12 = vector.broadcast %cst_10 : f32 to vector<32x256xf32>
      %c0_11 = arith.constant 0 : index
      %c0_12 = arith.constant 0 : index
      %13 = vector.load %arg8[%c0_11, %c0_12] : memref<32x256xf32, #tpu.memory_space<vmem>>, vector<32x256xf32>
      tpu.vector_store %arg8[%c0_11, %c0_12], %12 {strides = array<i32>} : memref<32x256xf32, #tpu.memory_space<vmem>>, vector<32x256xf32>,
    } else {
    }
    %c0 = arith.constant 0 : index
    %c0_1 = arith.constant 0 : index
    %3 = vector.load %arg8[%c0, %c0_1] : memref<32x256xf32, #tpu.memory_space<vmem>>, vector<32x256xf32>
    %c0_2 = arith.constant 0 : index
    %c0_3 = arith.constant 0 : index
    %4 = vector.load %arg3[%c0_2, %c0_3] : memref<32x128xbf16, #tpu.memory_space<vmem>>, vector<32x128xbf16>
    %c0_4 = arith.constant 0 : index
    %c0_5 = arith.constant 0 : index
    %5 = vector.load %arg4[%c0_4, %c0_5] : memref<128x256xbf16, #tpu.memory_space<vmem>>, vector<128x256xbf16>
    %cst = arith.constant dense<0.000000e+00> : vector<32x256xf32>
    %6 = tpu.matmul %4, %5, %cst {dimension_numbers = #tpu.dot_dimension_numbers<[1], [0], [0], [1], [0, 0, 1, 1], [], []>} : vector<32x128xbf16>, vector<128x256xbf16>, vector<32x256xf32> -> vector<32x256xf32>
    %7 = arith.addf %3, %6 : vector<32x256xf32>
    %c0_6 = arith.constant 0 : index
    %c0_7 = arith.constant 0 : index
    %8 = vector.load %arg8[%c0_6, %c0_7] : memref<32x256xf32, #tpu.memory_space<vmem>>, vector<32x256xf32>
    tpu.vector_store %arg8[%c0_6, %c0_7], %7 {strides = array<i32>} : memref<32x256xf32, #tpu.memory_space<vmem>>, vector<32x256xf32>,
    %c0_i32_8 = arith.constant 0 : i32
    %9 = arith.cmpi eq, %arg2, %c0_i32_8 : i32
    %10 = arith.extui %9 : i1 to i32
    %c0_i32_9 = arith.constant 0 : i32
    %11 = arith.cmpi ne, %10, %c0_i32_9 : i32
    scf.if %11 {
      %c0_10 = arith.constant 0 : index
      %c0_11 = arith.constant 0 : index
      %12 = vector.load %arg8[%c0_10, %c0_11] : memref<32x256xf32, #tpu.memory_space<vmem>>, vector<32x256xf32>
      %c0_12 = arith.constant 0 : index
      %c0_13 = arith.constant 0 : index
      %13 = vector.load %arg5[%c0_12, %c0_13] : memref<1x256xf32, #tpu.memory_space<vmem>>, vector<1x256xf32>
      %14 = vector.broadcast %13 : vector<1x256xf32> to vector<32x256xf32>
      %15 = arith.mulf %12, %14 : vector<32x256xf32>
      %c0_14 = arith.constant 0 : index
      %c0_15 = arith.constant 0 : index
      %16 = vector.load %arg6[%c0_14, %c0_15] : memref<1x256xf32, #tpu.memory_space<vmem>>, vector<1x256xf32>
      %17 = vector.broadcast %16 : vector<1x256xf32> to vector<32x256xf32>
      %18 = arith.addf %15, %17 : vector<32x256xf32>
      %c0_16 = arith.constant 0 : index
      %c0_17 = arith.constant 0 : index
      %19 = vector.load %arg7[%c0_16, %c0_17] : memref<32x256xf32, #tpu.memory_space<vmem>>, vector<32x256xf32>
      tpu.vector_store %arg7[%c0_16, %c0_17], %18 {strides = array<i32>} : memref<32x256xf32, #tpu.memory_space<vmem>>, vector<32x256xf32>,
    } else {
    }
    return
  }
  func.func @transform_0(%arg0: i32, %arg1: i32, %arg2: i32) -> (i32, i32) {
    %c0_i32 = arith.constant 0 : i32
    return %arg0, %arg2 : i32, i32
  }
  func.func @transform_1(%arg0: i32, %arg1: i32, %arg2: i32) -> (i32, i32) {
    %c0_i32 = arith.constant 0 : i32
    return %arg2, %arg1 : i32, i32
  }
  func.func @transform_2(%arg0: i32, %arg1: i32, %arg2: i32) -> (i32, i32) {
    %c0_i32 = arith.constant 0 : i32
    %c0_i32_0 = arith.constant 0 : i32
    return %c0_i32, %arg1 : i32, i32
  }
  func.func @transform_3(%arg0: i32, %arg1: i32, %arg2: i32) -> (i32, i32) {
    %c0_i32 = arith.constant 0 : i32
    %c0_i32_0 = arith.constant 0 : i32
    return %c0_i32, %arg1 : i32, i32
  }
  func.func @transform_4(%arg0: i32, %arg1: i32, %arg2: i32) -> (i32, i32) {
    %c0_i32 = arith.constant 0 : i32
    return %arg0, %arg1 : i32, i32
  }
}

module attributes {stable_mosaic.version = 11 : i64} {
  func.func @_mm_bn_res_kernel(%arg0: i32, %arg1: i32, %arg2: i32, %arg3: memref<32x256xbf16, #tpu.memory_space<vmem>>, %arg4: memref<256x256xbf16, #tpu.memory_space<vmem>>, %arg5: memref<1x256xf32, #tpu.memory_space<vmem>>, %arg6: memref<1x256xf32, #tpu.memory_space<vmem>>, %arg7: memref<32x256xf32, #tpu.memory_space<vmem>>, %arg8: memref<32x256xf32, #tpu.memory_space<vmem>>, %arg9: memref<32x256xf32, #tpu.memory_space<vmem>>) attributes {dimension_semantics = [#tpu.dimension_semantics<parallel>, #tpu.dimension_semantics<parallel>, #tpu.dimension_semantics<arbitrary>], iteration_bounds = array<i64: 1, 1, 9>, scalar_prefetch = 0 : i64, scratch_operands = 1 : i64, tpu.core_type = #tpu.core_type<tc>, window_params = [{transform_indices = @transform_0, window_bounds = array<i64: 32, 256>}, {transform_indices = @transform_1, window_bounds = array<i64: 256, 256>}, {transform_indices = @transform_2, window_bounds = array<i64: 1, 256>}, {transform_indices = @transform_3, window_bounds = array<i64: 1, 256>}, {transform_indices = @transform_4, window_bounds = array<i64: 32, 256>}, {transform_indices = @transform_5, window_bounds = array<i64: 32, 256>}]} {
    %c0_i32 = arith.constant 0 : i32
    %0 = arith.cmpi eq, %arg2, %c0_i32 : i32
    %1 = arith.extui %0 : i1 to i32
    %c0_i32_0 = arith.constant 0 : i32
    %2 = arith.cmpi ne, %1, %c0_i32_0 : i32
    scf.if %2 {
      %cst_9 = arith.constant 0.000000e+00 : f32
      %12 = vector.broadcast %cst_9 : f32 to vector<32x256xf32>
      %c0_10 = arith.constant 0 : index
      %c0_11 = arith.constant 0 : index
      %13 = vector.load %arg9[%c0_10, %c0_11] : memref<32x256xf32, #tpu.memory_space<vmem>>, vector<32x256xf32>
      tpu.vector_store %arg9[%c0_10, %c0_11], %12 {strides = array<i32>} : memref<32x256xf32, #tpu.memory_space<vmem>>, vector<32x256xf32>,
    } else {
    }
    %c0 = arith.constant 0 : index
    %c0_1 = arith.constant 0 : index
    %3 = vector.load %arg9[%c0, %c0_1] : memref<32x256xf32, #tpu.memory_space<vmem>>, vector<32x256xf32>
    %c0_2 = arith.constant 0 : index
    %c0_3 = arith.constant 0 : index
    %4 = vector.load %arg3[%c0_2, %c0_3] : memref<32x256xbf16, #tpu.memory_space<vmem>>, vector<32x256xbf16>
    %c0_4 = arith.constant 0 : index
    %c0_5 = arith.constant 0 : index
    %5 = vector.load %arg4[%c0_4, %c0_5] : memref<256x256xbf16, #tpu.memory_space<vmem>>, vector<256x256xbf16>
    %cst = arith.constant dense<0.000000e+00> : vector<32x256xf32>
    %6 = tpu.matmul %4, %5, %cst {dimension_numbers = #tpu.dot_dimension_numbers<[1], [0], [0], [1], [0, 0, 1, 1], [], []>} : vector<32x256xbf16>, vector<256x256xbf16>, vector<32x256xf32> -> vector<32x256xf32>
    %7 = arith.addf %3, %6 : vector<32x256xf32>
    %c0_6 = arith.constant 0 : index
    %c0_7 = arith.constant 0 : index
    %8 = vector.load %arg9[%c0_6, %c0_7] : memref<32x256xf32, #tpu.memory_space<vmem>>, vector<32x256xf32>
    tpu.vector_store %arg9[%c0_6, %c0_7], %7 {strides = array<i32>} : memref<32x256xf32, #tpu.memory_space<vmem>>, vector<32x256xf32>,
    %c8_i32 = arith.constant 8 : i32
    %9 = arith.cmpi eq, %arg2, %c8_i32 : i32
    %10 = arith.extui %9 : i1 to i32
    %c0_i32_8 = arith.constant 0 : i32
    %11 = arith.cmpi ne, %10, %c0_i32_8 : i32
    scf.if %11 {
      %c0_9 = arith.constant 0 : index
      %c0_10 = arith.constant 0 : index
      %12 = vector.load %arg9[%c0_9, %c0_10] : memref<32x256xf32, #tpu.memory_space<vmem>>, vector<32x256xf32>
      %c0_11 = arith.constant 0 : index
      %c0_12 = arith.constant 0 : index
      %13 = vector.load %arg5[%c0_11, %c0_12] : memref<1x256xf32, #tpu.memory_space<vmem>>, vector<1x256xf32>
      %14 = vector.broadcast %13 : vector<1x256xf32> to vector<32x256xf32>
      %15 = arith.mulf %12, %14 : vector<32x256xf32>
      %c0_13 = arith.constant 0 : index
      %c0_14 = arith.constant 0 : index
      %16 = vector.load %arg6[%c0_13, %c0_14] : memref<1x256xf32, #tpu.memory_space<vmem>>, vector<1x256xf32>
      %17 = vector.broadcast %16 : vector<1x256xf32> to vector<32x256xf32>
      %18 = arith.addf %15, %17 : vector<32x256xf32>
      %c0_15 = arith.constant 0 : index
      %c0_16 = arith.constant 0 : index
      %19 = vector.load %arg7[%c0_15, %c0_16] : memref<32x256xf32, #tpu.memory_space<vmem>>, vector<32x256xf32>
      %20 = arith.addf %18, %19 : vector<32x256xf32>
      %cst_17 = arith.constant 0.000000e+00 : f32
      %21 = vector.broadcast %cst_17 : f32 to vector<32x256xf32>
      %22 = arith.maximumf %20, %21 : vector<32x256xf32>
      %c0_18 = arith.constant 0 : index
      %c0_19 = arith.constant 0 : index
      %23 = vector.load %arg8[%c0_18, %c0_19] : memref<32x256xf32, #tpu.memory_space<vmem>>, vector<32x256xf32>
      tpu.vector_store %arg8[%c0_18, %c0_19], %22 {strides = array<i32>} : memref<32x256xf32, #tpu.memory_space<vmem>>, vector<32x256xf32>,
    } else {
    }
    return
  }
  func.func @transform_0(%arg0: i32, %arg1: i32, %arg2: i32) -> (i32, i32) {
    %c0_i32 = arith.constant 0 : i32
    return %arg0, %arg2 : i32, i32
  }
  func.func @transform_1(%arg0: i32, %arg1: i32, %arg2: i32) -> (i32, i32) {
    %c0_i32 = arith.constant 0 : i32
    return %arg2, %arg1 : i32, i32
  }
  func.func @transform_2(%arg0: i32, %arg1: i32, %arg2: i32) -> (i32, i32) {
    %c0_i32 = arith.constant 0 : i32
    %c0_i32_0 = arith.constant 0 : i32
    return %c0_i32, %arg1 : i32, i32
  }
  func.func @transform_3(%arg0: i32, %arg1: i32, %arg2: i32) -> (i32, i32) {
    %c0_i32 = arith.constant 0 : i32
    %c0_i32_0 = arith.constant 0 : i32
    return %c0_i32, %arg1 : i32, i32
  }
  func.func @transform_4(%arg0: i32, %arg1: i32, %arg2: i32) -> (i32, i32) {
    %c0_i32 = arith.constant 0 : i32
    return %arg0, %arg1 : i32, i32
  }
  func.func @transform_5(%arg0: i32, %arg1: i32, %arg2: i32) -> (i32, i32) {
    %c0_i32 = arith.constant 0 : i32
    return %arg0, %arg1 : i32, i32
  }
}

module attributes {stable_mosaic.version = 11 : i64} {
  func.func @_mm_bn_kernel(%arg0: i32, %arg1: i32, %arg2: i32, %arg3: memref<32x256xbf16, #tpu.memory_space<vmem>>, %arg4: memref<256x256xbf16, #tpu.memory_space<vmem>>, %arg5: memref<1x256xf32, #tpu.memory_space<vmem>>, %arg6: memref<1x256xf32, #tpu.memory_space<vmem>>, %arg7: memref<32x256xf32, #tpu.memory_space<vmem>>, %arg8: memref<32x256xf32, #tpu.memory_space<vmem>>) attributes {dimension_semantics = [#tpu.dimension_semantics<parallel>, #tpu.dimension_semantics<parallel>, #tpu.dimension_semantics<arbitrary>], iteration_bounds = array<i64: 1, 1, 9>, scalar_prefetch = 0 : i64, scratch_operands = 1 : i64, tpu.core_type = #tpu.core_type<tc>, window_params = [{transform_indices = @transform_0, window_bounds = array<i64: 32, 256>}, {transform_indices = @transform_1, window_bounds = array<i64: 256, 256>}, {transform_indices = @transform_2, window_bounds = array<i64: 1, 256>}, {transform_indices = @transform_3, window_bounds = array<i64: 1, 256>}, {transform_indices = @transform_4, window_bounds = array<i64: 32, 256>}]} {
    %c0_i32 = arith.constant 0 : i32
    %0 = arith.cmpi eq, %arg2, %c0_i32 : i32
    %1 = arith.extui %0 : i1 to i32
    %c0_i32_0 = arith.constant 0 : i32
    %2 = arith.cmpi ne, %1, %c0_i32_0 : i32
    scf.if %2 {
      %cst_9 = arith.constant 0.000000e+00 : f32
      %12 = vector.broadcast %cst_9 : f32 to vector<32x256xf32>
      %c0_10 = arith.constant 0 : index
      %c0_11 = arith.constant 0 : index
      %13 = vector.load %arg8[%c0_10, %c0_11] : memref<32x256xf32, #tpu.memory_space<vmem>>, vector<32x256xf32>
      tpu.vector_store %arg8[%c0_10, %c0_11], %12 {strides = array<i32>} : memref<32x256xf32, #tpu.memory_space<vmem>>, vector<32x256xf32>,
    } else {
    }
    %c0 = arith.constant 0 : index
    %c0_1 = arith.constant 0 : index
    %3 = vector.load %arg8[%c0, %c0_1] : memref<32x256xf32, #tpu.memory_space<vmem>>, vector<32x256xf32>
    %c0_2 = arith.constant 0 : index
    %c0_3 = arith.constant 0 : index
    %4 = vector.load %arg3[%c0_2, %c0_3] : memref<32x256xbf16, #tpu.memory_space<vmem>>, vector<32x256xbf16>
    %c0_4 = arith.constant 0 : index
    %c0_5 = arith.constant 0 : index
    %5 = vector.load %arg4[%c0_4, %c0_5] : memref<256x256xbf16, #tpu.memory_space<vmem>>, vector<256x256xbf16>
    %cst = arith.constant dense<0.000000e+00> : vector<32x256xf32>
    %6 = tpu.matmul %4, %5, %cst {dimension_numbers = #tpu.dot_dimension_numbers<[1], [0], [0], [1], [0, 0, 1, 1], [], []>} : vector<32x256xbf16>, vector<256x256xbf16>, vector<32x256xf32> -> vector<32x256xf32>
    %7 = arith.addf %3, %6 : vector<32x256xf32>
    %c0_6 = arith.constant 0 : index
    %c0_7 = arith.constant 0 : index
    %8 = vector.load %arg8[%c0_6, %c0_7] : memref<32x256xf32, #tpu.memory_space<vmem>>, vector<32x256xf32>
    tpu.vector_store %arg8[%c0_6, %c0_7], %7 {strides = array<i32>} : memref<32x256xf32, #tpu.memory_space<vmem>>, vector<32x256xf32>,
    %c8_i32 = arith.constant 8 : i32
    %9 = arith.cmpi eq, %arg2, %c8_i32 : i32
    %10 = arith.extui %9 : i1 to i32
    %c0_i32_8 = arith.constant 0 : i32
    %11 = arith.cmpi ne, %10, %c0_i32_8 : i32
    scf.if %11 {
      %c0_9 = arith.constant 0 : index
      %c0_10 = arith.constant 0 : index
      %12 = vector.load %arg8[%c0_9, %c0_10] : memref<32x256xf32, #tpu.memory_space<vmem>>, vector<32x256xf32>
      %c0_11 = arith.constant 0 : index
      %c0_12 = arith.constant 0 : index
      %13 = vector.load %arg5[%c0_11, %c0_12] : memref<1x256xf32, #tpu.memory_space<vmem>>, vector<1x256xf32>
      %14 = vector.broadcast %13 : vector<1x256xf32> to vector<32x256xf32>
      %15 = arith.mulf %12, %14 : vector<32x256xf32>
      %c0_13 = arith.constant 0 : index
      %c0_14 = arith.constant 0 : index
      %16 = vector.load %arg6[%c0_13, %c0_14] : memref<1x256xf32, #tpu.memory_space<vmem>>, vector<1x256xf32>
      %17 = vector.broadcast %16 : vector<1x256xf32> to vector<32x256xf32>
      %18 = arith.addf %15, %17 : vector<32x256xf32>
      %cst_15 = arith.constant 0.000000e+00 : f32
      %19 = vector.broadcast %cst_15 : f32 to vector<32x256xf32>
      %20 = arith.maximumf %18, %19 : vector<32x256xf32>
      %c0_16 = arith.constant 0 : index
      %c0_17 = arith.constant 0 : index
      %21 = vector.load %arg7[%c0_16, %c0_17] : memref<32x256xf32, #tpu.memory_space<vmem>>, vector<32x256xf32>
      tpu.vector_store %arg7[%c0_16, %c0_17], %20 {strides = array<i32>} : memref<32x256xf32, #tpu.memory_space<vmem>>, vector<32x256xf32>,
    } else {
    }
    return
  }
  func.func @transform_0(%arg0: i32, %arg1: i32, %arg2: i32) -> (i32, i32) {
    %c0_i32 = arith.constant 0 : i32
    return %arg0, %arg2 : i32, i32
  }
  func.func @transform_1(%arg0: i32, %arg1: i32, %arg2: i32) -> (i32, i32) {
    %c0_i32 = arith.constant 0 : i32
    return %arg2, %arg1 : i32, i32
  }
  func.func @transform_2(%arg0: i32, %arg1: i32, %arg2: i32) -> (i32, i32) {
    %c0_i32 = arith.constant 0 : i32
    %c0_i32_0 = arith.constant 0 : i32
    return %c0_i32, %arg1 : i32, i32
  }
  func.func @transform_3(%arg0: i32, %arg1: i32, %arg2: i32) -> (i32, i32) {
    %c0_i32 = arith.constant 0 : i32
    %c0_i32_0 = arith.constant 0 : i32
    return %c0_i32, %arg1 : i32, i32
  }
  func.func @transform_4(%arg0: i32, %arg1: i32, %arg2: i32) -> (i32, i32) {
    %c0_i32 = arith.constant 0 : i32
    return %arg0, %arg1 : i32, i32
  }
}

module attributes {stable_mosaic.version = 11 : i64} {
  func.func @_mm_bn_kernel(%arg0: i32, %arg1: i32, %arg2: i32, %arg3: memref<8x256xbf16, #tpu.memory_space<vmem>>, %arg4: memref<256x256xbf16, #tpu.memory_space<vmem>>, %arg5: memref<1x256xf32, #tpu.memory_space<vmem>>, %arg6: memref<1x256xf32, #tpu.memory_space<vmem>>, %arg7: memref<8x256xf32, #tpu.memory_space<vmem>>, %arg8: memref<8x256xf32, #tpu.memory_space<vmem>>) attributes {dimension_semantics = [#tpu.dimension_semantics<parallel>, #tpu.dimension_semantics<parallel>, #tpu.dimension_semantics<arbitrary>], iteration_bounds = array<i64: 1, 2, 9>, scalar_prefetch = 0 : i64, scratch_operands = 1 : i64, tpu.core_type = #tpu.core_type<tc>, window_params = [{transform_indices = @transform_0, window_bounds = array<i64: 8, 256>}, {transform_indices = @transform_1, window_bounds = array<i64: 256, 256>}, {transform_indices = @transform_2, window_bounds = array<i64: 1, 256>}, {transform_indices = @transform_3, window_bounds = array<i64: 1, 256>}, {transform_indices = @transform_4, window_bounds = array<i64: 8, 256>}]} {
    %c0_i32 = arith.constant 0 : i32
    %0 = arith.cmpi eq, %arg2, %c0_i32 : i32
    %1 = arith.extui %0 : i1 to i32
    %c0_i32_0 = arith.constant 0 : i32
    %2 = arith.cmpi ne, %1, %c0_i32_0 : i32
    scf.if %2 {
      %cst_9 = arith.constant 0.000000e+00 : f32
      %12 = vector.broadcast %cst_9 : f32 to vector<8x256xf32>
      %c0_10 = arith.constant 0 : index
      %c0_11 = arith.constant 0 : index
      %13 = vector.load %arg8[%c0_10, %c0_11] : memref<8x256xf32, #tpu.memory_space<vmem>>, vector<8x256xf32>
      tpu.vector_store %arg8[%c0_10, %c0_11], %12 {strides = array<i32>} : memref<8x256xf32, #tpu.memory_space<vmem>>, vector<8x256xf32>,
    } else {
    }
    %c0 = arith.constant 0 : index
    %c0_1 = arith.constant 0 : index
    %3 = vector.load %arg8[%c0, %c0_1] : memref<8x256xf32, #tpu.memory_space<vmem>>, vector<8x256xf32>
    %c0_2 = arith.constant 0 : index
    %c0_3 = arith.constant 0 : index
    %4 = vector.load %arg3[%c0_2, %c0_3] : memref<8x256xbf16, #tpu.memory_space<vmem>>, vector<8x256xbf16>
    %c0_4 = arith.constant 0 : index
    %c0_5 = arith.constant 0 : index
    %5 = vector.load %arg4[%c0_4, %c0_5] : memref<256x256xbf16, #tpu.memory_space<vmem>>, vector<256x256xbf16>
    %cst = arith.constant dense<0.000000e+00> : vector<8x256xf32>
    %6 = tpu.matmul %4, %5, %cst {dimension_numbers = #tpu.dot_dimension_numbers<[1], [0], [0], [1], [0, 0, 1, 1], [], []>} : vector<8x256xbf16>, vector<256x256xbf16>, vector<8x256xf32> -> vector<8x256xf32>
    %7 = arith.addf %3, %6 : vector<8x256xf32>
    %c0_6 = arith.constant 0 : index
    %c0_7 = arith.constant 0 : index
    %8 = vector.load %arg8[%c0_6, %c0_7] : memref<8x256xf32, #tpu.memory_space<vmem>>, vector<8x256xf32>
    tpu.vector_store %arg8[%c0_6, %c0_7], %7 {strides = array<i32>} : memref<8x256xf32, #tpu.memory_space<vmem>>, vector<8x256xf32>,
    %c8_i32 = arith.constant 8 : i32
    %9 = arith.cmpi eq, %arg2, %c8_i32 : i32
    %10 = arith.extui %9 : i1 to i32
    %c0_i32_8 = arith.constant 0 : i32
    %11 = arith.cmpi ne, %10, %c0_i32_8 : i32
    scf.if %11 {
      %c0_9 = arith.constant 0 : index
      %c0_10 = arith.constant 0 : index
      %12 = vector.load %arg8[%c0_9, %c0_10] : memref<8x256xf32, #tpu.memory_space<vmem>>, vector<8x256xf32>
      %c0_11 = arith.constant 0 : index
      %c0_12 = arith.constant 0 : index
      %13 = vector.load %arg5[%c0_11, %c0_12] : memref<1x256xf32, #tpu.memory_space<vmem>>, vector<1x256xf32>
      %14 = vector.broadcast %13 : vector<1x256xf32> to vector<8x256xf32>
      %15 = arith.mulf %12, %14 : vector<8x256xf32>
      %c0_13 = arith.constant 0 : index
      %c0_14 = arith.constant 0 : index
      %16 = vector.load %arg6[%c0_13, %c0_14] : memref<1x256xf32, #tpu.memory_space<vmem>>, vector<1x256xf32>
      %17 = vector.broadcast %16 : vector<1x256xf32> to vector<8x256xf32>
      %18 = arith.addf %15, %17 : vector<8x256xf32>
      %cst_15 = arith.constant 0.000000e+00 : f32
      %19 = vector.broadcast %cst_15 : f32 to vector<8x256xf32>
      %20 = arith.maximumf %18, %19 : vector<8x256xf32>
      %c0_16 = arith.constant 0 : index
      %c0_17 = arith.constant 0 : index
      %21 = vector.load %arg7[%c0_16, %c0_17] : memref<8x256xf32, #tpu.memory_space<vmem>>, vector<8x256xf32>
      tpu.vector_store %arg7[%c0_16, %c0_17], %20 {strides = array<i32>} : memref<8x256xf32, #tpu.memory_space<vmem>>, vector<8x256xf32>,
    } else {
    }
    return
  }
  func.func @transform_0(%arg0: i32, %arg1: i32, %arg2: i32) -> (i32, i32) {
    %c0_i32 = arith.constant 0 : i32
    return %arg0, %arg2 : i32, i32
  }
  func.func @transform_1(%arg0: i32, %arg1: i32, %arg2: i32) -> (i32, i32) {
    %c0_i32 = arith.constant 0 : i32
    return %arg2, %arg1 : i32, i32
  }
  func.func @transform_2(%arg0: i32, %arg1: i32, %arg2: i32) -> (i32, i32) {
    %c0_i32 = arith.constant 0 : i32
    %c0_i32_0 = arith.constant 0 : i32
    return %c0_i32, %arg1 : i32, i32
  }
  func.func @transform_3(%arg0: i32, %arg1: i32, %arg2: i32) -> (i32, i32) {
    %c0_i32 = arith.constant 0 : i32
    %c0_i32_0 = arith.constant 0 : i32
    return %c0_i32, %arg1 : i32, i32
  }
  func.func @transform_4(%arg0: i32, %arg1: i32, %arg2: i32) -> (i32, i32) {
    %c0_i32 = arith.constant 0 : i32
    return %arg0, %arg1 : i32, i32
  }
}

module attributes {stable_mosaic.version = 11 : i64} {
  func.func @_mm_bn_kernel(%arg0: i32, %arg1: i32, %arg2: i32, %arg3: memref<8x256xbf16, #tpu.memory_space<vmem>>, %arg4: memref<256x256xbf16, #tpu.memory_space<vmem>>, %arg5: memref<1x256xf32, #tpu.memory_space<vmem>>, %arg6: memref<1x256xf32, #tpu.memory_space<vmem>>, %arg7: memref<8x256xf32, #tpu.memory_space<vmem>>, %arg8: memref<8x256xf32, #tpu.memory_space<vmem>>) attributes {dimension_semantics = [#tpu.dimension_semantics<parallel>, #tpu.dimension_semantics<parallel>, #tpu.dimension_semantics<arbitrary>], iteration_bounds = array<i64: 1, 2, 1>, scalar_prefetch = 0 : i64, scratch_operands = 1 : i64, tpu.core_type = #tpu.core_type<tc>, window_params = [{transform_indices = @transform_0, window_bounds = array<i64: 8, 256>}, {transform_indices = @transform_1, window_bounds = array<i64: 256, 256>}, {transform_indices = @transform_2, window_bounds = array<i64: 1, 256>}, {transform_indices = @transform_3, window_bounds = array<i64: 1, 256>}, {transform_indices = @transform_4, window_bounds = array<i64: 8, 256>}]} {
    %c0_i32 = arith.constant 0 : i32
    %0 = arith.cmpi eq, %arg2, %c0_i32 : i32
    %1 = arith.extui %0 : i1 to i32
    %c0_i32_0 = arith.constant 0 : i32
    %2 = arith.cmpi ne, %1, %c0_i32_0 : i32
    scf.if %2 {
      %cst_10 = arith.constant 0.000000e+00 : f32
      %12 = vector.broadcast %cst_10 : f32 to vector<8x256xf32>
      %c0_11 = arith.constant 0 : index
      %c0_12 = arith.constant 0 : index
      %13 = vector.load %arg8[%c0_11, %c0_12] : memref<8x256xf32, #tpu.memory_space<vmem>>, vector<8x256xf32>
      tpu.vector_store %arg8[%c0_11, %c0_12], %12 {strides = array<i32>} : memref<8x256xf32, #tpu.memory_space<vmem>>, vector<8x256xf32>,
    } else {
    }
    %c0 = arith.constant 0 : index
    %c0_1 = arith.constant 0 : index
    %3 = vector.load %arg8[%c0, %c0_1] : memref<8x256xf32, #tpu.memory_space<vmem>>, vector<8x256xf32>
    %c0_2 = arith.constant 0 : index
    %c0_3 = arith.constant 0 : index
    %4 = vector.load %arg3[%c0_2, %c0_3] : memref<8x256xbf16, #tpu.memory_space<vmem>>, vector<8x256xbf16>
    %c0_4 = arith.constant 0 : index
    %c0_5 = arith.constant 0 : index
    %5 = vector.load %arg4[%c0_4, %c0_5] : memref<256x256xbf16, #tpu.memory_space<vmem>>, vector<256x256xbf16>
    %cst = arith.constant dense<0.000000e+00> : vector<8x256xf32>
    %6 = tpu.matmul %4, %5, %cst {dimension_numbers = #tpu.dot_dimension_numbers<[1], [0], [0], [1], [0, 0, 1, 1], [], []>} : vector<8x256xbf16>, vector<256x256xbf16>, vector<8x256xf32> -> vector<8x256xf32>
    %7 = arith.addf %3, %6 : vector<8x256xf32>
    %c0_6 = arith.constant 0 : index
    %c0_7 = arith.constant 0 : index
    %8 = vector.load %arg8[%c0_6, %c0_7] : memref<8x256xf32, #tpu.memory_space<vmem>>, vector<8x256xf32>
    tpu.vector_store %arg8[%c0_6, %c0_7], %7 {strides = array<i32>} : memref<8x256xf32, #tpu.memory_space<vmem>>, vector<8x256xf32>,
    %c0_i32_8 = arith.constant 0 : i32
    %9 = arith.cmpi eq, %arg2, %c0_i32_8 : i32
    %10 = arith.extui %9 : i1 to i32
    %c0_i32_9 = arith.constant 0 : i32
    %11 = arith.cmpi ne, %10, %c0_i32_9 : i32
    scf.if %11 {
      %c0_10 = arith.constant 0 : index
      %c0_11 = arith.constant 0 : index
      %12 = vector.load %arg8[%c0_10, %c0_11] : memref<8x256xf32, #tpu.memory_space<vmem>>, vector<8x256xf32>
      %c0_12 = arith.constant 0 : index
      %c0_13 = arith.constant 0 : index
      %13 = vector.load %arg5[%c0_12, %c0_13] : memref<1x256xf32, #tpu.memory_space<vmem>>, vector<1x256xf32>
      %14 = vector.broadcast %13 : vector<1x256xf32> to vector<8x256xf32>
      %15 = arith.mulf %12, %14 : vector<8x256xf32>
      %c0_14 = arith.constant 0 : index
      %c0_15 = arith.constant 0 : index
      %16 = vector.load %arg6[%c0_14, %c0_15] : memref<1x256xf32, #tpu.memory_space<vmem>>, vector<1x256xf32>
      %17 = vector.broadcast %16 : vector<1x256xf32> to vector<8x256xf32>
      %18 = arith.addf %15, %17 : vector<8x256xf32>
      %c0_16 = arith.constant 0 : index
      %c0_17 = arith.constant 0 : index
      %19 = vector.load %arg7[%c0_16, %c0_17] : memref<8x256xf32, #tpu.memory_space<vmem>>, vector<8x256xf32>
      tpu.vector_store %arg7[%c0_16, %c0_17], %18 {strides = array<i32>} : memref<8x256xf32, #tpu.memory_space<vmem>>, vector<8x256xf32>,
    } else {
    }
    return
  }
  func.func @transform_0(%arg0: i32, %arg1: i32, %arg2: i32) -> (i32, i32) {
    %c0_i32 = arith.constant 0 : i32
    return %arg0, %arg2 : i32, i32
  }
  func.func @transform_1(%arg0: i32, %arg1: i32, %arg2: i32) -> (i32, i32) {
    %c0_i32 = arith.constant 0 : i32
    return %arg2, %arg1 : i32, i32
  }
  func.func @transform_2(%arg0: i32, %arg1: i32, %arg2: i32) -> (i32, i32) {
    %c0_i32 = arith.constant 0 : i32
    %c0_i32_0 = arith.constant 0 : i32
    return %c0_i32, %arg1 : i32, i32
  }
  func.func @transform_3(%arg0: i32, %arg1: i32, %arg2: i32) -> (i32, i32) {
    %c0_i32 = arith.constant 0 : i32
    %c0_i32_0 = arith.constant 0 : i32
    return %c0_i32, %arg1 : i32, i32
  }
  func.func @transform_4(%arg0: i32, %arg1: i32, %arg2: i32) -> (i32, i32) {
    %c0_i32 = arith.constant 0 : i32
    return %arg0, %arg1 : i32, i32
  }
}

module attributes {stable_mosaic.version = 11 : i64} {
  func.func @_mm_bn_res_kernel(%arg0: i32, %arg1: i32, %arg2: i32, %arg3: memref<8x512xbf16, #tpu.memory_space<vmem>>, %arg4: memref<512x256xbf16, #tpu.memory_space<vmem>>, %arg5: memref<1x256xf32, #tpu.memory_space<vmem>>, %arg6: memref<1x256xf32, #tpu.memory_space<vmem>>, %arg7: memref<8x256xf32, #tpu.memory_space<vmem>>, %arg8: memref<8x256xf32, #tpu.memory_space<vmem>>, %arg9: memref<8x256xf32, #tpu.memory_space<vmem>>) attributes {dimension_semantics = [#tpu.dimension_semantics<parallel>, #tpu.dimension_semantics<parallel>, #tpu.dimension_semantics<arbitrary>], iteration_bounds = array<i64: 1, 2, 9>, scalar_prefetch = 0 : i64, scratch_operands = 1 : i64, tpu.core_type = #tpu.core_type<tc>, window_params = [{transform_indices = @transform_0, window_bounds = array<i64: 8, 512>}, {transform_indices = @transform_1, window_bounds = array<i64: 512, 256>}, {transform_indices = @transform_2, window_bounds = array<i64: 1, 256>}, {transform_indices = @transform_3, window_bounds = array<i64: 1, 256>}, {transform_indices = @transform_4, window_bounds = array<i64: 8, 256>}, {transform_indices = @transform_5, window_bounds = array<i64: 8, 256>}]} {
    %c0_i32 = arith.constant 0 : i32
    %0 = arith.cmpi eq, %arg2, %c0_i32 : i32
    %1 = arith.extui %0 : i1 to i32
    %c0_i32_0 = arith.constant 0 : i32
    %2 = arith.cmpi ne, %1, %c0_i32_0 : i32
    scf.if %2 {
      %cst_9 = arith.constant 0.000000e+00 : f32
      %12 = vector.broadcast %cst_9 : f32 to vector<8x256xf32>
      %c0_10 = arith.constant 0 : index
      %c0_11 = arith.constant 0 : index
      %13 = vector.load %arg9[%c0_10, %c0_11] : memref<8x256xf32, #tpu.memory_space<vmem>>, vector<8x256xf32>
      tpu.vector_store %arg9[%c0_10, %c0_11], %12 {strides = array<i32>} : memref<8x256xf32, #tpu.memory_space<vmem>>, vector<8x256xf32>,
    } else {
    }
    %c0 = arith.constant 0 : index
    %c0_1 = arith.constant 0 : index
    %3 = vector.load %arg9[%c0, %c0_1] : memref<8x256xf32, #tpu.memory_space<vmem>>, vector<8x256xf32>
    %c0_2 = arith.constant 0 : index
    %c0_3 = arith.constant 0 : index
    %4 = vector.load %arg3[%c0_2, %c0_3] : memref<8x512xbf16, #tpu.memory_space<vmem>>, vector<8x512xbf16>
    %c0_4 = arith.constant 0 : index
    %c0_5 = arith.constant 0 : index
    %5 = vector.load %arg4[%c0_4, %c0_5] : memref<512x256xbf16, #tpu.memory_space<vmem>>, vector<512x256xbf16>
    %cst = arith.constant dense<0.000000e+00> : vector<8x256xf32>
    %6 = tpu.matmul %4, %5, %cst {dimension_numbers = #tpu.dot_dimension_numbers<[1], [0], [0], [1], [0, 0, 1, 1], [], []>} : vector<8x512xbf16>, vector<512x256xbf16>, vector<8x256xf32> -> vector<8x256xf32>
    %7 = arith.addf %3, %6 : vector<8x256xf32>
    %c0_6 = arith.constant 0 : index
    %c0_7 = arith.constant 0 : index
    %8 = vector.load %arg9[%c0_6, %c0_7] : memref<8x256xf32, #tpu.memory_space<vmem>>, vector<8x256xf32>
    tpu.vector_store %arg9[%c0_6, %c0_7], %7 {strides = array<i32>} : memref<8x256xf32, #tpu.memory_space<vmem>>, vector<8x256xf32>,
    %c8_i32 = arith.constant 8 : i32
    %9 = arith.cmpi eq, %arg2, %c8_i32 : i32
    %10 = arith.extui %9 : i1 to i32
    %c0_i32_8 = arith.constant 0 : i32
    %11 = arith.cmpi ne, %10, %c0_i32_8 : i32
    scf.if %11 {
      %c0_9 = arith.constant 0 : index
      %c0_10 = arith.constant 0 : index
      %12 = vector.load %arg9[%c0_9, %c0_10] : memref<8x256xf32, #tpu.memory_space<vmem>>, vector<8x256xf32>
      %c0_11 = arith.constant 0 : index
      %c0_12 = arith.constant 0 : index
      %13 = vector.load %arg5[%c0_11, %c0_12] : memref<1x256xf32, #tpu.memory_space<vmem>>, vector<1x256xf32>
      %14 = vector.broadcast %13 : vector<1x256xf32> to vector<8x256xf32>
      %15 = arith.mulf %12, %14 : vector<8x256xf32>
      %c0_13 = arith.constant 0 : index
      %c0_14 = arith.constant 0 : index
      %16 = vector.load %arg6[%c0_13, %c0_14] : memref<1x256xf32, #tpu.memory_space<vmem>>, vector<1x256xf32>
      %17 = vector.broadcast %16 : vector<1x256xf32> to vector<8x256xf32>
      %18 = arith.addf %15, %17 : vector<8x256xf32>
      %c0_15 = arith.constant 0 : index
      %c0_16 = arith.constant 0 : index
      %19 = vector.load %arg7[%c0_15, %c0_16] : memref<8x256xf32, #tpu.memory_space<vmem>>, vector<8x256xf32>
      %20 = arith.addf %18, %19 : vector<8x256xf32>
      %cst_17 = arith.constant 0.000000e+00 : f32
      %21 = vector.broadcast %cst_17 : f32 to vector<8x256xf32>
      %22 = arith.maximumf %20, %21 : vector<8x256xf32>
      %c0_18 = arith.constant 0 : index
      %c0_19 = arith.constant 0 : index
      %23 = vector.load %arg8[%c0_18, %c0_19] : memref<8x256xf32, #tpu.memory_space<vmem>>, vector<8x256xf32>
      tpu.vector_store %arg8[%c0_18, %c0_19], %22 {strides = array<i32>} : memref<8x256xf32, #tpu.memory_space<vmem>>, vector<8x256xf32>,
    } else {
    }
    return
  }
  func.func @transform_0(%arg0: i32, %arg1: i32, %arg2: i32) -> (i32, i32) {
    %c0_i32 = arith.constant 0 : i32
    return %arg0, %arg2 : i32, i32
  }
  func.func @transform_1(%arg0: i32, %arg1: i32, %arg2: i32) -> (i32, i32) {
    %c0_i32 = arith.constant 0 : i32
    return %arg2, %arg1 : i32, i32
  }
  func.func @transform_2(%arg0: i32, %arg1: i32, %arg2: i32) -> (i32, i32) {
    %c0_i32 = arith.constant 0 : i32
    %c0_i32_0 = arith.constant 0 : i32
    return %c0_i32, %arg1 : i32, i32
  }
  func.func @transform_3(%arg0: i32, %arg1: i32, %arg2: i32) -> (i32, i32) {
    %c0_i32 = arith.constant 0 : i32
    %c0_i32_0 = arith.constant 0 : i32
    return %c0_i32, %arg1 : i32, i32
  }
  func.func @transform_4(%arg0: i32, %arg1: i32, %arg2: i32) -> (i32, i32) {
    %c0_i32 = arith.constant 0 : i32
    return %arg0, %arg1 : i32, i32
  }
  func.func @transform_5(%arg0: i32, %arg1: i32, %arg2: i32) -> (i32, i32) {
    %c0_i32 = arith.constant 0 : i32
    return %arg0, %arg1 : i32, i32
  }
}

module attributes {stable_mosaic.version = 11 : i64} {
  func.func @_mm_bn_kernel(%arg0: i32, %arg1: i32, %arg2: i32, %arg3: memref<8x512xbf16, #tpu.memory_space<vmem>>, %arg4: memref<512x256xbf16, #tpu.memory_space<vmem>>, %arg5: memref<1x256xf32, #tpu.memory_space<vmem>>, %arg6: memref<1x256xf32, #tpu.memory_space<vmem>>, %arg7: memref<8x256xf32, #tpu.memory_space<vmem>>, %arg8: memref<8x256xf32, #tpu.memory_space<vmem>>) attributes {dimension_semantics = [#tpu.dimension_semantics<parallel>, #tpu.dimension_semantics<parallel>, #tpu.dimension_semantics<arbitrary>], iteration_bounds = array<i64: 1, 2, 9>, scalar_prefetch = 0 : i64, scratch_operands = 1 : i64, tpu.core_type = #tpu.core_type<tc>, window_params = [{transform_indices = @transform_0, window_bounds = array<i64: 8, 512>}, {transform_indices = @transform_1, window_bounds = array<i64: 512, 256>}, {transform_indices = @transform_2, window_bounds = array<i64: 1, 256>}, {transform_indices = @transform_3, window_bounds = array<i64: 1, 256>}, {transform_indices = @transform_4, window_bounds = array<i64: 8, 256>}]} {
    %c0_i32 = arith.constant 0 : i32
    %0 = arith.cmpi eq, %arg2, %c0_i32 : i32
    %1 = arith.extui %0 : i1 to i32
    %c0_i32_0 = arith.constant 0 : i32
    %2 = arith.cmpi ne, %1, %c0_i32_0 : i32
    scf.if %2 {
      %cst_9 = arith.constant 0.000000e+00 : f32
      %12 = vector.broadcast %cst_9 : f32 to vector<8x256xf32>
      %c0_10 = arith.constant 0 : index
      %c0_11 = arith.constant 0 : index
      %13 = vector.load %arg8[%c0_10, %c0_11] : memref<8x256xf32, #tpu.memory_space<vmem>>, vector<8x256xf32>
      tpu.vector_store %arg8[%c0_10, %c0_11], %12 {strides = array<i32>} : memref<8x256xf32, #tpu.memory_space<vmem>>, vector<8x256xf32>,
    } else {
    }
    %c0 = arith.constant 0 : index
    %c0_1 = arith.constant 0 : index
    %3 = vector.load %arg8[%c0, %c0_1] : memref<8x256xf32, #tpu.memory_space<vmem>>, vector<8x256xf32>
    %c0_2 = arith.constant 0 : index
    %c0_3 = arith.constant 0 : index
    %4 = vector.load %arg3[%c0_2, %c0_3] : memref<8x512xbf16, #tpu.memory_space<vmem>>, vector<8x512xbf16>
    %c0_4 = arith.constant 0 : index
    %c0_5 = arith.constant 0 : index
    %5 = vector.load %arg4[%c0_4, %c0_5] : memref<512x256xbf16, #tpu.memory_space<vmem>>, vector<512x256xbf16>
    %cst = arith.constant dense<0.000000e+00> : vector<8x256xf32>
    %6 = tpu.matmul %4, %5, %cst {dimension_numbers = #tpu.dot_dimension_numbers<[1], [0], [0], [1], [0, 0, 1, 1], [], []>} : vector<8x512xbf16>, vector<512x256xbf16>, vector<8x256xf32> -> vector<8x256xf32>
    %7 = arith.addf %3, %6 : vector<8x256xf32>
    %c0_6 = arith.constant 0 : index
    %c0_7 = arith.constant 0 : index
    %8 = vector.load %arg8[%c0_6, %c0_7] : memref<8x256xf32, #tpu.memory_space<vmem>>, vector<8x256xf32>
    tpu.vector_store %arg8[%c0_6, %c0_7], %7 {strides = array<i32>} : memref<8x256xf32, #tpu.memory_space<vmem>>, vector<8x256xf32>,
    %c8_i32 = arith.constant 8 : i32
    %9 = arith.cmpi eq, %arg2, %c8_i32 : i32
    %10 = arith.extui %9 : i1 to i32
    %c0_i32_8 = arith.constant 0 : i32
    %11 = arith.cmpi ne, %10, %c0_i32_8 : i32
    scf.if %11 {
      %c0_9 = arith.constant 0 : index
      %c0_10 = arith.constant 0 : index
      %12 = vector.load %arg8[%c0_9, %c0_10] : memref<8x256xf32, #tpu.memory_space<vmem>>, vector<8x256xf32>
      %c0_11 = arith.constant 0 : index
      %c0_12 = arith.constant 0 : index
      %13 = vector.load %arg5[%c0_11, %c0_12] : memref<1x256xf32, #tpu.memory_space<vmem>>, vector<1x256xf32>
      %14 = vector.broadcast %13 : vector<1x256xf32> to vector<8x256xf32>
      %15 = arith.mulf %12, %14 : vector<8x256xf32>
      %c0_13 = arith.constant 0 : index
      %c0_14 = arith.constant 0 : index
      %16 = vector.load %arg6[%c0_13, %c0_14] : memref<1x256xf32, #tpu.memory_space<vmem>>, vector<1x256xf32>
      %17 = vector.broadcast %16 : vector<1x256xf32> to vector<8x256xf32>
      %18 = arith.addf %15, %17 : vector<8x256xf32>
      %cst_15 = arith.constant 0.000000e+00 : f32
      %19 = vector.broadcast %cst_15 : f32 to vector<8x256xf32>
      %20 = arith.maximumf %18, %19 : vector<8x256xf32>
      %c0_16 = arith.constant 0 : index
      %c0_17 = arith.constant 0 : index
      %21 = vector.load %arg7[%c0_16, %c0_17] : memref<8x256xf32, #tpu.memory_space<vmem>>, vector<8x256xf32>
      tpu.vector_store %arg7[%c0_16, %c0_17], %20 {strides = array<i32>} : memref<8x256xf32, #tpu.memory_space<vmem>>, vector<8x256xf32>,
    } else {
    }
    return
  }
  func.func @transform_0(%arg0: i32, %arg1: i32, %arg2: i32) -> (i32, i32) {
    %c0_i32 = arith.constant 0 : i32
    return %arg0, %arg2 : i32, i32
  }
  func.func @transform_1(%arg0: i32, %arg1: i32, %arg2: i32) -> (i32, i32) {
    %c0_i32 = arith.constant 0 : i32
    return %arg2, %arg1 : i32, i32
  }
  func.func @transform_2(%arg0: i32, %arg1: i32, %arg2: i32) -> (i32, i32) {
    %c0_i32 = arith.constant 0 : i32
    %c0_i32_0 = arith.constant 0 : i32
    return %c0_i32, %arg1 : i32, i32
  }
  func.func @transform_3(%arg0: i32, %arg1: i32, %arg2: i32) -> (i32, i32) {
    %c0_i32 = arith.constant 0 : i32
    %c0_i32_0 = arith.constant 0 : i32
    return %c0_i32, %arg1 : i32, i32
  }
  func.func @transform_4(%arg0: i32, %arg1: i32, %arg2: i32) -> (i32, i32) {
    %c0_i32 = arith.constant 0 : i32
    return %arg0, %arg1 : i32, i32
  }
}

module attributes {stable_mosaic.version = 11 : i64} {
  func.func @_avgpool_kernel(%arg0: i32, %arg1: memref<2x4x512xf32, #tpu.memory_space<vmem>>, %arg2: memref<2x512xf32, #tpu.memory_space<vmem>>) attributes {dimension_semantics = [#tpu.dimension_semantics<arbitrary>], iteration_bounds = array<i64: 1>, scalar_prefetch = 0 : i64, scratch_operands = 0 : i64, tpu.core_type = #tpu.core_type<tc>, window_params = [{pipeline_mode = #tpu.pipeline_mode<synchronous>, transform_indices = @transform_0, window_bounds = array<i64: 2, 4, 512>}, {pipeline_mode = #tpu.pipeline_mode<synchronous>, transform_indices = @transform_1, window_bounds = array<i64: 2, 512>}]} {
    %c0 = arith.constant 0 : index
    %c0_0 = arith.constant 0 : index
    %c0_1 = arith.constant 0 : index
    %0 = vector.load %arg1[%c0, %c0_0, %c0_1] : memref<2x4x512xf32, #tpu.memory_space<vmem>>, vector<2x4x512xf32>
    %cst = arith.constant dense<0.000000e+00> : vector<2x512xf32>
    %1 = vector.multi_reduction <add>, %0, %cst [1] : vector<2x4x512xf32> to vector<2x512xf32>
    %cst_2 = arith.constant 4.000000e+00 : f32
    %2 = vector.broadcast %cst_2 : f32 to vector<2x512xf32>
    %3 = arith.divf %1, %2 : vector<2x512xf32>
    %c0_3 = arith.constant 0 : index
    %c0_4 = arith.constant 0 : index
    %4 = vector.load %arg2[%c0_3, %c0_4] : memref<2x512xf32, #tpu.memory_space<vmem>>, vector<2x512xf32>
    tpu.vector_store %arg2[%c0_3, %c0_4], %3 {strides = array<i32>} : memref<2x512xf32, #tpu.memory_space<vmem>>, vector<2x512xf32>,
    return
  }
  func.func @transform_0(%arg0: i32) -> (i32, i32, i32) {
    %c0_i32 = arith.constant 0 : i32
    %c0_i32_0 = arith.constant 0 : i32
    %c0_i32_1 = arith.constant 0 : i32
    %c0_i32_2 = arith.constant 0 : i32
    return %c0_i32, %c0_i32_0, %c0_i32_1 : i32, i32, i32
  }
  func.func @transform_1(%arg0: i32) -> (i32, i32) {
    %c0_i32 = arith.constant 0 : i32
    %c0_i32_0 = arith.constant 0 : i32
    %c0_i32_1 = arith.constant 0 : i32
    return %c0_i32, %c0_i32_0 : i32, i32
  }
}

</mosaic_0001>

<bundles_post_ra>
// kernel: resnet_forward.21
= control target key start
LH: loop header
LB: loop body
LE: loop exit
PB: predicated region body
PF: predicated region fallthrough
CT: control target
= control target key end

     0   :  { %s1560_s15 = smov 0   ;;  %s1562_s16 = smov 0   ;;  %s1886_s0 = inlined_call_operand.vmem [shape: bf16[2048,256], index: 0, kind: input, shape index: {}]   ;;  %s1887_s1 = inlined_call_operand.vmem [shape: bf16[256,64], index: 1, kind: input, shape index: {}]   ;;  %s1888_s2 = inlined_call_operand.vmem [shape: f32[1,64], index: 2, kind: input, shape index: {}]   ;;  %s1889_s3 = inlined_call_operand.vmem [shape: f32[1,64], index: 3, kind: input, shape index: {}]   ;;  %s1890_s4 = inlined_call_operand.vmem [shape: f32[2048,64], index: 4, kind: output, shape index: {}]  }
   0x1   :  { %s1564_s17 = smov 0  }
   0x2 LB: > { %s33_s18 = sadd.s32 1, %s1528_s16  ;;  %p1234_p0 = scmp.ge.s32.totalorder %s1532_s17, 1  ;;  %s1532_s17 = sphi %s1564_s17, %s14_s17   ;;  %s1528_s16 = sphi %s1562_s16, %s1892_s16   ;;  %s1524_s15 = sphi %s1560_s15, %s1891_s15  }
   0x3   : > { %p35_p1 = scmp.ge.s32.totalorder %s33_s18, 8  ;;  %p224_p2 = scmp.lt.s32.totalorder %s1532_s17, 9 }
   0x5   : > { %s1894_s18 = smov (%p35_p1, %s33_s18), 0  ;;  %p225_p3 = pnand %p1234_p0, %p224_p2 }
   0x6   : > { %v1446_v0 = vld [vmem:[%s1887_s1 + $0x40] sm:$0xff] (!%p225_p3)   ;;  %s1235_s21 = sshll.u32 (!%p225_p3), %s1524_s15, 5  ;;  %v1448_v2 = vld [vmem:[%s1887_s1 + $0x48] sm:$0xff] (!%p225_p3)   ;;  %v1450_v4 = vld [vmem:[%s1887_s1 + $0x50] sm:$0xff] (!%p225_p3)   ;;  %vm313_vm0 = vcmask (!%p225_p3), 523264   ;;  %v1534_v48 = vmov (!%p225_p3), 0.0  }
   0x7   : > { %228 = sbr.rel (%p225_p3) target bundleno = 330 (0x14a), region = 36  ;;  %v1447_v1 = vld [vmem:[%s1887_s1] sm:$0xff] (!%p225_p3)   ;;  %1293 = vmatprep.subr.bf16.mxu0 (!%p225_p3), %v1446_v0  ;;  %1405 = vmatprep.subr.bf16.mxu1 (!%p225_p3), %v1446_v0  ;;  %v1449_v3 = vld [vmem:[%s1887_s1 + $0x8] sm:$0xff] (!%p225_p3)   ;;  %p274_p4 = scmp.lt.s32.totalorder (!%p225_p3), %s1235_s21, 255  ;;  %v1451_v5 = vld [vmem:[%s1887_s1 + $0x10] sm:$0xff] (!%p225_p3)   ;;  %314 = vst.msk [vmem:[#allocation2] sm:$0xff] (!%p225_p3), %vm313_vm0, %v1534_v48 }
   0x8   : > { %1294 = vmatpush3.bf16.msra.mxu0 (!%p225_p3), %v1447_v1  ;;  %1413 = vmatpush3.bf16.msra.mxu1 (!%p225_p3), %v1447_v1  ;;  %v1452_v6 = vld [vmem:[%s1887_s1 + $0x58] sm:$0xff] (!%p225_p3)   ;;  %v1454_v8 = vld [vmem:[%s1887_s1 + $0x60] sm:$0xff] (!%p225_p3)   ;;  %v1456_v10 = vld [vmem:[%s1887_s1 + $0x68] sm:$0xff] (!%p225_p3)   ;;  %315 = vst.msk [vmem:[#allocation2 + $0x8] sm:$0xff] (!%p225_p3), %vm313_vm0, %v1534_v48 }
   0x9   : > { %1295 = vmatprep.subr.bf16.mxu0 (!%p225_p3), %v1448_v2  ;;  %1406 = vmatprep.subr.bf16.mxu1 (!%p225_p3), %v1448_v2  ;;  %v1453_v7 = vld [vmem:[%s1887_s1 + $0x18] sm:$0xff] (!%p225_p3)   ;;  %v1455_v9 = vld [vmem:[%s1887_s1 + $0x20] sm:$0xff] (!%p225_p3)   ;;  %v1457_v13 = vld [vmem:[%s1887_s1 + $0x28] sm:$0xff] (!%p225_p3)   ;;  %316 = vst.msk [vmem:[#allocation2 + $0x10] sm:$0xff] (!%p225_p3), %vm313_vm0, %v1534_v48 }
   0xa   : > { %v1458_v14 = vld [vmem:[%s1887_s1 + $0x70] sm:$0xff] (!%p225_p3)   ;;  %v1460_v16 = vld [vmem:[%s1887_s1 + $0x78] sm:$0xff] (!%p225_p3)   ;;  %317 = vst.msk [vmem:[#allocation2 + $0x18] sm:$0xff] (!%p225_p3), %vm313_vm0, %v1534_v48  ;;  %318 = vst.msk [vmem:[#allocation2 + $0x20] sm:$0xff] (!%p225_p3), %vm313_vm0, %v1534_v48 }
   0xb   : > { %v1459_v15 = vld [vmem:[%s1887_s1 + $0x30] sm:$0xff] (!%p225_p3)   ;;  %v1461_v17 = vld [vmem:[%s1887_s1 + $0x38] sm:$0xff] (!%p225_p3)   ;;  %319 = vst.msk [vmem:[#allocation2 + $0x28] sm:$0xff] (!%p225_p3), %vm313_vm0, %v1534_v48  ;;  %320 = vst.msk [vmem:[#allocation2 + $0x30] sm:$0xff] (!%p225_p3), %vm313_vm0, %v1534_v48 }
   0xc   : > { %1296 = vmatpush3.bf16.msra.mxu0 (!%p225_p3), %v1449_v3  ;;  %1414 = vmatpush3.bf16.msra.mxu1 (!%p225_p3), %v1449_v3  ;;  %321 = vst.msk [vmem:[#allocation2 + $0x38] sm:$0xff] (!%p225_p3), %vm313_vm0, %v1534_v48  ;;  %322 = vst.msk [vmem:[#allocation2 + $0x40] sm:$0xff] (!%p225_p3), %vm313_vm0, %v1534_v48 }
   0xd   : > { %1297 = vmatprep.subr.bf16.mxu0 (!%p225_p3), %v1450_v4  ;;  %1407 = vmatprep.subr.bf16.mxu1 (!%p225_p3), %v1450_v4  ;;  %323 = vst.msk [vmem:[#allocation2 + $0x48] sm:$0xff] (!%p225_p3), %vm313_vm0, %v1534_v48  ;;  %324 = vst.msk [vmem:[#allocation2 + $0x50] sm:$0xff] (!%p225_p3), %vm313_vm0, %v1534_v48 }
   0xe   : > { %s1896_s21 = smov (!%p274_p4, %s1235_s21), 255  ;;  %325 = vst.msk [vmem:[#allocation2 + $0x58] sm:$0xff] %vm313_vm0, %v1534_v48  ;;  %326 = vst.msk [vmem:[#allocation2 + $0x60] sm:$0xff] %vm313_vm0, %v1534_v48  ;;  %v346_v51 = vld [vmem:[#allocation2] sm:$0xff] }
   0xf   : > { %s1292_s10 = sshll.u32 %s1896_s21, 3  ;;  %327 = vst.msk [vmem:[#allocation2 + $0x68] sm:$0xff] %vm313_vm0, %v1534_v48  ;;  %328 = vst.msk [vmem:[#allocation2 + $0x70] sm:$0xff] %vm313_vm0, %v1534_v48  ;;  %v347_v59 = vld [vmem:[#allocation2 + $0x8] sm:$0xff] }
  0x10   : > { %1298 = vmatpush3.bf16.msra.mxu0 %v1451_v5  ;;  %1415 = vmatpush3.bf16.msra.mxu1 %v1451_v5  ;;  %s1613_s15 = scalar_lea.vmem %s1886_s0, %s1292_s10  ;;  %329 = vst.msk [vmem:[#allocation2 + $0x78] sm:$0xff] %vm313_vm0, %v1534_v48  ;;  %330 = vst.msk [vmem:[#allocation2 + $0x80] sm:$0xff] %vm313_vm0, %v1534_v48 }
  0x11   : > { %1299 = vmatprep.subr.bf16.mxu0 %v1452_v6  ;;  %1408 = vmatprep.subr.bf16.mxu1 %v1452_v6  ;;  %v1464_v11 = vld [vmem:[%s1613_s15 + $0x4] ss:$8 sps:$4 sm:$0xff]   ;;  %v1462_v18 = vld [vmem:[%s1613_s15] ss:$8 sps:$4 sm:$0xff]   ;;  %v1468_v20 = vld [vmem:[%s1613_s15 + $0x14] ss:$8 sps:$4 sm:$0xff]  }
  0x12   : > { %v1467_v12 = vld [vmem:[%s1613_s15 + $0x84] ss:$8 sps:$4 sm:$0xff]   ;;  %730 = vmatprep.mubr.bf16.mxu0 %v1464_v11  ;;  %v1465_v19 = vld [vmem:[%s1613_s15 + $0x80] ss:$8 sps:$4 sm:$0xff]   ;;  %v1470_v21 = vld [vmem:[%s1613_s15 + $0x94] ss:$8 sps:$4 sm:$0xff]  }
  0x13   : > { %794 = vmatprep.mubr.bf16.mxu1 %v1467_v12  ;;  %v1472_v22 = vld [vmem:[%s1613_s15 + $0x10] ss:$8 sps:$4 sm:$0xff]   ;;  %v1474_v24 = vld [vmem:[%s1613_s15 + $0x24] ss:$8 sps:$4 sm:$0xff]   ;;  %v1478_v26 = vld [vmem:[%s1613_s15 + $0x20] ss:$8 sps:$4 sm:$0xff]  }
  0x14   : > { %1300 = vmatpush3.bf16.msra.mxu0 %v1453_v7  ;;  %1416 = vmatpush3.bf16.msra.mxu1 %v1453_v7  ;;  %v1473_v23 = vld [vmem:[%s1613_s15 + $0x90] ss:$8 sps:$4 sm:$0xff]   ;;  %v1476_v25 = vld [vmem:[%s1613_s15 + $0xa4] ss:$8 sps:$4 sm:$0xff]   ;;  %v1479_v27 = vld [vmem:[%s1613_s15 + $0xa0] ss:$8 sps:$4 sm:$0xff]  }
  0x15   : > { %1301 = vmatprep.subr.bf16.mxu0 %v1454_v8  ;;  %1409 = vmatprep.subr.bf16.mxu1 %v1454_v8  ;;  %v1480_v28 = vld [vmem:[%s1613_s15 + $0x34] ss:$8 sps:$4 sm:$0xff]   ;;  %v1484_v30 = vld [vmem:[%s1613_s15 + $0x30] ss:$8 sps:$4 sm:$0xff]   ;;  %v1486_v32 = vld [vmem:[%s1613_s15 + $0x44] ss:$8 sps:$4 sm:$0xff]  }
  0x16   : > { %v1482_v29 = vld [vmem:[%s1613_s15 + $0xb4] ss:$8 sps:$4 sm:$0xff]   ;;  %v1485_v31 = vld [vmem:[%s1613_s15 + $0xb0] ss:$8 sps:$4 sm:$0xff]   ;;  %v1488_v33 = vld [vmem:[%s1613_s15 + $0xc4] ss:$8 sps:$4 sm:$0xff]  }
  0x17   : > { %v1490_v34 = vld [vmem:[%s1613_s15 + $0x40] ss:$8 sps:$4 sm:$0xff]   ;;  %v1492_v36 = vld [vmem:[%s1613_s15 + $0x54] ss:$8 sps:$4 sm:$0xff]   ;;  %v1496_v38 = vld [vmem:[%s1613_s15 + $0x50] ss:$8 sps:$4 sm:$0xff]  }
  0x18   : > { %1302 = vmatpush3.bf16.msra.mxu0 %v1455_v9  ;;  %1417 = vmatpush3.bf16.msra.mxu1 %v1455_v9  ;;  %v1491_v35 = vld [vmem:[%s1613_s15 + $0xc0] ss:$8 sps:$4 sm:$0xff]   ;;  %v1494_v37 = vld [vmem:[%s1613_s15 + $0xd4] ss:$8 sps:$4 sm:$0xff]   ;;  %v1497_v39 = vld [vmem:[%s1613_s15 + $0xd0] ss:$8 sps:$4 sm:$0xff]  }
  0x19   : > { %1303 = vmatprep.subr.bf16.mxu0 %v1456_v10  ;;  %1410 = vmatprep.subr.bf16.mxu1 %v1456_v10  ;;  %v1498_v40 = vld [vmem:[%s1613_s15 + $0x64] ss:$8 sps:$4 sm:$0xff]   ;;  %v1502_v42 = vld [vmem:[%s1613_s15 + $0x60] ss:$8 sps:$4 sm:$0xff]   ;;  %v1504_v44 = vld [vmem:[%s1613_s15 + $0x74] ss:$8 sps:$4 sm:$0xff]  }
  0x1a   : > { %v1500_v41 = vld [vmem:[%s1613_s15 + $0xe4] ss:$8 sps:$4 sm:$0xff]   ;;  %v1503_v43 = vld [vmem:[%s1613_s15 + $0xe0] ss:$8 sps:$4 sm:$0xff]   ;;  %v1506_v45 = vld [vmem:[%s1613_s15 + $0xf4] ss:$8 sps:$4 sm:$0xff]  }
  0x1b   : > { %v1508_v46 = vld [vmem:[%s1613_s15 + $0x70] ss:$8 sps:$4 sm:$0xff]   ;;  %331 = vst.msk [vmem:[#allocation2 + $0x88] sm:$0xff] %vm313_vm0, %v1534_v48  ;;  %332 = vst.msk [vmem:[#allocation2 + $0x90] sm:$0xff] %vm313_vm0, %v1534_v48  ;;  %v362_v53 = vld [vmem:[#allocation2 + $0x80] sm:$0xff] }
  0x1c   : > { %1304 = vmatpush3.bf16.msra.mxu0 %v1457_v13  ;;  %1418 = vmatpush3.bf16.msra.mxu1 %v1457_v13  ;;  %v1509_v47 = vld [vmem:[%s1613_s15 + $0xf0] ss:$8 sps:$4 sm:$0xff]   ;;  %333 = vst.msk [vmem:[#allocation2 + $0x98] sm:$0xff] %vm313_vm0, %v1534_v48  ;;  %334 = vst.msk [vmem:[#allocation2 + $0xa0] sm:$0xff] %vm313_vm0, %v1534_v48  ;;  %s1729_s15 = scalar_lea.vmem %s1890_s4, %s1292_s10 }
  0x1d   : > { %1305 = vmatprep.subr.bf16.mxu0 %v1458_v14  ;;  %1411 = vmatprep.subr.bf16.mxu1 %v1458_v14  ;;  %335 = vst.msk [vmem:[#allocation2 + $0xa8] sm:$0xff] %vm313_vm0, %v1534_v48  ;;  %336 = vst.msk [vmem:[#allocation2 + $0xb0] sm:$0xff] %vm313_vm0, %v1534_v48  ;;  %v348_v7 = vld [vmem:[#allocation2 + $0x10] sm:$0xff] }
  0x1e   : > { %337 = vst.msk [vmem:[#allocation2 + $0xb8] sm:$0xff] %vm313_vm0, %v1534_v48  ;;  %338 = vst.msk [vmem:[#allocation2 + $0xc0] sm:$0xff] %vm313_vm0, %v1534_v48 }
  0x1f   : > { %339 = vst.msk [vmem:[#allocation2 + $0xc8] sm:$0xff] %vm313_vm0, %v1534_v48  ;;  %340 = vst.msk [vmem:[#allocation2 + $0xd0] sm:$0xff] %vm313_vm0, %v1534_v48 }
  0x20   : > { %1306 = vmatpush3.bf16.msra.mxu0 %v1459_v15  ;;  %1419 = vmatpush3.bf16.msra.mxu1 %v1459_v15  ;;  %341 = vst.msk [vmem:[#allocation2 + $0xd8] sm:$0xff] %vm313_vm0, %v1534_v48  ;;  %342 = vst.msk [vmem:[#allocation2 + $0xe0] sm:$0xff] %vm313_vm0, %v1534_v48  ;;  %v1707_v15 = vld [vmem:[%s1888_s2] ss:$0 sm:$0xff] }
  0x21   : > { %1307 = vmatprep.subr.bf16.mxu0 %v1460_v16  ;;  %1412 = vmatprep.subr.bf16.mxu1 %v1460_v16  ;;  %343 = vst.msk [vmem:[#allocation2 + $0xe8] sm:$0xff] %vm313_vm0, %v1534_v48  ;;  %344 = vst.msk [vmem:[#allocation2 + $0xf0] sm:$0xff] %vm313_vm0, %v1534_v48  ;;  %v349_v16 = vld [vmem:[#allocation2 + $0x18] sm:$0xff] }
  0x22   : > { %345 = vst.msk [vmem:[#allocation2 + $0xf8] sm:$0xff] %vm313_vm0, %v1534_v48  ;;  %v363_v61 = vld [vmem:[#allocation2 + $0x88] sm:$0xff]  ;;  %v364_v9 = vld [vmem:[#allocation2 + $0x90] sm:$0xff] }
  0x24   : > { %1308 = vmatpush3.bf16.msra.mxu0 %v1461_v17  ;;  %1420 = vmatpush3.bf16.msra.mxu1 %v1461_v17 }
  0x27   : > { %731 = vmatmul.mubr.bf16.vlgmr.msra.gmra.mrb[0].mxu0 %v1462_v18  ;;  %795 = vmatmul.mubr.bf16.vlgmr.msra.gmra.mrb[0].mxu1 %v1465_v19  ;;  %v365_v18 = vld [vmem:[#allocation2 + $0x98] sm:$0xff] }
  0x28   : > { %738 = vmatprep.mubr.bf16.mxu0 %v1468_v20  ;;  %802 = vmatprep.mubr.bf16.mxu1 %v1470_v21 }
  0x2f   : > { %739 = vmatmul.mubr.bf16.gmra.mrb[4].mxu0 %v1472_v22  ;;  %803 = vmatmul.mubr.bf16.gmra.mrb[4].mxu1 %v1473_v23 }
  0x30   : > { %746 = vmatprep.mubr.bf16.mxu0 %v1474_v24  ;;  %810 = vmatprep.mubr.bf16.mxu1 %v1476_v25  ;;  %v1712_v25 = vld [vmem:[%s1889_s3] ss:$0 sm:$0xff] }
  0x37   : > { %747 = vmatmul.mubr.bf16.gmra.mrb[8].mxu0 %v1478_v26  ;;  %811 = vmatmul.mubr.bf16.gmra.mrb[8].mxu1 %v1479_v27 }
  0x38   : > { %754 = vmatprep.mubr.bf16.mxu0 %v1480_v28  ;;  %818 = vmatprep.mubr.bf16.mxu1 %v1482_v29 }
  0x3f   : > { %755 = vmatmul.mubr.bf16.gmra.mrb[12].mxu0 %v1484_v30  ;;  %819 = vmatmul.mubr.bf16.gmra.mrb[12].mxu1 %v1485_v31 }
  0x40   : > { %762 = vmatprep.mubr.bf16.mxu0 %v1486_v32  ;;  %826 = vmatprep.mubr.bf16.mxu1 %v1488_v33 }
  0x47   : > { %763 = vmatmul.mubr.bf16.gmra.mrb[16].mxu0 %v1490_v34  ;;  %827 = vmatmul.mubr.bf16.gmra.mrb[16].mxu1 %v1491_v35 }
  0x48   : > { %770 = vmatprep.mubr.bf16.mxu0 %v1492_v36  ;;  %834 = vmatprep.mubr.bf16.mxu1 %v1494_v37 }
  0x4f   : > { %771 = vmatmul.mubr.bf16.gmra.mrb[20].mxu0 %v1496_v38  ;;  %835 = vmatmul.mubr.bf16.gmra.mrb[20].mxu1 %v1497_v39 }
  0x50   : > { %778 = vmatprep.mubr.bf16.mxu0 %v1498_v40  ;;  %842 = vmatprep.mubr.bf16.mxu1 %v1500_v41 }
  0x57   : > { %779 = vmatmul.mubr.bf16.gmra.mrb[24].mxu0 %v1502_v42  ;;  %843 = vmatmul.mubr.bf16.gmra.mrb[24].mxu1 %v1503_v43 }
  0x58   : > { %786 = vmatprep.mubr.bf16.mxu0 %v1504_v44  ;;  %850 = vmatprep.mubr.bf16.mxu1 %v1506_v45  ;;  %v350_v45 = vld [vmem:[#allocation2 + $0x20] sm:$0xff] }
  0x5f   : > { %787 = vmatmul.mubr.bf16.gmra.mrb[28].mxu0 %v1508_v46  ;;  %851 = vmatmul.mubr.bf16.gmra.mrb[28].mxu1 %v1509_v47  ;;  %v366_v46 = vld [vmem:[#allocation2 + $0xa0] sm:$0xff] }
  0xfa   : > { %v1309_v49 = vpop.f32.mrb[0].mxu0  ;;  %v1357_v50 = vpop.f32.mrb[0].mxu1 }
  0xfb   : > { %v1310_v52 = vpop.f32.mrb[1].mxu0  ;;  %v1358_v54 = vpop.f32.mrb[1].mxu1 }
  0xfc   : > { %v1311_v55 = vadd.f32 %v1310_v52, %v1309_v49  ;;  %v1359_v56 = vadd.f32 %v1358_v54, %v1357_v50  ;;  %v1312_v57 = vpop.f32.mrb[2].mxu0  ;;  %v1360_v58 = vpop.f32.mrb[2].mxu1 }
  0xfd   : > { %v1313_v60 = vpop.f32.mrb[3].mxu0  ;;  %v1361_v62 = vpop.f32.mrb[3].mxu1 }
  0xfe   : > { %v859_v63 = vadd.f32 %v1311_v55, %v346_v51  ;;  %v875_v0 = vadd.f32 %v1359_v56, %v362_v53  ;;  %v1314_v1 = vadd.f32 %v1313_v60, %v1312_v57  ;;  %v1362_v2 = vadd.f32 %v1361_v62, %v1360_v58  ;;  %v351_v51 = vld [vmem:[#allocation2 + $0x28] sm:$0xff] }
  0xff   : > { %v367_v53 = vld [vmem:[#allocation2 + $0xa8] sm:$0xff] }
 0x100   : > { %892 = vst.msk [vmem:[#allocation2] sm:$0xff] %vm313_vm0, %v859_v63  ;;  %908 = vst.msk [vmem:[#allocation2 + $0x80] sm:$0xff] %vm313_vm0, %v875_v0  ;;  %v860_v3 = vadd.f32 %v1314_v1, %v347_v59  ;;  %v876_v4 = vadd.f32 %v1362_v2, %v363_v61 }
 0x102   : > { %893 = vst.msk [vmem:[#allocation2 + $0x8] sm:$0xff] %vm313_vm0, %v860_v3  ;;  %909 = vst.msk [vmem:[#allocation2 + $0x88] sm:$0xff] %vm313_vm0, %v876_v4  ;;  %v1315_v5 = vpop.f32.mrb[4].mxu0  ;;  %v1363_v6 = vpop.f32.mrb[4].mxu1 }
 0x103   : > { %v1316_v8 = vpop.f32.mrb[5].mxu0  ;;  %v1364_v10 = vpop.f32.mrb[5].mxu1 }
 0x104   : > { %v1317_v11 = vadd.f32 %v1316_v8, %v1315_v5  ;;  %v1365_v12 = vadd.f32 %v1364_v10, %v1363_v6  ;;  %v1318_v13 = vpop.f32.mrb[6].mxu0  ;;  %v1366_v14 = vpop.f32.mrb[6].mxu1 }
 0x105   : > { %v1319_v17 = vpop.f32.mrb[7].mxu0  ;;  %v1367_v19 = vpop.f32.mrb[7].mxu1 }
 0x106   : > { %v861_v20 = vadd.f32 %v1317_v11, %v348_v7  ;;  %v877_v21 = vadd.f32 %v1365_v12, %v364_v9  ;;  %v1320_v22 = vadd.f32 %v1319_v17, %v1318_v13  ;;  %v1368_v23 = vadd.f32 %v1367_v19, %v1366_v14  ;;  %v368_v19 = vld [vmem:[#allocation2 + $0xb0] sm:$0xff] }
 0x107   : > { %v927_v24 = vld [vmem:[#allocation2] sm:$0xff] }
 0x108   : > { %v943_v26 = vld [vmem:[#allocation2 + $0x80] sm:$0xff]  ;;  %v966_v27 = vmul.f32 %v1707_v15, %v927_v24  ;;  %894 = vst.msk [vmem:[#allocation2 + $0x10] sm:$0xff] %vm313_vm0, %v861_v20  ;;  %910 = vst.msk [vmem:[#allocation2 + $0x90] sm:$0xff] %vm313_vm0, %v877_v21  ;;  %v862_v29 = vadd.f32 %v1320_v22, %v349_v16  ;;  %v878_v30 = vadd.f32 %v1368_v23, %v365_v18  ;;  %v352_v18 = vld [vmem:[#allocation2 + $0x30] sm:$0xff] }
 0x109   : > { %v982_v28 = vmul.f32 %v1707_v15, %v943_v26  ;;  %v928_v31 = vld [vmem:[#allocation2 + $0x8] sm:$0xff]  ;;  %v353_v24 = vld [vmem:[#allocation2 + $0x38] sm:$0xff] }
 0x10a   : > { %v944_v32 = vld [vmem:[#allocation2 + $0x88] sm:$0xff]  ;;  %v1005_v33 = vadd.f32 %v1712_v25, %v966_v27  ;;  %v967_v35 = vmul.f32 %v1707_v15, %v928_v31  ;;  %895 = vst.msk [vmem:[#allocation2 + $0x18] sm:$0xff] %vm313_vm0, %v862_v29  ;;  %911 = vst.msk [vmem:[#allocation2 + $0x98] sm:$0xff] %vm313_vm0, %v878_v30  ;;  %v1321_v37 = vpop.f32.mrb[8].mxu0  ;;  %v1369_v38 = vpop.f32.mrb[8].mxu1  ;;  %v369_v27 = vld [vmem:[#allocation2 + $0xb8] sm:$0xff] }
 0x10b   : > { %v1021_v34 = vadd.f32 %v1712_v25, %v982_v28  ;;  %v983_v36 = vmul.f32 %v1707_v15, %v944_v32  ;;  %v1322_v39 = vpop.f32.mrb[9].mxu0  ;;  %v1370_v40 = vpop.f32.mrb[9].mxu1 }
 0x10c   : > { %v1037_v41 = vmax.f32 %v1005_v33, 0.0  ;;  %v1006_v43 = vadd.f32 %v1712_v25, %v967_v35  ;;  %v1324_v47 = vpop.f32.mrb[10].mxu0  ;;  %v1372_v48 = vpop.f32.mrb[10].mxu1  ;;  %v1323_v49 = vadd.f32 %v1322_v39, %v1321_v37  ;;  %v1371_v50 = vadd.f32 %v1370_v40, %v1369_v38 }
 0x10d   : > { %v1053_v42 = vmax.f32 %v1021_v34, 0.0  ;;  %v1022_v44 = vadd.f32 %v1712_v25, %v983_v36  ;;  %v1325_v52 = vpop.f32.mrb[11].mxu0  ;;  %v1373_v54 = vpop.f32.mrb[11].mxu1 }
 0x10e   : > { %1069 = vst.msk [vmem:[%s1729_s15] sm:$0xff] %vm313_vm0, %v1037_v41  ;;  %v1038_v55 = vmax.f32 %v1006_v43, 0.0  ;;  %v1326_v57 = vadd.f32 %v1325_v52, %v1324_v47  ;;  %v1374_v58 = vadd.f32 %v1373_v54, %v1372_v48  ;;  %v863_v61 = vadd.f32 %v1323_v49, %v350_v45  ;;  %v354_v49 = vld [vmem:[#allocation2 + $0x40] sm:$0xff] }
 0x10f   : > { %1085 = vst.msk [vmem:[%s1729_s15 + $0x80] sm:$0xff] %vm313_vm0, %v1053_v42  ;;  %v1054_v56 = vmax.f32 %v1022_v44, 0.0  ;;  %v929_v59 = vld [vmem:[#allocation2 + $0x10] sm:$0xff]  ;;  %v879_v62 = vadd.f32 %v1371_v50, %v366_v46 }
 0x110   : > { %v945_v60 = vld [vmem:[#allocation2 + $0x90] sm:$0xff]  ;;  %1070 = vst.msk [vmem:[%s1729_s15 + $0x8] sm:$0xff] %vm313_vm0, %v1038_v55  ;;  %v968_v63 = vmul.f32 %v1707_v15, %v929_v59  ;;  %v864_v1 = vadd.f32 %v1326_v57, %v351_v51  ;;  %v880_v2 = vadd.f32 %v1374_v58, %v367_v53  ;;  %896 = vst.msk [vmem:[#allocation2 + $0x20] sm:$0xff] %vm313_vm0, %v863_v61  ;;  %v370_v51 = vld [vmem:[#allocation2 + $0xc0] sm:$0xff] }
 0x111   : > { %1086 = vst.msk [vmem:[%s1729_s15 + $0x88] sm:$0xff] %vm313_vm0, %v1054_v56  ;;  %v984_v0 = vmul.f32 %v1707_v15, %v945_v60  ;;  %v930_v3 = vld [vmem:[#allocation2 + $0x18] sm:$0xff]  ;;  %912 = vst.msk [vmem:[#allocation2 + $0xa0] sm:$0xff] %vm313_vm0, %v879_v62 }
 0x112   : > { %v946_v4 = vld [vmem:[#allocation2 + $0x98] sm:$0xff]  ;;  %v1007_v5 = vadd.f32 %v1712_v25, %v968_v63  ;;  %v969_v7 = vmul.f32 %v1707_v15, %v930_v3  ;;  %897 = vst.msk [vmem:[#allocation2 + $0x28] sm:$0xff] %vm313_vm0, %v864_v1  ;;  %913 = vst.msk [vmem:[#allocation2 + $0xa8] sm:$0xff] %vm313_vm0, %v880_v2  ;;  %v1327_v9 = vpop.f32.mrb[12].mxu0  ;;  %v1375_v10 = vpop.f32.mrb[12].mxu1  ;;  %v355_v3 = vld [vmem:[#allocation2 + $0x48] sm:$0xff] }
 0x113   : > { %v1023_v6 = vadd.f32 %v1712_v25, %v984_v0  ;;  %v985_v8 = vmul.f32 %v1707_v15, %v946_v4  ;;  %v1328_v11 = vpop.f32.mrb[13].mxu0  ;;  %v1376_v12 = vpop.f32.mrb[13].mxu1  ;;  %v371_v4 = vld [vmem:[#allocation2 + $0xc8] sm:$0xff] }
 0x114   : > { %v1039_v13 = vmax.f32 %v1007_v5, 0.0  ;;  %v1008_v16 = vadd.f32 %v1712_v25, %v969_v7  ;;  %v1330_v20 = vpop.f32.mrb[14].mxu0  ;;  %v1378_v21 = vpop.f32.mrb[14].mxu1  ;;  %v1329_v22 = vadd.f32 %v1328_v11, %v1327_v9  ;;  %v1377_v23 = vadd.f32 %v1376_v12, %v1375_v10 }
 0x115   : > { %v1055_v14 = vmax.f32 %v1023_v6, 0.0  ;;  %v1024_v17 = vadd.f32 %v1712_v25, %v985_v8  ;;  %v1331_v26 = vpop.f32.mrb[15].mxu0  ;;  %v1379_v28 = vpop.f32.mrb[15].mxu1 }
 0x116   : > { %1071 = vst.msk [vmem:[%s1729_s15 + $0x10] sm:$0xff] %vm313_vm0, %v1039_v13  ;;  %v1040_v29 = vmax.f32 %v1008_v16, 0.0  ;;  %v1332_v31 = vadd.f32 %v1331_v26, %v1330_v20  ;;  %v1380_v32 = vadd.f32 %v1379_v28, %v1378_v21  ;;  %v865_v33 = vadd.f32 %v1329_v22, %v352_v18  ;;  %v356_v22 = vld [vmem:[#allocation2 + $0x50] sm:$0xff] }
 0x117   : > { %1087 = vst.msk [vmem:[%s1729_s15 + $0x90] sm:$0xff] %vm313_vm0, %v1055_v14  ;;  %v1056_v30 = vmax.f32 %v1024_v17, 0.0  ;;  %v881_v34 = vadd.f32 %v1377_v23, %v368_v19  ;;  %v931_v35 = vld [vmem:[#allocation2 + $0x20] sm:$0xff] }
 0x118   : > { %1072 = vst.msk [vmem:[%s1729_s15 + $0x18] sm:$0xff] %vm313_vm0, %v1040_v29  ;;  %v947_v36 = vld [vmem:[#allocation2 + $0xa0] sm:$0xff]  ;;  %v866_v37 = vadd.f32 %v1332_v31, %v353_v24  ;;  %v882_v38 = vadd.f32 %v1380_v32, %v369_v27  ;;  %v970_v39 = vmul.f32 %v1707_v15, %v931_v35  ;;  %898 = vst.msk [vmem:[#allocation2 + $0x30] sm:$0xff] %vm313_vm0, %v865_v33  ;;  %v372_v24 = vld [vmem:[#allocation2 + $0xd0] sm:$0xff] }
 0x119   : > { %1088 = vst.msk [vmem:[%s1729_s15 + $0x98] sm:$0xff] %vm313_vm0, %v1056_v30  ;;  %v986_v40 = vmul.f32 %v1707_v15, %v947_v36  ;;  %v932_v41 = vld [vmem:[#allocation2 + $0x28] sm:$0xff]  ;;  %914 = vst.msk [vmem:[#allocation2 + $0xb0] sm:$0xff] %vm313_vm0, %v881_v34 }
 0x11a   : > { %v948_v42 = vld [vmem:[#allocation2 + $0xa8] sm:$0xff]  ;;  %v971_v43 = vmul.f32 %v1707_v15, %v932_v41  ;;  %899 = vst.msk [vmem:[#allocation2 + $0x38] sm:$0xff] %vm313_vm0, %v866_v37  ;;  %915 = vst.msk [vmem:[#allocation2 + $0xb8] sm:$0xff] %vm313_vm0, %v882_v38  ;;  %v1333_v45 = vpop.f32.mrb[16].mxu0  ;;  %v1381_v46 = vpop.f32.mrb[16].mxu1  ;;  %v1009_v47 = vadd.f32 %v1712_v25, %v970_v39  ;;  %v357_v41 = vld [vmem:[#allocation2 + $0x58] sm:$0xff] }
 0x11b   : > { %v987_v44 = vmul.f32 %v1707_v15, %v948_v42  ;;  %v1025_v48 = vadd.f32 %v1712_v25, %v986_v40  ;;  %v1334_v50 = vpop.f32.mrb[17].mxu0  ;;  %v1382_v52 = vpop.f32.mrb[17].mxu1  ;;  %v373_v42 = vld [vmem:[#allocation2 + $0xd8] sm:$0xff] }
 0x11c   : > { %v1010_v53 = vadd.f32 %v1712_v25, %v971_v43  ;;  %v1335_v55 = vadd.f32 %v1334_v50, %v1333_v45  ;;  %v1383_v56 = vadd.f32 %v1382_v52, %v1381_v46  ;;  %v1336_v57 = vpop.f32.mrb[18].mxu0  ;;  %v1384_v58 = vpop.f32.mrb[18].mxu1  ;;  %v1041_v59 = vmax.f32 %v1009_v47, 0.0 }
 0x11d   : > { %v1026_v54 = vadd.f32 %v1712_v25, %v987_v44  ;;  %v1057_v60 = vmax.f32 %v1025_v48, 0.0  ;;  %v1337_v61 = vpop.f32.mrb[19].mxu0  ;;  %v1385_v62 = vpop.f32.mrb[19].mxu1 }
 0x11e   : > { %v1042_v63 = vmax.f32 %v1010_v53, 0.0  ;;  %v867_v1 = vadd.f32 %v1335_v55, %v354_v49  ;;  %v883_v2 = vadd.f32 %v1383_v56, %v370_v51  ;;  %1073 = vst.msk [vmem:[%s1729_s15 + $0x20] sm:$0xff] %vm313_vm0, %v1041_v59  ;;  %v1338_v5 = vadd.f32 %v1337_v61, %v1336_v57  ;;  %v358_v59 = vld [vmem:[#allocation2 + $0x60] sm:$0xff] }
 0x11f   : > { %v1058_v0 = vmax.f32 %v1026_v54, 0.0  ;;  %1089 = vst.msk [vmem:[%s1729_s15 + $0xa0] sm:$0xff] %vm313_vm0, %v1057_v60  ;;  %v1386_v6 = vadd.f32 %v1385_v62, %v1384_v58  ;;  %v933_v7 = vld [vmem:[#allocation2 + $0x30] sm:$0xff]  ;;  %v374_v61 = vld [vmem:[#allocation2 + $0xe0] sm:$0xff] }
 0x120   : > { %1074 = vst.msk [vmem:[%s1729_s15 + $0x28] sm:$0xff] %vm313_vm0, %v1042_v63  ;;  %v949_v8 = vld [vmem:[#allocation2 + $0xb0] sm:$0xff]  ;;  %900 = vst.msk [vmem:[#allocation2 + $0x40] sm:$0xff] %vm313_vm0, %v867_v1  ;;  %v972_v9 = vmul.f32 %v1707_v15, %v933_v7  ;;  %v868_v13 = vadd.f32 %v1338_v5, %v355_v3  ;;  %v359_v7 = vld [vmem:[#allocation2 + $0x68] sm:$0xff] }
 0x121   : > { %1090 = vst.msk [vmem:[%s1729_s15 + $0xa8] sm:$0xff] %vm313_vm0, %v1058_v0  ;;  %916 = vst.msk [vmem:[#allocation2 + $0xc0] sm:$0xff] %vm313_vm0, %v883_v2  ;;  %v988_v10 = vmul.f32 %v1707_v15, %v949_v8  ;;  %v934_v11 = vld [vmem:[#allocation2 + $0x38] sm:$0xff]  ;;  %v884_v14 = vadd.f32 %v1386_v6, %v371_v4 }
 0x122   : > { %v950_v12 = vld [vmem:[#allocation2 + $0xb8] sm:$0xff]  ;;  %v973_v16 = vmul.f32 %v1707_v15, %v934_v11  ;;  %v1339_v18 = vpop.f32.mrb[20].mxu0  ;;  %v1387_v19 = vpop.f32.mrb[20].mxu1  ;;  %v1011_v20 = vadd.f32 %v1712_v25, %v972_v9  ;;  %901 = vst.msk [vmem:[#allocation2 + $0x48] sm:$0xff] %vm313_vm0, %v868_v13  ;;  %v375_v9 = vld [vmem:[#allocation2 + $0xe8] sm:$0xff] }
 0x123   : > { %v989_v17 = vmul.f32 %v1707_v15, %v950_v12  ;;  %v1027_v21 = vadd.f32 %v1712_v25, %v988_v10  ;;  %917 = vst.msk [vmem:[#allocation2 + $0xc8] sm:$0xff] %vm313_vm0, %v884_v14  ;;  %v1340_v23 = vpop.f32.mrb[21].mxu0  ;;  %v1388_v26 = vpop.f32.mrb[21].mxu1 }
 0x124   : > { %v1012_v27 = vadd.f32 %v1712_v25, %v973_v16  ;;  %v1341_v29 = vadd.f32 %v1340_v23, %v1339_v18  ;;  %v1389_v30 = vadd.f32 %v1388_v26, %v1387_v19  ;;  %v1342_v31 = vpop.f32.mrb[22].mxu0  ;;  %v1390_v32 = vpop.f32.mrb[22].mxu1  ;;  %v1043_v33 = vmax.f32 %v1011_v20, 0.0 }
 0x125   : > { %v1028_v28 = vadd.f32 %v1712_v25, %v989_v17  ;;  %v1059_v34 = vmax.f32 %v1027_v21, 0.0  ;;  %v1343_v35 = vpop.f32.mrb[23].mxu0  ;;  %v1391_v36 = vpop.f32.mrb[23].mxu1 }
 0x126   : > { %v1044_v37 = vmax.f32 %v1012_v27, 0.0  ;;  %v869_v39 = vadd.f32 %v1341_v29, %v356_v22  ;;  %v885_v40 = vadd.f32 %v1389_v30, %v372_v24  ;;  %1075 = vst.msk [vmem:[%s1729_s15 + $0x30] sm:$0xff] %vm313_vm0, %v1043_v33  ;;  %v1344_v45 = vadd.f32 %v1343_v35, %v1342_v31  ;;  %v360_v33 = vld [vmem:[#allocation2 + $0x70] sm:$0xff] }
 0x127   : > { %v1060_v38 = vmax.f32 %v1028_v28, 0.0  ;;  %1091 = vst.msk [vmem:[%s1729_s15 + $0xb0] sm:$0xff] %vm313_vm0, %v1059_v34  ;;  %v935_v43 = vld [vmem:[#allocation2 + $0x40] sm:$0xff]  ;;  %v1392_v46 = vadd.f32 %v1391_v36, %v1390_v32  ;;  %v376_v35 = vld [vmem:[#allocation2 + $0xf0] sm:$0xff] }
 0x128   : > { %v951_v44 = vld [vmem:[#allocation2 + $0xc0] sm:$0xff]  ;;  %1076 = vst.msk [vmem:[%s1729_s15 + $0x38] sm:$0xff] %vm313_vm0, %v1044_v37  ;;  %v974_v47 = vmul.f32 %v1707_v15, %v935_v43  ;;  %902 = vst.msk [vmem:[#allocation2 + $0x50] sm:$0xff] %vm313_vm0, %v869_v39  ;;  %v870_v49 = vadd.f32 %v1344_v45, %v357_v41  ;;  %v361_v45 = vld [vmem:[#allocation2 + $0x78] sm:$0xff] }
 0x129   : > { %1092 = vst.msk [vmem:[%s1729_s15 + $0xb8] sm:$0xff] %vm313_vm0, %v1060_v38  ;;  %v990_v48 = vmul.f32 %v1707_v15, %v951_v44  ;;  %918 = vst.msk [vmem:[#allocation2 + $0xd0] sm:$0xff] %vm313_vm0, %v885_v40  ;;  %v886_v50 = vadd.f32 %v1392_v46, %v373_v42  ;;  %v936_v53 = vld [vmem:[#allocation2 + $0x48] sm:$0xff] }
 0x12a   : > { %v1013_v51 = vadd.f32 %v1712_v25, %v974_v47  ;;  %v952_v54 = vld [vmem:[#allocation2 + $0xc8] sm:$0xff]  ;;  %v1345_v55 = vpop.f32.mrb[24].mxu0  ;;  %v1393_v56 = vpop.f32.mrb[24].mxu1  ;;  %v975_v57 = vmul.f32 %v1707_v15, %v936_v53  ;;  %903 = vst.msk [vmem:[#allocation2 + $0x58] sm:$0xff] %vm313_vm0, %v870_v49  ;;  %v377_v47 = vld [vmem:[#allocation2 + $0xf8] sm:$0xff] }
 0x12b   : > { %v1029_v52 = vadd.f32 %v1712_v25, %v990_v48  ;;  %v991_v58 = vmul.f32 %v1707_v15, %v952_v54  ;;  %919 = vst.msk [vmem:[#allocation2 + $0xd8] sm:$0xff] %vm313_vm0, %v886_v50  ;;  %v1346_v60 = vpop.f32.mrb[25].mxu0  ;;  %v1394_v62 = vpop.f32.mrb[25].mxu1 }
 0x12c   : > { %v1045_v63 = vmax.f32 %v1013_v51, 0.0  ;;  %v1347_v1 = vadd.f32 %v1346_v60, %v1345_v55  ;;  %v1395_v2 = vadd.f32 %v1394_v62, %v1393_v56  ;;  %v1348_v3 = vpop.f32.mrb[26].mxu0  ;;  %v1396_v4 = vpop.f32.mrb[26].mxu1  ;;  %v1014_v5 = vadd.f32 %v1712_v25, %v975_v57 }
 0x12d   : > { %v1061_v0 = vmax.f32 %v1029_v52, 0.0  ;;  %v1030_v6 = vadd.f32 %v1712_v25, %v991_v58  ;;  %v1349_v8 = vpop.f32.mrb[27].mxu0  ;;  %v1397_v10 = vpop.f32.mrb[27].mxu1 }
 0x12e   : > { %1077 = vst.msk [vmem:[%s1729_s15 + $0x40] sm:$0xff] %vm313_vm0, %v1045_v63  ;;  %v871_v11 = vadd.f32 %v1347_v1, %v358_v59  ;;  %v887_v12 = vadd.f32 %v1395_v2, %v374_v61  ;;  %v1350_v13 = vadd.f32 %v1349_v8, %v1348_v3  ;;  %v1398_v14 = vadd.f32 %v1397_v10, %v1396_v4 }
 0x12f   : > { %1093 = vst.msk [vmem:[%s1729_s15 + $0xc0] sm:$0xff] %vm313_vm0, %v1061_v0  ;;  %v1046_v16 = vmax.f32 %v1014_v5, 0.0  ;;  %v1062_v17 = vmax.f32 %v1030_v6, 0.0  ;;  %v937_v18 = vld [vmem:[#allocation2 + $0x50] sm:$0xff] }
 0x130   : > { %v953_v19 = vld [vmem:[#allocation2 + $0xd0] sm:$0xff]  ;;  %v976_v20 = vmul.f32 %v1707_v15, %v937_v18  ;;  %904 = vst.msk [vmem:[#allocation2 + $0x60] sm:$0xff] %vm313_vm0, %v871_v11  ;;  %920 = vst.msk [vmem:[#allocation2 + $0xe0] sm:$0xff] %vm313_vm0, %v887_v12  ;;  %v872_v22 = vadd.f32 %v1350_v13, %v359_v7  ;;  %v888_v23 = vadd.f32 %v1398_v14, %v375_v9 }
 0x131   : > { %v992_v21 = vmul.f32 %v1707_v15, %v953_v19  ;;  %1078 = vst.msk [vmem:[%s1729_s15 + $0x48] sm:$0xff] %vm313_vm0, %v1046_v16  ;;  %1094 = vst.msk [vmem:[%s1729_s15 + $0xc8] sm:$0xff] %vm313_vm0, %v1062_v17  ;;  %v938_v27 = vld [vmem:[#allocation2 + $0x58] sm:$0xff] }
 0x132   : > { %v1015_v24 = vadd.f32 %v1712_v25, %v976_v20  ;;  %v954_v28 = vld [vmem:[#allocation2 + $0xd8] sm:$0xff]  ;;  %905 = vst.msk [vmem:[#allocation2 + $0x68] sm:$0xff] %vm313_vm0, %v872_v22  ;;  %921 = vst.msk [vmem:[#allocation2 + $0xe8] sm:$0xff] %vm313_vm0, %v888_v23  ;;  %v1351_v29 = vpop.f32.mrb[28].mxu0  ;;  %v1399_v30 = vpop.f32.mrb[28].mxu1  ;;  %v977_v31 = vmul.f32 %v1707_v15, %v938_v27 }
 0x133   : > { %v1031_v26 = vadd.f32 %v1712_v25, %v992_v21  ;;  %v993_v32 = vmul.f32 %v1707_v15, %v954_v28  ;;  %v1352_v34 = vpop.f32.mrb[29].mxu0  ;;  %v1400_v36 = vpop.f32.mrb[29].mxu1 }
 0x134   : > { %v1047_v37 = vmax.f32 %v1015_v24, 0.0  ;;  %v1353_v39 = vadd.f32 %v1352_v34, %v1351_v29  ;;  %v1401_v40 = vadd.f32 %v1400_v36, %v1399_v30  ;;  %v1354_v41 = vpop.f32.mrb[30].mxu0  ;;  %v1402_v42 = vpop.f32.mrb[30].mxu1  ;;  %v1016_v43 = vadd.f32 %v1712_v25, %v977_v31 }
 0x135   : > { %v1063_v38 = vmax.f32 %v1031_v26, 0.0  ;;  %v1032_v44 = vadd.f32 %v1712_v25, %v993_v32  ;;  %v1355_v46 = vpop.f32.mrb[31].mxu0  ;;  %v1403_v48 = vpop.f32.mrb[31].mxu1 }
 0x136   : > { %1079 = vst.msk [vmem:[%s1729_s15 + $0x50] sm:$0xff] %vm313_vm0, %v1047_v37  ;;  %v873_v49 = vadd.f32 %v1353_v39, %v360_v33  ;;  %v889_v50 = vadd.f32 %v1401_v40, %v376_v35  ;;  %v1356_v51 = vadd.f32 %v1355_v46, %v1354_v41  ;;  %v1404_v52 = vadd.f32 %v1403_v48, %v1402_v42 }
 0x137   : > { %1095 = vst.msk [vmem:[%s1729_s15 + $0xd0] sm:$0xff] %vm313_vm0, %v1063_v38  ;;  %v1048_v53 = vmax.f32 %v1016_v43, 0.0  ;;  %v1064_v54 = vmax.f32 %v1032_v44, 0.0  ;;  %v939_v55 = vld [vmem:[#allocation2 + $0x60] sm:$0xff] }
 0x138   : > { %v955_v56 = vld [vmem:[#allocation2 + $0xe0] sm:$0xff]  ;;  %v978_v57 = vmul.f32 %v1707_v15, %v939_v55  ;;  %906 = vst.msk [vmem:[#allocation2 + $0x70] sm:$0xff] %vm313_vm0, %v873_v49  ;;  %922 = vst.msk [vmem:[#allocation2 + $0xf0] sm:$0xff] %vm313_vm0, %v889_v50  ;;  %v874_v59 = vadd.f32 %v1356_v51, %v361_v45  ;;  %v890_v60 = vadd.f32 %v1404_v52, %v377_v47 }
 0x139   : > { %v994_v58 = vmul.f32 %v1707_v15, %v955_v56  ;;  %1080 = vst.msk [vmem:[%s1729_s15 + $0x58] sm:$0xff] %vm313_vm0, %v1048_v53  ;;  %1096 = vst.msk [vmem:[%s1729_s15 + $0xd8] sm:$0xff] %vm313_vm0, %v1064_v54  ;;  %v940_v61 = vld [vmem:[#allocation2 + $0x68] sm:$0xff] }
 0x13a   : > { %v956_v62 = vld [vmem:[#allocation2 + $0xe8] sm:$0xff]  ;;  %v1017_v63 = vadd.f32 %v1712_v25, %v978_v57  ;;  %v979_v1 = vmul.f32 %v1707_v15, %v940_v61  ;;  %907 = vst.msk [vmem:[#allocation2 + $0x78] sm:$0xff] %vm313_vm0, %v874_v59  ;;  %923 = vst.msk [vmem:[#allocation2 + $0xf8] sm:$0xff] %vm313_vm0, %v890_v60 }
 0x13b   : > { %v1033_v0 = vadd.f32 %v1712_v25, %v994_v58  ;;  %v995_v2 = vmul.f32 %v1707_v15, %v956_v62 }
 0x13c   : > { %v1049_v3 = vmax.f32 %v1017_v63, 0.0  ;;  %v1018_v5 = vadd.f32 %v1712_v25, %v979_v1 }
 0x13d   : > { %v1065_v4 = vmax.f32 %v1033_v0, 0.0  ;;  %v1034_v6 = vadd.f32 %v1712_v25, %v995_v2 }
 0x13e   : > { %1081 = vst.msk [vmem:[%s1729_s15 + $0x60] sm:$0xff] %vm313_vm0, %v1049_v3  ;;  %v1050_v7 = vmax.f32 %v1018_v5, 0.0 }
 0x13f   : > { %1097 = vst.msk [vmem:[%s1729_s15 + $0xe0] sm:$0xff] %vm313_vm0, %v1065_v4  ;;  %v1066_v8 = vmax.f32 %v1034_v6, 0.0  ;;  %v941_v9 = vld [vmem:[#allocation2 + $0x70] sm:$0xff] }
 0x140   : > { %v957_v10 = vld [vmem:[#allocation2 + $0xf0] sm:$0xff]  ;;  %1082 = vst.msk [vmem:[%s1729_s15 + $0x68] sm:$0xff] %vm313_vm0, %v1050_v7  ;;  %v980_v11 = vmul.f32 %v1707_v15, %v941_v9 }
 0x141   : > { %1098 = vst.msk [vmem:[%s1729_s15 + $0xe8] sm:$0xff] %vm313_vm0, %v1066_v8  ;;  %v996_v12 = vmul.f32 %v1707_v15, %v957_v10  ;;  %v942_v13 = vld [vmem:[#allocation2 + $0x78] sm:$0xff] }
 0x142   : > { %v958_v14 = vld [vmem:[#allocation2 + $0xf8] sm:$0xff]  ;;  %v1019_v16 = vadd.f32 %v1712_v25, %v980_v11  ;;  %v981_v18 = vmul.f32 %v1707_v15, %v942_v13 }
 0x143   : > { %v1035_v17 = vadd.f32 %v1712_v25, %v996_v12  ;;  %v997_v19 = vmul.f32 %v1707_v15, %v958_v14 }
 0x144   : > { %v1051_v20 = vmax.f32 %v1019_v16, 0.0  ;;  %v1020_v22 = vadd.f32 %v1712_v25, %v981_v18 }
 0x145   : > { %v1067_v21 = vmax.f32 %v1035_v17, 0.0  ;;  %v1036_v23 = vadd.f32 %v1712_v25, %v997_v19 }
 0x146   : > { %1083 = vst.msk [vmem:[%s1729_s15 + $0x70] sm:$0xff] %vm313_vm0, %v1051_v20  ;;  %v1052_v24 = vmax.f32 %v1020_v22, 0.0 }
 0x147   : > { %1099 = vst.msk [vmem:[%s1729_s15 + $0xf0] sm:$0xff] %vm313_vm0, %v1067_v21  ;;  %v1068_v26 = vmax.f32 %v1036_v23, 0.0 }
 0x148   : > { %1084 = vst.msk [vmem:[%s1729_s15 + $0x78] sm:$0xff] %vm313_vm0, %v1052_v24 }
 0x149   : > { %1100 = vst.msk [vmem:[%s1729_s15 + $0xf8] sm:$0xff] %vm313_vm0, %v1068_v26 }
 0x14a PF: > { %s14_s17 = sadd.s32 1, %s1532_s17   ;;  %s1891_s15 = smov %s1528_s16 }
 0x14b   : > { %p11_p5 = scmp.ge.s32.totalorder %s14_s17, 10   ;;  %s1892_s16 = smov %s1894_s18 }
 0x14d   :  { %13 = sbr.rel (!%p11_p5) target bundleno = 2 (0x2), region = 83 }

// kernel: resnet_forward.22
= control target key start
LH: loop header
LB: loop body
LE: loop exit
PB: predicated region body
PF: predicated region fallthrough
CT: control target
= control target key end

     0   :  { %s1550_s15 = smov 0   ;;  %s1552_s16 = smov 0   ;;  %s1944_s0 = inlined_call_operand.vmem [shape: bf16[512,640], index: 0, kind: input, shape index: {}]   ;;  %s1945_s1 = inlined_call_operand.vmem [shape: bf16[640,64], index: 1, kind: input, shape index: {}]   ;;  %s1946_s2 = inlined_call_operand.vmem [shape: f32[1,64], index: 2, kind: input, shape index: {}]   ;;  %s1947_s3 = inlined_call_operand.vmem [shape: f32[1,64], index: 3, kind: input, shape index: {}]   ;;  %s1948_s4 = inlined_call_operand.vmem [shape: f32[512,64], index: 4, kind: output, shape index: {}]  }
   0x1   :  { %s1554_s17 = smov 0   ;;  %s1556_s18 = smov 0  }
   0x2   :  { %s1558_s19 = smov 0   ;;  %s1560_s20 = smov 0  }
   0x3   :  { %s1562_s21 = smov 0  }
   0x4 LB: > { %s26_s22 = sadd.s32 1, %s1514_s19  ;;  %s33_s23 = sadd.s32 1, %s1518_s20  ;;  %s1522_s21 = sphi %s1562_s21, %s14_s21   ;;  %s1518_s20 = sphi %s1560_s20, %s1954_s20   ;;  %s1514_s19 = sphi %s1558_s19, %s1953_s19   ;;  %s1510_s18 = sphi %s1556_s18, %s1952_s18   ;;  %s1506_s17 = sphi %s1554_s17, %s1951_s17   ;;  %s1502_s16 = sphi %s1552_s16, %s1950_s16   ;;  %s1498_s15 = sphi %s1550_s15, %s1949_s15  }
   0x5   : > { %p27_p0 = scmp.ge.s32.totalorder %s26_s22, 5  ;;  %p49_p1 = scmp.ne.s32.totalorder %s1502_s16, %s1498_s15 }
   0x6   : > { %p50_p2 = scmp.eq.s32.totalorder %s1522_s21, 0  ;;  %s42_s27 = sadd.s32 1, %s1502_s16 }
   0x7   : > { %s1956_s22 = smov (%p27_p0, %s26_s22), 0  ;;  %s1958_s23 = smov (!%p27_p0, %s33_s23), %s1518_s20 }
   0x8   : > { %p51_p3 = por %p50_p2, %p49_p1  ;;  %p35_p4 = scmp.ge.s32.totalorder %s1958_s23, 2 }
   0x9   : > { %s38_s24 = ssub.s32 %s1514_s19, %s1956_s22  ;;  %p1257_p6 = scmp.ge.s32.totalorder %s1522_s21, 10 }
   0xa   : > { %s1960_s23 = smov (%p35_p4, %s1958_s23), 0 }
   0xb   : > { %s37_s25 = ssub.s32 %s1518_s20, %s1960_s23  ;;  %195 = sbr.rel (%p1257_p6) target bundleno = 46 (0x2e), region = 24 }
   0xc   : > { %s39_s26 = sor.u32 %s38_s24, %s37_s25 }
   0xd   : > { %p40_p5 = scmp.eq.s32.totalorder %s39_s26, 0 }
   0xf   : > { %s1601_s28 = scalar_select %p40_p5, %s1502_s16, %s42_s27  }
  0x12   : > { %198 = sbr.rel (!%p51_p3) target bundleno = 46 (0x2e), region = 28  ;;  %s200_s29 = sand.u32 (%p51_p3), 1, %s1502_s16  }
  0x13   : > { %s1386_s30 = smul.u32 (%p51_p3), 160, %s1518_s20  ;;  %s1258_s5 = sshll.u32 (%p51_p3), %s200_s29, 7 }
  0x14   : > { %s1615_s11 = scalar_lea.vmem (%p51_p3), [#allocation3], %s1258_s5 }
  0x15   : > { %s205_s6 = sadd.s32 (%p51_p3), %s1514_s19, %s1386_s30 }
  0x16   : > { %s1261_s7 = sshll.u32 (%p51_p3), %s205_s6, 2 }
  0x17   : > { %s1610_s10 = scalar_lea.vmem (%p51_p3), %s1944_s0, %s1261_s7 }
  0x18   : > { %v223_v0 = vld [vmem:[%s1610_s10] sm:$0xf] (%p51_p3)  ;;  %v225_v1 = vld [vmem:[%s1610_s10 + $0x14] sm:$0xf] (%p51_p3)  ;;  %v227_v2 = vld [vmem:[%s1610_s10 + $0x28] sm:$0xf] (%p51_p3) }
  0x19   : > { %224 = vst [vmem:[%s1615_s11] sm:$0xf] %v223_v0  ;;  %226 = vst [vmem:[%s1615_s11 + $0x4] sm:$0xf] %v225_v1  ;;  %v229_v3 = vld [vmem:[%s1610_s10 + $0x3c] sm:$0xf] }
  0x1a   : > { %228 = vst [vmem:[%s1615_s11 + $0x8] sm:$0xf] %v227_v2  ;;  %v231_v4 = vld [vmem:[%s1610_s10 + $0x50] sm:$0xf]  ;;  %v233_v5 = vld [vmem:[%s1610_s10 + $0x64] sm:$0xf] }
  0x1b   : > { %230 = vst [vmem:[%s1615_s11 + $0xc] sm:$0xf] %v229_v3  ;;  %232 = vst [vmem:[%s1615_s11 + $0x10] sm:$0xf] %v231_v4  ;;  %v235_v6 = vld [vmem:[%s1610_s10 + $0x78] sm:$0xf] }
  0x1c   : > { %234 = vst [vmem:[%s1615_s11 + $0x14] sm:$0xf] %v233_v5  ;;  %v237_v7 = vld [vmem:[%s1610_s10 + $0x8c] sm:$0xf]  ;;  %v239_v8 = vld [vmem:[%s1610_s10 + $0xa0] sm:$0xf] }
  0x1d   : > { %236 = vst [vmem:[%s1615_s11 + $0x18] sm:$0xf] %v235_v6  ;;  %238 = vst [vmem:[%s1615_s11 + $0x1c] sm:$0xf] %v237_v7  ;;  %v241_v9 = vld [vmem:[%s1610_s10 + $0xb4] sm:$0xf] }
  0x1e   : > { %240 = vst [vmem:[%s1615_s11 + $0x20] sm:$0xf] %v239_v8  ;;  %v243_v10 = vld [vmem:[%s1610_s10 + $0xc8] sm:$0xf]  ;;  %v245_v11 = vld [vmem:[%s1610_s10 + $0xdc] sm:$0xf] }
  0x1f   : > { %242 = vst [vmem:[%s1615_s11 + $0x24] sm:$0xf] %v241_v9  ;;  %244 = vst [vmem:[%s1615_s11 + $0x28] sm:$0xf] %v243_v10  ;;  %v247_v12 = vld [vmem:[%s1610_s10 + $0xf0] sm:$0xf] }
  0x20   : > { %246 = vst [vmem:[%s1615_s11 + $0x2c] sm:$0xf] %v245_v11  ;;  %v249_v13 = vld [vmem:[%s1610_s10 + $0x104] sm:$0xf]  ;;  %v251_v14 = vld [vmem:[%s1610_s10 + $0x118] sm:$0xf] }
  0x21   : > { %248 = vst [vmem:[%s1615_s11 + $0x30] sm:$0xf] %v247_v12  ;;  %250 = vst [vmem:[%s1615_s11 + $0x34] sm:$0xf] %v249_v13  ;;  %v253_v15 = vld [vmem:[%s1610_s10 + $0x12c] sm:$0xf] }
  0x22   : > { %252 = vst [vmem:[%s1615_s11 + $0x38] sm:$0xf] %v251_v14  ;;  %v255_v16 = vld [vmem:[%s1610_s10 + $0x140] sm:$0xf]  ;;  %v257_v17 = vld [vmem:[%s1610_s10 + $0x154] sm:$0xf] }
  0x23   : > { %254 = vst [vmem:[%s1615_s11 + $0x3c] sm:$0xf] %v253_v15  ;;  %256 = vst [vmem:[%s1615_s11 + $0x40] sm:$0xf] %v255_v16  ;;  %v259_v18 = vld [vmem:[%s1610_s10 + $0x168] sm:$0xf] }
  0x24   : > { %258 = vst [vmem:[%s1615_s11 + $0x44] sm:$0xf] %v257_v17  ;;  %v261_v19 = vld [vmem:[%s1610_s10 + $0x17c] sm:$0xf]  ;;  %v263_v20 = vld [vmem:[%s1610_s10 + $0x190] sm:$0xf] }
  0x25   : > { %260 = vst [vmem:[%s1615_s11 + $0x48] sm:$0xf] %v259_v18  ;;  %262 = vst [vmem:[%s1615_s11 + $0x4c] sm:$0xf] %v261_v19  ;;  %v265_v21 = vld [vmem:[%s1610_s10 + $0x1a4] sm:$0xf] }
  0x26   : > { %264 = vst [vmem:[%s1615_s11 + $0x50] sm:$0xf] %v263_v20  ;;  %v267_v22 = vld [vmem:[%s1610_s10 + $0x1b8] sm:$0xf]  ;;  %v269_v23 = vld [vmem:[%s1610_s10 + $0x1cc] sm:$0xf] }
  0x27   : > { %266 = vst [vmem:[%s1615_s11 + $0x54] sm:$0xf] %v265_v21  ;;  %268 = vst [vmem:[%s1615_s11 + $0x58] sm:$0xf] %v267_v22  ;;  %v271_v24 = vld [vmem:[%s1610_s10 + $0x1e0] sm:$0xf] }
  0x28   : > { %270 = vst [vmem:[%s1615_s11 + $0x5c] sm:$0xf] %v269_v23  ;;  %v273_v25 = vld [vmem:[%s1610_s10 + $0x1f4] sm:$0xf]  ;;  %v275_v26 = vld [vmem:[%s1610_s10 + $0x208] sm:$0xf] }
  0x29   : > { %272 = vst [vmem:[%s1615_s11 + $0x60] sm:$0xf] %v271_v24  ;;  %274 = vst [vmem:[%s1615_s11 + $0x64] sm:$0xf] %v273_v25  ;;  %v277_v27 = vld [vmem:[%s1610_s10 + $0x21c] sm:$0xf] }
  0x2a   : > { %276 = vst [vmem:[%s1615_s11 + $0x68] sm:$0xf] %v275_v26  ;;  %v279_v28 = vld [vmem:[%s1610_s10 + $0x230] sm:$0xf]  ;;  %v281_v29 = vld [vmem:[%s1610_s10 + $0x244] sm:$0xf] }
  0x2b   : > { %278 = vst [vmem:[%s1615_s11 + $0x6c] sm:$0xf] %v277_v27  ;;  %280 = vst [vmem:[%s1615_s11 + $0x70] sm:$0xf] %v279_v28  ;;  %v283_v30 = vld [vmem:[%s1610_s10 + $0x258] sm:$0xf] }
  0x2c   : > { %282 = vst [vmem:[%s1615_s11 + $0x74] sm:$0xf] %v281_v29  ;;  %v285_v31 = vld [vmem:[%s1610_s10 + $0x26c] sm:$0xf]  ;;  %284 = vst [vmem:[%s1615_s11 + $0x78] sm:$0xf] %v283_v30 }
  0x2d   : > { %286 = vst [vmem:[%s1615_s11 + $0x7c] sm:$0xf] %v285_v31 }
  0x2e PF: > { %p1262_p7 = scmp.ge.s32.totalorder %s1522_s21, 1  ;;  %p384_p8 = scmp.lt.s32.totalorder %s1522_s21, 11 }
  0x30   : > { %p385_p9 = pnand %p1262_p7, %p384_p8 }
  0x31   : > { %s391_s12 = sand.u32 (!%p385_p9), 1, %s1498_s15   ;;  %s1264_s13 = sshll.u32 (!%p385_p9), %s1506_s17, 4 }
  0x32   : > { %388 = sbr.rel (%p385_p9) target bundleno = 368 (0x170), region = 73  ;;  %s1263_s14 = sshll.u32 (!%p385_p9), %s391_s12, 7 }
  0x33   : > { %p435_p10 = scmp.lt.s32.totalorder (!%p385_p9), %s1264_s13, 79  ;;  %s1266_s24 = sshll.u32 (!%p385_p9), %s1510_s18, 5 }
  0x34   : > { %p450_p11 = scmp.lt.s32.totalorder (!%p385_p9), %s1266_s24, 63  ;;  %s1693_s15 = scalar_lea.vmem (!%p385_p9), [#allocation3], %s1263_s14 }
  0x35   : > { %p1268_p12 = scmp.ne.s32.totalorder (!%p385_p9), %s1506_s17, 0 }
  0x39   : > { %s1962_s13 = smov (!%p435_p10, %s1264_s13), 79  ;;  %s1964_s24 = smov (!%p450_p11, %s1266_s24), 63 }
  0x3a   : > { %s1265_s25 = sshll.u32 %s1962_s13, 2  ;;  %s1267_s30 = sshll.u32 %s1964_s24, 3  ;;  %vm463_vm0 = vcmask (!%p1268_p12), 523264   ;;  %v1524_v32 = vmov (!%p1268_p12), 0.0  }
  0x3b   : > { %s1686_s29 = scalar_lea.vmem %s1945_s1, %s1265_s25  ;;  %s1691_s7 = scalar_lea.vmem %s1948_s4, %s1267_s30  ;;  %464 = vst.msk [vmem:[#allocation2] sm:$0xff] (!%p1268_p12), %vm463_vm0, %v1524_v32  ;;  %465 = vst.msk [vmem:[#allocation2 + $0x8] sm:$0xff] (!%p1268_p12), %vm463_vm0, %v1524_v32 }
  0x3c   : > { %462 = sbr.rel (%p1268_p12) target bundleno = 75 (0x4b), region = 81  ;;  %466 = vst.msk [vmem:[#allocation2 + $0x10] sm:$0xff] (!%p1268_p12), %vm463_vm0, %v1524_v32  ;;  %467 = vst.msk [vmem:[#allocation2 + $0x18] sm:$0xff] (!%p1268_p12), %vm463_vm0, %v1524_v32 }
  0x3d   : > { %468 = vst.msk [vmem:[#allocation2 + $0x20] sm:$0xff] (!%p1268_p12), %vm463_vm0, %v1524_v32  ;;  %469 = vst.msk [vmem:[#allocation2 + $0x28] sm:$0xff] (!%p1268_p12), %vm463_vm0, %v1524_v32 }
  0x3e   : > { %470 = vst.msk [vmem:[#allocation2 + $0x30] sm:$0xff] (!%p1268_p12), %vm463_vm0, %v1524_v32  ;;  %471 = vst.msk [vmem:[#allocation2 + $0x38] sm:$0xff] (!%p1268_p12), %vm463_vm0, %v1524_v32 }
  0x3f   : > { %472 = vst.msk [vmem:[#allocation2 + $0x40] sm:$0xff] (!%p1268_p12), %vm463_vm0, %v1524_v32  ;;  %473 = vst.msk [vmem:[#allocation2 + $0x48] sm:$0xff] (!%p1268_p12), %vm463_vm0, %v1524_v32 }
  0x40   : > { %474 = vst.msk [vmem:[#allocation2 + $0x50] sm:$0xff] (!%p1268_p12), %vm463_vm0, %v1524_v32  ;;  %475 = vst.msk [vmem:[#allocation2 + $0x58] sm:$0xff] (!%p1268_p12), %vm463_vm0, %v1524_v32 }
  0x41   : > { %476 = vst.msk [vmem:[#allocation2 + $0x60] sm:$0xff] (!%p1268_p12), %vm463_vm0, %v1524_v32  ;;  %477 = vst.msk [vmem:[#allocation2 + $0x68] sm:$0xff] (!%p1268_p12), %vm463_vm0, %v1524_v32 }
  0x42   : > { %478 = vst.msk [vmem:[#allocation2 + $0x70] sm:$0xff] (!%p1268_p12), %vm463_vm0, %v1524_v32  ;;  %479 = vst.msk [vmem:[#allocation2 + $0x78] sm:$0xff] (!%p1268_p12), %vm463_vm0, %v1524_v32 }
  0x43   : > { %480 = vst.msk [vmem:[#allocation2 + $0x80] sm:$0xff] %vm463_vm0, %v1524_v32  ;;  %481 = vst.msk [vmem:[#allocation2 + $0x88] sm:$0xff] %vm463_vm0, %v1524_v32 }
  0x44   : > { %482 = vst.msk [vmem:[#allocation2 + $0x90] sm:$0xff] %vm463_vm0, %v1524_v32  ;;  %483 = vst.msk [vmem:[#allocation2 + $0x98] sm:$0xff] %vm463_vm0, %v1524_v32 }
  0x45   : > { %484 = vst.msk [vmem:[#allocation2 + $0xa0] sm:$0xff] %vm463_vm0, %v1524_v32  ;;  %485 = vst.msk [vmem:[#allocation2 + $0xa8] sm:$0xff] %vm463_vm0, %v1524_v32 }
  0x46   : > { %486 = vst.msk [vmem:[#allocation2 + $0xb0] sm:$0xff] %vm463_vm0, %v1524_v32  ;;  %487 = vst.msk [vmem:[#allocation2 + $0xb8] sm:$0xff] %vm463_vm0, %v1524_v32 }
  0x47   : > { %488 = vst.msk [vmem:[#allocation2 + $0xc0] sm:$0xff] %vm463_vm0, %v1524_v32  ;;  %489 = vst.msk [vmem:[#allocation2 + $0xc8] sm:$0xff] %vm463_vm0, %v1524_v32 }
  0x48   : > { %490 = vst.msk [vmem:[#allocation2 + $0xd0] sm:$0xff] %vm463_vm0, %v1524_v32  ;;  %491 = vst.msk [vmem:[#allocation2 + $0xd8] sm:$0xff] %vm463_vm0, %v1524_v32 }
  0x49   : > { %492 = vst.msk [vmem:[#allocation2 + $0xe0] sm:$0xff] %vm463_vm0, %v1524_v32  ;;  %493 = vst.msk [vmem:[#allocation2 + $0xe8] sm:$0xff] %vm463_vm0, %v1524_v32 }
  0x4a   : > { %494 = vst.msk [vmem:[#allocation2 + $0xf0] sm:$0xff] %vm463_vm0, %v1524_v32  ;;  %495 = vst.msk [vmem:[#allocation2 + $0xf8] sm:$0xff] %vm463_vm0, %v1524_v32 }
  0x4b PF: > { %v1444_v33 = vld [vmem:[%s1686_s29] sm:$0xff]   ;;  %v1445_v34 = vld [vmem:[%s1686_s29 + $0x8] sm:$0xff]   ;;  %v1446_v35 = vld [vmem:[%s1686_s29 + $0x10] sm:$0xff]   ;;  %vm913_vm1 = vcmask 523264   ;;  %p1293_p13 = scmp.ne.s32.totalorder %s1506_s17, 4 }
  0x4c   : > { %1322 = vmatprep.subr.bf16.mxu0 %v1444_v33  ;;  %1370 = vmatprep.subr.bf16.mxu1 %v1444_v33  ;;  %v1447_v36 = vld [vmem:[%s1686_s29 + $0x18] sm:$0xff]   ;;  %v1452_v37 = vld [vmem:[%s1693_s15] sm:$0xff]   ;;  %v1449_v40 = vld [vmem:[%s1686_s29 + $0x28] sm:$0xff]  }
  0x4d   : > { %1323 = vmatpush3.bf16.msra.mxu0 %v1444_v33  ;;  %1378 = vmatpush3.bf16.msra.mxu1 %v1444_v33  ;;  %v1453_v38 = vld [vmem:[%s1693_s15 + $0x40] sm:$0xff]   ;;  %v1450_v41 = vld [vmem:[%s1686_s29 + $0x30] sm:$0xff]   ;;  %v1451_v42 = vld [vmem:[%s1686_s29 + $0x38] sm:$0xff]  }
  0x4e   : > { %1324 = vmatprep.subr.bf16.mxu0 %v1445_v34  ;;  %1371 = vmatprep.subr.bf16.mxu1 %v1445_v34  ;;  %v1448_v39 = vld [vmem:[%s1686_s29 + $0x20] sm:$0xff]   ;;  %v1454_v43 = vld [vmem:[%s1693_s15 + $0x8] sm:$0xff]   ;;  %v1456_v45 = vld [vmem:[%s1693_s15 + $0x10] sm:$0xff]  }
  0x4f   : > { %1338 = vmatprep.mubr.bf16.mxu0 %v1452_v37  ;;  %1354 = vmatprep.mubr.bf16.mxu1 %v1453_v38  ;;  %v1455_v44 = vld [vmem:[%s1693_s15 + $0x48] sm:$0xff]   ;;  %v1457_v46 = vld [vmem:[%s1693_s15 + $0x50] sm:$0xff]   ;;  %v1458_v47 = vld [vmem:[%s1693_s15 + $0x18] sm:$0xff]  }
  0x50   : > { %v1459_v48 = vld [vmem:[%s1693_s15 + $0x58] sm:$0xff]   ;;  %v1460_v49 = vld [vmem:[%s1693_s15 + $0x20] sm:$0xff]   ;;  %v1462_v51 = vld [vmem:[%s1693_s15 + $0x28] sm:$0xff]  }
  0x51   : > { %1325 = vmatpush3.bf16.msra.mxu0 %v1445_v34  ;;  %1379 = vmatpush3.bf16.msra.mxu1 %v1445_v34  ;;  %v1461_v50 = vld [vmem:[%s1693_s15 + $0x60] sm:$0xff]   ;;  %v1463_v52 = vld [vmem:[%s1693_s15 + $0x68] sm:$0xff]   ;;  %v1464_v53 = vld [vmem:[%s1693_s15 + $0x30] sm:$0xff]  }
  0x52   : > { %1326 = vmatprep.subr.bf16.mxu0 %v1446_v35  ;;  %1372 = vmatprep.subr.bf16.mxu1 %v1446_v35  ;;  %v1465_v54 = vld [vmem:[%s1693_s15 + $0x70] sm:$0xff]   ;;  %v1466_v55 = vld [vmem:[%s1693_s15 + $0x38] sm:$0xff]   ;;  %v496_v59 = vld [vmem:[#allocation2] sm:$0xff] }
  0x53   : > { %v1467_v56 = vld [vmem:[%s1693_s15 + $0x78] sm:$0xff]   ;;  %v498_v57 = vld [vmem:[#allocation2 + $0x10] sm:$0xff]  ;;  %v512_v60 = vld [vmem:[#allocation2 + $0x80] sm:$0xff] }
  0x54   : > { %v514_v58 = vld [vmem:[#allocation2 + $0x90] sm:$0xff]  ;;  %v499_v63 = vld [vmem:[#allocation2 + $0x18] sm:$0xff]  ;;  %v497_v5 = vld [vmem:[#allocation2 + $0x8] sm:$0xff] }
  0x55   : > { %1327 = vmatpush3.bf16.msra.mxu0 %v1446_v35  ;;  %1380 = vmatpush3.bf16.msra.mxu1 %v1446_v35  ;;  %v515_v0 = vld [vmem:[#allocation2 + $0x98] sm:$0xff]  ;;  %v513_v6 = vld [vmem:[#allocation2 + $0x88] sm:$0xff]  ;;  %v502_v17 = vld [vmem:[#allocation2 + $0x30] sm:$0xff] }
  0x56   : > { %1328 = vmatprep.subr.bf16.mxu0 %v1447_v36  ;;  %1373 = vmatprep.subr.bf16.mxu1 %v1447_v36  ;;  %v518_v18 = vld [vmem:[#allocation2 + $0xb0] sm:$0xff]  ;;  %v500_v19 = vld [vmem:[#allocation2 + $0x20] sm:$0xff]  ;;  %v503_v23 = vld [vmem:[#allocation2 + $0x38] sm:$0xff] }
  0x57   : > { %v516_v20 = vld [vmem:[#allocation2 + $0xa0] sm:$0xff]  ;;  %v519_v24 = vld [vmem:[#allocation2 + $0xb8] sm:$0xff]  ;;  %v501_v29 = vld [vmem:[#allocation2 + $0x28] sm:$0xff] }
  0x58   : > { %v517_v30 = vld [vmem:[#allocation2 + $0xa8] sm:$0xff] }
  0x59   : > { %1329 = vmatpush3.bf16.msra.mxu0 %v1447_v36  ;;  %1381 = vmatpush3.bf16.msra.mxu1 %v1447_v36 }
  0x5a   : > { %1330 = vmatprep.subr.bf16.mxu0 %v1448_v39  ;;  %1374 = vmatprep.subr.bf16.mxu1 %v1448_v39 }
  0x5d   : > { %1331 = vmatpush3.bf16.msra.mxu0 %v1448_v39  ;;  %1382 = vmatpush3.bf16.msra.mxu1 %v1448_v39 }
  0x5e   : > { %1332 = vmatprep.subr.bf16.mxu0 %v1449_v40  ;;  %1375 = vmatprep.subr.bf16.mxu1 %v1449_v40 }
  0x61   : > { %1333 = vmatpush3.bf16.msra.mxu0 %v1449_v40  ;;  %1383 = vmatpush3.bf16.msra.mxu1 %v1449_v40 }
  0x62   : > { %1334 = vmatprep.subr.bf16.mxu0 %v1450_v41  ;;  %1376 = vmatprep.subr.bf16.mxu1 %v1450_v41 }
  0x65   : > { %1335 = vmatpush3.bf16.msra.mxu0 %v1450_v41  ;;  %1384 = vmatpush3.bf16.msra.mxu1 %v1450_v41  ;;  %v506_v41 = vld [vmem:[#allocation2 + $0x50] sm:$0xff] }
  0x66   : > { %1336 = vmatprep.subr.bf16.mxu0 %v1451_v42  ;;  %1377 = vmatprep.subr.bf16.mxu1 %v1451_v42 }
  0x69   : > { %1337 = vmatpush3.bf16.msra.mxu0 %v1451_v42  ;;  %1385 = vmatpush3.bf16.msra.mxu1 %v1451_v42  ;;  %v522_v42 = vld [vmem:[#allocation2 + $0xd0] sm:$0xff] }
  0x6c   : > { %1339 = vmatmul.mubr.bf16.vlgmr.msra.gmra.mrb[0].mxu0 %v1454_v43  ;;  %1355 = vmatmul.mubr.bf16.vlgmr.msra.gmra.mrb[0].mxu1 %v1455_v44  ;;  %v504_v43 = vld [vmem:[#allocation2 + $0x40] sm:$0xff] }
  0x6d   : > { %1342 = vmatprep.mubr.bf16.mxu0 %v1456_v45  ;;  %1358 = vmatprep.mubr.bf16.mxu1 %v1457_v46  ;;  %v520_v44 = vld [vmem:[#allocation2 + $0xc0] sm:$0xff] }
  0x74   : > { %1343 = vmatmul.mubr.bf16.gmra.mrb[4].mxu0 %v1458_v47  ;;  %1359 = vmatmul.mubr.bf16.gmra.mrb[4].mxu1 %v1459_v48  ;;  %v507_v47 = vld [vmem:[#allocation2 + $0x58] sm:$0xff] }
  0x75   : > { %1346 = vmatprep.mubr.bf16.mxu0 %v1460_v49  ;;  %1362 = vmatprep.mubr.bf16.mxu1 %v1461_v50  ;;  %v523_v48 = vld [vmem:[#allocation2 + $0xd8] sm:$0xff] }
  0x7c   : > { %1347 = vmatmul.mubr.bf16.gmra.mrb[8].mxu0 %v1462_v51  ;;  %1363 = vmatmul.mubr.bf16.gmra.mrb[8].mxu1 %v1463_v52 }
  0x7d   : > { %1350 = vmatprep.mubr.bf16.mxu0 %v1464_v53  ;;  %1366 = vmatprep.mubr.bf16.mxu1 %v1465_v54  ;;  %v505_v53 = vld [vmem:[#allocation2 + $0x48] sm:$0xff] }
  0x7e   : > { %v521_v54 = vld [vmem:[#allocation2 + $0xc8] sm:$0xff] }
  0x84   : > { %1351 = vmatmul.mubr.bf16.gmra.mrb[12].mxu0 %v1466_v55  ;;  %1367 = vmatmul.mubr.bf16.gmra.mrb[12].mxu1 %v1467_v56 }
 0x13f   : > { %v1340_v61 = vpop.f32.mrb[0].mxu0  ;;  %v1356_v62 = vpop.f32.mrb[0].mxu1 }
 0x140   : > { %v883_v1 = vadd.f32 %v1340_v61, %v498_v57  ;;  %v899_v2 = vadd.f32 %v1356_v62, %v514_v58  ;;  %v754_v3 = vpop.f32.mrb[1].mxu0  ;;  %v818_v4 = vpop.f32.mrb[1].mxu1 }
 0x141   : > { %v881_v7 = vadd.f32 %v754_v3, %v496_v59  ;;  %v897_v8 = vadd.f32 %v818_v4, %v512_v60  ;;  %v1341_v9 = vpop.f32.mrb[2].mxu0  ;;  %v1357_v10 = vpop.f32.mrb[2].mxu1  ;;  %v508_v3 = vld [vmem:[#allocation2 + $0x60] sm:$0xff] }
 0x142   : > { %916 = vst.msk [vmem:[#allocation2 + $0x10] sm:$0xff] %vm913_vm1, %v883_v1  ;;  %932 = vst.msk [vmem:[#allocation2 + $0x90] sm:$0xff] %vm913_vm1, %v899_v2  ;;  %v884_v11 = vadd.f32 %v1341_v9, %v499_v63  ;;  %v900_v12 = vadd.f32 %v1357_v10, %v515_v0  ;;  %v757_v13 = vpop.f32.mrb[3].mxu0  ;;  %v821_v14 = vpop.f32.mrb[3].mxu1  ;;  %v510_v1 = vld [vmem:[#allocation2 + $0x70] sm:$0xff]  ;;  %v524_v4 = vld [vmem:[#allocation2 + $0xe0] sm:$0xff] }
 0x143   : > { %914 = vst.msk [vmem:[#allocation2] sm:$0xff] %vm913_vm1, %v881_v7  ;;  %930 = vst.msk [vmem:[#allocation2 + $0x80] sm:$0xff] %vm913_vm1, %v897_v8  ;;  %v882_v15 = vadd.f32 %v757_v13, %v497_v5  ;;  %v898_v16 = vadd.f32 %v821_v14, %v513_v6  ;;  %v526_v2 = vld [vmem:[#allocation2 + $0xf0] sm:$0xff]  ;;  %v511_v7 = vld [vmem:[#allocation2 + $0x78] sm:$0xff] }
 0x144   : > { %917 = vst.msk [vmem:[#allocation2 + $0x18] sm:$0xff] %vm913_vm1, %v884_v11  ;;  %933 = vst.msk [vmem:[#allocation2 + $0x98] sm:$0xff] %vm913_vm1, %v900_v12  ;;  %v527_v8 = vld [vmem:[#allocation2 + $0xf8] sm:$0xff]  ;;  %v509_v13 = vld [vmem:[#allocation2 + $0x68] sm:$0xff] }
 0x145   : > { %915 = vst.msk [vmem:[#allocation2 + $0x8] sm:$0xff] %vm913_vm1, %v882_v15  ;;  %931 = vst.msk [vmem:[#allocation2 + $0x88] sm:$0xff] %vm913_vm1, %v898_v16  ;;  %v525_v14 = vld [vmem:[#allocation2 + $0xe8] sm:$0xff] }
 0x147   : > { %v1344_v21 = vpop.f32.mrb[4].mxu0  ;;  %v1360_v22 = vpop.f32.mrb[4].mxu1 }
 0x148   : > { %v887_v25 = vadd.f32 %v1344_v21, %v502_v17  ;;  %v903_v26 = vadd.f32 %v1360_v22, %v518_v18  ;;  %v770_v27 = vpop.f32.mrb[5].mxu0  ;;  %v834_v28 = vpop.f32.mrb[5].mxu1 }
 0x149   : > { %v885_v31 = vadd.f32 %v770_v27, %v500_v19  ;;  %v901_v32 = vadd.f32 %v834_v28, %v516_v20  ;;  %v1345_v33 = vpop.f32.mrb[6].mxu0  ;;  %v1361_v34 = vpop.f32.mrb[6].mxu1  ;;  %v1793_v27 = vld [vmem:[%s1947_s3] ss:$0 sm:$0xff] (!%p1293_p13) }
 0x14a   : > { %920 = vst.msk [vmem:[#allocation2 + $0x30] sm:$0xff] %vm913_vm1, %v887_v25  ;;  %936 = vst.msk [vmem:[#allocation2 + $0xb0] sm:$0xff] %vm913_vm1, %v903_v26  ;;  %v888_v35 = vadd.f32 %v1345_v33, %v503_v23  ;;  %v904_v36 = vadd.f32 %v1361_v34, %v519_v24  ;;  %v773_v37 = vpop.f32.mrb[7].mxu0  ;;  %v837_v38 = vpop.f32.mrb[7].mxu1  ;;  %v950_v25 = vld [vmem:[#allocation2] sm:$0xff] (!%p1293_p13) }
 0x14b   : > { %918 = vst.msk [vmem:[#allocation2 + $0x20] sm:$0xff] %vm913_vm1, %v885_v31  ;;  %934 = vst.msk [vmem:[#allocation2 + $0xa0] sm:$0xff] %vm913_vm1, %v901_v32  ;;  %v886_v39 = vadd.f32 %v773_v37, %v501_v29  ;;  %v902_v40 = vadd.f32 %v837_v38, %v517_v30  ;;  %v1788_v26 = vld [vmem:[%s1946_s2] ss:$0 sm:$0xff] (!%p1293_p13)  ;;  %v952_v30 = vld [vmem:[#allocation2 + $0x10] sm:$0xff] (!%p1293_p13) }
 0x14c   : > { %921 = vst.msk [vmem:[#allocation2 + $0x38] sm:$0xff] %vm913_vm1, %v888_v35  ;;  %937 = vst.msk [vmem:[#allocation2 + $0xb8] sm:$0xff] %vm913_vm1, %v904_v36  ;;  %v989_v28 = vmul.f32 (!%p1293_p13), %v1788_v26, %v950_v25  ;;  %v951_v29 = vld [vmem:[#allocation2 + $0x8] sm:$0xff] (!%p1293_p13)  ;;  %v953_v31 = vld [vmem:[#allocation2 + $0x18] sm:$0xff] (!%p1293_p13)  ;;  %v991_v33 = vmul.f32 (!%p1293_p13), %v1788_v26, %v952_v30 }
 0x14d   : > { %919 = vst.msk [vmem:[#allocation2 + $0x28] sm:$0xff] %vm913_vm1, %v886_v39  ;;  %935 = vst.msk [vmem:[#allocation2 + $0xa8] sm:$0xff] %vm913_vm1, %v902_v40  ;;  %v990_v32 = vmul.f32 (!%p1293_p13), %v1788_v26, %v951_v29  ;;  %v992_v34 = vmul.f32 (!%p1293_p13), %v1788_v26, %v953_v31 }
 0x14e   : > { %v1028_v38 = vadd.f32 (!%p1293_p13), %v1793_v27, %v989_v28 }
 0x14f   : > { %v1348_v45 = vpop.f32.mrb[8].mxu0  ;;  %v1364_v46 = vpop.f32.mrb[8].mxu1 }
 0x150   : > { %v891_v49 = vadd.f32 %v1348_v45, %v506_v41  ;;  %v907_v50 = vadd.f32 %v1364_v46, %v522_v42  ;;  %v786_v51 = vpop.f32.mrb[9].mxu0  ;;  %v850_v52 = vpop.f32.mrb[9].mxu1  ;;  %v1031_v45 = vadd.f32 (!%p1293_p13), %v1793_v27, %v992_v34 }
 0x151   : > { %v889_v55 = vadd.f32 %v786_v51, %v504_v43  ;;  %v905_v56 = vadd.f32 %v850_v52, %v520_v44  ;;  %v1349_v57 = vpop.f32.mrb[10].mxu0  ;;  %v1365_v58 = vpop.f32.mrb[10].mxu1  ;;  %v956_v37 = vld [vmem:[#allocation2 + $0x30] sm:$0xff] (!%p1293_p13)  ;;  %v1029_v43 = vadd.f32 (!%p1293_p13), %v1793_v27, %v990_v32  ;;  %v1030_v44 = vadd.f32 (!%p1293_p13), %v1793_v27, %v991_v33 }
 0x152   : > { %924 = vst.msk [vmem:[#allocation2 + $0x50] sm:$0xff] %vm913_vm1, %v891_v49  ;;  %940 = vst.msk [vmem:[#allocation2 + $0xd0] sm:$0xff] %vm913_vm1, %v907_v50  ;;  %v892_v59 = vadd.f32 %v1349_v57, %v507_v47  ;;  %v908_v60 = vadd.f32 %v1365_v58, %v523_v48  ;;  %v789_v61 = vpop.f32.mrb[11].mxu0  ;;  %v853_v62 = vpop.f32.mrb[11].mxu1  ;;  %v954_v35 = vld [vmem:[#allocation2 + $0x20] sm:$0xff] (!%p1293_p13)  ;;  %v995_v41 = vmul.f32 (!%p1293_p13), %v1788_v26, %v956_v37  ;;  %v1060_v48 = vmax.f32 (!%p1293_p13), %v1028_v38, 0.0 }
 0x153   : > { %922 = vst.msk [vmem:[#allocation2 + $0x40] sm:$0xff] %vm913_vm1, %v889_v55  ;;  %938 = vst.msk [vmem:[#allocation2 + $0xc0] sm:$0xff] %vm913_vm1, %v905_v56  ;;  %v890_v63 = vadd.f32 %v789_v61, %v505_v53  ;;  %v906_v0 = vadd.f32 %v853_v62, %v521_v54  ;;  %v993_v39 = vmul.f32 (!%p1293_p13), %v1788_v26, %v954_v35  ;;  %v957_v42 = vld [vmem:[#allocation2 + $0x38] sm:$0xff] (!%p1293_p13)  ;;  %v1061_v55 = vmax.f32 (!%p1293_p13), %v1029_v43, 0.0  ;;  %v970_v29 = vld [vmem:[#allocation2 + $0xa0] sm:$0xff] (!%p1293_p13) }
 0x154   : > { %925 = vst.msk [vmem:[#allocation2 + $0x58] sm:$0xff] %vm913_vm1, %v892_v59  ;;  %941 = vst.msk [vmem:[#allocation2 + $0xd8] sm:$0xff] %vm913_vm1, %v908_v60  ;;  %v955_v36 = vld [vmem:[#allocation2 + $0x28] sm:$0xff] (!%p1293_p13)  ;;  %v996_v46 = vmul.f32 (!%p1293_p13), %v1788_v26, %v957_v42  ;;  %v1034_v51 = vadd.f32 (!%p1293_p13), %v1793_v27, %v995_v41  ;;  %v1062_v56 = vmax.f32 (!%p1293_p13), %v1030_v44, 0.0  ;;  %v1063_v57 = vmax.f32 (!%p1293_p13), %v1031_v45, 0.0  ;;  %v972_v31 = vld [vmem:[#allocation2 + $0xb0] sm:$0xff] (!%p1293_p13) }
 0x155   : > { %923 = vst.msk [vmem:[#allocation2 + $0x48] sm:$0xff] %vm913_vm1, %v890_v63  ;;  %939 = vst.msk [vmem:[#allocation2 + $0xc8] sm:$0xff] %vm913_vm1, %v906_v0  ;;  %v994_v40 = vmul.f32 (!%p1293_p13), %v1788_v26, %v955_v36  ;;  %v1032_v49 = vadd.f32 (!%p1293_p13), %v1793_v27, %v993_v39  ;;  %v971_v30 = vld [vmem:[#allocation2 + $0xa8] sm:$0xff] (!%p1293_p13)  ;;  %v973_v36 = vld [vmem:[#allocation2 + $0xb8] sm:$0xff] (!%p1293_p13)  ;;  %v1009_v42 = vmul.f32 (!%p1293_p13), %v1788_v26, %v970_v29 }
 0x156   : > { %v1035_v58 = vadd.f32 (!%p1293_p13), %v1793_v27, %v996_v46  ;;  %1092 = vst.msk [vmem:[%s1691_s7] sm:$0xff] (!%p1293_p13), %vm913_vm1, %v1060_v48  ;;  %v1066_v0 = vmax.f32 (!%p1293_p13), %v1034_v51, 0.0  ;;  %1093 = vst.msk [vmem:[%s1691_s7 + $0x8] sm:$0xff] (!%p1293_p13), %vm913_vm1, %v1061_v55  ;;  %v1010_v43 = vmul.f32 (!%p1293_p13), %v1788_v26, %v971_v30  ;;  %v1011_v44 = vmul.f32 (!%p1293_p13), %v1788_v26, %v972_v31 }
 0x157   : > { %v1352_v5 = vpop.f32.mrb[12].mxu0  ;;  %v1368_v6 = vpop.f32.mrb[12].mxu1  ;;  %949 = sbr.rel (%p1293_p13) target bundleno = 368 (0x170), region = 85  ;;  %v1033_v50 = vadd.f32 (!%p1293_p13), %v1793_v27, %v994_v40  ;;  %v1064_v62 = vmax.f32 (!%p1293_p13), %v1032_v49, 0.0  ;;  %1094 = vst.msk [vmem:[%s1691_s7 + $0x10] sm:$0xff] (!%p1293_p13), %vm913_vm1, %v1062_v56  ;;  %1095 = vst.msk [vmem:[%s1691_s7 + $0x18] sm:$0xff] (!%p1293_p13), %vm913_vm1, %v1063_v57  ;;  %v1012_v48 = vmul.f32 (!%p1293_p13), %v1788_v26, %v973_v36  ;;  %v1048_v51 = vadd.f32 (!%p1293_p13), %v1793_v27, %v1009_v42 }
 0x158   : > { %v895_v9 = vadd.f32 %v1352_v5, %v510_v1  ;;  %v911_v10 = vadd.f32 %v1368_v6, %v526_v2  ;;  %v802_v11 = vpop.f32.mrb[13].mxu0  ;;  %v866_v12 = vpop.f32.mrb[13].mxu1  ;;  %1098 = vst.msk [vmem:[%s1691_s7 + $0x30] sm:$0xff] (!%p1293_p13), %vm913_vm1, %v1066_v0 }
 0x159   : > { %v893_v15 = vadd.f32 %v802_v11, %v508_v3  ;;  %v909_v16 = vadd.f32 %v866_v12, %v524_v4  ;;  %v1353_v17 = vpop.f32.mrb[14].mxu0  ;;  %v1369_v18 = vpop.f32.mrb[14].mxu1  ;;  %v960_v53 = vld [vmem:[#allocation2 + $0x50] sm:$0xff] (!%p1293_p13)  ;;  %v1065_v63 = vmax.f32 (!%p1293_p13), %v1033_v50, 0.0  ;;  %v1067_v3 = vmax.f32 (!%p1293_p13), %v1035_v58, 0.0  ;;  %1096 = vst.msk [vmem:[%s1691_s7 + $0x20] sm:$0xff] (!%p1293_p13), %vm913_vm1, %v1064_v62 }
 0x15a   : > { %928 = vst.msk [vmem:[#allocation2 + $0x70] sm:$0xff] %vm913_vm1, %v895_v9  ;;  %944 = vst.msk [vmem:[#allocation2 + $0xf0] sm:$0xff] %vm913_vm1, %v911_v10  ;;  %v896_v19 = vadd.f32 %v1353_v17, %v511_v7  ;;  %v912_v20 = vadd.f32 %v1369_v18, %v527_v8  ;;  %v805_v21 = vpop.f32.mrb[15].mxu0  ;;  %v869_v22 = vpop.f32.mrb[15].mxu1  ;;  %v958_v47 = vld [vmem:[#allocation2 + $0x40] sm:$0xff] (!%p1293_p13)  ;;  %v999_v5 = vmul.f32 (!%p1293_p13), %v1788_v26, %v960_v53  ;;  %v976_v55 = vld [vmem:[#allocation2 + $0xd0] sm:$0xff] (!%p1293_p13) }
 0x15b   : > { %926 = vst.msk [vmem:[#allocation2 + $0x60] sm:$0xff] %vm913_vm1, %v893_v15  ;;  %942 = vst.msk [vmem:[#allocation2 + $0xe0] sm:$0xff] %vm913_vm1, %v909_v16  ;;  %v894_v23 = vadd.f32 %v805_v21, %v509_v13  ;;  %v910_v24 = vadd.f32 %v869_v22, %v525_v14  ;;  %v961_v54 = vld [vmem:[#allocation2 + $0x58] sm:$0xff] (!%p1293_p13)  ;;  %v997_v1 = vmul.f32 (!%p1293_p13), %v1788_v26, %v958_v47  ;;  %v966_v15 = vld [vmem:[#allocation2 + $0x80] sm:$0xff] (!%p1293_p13)  ;;  %v1080_v0 = vmax.f32 (!%p1293_p13), %v1048_v51, 0.0 }
 0x15c   : > { %929 = vst.msk [vmem:[#allocation2 + $0x78] sm:$0xff] %vm913_vm1, %v896_v19  ;;  %945 = vst.msk [vmem:[#allocation2 + $0xf8] sm:$0xff] %vm913_vm1, %v912_v20  ;;  %v959_v52 = vld [vmem:[#allocation2 + $0x48] sm:$0xff] (!%p1293_p13)  ;;  %v1000_v6 = vmul.f32 (!%p1293_p13), %v1788_v26, %v961_v54  ;;  %v1038_v12 = vadd.f32 (!%p1293_p13), %v1793_v27, %v999_v5  ;;  %v968_v21 = vld [vmem:[#allocation2 + $0x90] sm:$0xff] (!%p1293_p13)  ;;  %v1005_v35 = vmul.f32 (!%p1293_p13), %v1788_v26, %v966_v15 }
 0x15d   : > { %927 = vst.msk [vmem:[#allocation2 + $0x68] sm:$0xff] %vm913_vm1, %v894_v23  ;;  %943 = vst.msk [vmem:[#allocation2 + $0xe8] sm:$0xff] %vm913_vm1, %v910_v24  ;;  %v998_v4 = vmul.f32 (!%p1293_p13), %v1788_v26, %v959_v52  ;;  %v1036_v7 = vadd.f32 (!%p1293_p13), %v1793_v27, %v997_v1  ;;  %v967_v20 = vld [vmem:[#allocation2 + $0x88] sm:$0xff] (!%p1293_p13)  ;;  %v969_v22 = vld [vmem:[#allocation2 + $0x98] sm:$0xff] (!%p1293_p13)  ;;  %v1007_v39 = vmul.f32 (!%p1293_p13), %v1788_v26, %v968_v21 }
 0x15e   : > { %1097 = vst.msk [vmem:[%s1691_s7 + $0x28] sm:$0xff] %vm913_vm1, %v1065_v63  ;;  %1099 = vst.msk [vmem:[%s1691_s7 + $0x38] sm:$0xff] %vm913_vm1, %v1067_v3  ;;  %v1039_v13 = vadd.f32 %v1793_v27, %v1000_v6  ;;  %v1070_v24 = vmax.f32 %v1038_v12, 0.0  ;;  %v1006_v38 = vmul.f32 %v1788_v26, %v967_v20  ;;  %v1008_v40 = vmul.f32 %v1788_v26, %v969_v22  ;;  %v974_v49 = vld [vmem:[#allocation2 + $0xc0] sm:$0xff]  ;;  %v975_v54 = vld [vmem:[#allocation2 + $0xc8] sm:$0xff] }
 0x15f   : > { %v1037_v11 = vadd.f32 %v1793_v27, %v998_v4  ;;  %v1068_v16 = vmax.f32 %v1036_v7, 0.0  ;;  %v1044_v41 = vadd.f32 %v1793_v27, %v1005_v35  ;;  %v1046_v46 = vadd.f32 %v1793_v27, %v1007_v39  ;;  %v977_v56 = vld [vmem:[#allocation2 + $0xd8] sm:$0xff]  ;;  %1112 = vst.msk [vmem:[%s1691_s7 + $0xa0] sm:$0xff] %vm913_vm1, %v1080_v0 }
 0x160   : > { %v1071_v25 = vmax.f32 %v1039_v13, 0.0  ;;  %1102 = vst.msk [vmem:[%s1691_s7 + $0x50] sm:$0xff] %vm913_vm1, %v1070_v24  ;;  %v1045_v45 = vadd.f32 %v1793_v27, %v1006_v38  ;;  %v1047_v47 = vadd.f32 %v1793_v27, %v1008_v40  ;;  %v1049_v52 = vadd.f32 %v1793_v27, %v1010_v43 }
 0x161   : > { %v964_v61 = vld [vmem:[#allocation2 + $0x70] sm:$0xff]  ;;  %v1069_v23 = vmax.f32 %v1037_v11, 0.0  ;;  %1100 = vst.msk [vmem:[%s1691_s7 + $0x40] sm:$0xff] %vm913_vm1, %v1068_v16  ;;  %v1076_v50 = vmax.f32 %v1044_v41, 0.0  ;;  %v1050_v53 = vadd.f32 %v1793_v27, %v1011_v44  ;;  %v1078_v58 = vmax.f32 %v1046_v46, 0.0 }
 0x162   : > { %v962_v59 = vld [vmem:[#allocation2 + $0x60] sm:$0xff]  ;;  %v1003_v10 = vmul.f32 %v1788_v26, %v964_v61  ;;  %1103 = vst.msk [vmem:[%s1691_s7 + $0x58] sm:$0xff] %vm913_vm1, %v1071_v25  ;;  %v1077_v57 = vmax.f32 %v1045_v45, 0.0  ;;  %v980_v63 = vld [vmem:[#allocation2 + $0xf0] sm:$0xff]  ;;  %v1081_v1 = vmax.f32 %v1049_v52, 0.0  ;;  %v1013_v3 = vmul.f32 %v1788_v26, %v974_v49 }
 0x163   : > { %v965_v2 = vld [vmem:[#allocation2 + $0x78] sm:$0xff]  ;;  %v1001_v8 = vmul.f32 %v1788_v26, %v962_v59  ;;  %1101 = vst.msk [vmem:[%s1691_s7 + $0x48] sm:$0xff] %vm913_vm1, %v1069_v23  ;;  %v1079_v59 = vmax.f32 %v1047_v47, 0.0  ;;  %v978_v61 = vld [vmem:[#allocation2 + $0xe0] sm:$0xff]  ;;  %1108 = vst.msk [vmem:[%s1691_s7 + $0x80] sm:$0xff] %vm913_vm1, %v1076_v50  ;;  %v1014_v6 = vmul.f32 %v1788_v26, %v975_v54  ;;  %v1015_v7 = vmul.f32 %v1788_v26, %v976_v55 }
 0x164   : > { %v963_v60 = vld [vmem:[#allocation2 + $0x68] sm:$0xff]  ;;  %v1004_v14 = vmul.f32 %v1788_v26, %v965_v2  ;;  %v1042_v19 = vadd.f32 %v1793_v27, %v1003_v10  ;;  %v1082_v2 = vmax.f32 %v1050_v53, 0.0  ;;  %v981_v4 = vld [vmem:[#allocation2 + $0xf8] sm:$0xff]  ;;  %1109 = vst.msk [vmem:[%s1691_s7 + $0x88] sm:$0xff] %vm913_vm1, %v1077_v57  ;;  %1110 = vst.msk [vmem:[%s1691_s7 + $0x90] sm:$0xff] %vm913_vm1, %v1078_v58  ;;  %v1017_v10 = vmul.f32 %v1788_v26, %v978_v61 }
 0x165   : > { %v1002_v9 = vmul.f32 %v1788_v26, %v963_v60  ;;  %v1040_v17 = vadd.f32 %v1793_v27, %v1001_v8  ;;  %v1051_v60 = vadd.f32 %v1793_v27, %v1012_v48  ;;  %v979_v62 = vld [vmem:[#allocation2 + $0xe8] sm:$0xff]  ;;  %1111 = vst.msk [vmem:[%s1691_s7 + $0x98] sm:$0xff] %vm913_vm1, %v1079_v59  ;;  %v1016_v8 = vmul.f32 %v1788_v26, %v977_v56 }
 0x166   : > { %v1043_v28 = vadd.f32 %v1793_v27, %v1004_v14  ;;  %v1074_v34 = vmax.f32 %v1042_v19, 0.0  ;;  %1113 = vst.msk [vmem:[%s1691_s7 + $0xa8] sm:$0xff] %vm913_vm1, %v1081_v1  ;;  %1114 = vst.msk [vmem:[%s1691_s7 + $0xb0] sm:$0xff] %vm913_vm1, %v1082_v2  ;;  %v1018_v11 = vmul.f32 %v1788_v26, %v979_v62  ;;  %v1019_v12 = vmul.f32 %v1788_v26, %v980_v63 }
 0x167   : > { %v1041_v18 = vadd.f32 %v1793_v27, %v1002_v9  ;;  %v1072_v32 = vmax.f32 %v1040_v17, 0.0  ;;  %v1083_v5 = vmax.f32 %v1051_v60, 0.0  ;;  %v1052_v9 = vadd.f32 %v1793_v27, %v1013_v3 }
 0x168   : > { %v1075_v37 = vmax.f32 %v1043_v28, 0.0  ;;  %1106 = vst.msk [vmem:[%s1691_s7 + $0x70] sm:$0xff] %vm913_vm1, %v1074_v34  ;;  %v1053_v13 = vadd.f32 %v1793_v27, %v1014_v6  ;;  %v1054_v14 = vadd.f32 %v1793_v27, %v1015_v7  ;;  %v1055_v15 = vadd.f32 %v1793_v27, %v1016_v8 }
 0x169   : > { %v1073_v33 = vmax.f32 %v1041_v18, 0.0  ;;  %1104 = vst.msk [vmem:[%s1691_s7 + $0x60] sm:$0xff] %vm913_vm1, %v1072_v32  ;;  %1115 = vst.msk [vmem:[%s1691_s7 + $0xb8] sm:$0xff] %vm913_vm1, %v1083_v5  ;;  %v1020_v16 = vmul.f32 %v1788_v26, %v981_v4  ;;  %v1084_v17 = vmax.f32 %v1052_v9, 0.0  ;;  %v1056_v18 = vadd.f32 %v1793_v27, %v1017_v10 }
 0x16a   : > { %1107 = vst.msk [vmem:[%s1691_s7 + $0x78] sm:$0xff] %vm913_vm1, %v1075_v37  ;;  %v1057_v19 = vadd.f32 %v1793_v27, %v1018_v11  ;;  %v1058_v20 = vadd.f32 %v1793_v27, %v1019_v12  ;;  %v1085_v21 = vmax.f32 %v1053_v13, 0.0  ;;  %v1086_v22 = vmax.f32 %v1054_v14, 0.0 }
 0x16b   : > { %1105 = vst.msk [vmem:[%s1691_s7 + $0x68] sm:$0xff] %vm913_vm1, %v1073_v33  ;;  %v1087_v23 = vmax.f32 %v1055_v15, 0.0  ;;  %v1059_v24 = vadd.f32 %v1793_v27, %v1020_v16  ;;  %1116 = vst.msk [vmem:[%s1691_s7 + $0xc0] sm:$0xff] %vm913_vm1, %v1084_v17  ;;  %v1088_v25 = vmax.f32 %v1056_v18, 0.0 }
 0x16c   : > { %v1089_v26 = vmax.f32 %v1057_v19, 0.0  ;;  %v1090_v28 = vmax.f32 %v1058_v20, 0.0  ;;  %1117 = vst.msk [vmem:[%s1691_s7 + $0xc8] sm:$0xff] %vm913_vm1, %v1085_v21  ;;  %1118 = vst.msk [vmem:[%s1691_s7 + $0xd0] sm:$0xff] %vm913_vm1, %v1086_v22 }
 0x16d   : > { %1119 = vst.msk [vmem:[%s1691_s7 + $0xd8] sm:$0xff] %vm913_vm1, %v1087_v23  ;;  %v1091_v29 = vmax.f32 %v1059_v24, 0.0  ;;  %1120 = vst.msk [vmem:[%s1691_s7 + $0xe0] sm:$0xff] %vm913_vm1, %v1088_v25 }
 0x16e   : > { %1121 = vst.msk [vmem:[%s1691_s7 + $0xe8] sm:$0xff] %vm913_vm1, %v1089_v26  ;;  %1122 = vst.msk [vmem:[%s1691_s7 + $0xf0] sm:$0xff] %vm913_vm1, %v1090_v28 }
 0x16f   : > { %1123 = vst.msk [vmem:[%s1691_s7 + $0xf8] sm:$0xff] %vm913_vm1, %v1091_v29 }
 0x170 PF: > { %s14_s21 = sadd.s32 1, %s1522_s21   ;;  %s1949_s15 = smov %s1502_s16 }
 0x171   : > { %p11_p0 = scmp.ge.s32.totalorder %s14_s21, 12   ;;  %s1950_s16 = smov %s1601_s28 }
 0x172   : > { %s1951_s17 = smov %s1514_s19  ;;  %s1952_s18 = smov %s1518_s20 }
 0x173   : > { %s1953_s19 = smov %s1956_s22  ;;  %s1954_s20 = smov %s1960_s23 }
 0x174   :  { %13 = sbr.rel (!%p11_p0) target bundleno = 4 (0x4), region = 129 }

// kernel: resnet_forward.23
= control target key start
LH: loop header
LB: loop body
LE: loop exit
PB: predicated region body
PF: predicated region fallthrough
CT: control target
= control target key end

     0   :  { %s1696_s18 = smov 0   ;;  %s1698_s19 = smov 0   ;;  %s2127_s0 = inlined_call_operand.vmem [shape: bf16[512,640], index: 0, kind: input, shape index: {}]   ;;  %s2128_s1 = inlined_call_operand.vmem [shape: bf16[640,64], index: 1, kind: input, shape index: {}]   ;;  %s2129_s2 = inlined_call_operand.vmem [shape: f32[1,64], index: 2, kind: input, shape index: {}]   ;;  %s2130_s3 = inlined_call_operand.vmem [shape: f32[1,64], index: 3, kind: input, shape index: {}]   ;;  %s2131_s4 = inlined_call_operand.vmem [shape: f32[512,64], index: 4, kind: input, shape index: {}]   ;;  %s2132_s5 = inlined_call_operand.vmem [shape: f32[512,64], index: 5, kind: output, shape index: {}]  }
   0x1   :  { %s1700_s20 = smov 0   ;;  %s1702_s21 = smov 0  }
   0x2   :  { %s1704_s22 = smov 0   ;;  %s1706_s23 = smov 0  }
   0x3   :  { %s1708_s24 = smov 0  }
   0x4 LB: > { %s27_s25 = sadd.s32 1, %s1655_s22  ;;  %s34_s26 = sadd.s32 1, %s1659_s23  ;;  %s1663_s24 = sphi %s1708_s24, %s15_s24   ;;  %s1659_s23 = sphi %s1706_s23, %s2138_s23   ;;  %s1655_s22 = sphi %s1704_s22, %s2137_s22   ;;  %s1651_s21 = sphi %s1702_s21, %s2136_s21   ;;  %s1647_s20 = sphi %s1700_s20, %s2135_s20   ;;  %s1643_s19 = sphi %s1698_s19, %s2134_s19   ;;  %s1639_s18 = sphi %s1696_s18, %s2133_s18  }
   0x5   : > { %p28_p0 = scmp.ge.s32.totalorder %s27_s25, 5  ;;  %p50_p1 = scmp.ne.s32.totalorder %s1643_s19, %s1639_s18 }
   0x6   : > { %p51_p2 = scmp.eq.s32.totalorder %s1663_s24, 0  ;;  %s43_s30 = sadd.s32 1, %s1643_s19 }
   0x7   : > { %s2140_s25 = smov (%p28_p0, %s27_s25), 0  ;;  %s2142_s26 = smov (!%p28_p0, %s34_s26), %s1659_s23 }
   0x8   : > { %p52_p3 = por %p51_p2, %p50_p1  ;;  %p36_p4 = scmp.ge.s32.totalorder %s2142_s26, 2 }
   0x9   : > { %s39_s27 = ssub.s32 %s1655_s22, %s2140_s25  ;;  %p1396_p6 = scmp.ge.s32.totalorder %s1663_s24, 10 }
   0xa   : > { %s2144_s26 = smov (%p36_p4, %s2142_s26), 0 }
   0xb   : > { %s38_s28 = ssub.s32 %s1659_s23, %s2144_s26  ;;  %224 = sbr.rel (%p1396_p6) target bundleno = 46 (0x2e), region = 24 }
   0xc   : > { %s40_s29 = sor.u32 %s39_s27, %s38_s28 }
   0xd   : > { %p41_p5 = scmp.eq.s32.totalorder %s40_s29, 0 }
   0xf   : > { %s1747_s6 = scalar_select %p41_p5, %s1643_s19, %s43_s30  }
  0x12   : > { %227 = sbr.rel (!%p52_p3) target bundleno = 46 (0x2e), region = 28  ;;  %s229_s7 = sand.u32 (%p52_p3), 1, %s1643_s19  }
  0x13   : > { %s1527_s8 = smul.u32 (%p52_p3), 160, %s1659_s23  ;;  %s1397_s9 = sshll.u32 (%p52_p3), %s229_s7, 7 }
  0x14   : > { %s1761_s15 = scalar_lea.vmem (%p52_p3), [#allocation3], %s1397_s9 }
  0x15   : > { %s234_s10 = sadd.s32 (%p52_p3), %s1655_s22, %s1527_s8 }
  0x16   : > { %s1400_s11 = sshll.u32 (%p52_p3), %s234_s10, 2 }
  0x17   : > { %s1756_s14 = scalar_lea.vmem (%p52_p3), %s2127_s0, %s1400_s11 }
  0x18   : > { %v252_v0 = vld [vmem:[%s1756_s14] sm:$0xf] (%p52_p3)  ;;  %v254_v1 = vld [vmem:[%s1756_s14 + $0x14] sm:$0xf] (%p52_p3)  ;;  %v256_v2 = vld [vmem:[%s1756_s14 + $0x28] sm:$0xf] (%p52_p3) }
  0x19   : > { %253 = vst [vmem:[%s1761_s15] sm:$0xf] %v252_v0  ;;  %255 = vst [vmem:[%s1761_s15 + $0x4] sm:$0xf] %v254_v1  ;;  %v258_v3 = vld [vmem:[%s1756_s14 + $0x3c] sm:$0xf] }
  0x1a   : > { %257 = vst [vmem:[%s1761_s15 + $0x8] sm:$0xf] %v256_v2  ;;  %v260_v4 = vld [vmem:[%s1756_s14 + $0x50] sm:$0xf]  ;;  %v262_v5 = vld [vmem:[%s1756_s14 + $0x64] sm:$0xf] }
  0x1b   : > { %259 = vst [vmem:[%s1761_s15 + $0xc] sm:$0xf] %v258_v3  ;;  %261 = vst [vmem:[%s1761_s15 + $0x10] sm:$0xf] %v260_v4  ;;  %v264_v6 = vld [vmem:[%s1756_s14 + $0x78] sm:$0xf] }
  0x1c   : > { %263 = vst [vmem:[%s1761_s15 + $0x14] sm:$0xf] %v262_v5  ;;  %v266_v7 = vld [vmem:[%s1756_s14 + $0x8c] sm:$0xf]  ;;  %v268_v8 = vld [vmem:[%s1756_s14 + $0xa0] sm:$0xf] }
  0x1d   : > { %265 = vst [vmem:[%s1761_s15 + $0x18] sm:$0xf] %v264_v6  ;;  %267 = vst [vmem:[%s1761_s15 + $0x1c] sm:$0xf] %v266_v7  ;;  %v270_v9 = vld [vmem:[%s1756_s14 + $0xb4] sm:$0xf] }
  0x1e   : > { %269 = vst [vmem:[%s1761_s15 + $0x20] sm:$0xf] %v268_v8  ;;  %v272_v10 = vld [vmem:[%s1756_s14 + $0xc8] sm:$0xf]  ;;  %v274_v11 = vld [vmem:[%s1756_s14 + $0xdc] sm:$0xf] }
  0x1f   : > { %271 = vst [vmem:[%s1761_s15 + $0x24] sm:$0xf] %v270_v9  ;;  %273 = vst [vmem:[%s1761_s15 + $0x28] sm:$0xf] %v272_v10  ;;  %v276_v12 = vld [vmem:[%s1756_s14 + $0xf0] sm:$0xf] }
  0x20   : > { %275 = vst [vmem:[%s1761_s15 + $0x2c] sm:$0xf] %v274_v11  ;;  %v278_v13 = vld [vmem:[%s1756_s14 + $0x104] sm:$0xf]  ;;  %v280_v14 = vld [vmem:[%s1756_s14 + $0x118] sm:$0xf] }
  0x21   : > { %277 = vst [vmem:[%s1761_s15 + $0x30] sm:$0xf] %v276_v12  ;;  %279 = vst [vmem:[%s1761_s15 + $0x34] sm:$0xf] %v278_v13  ;;  %v282_v15 = vld [vmem:[%s1756_s14 + $0x12c] sm:$0xf] }
  0x22   : > { %281 = vst [vmem:[%s1761_s15 + $0x38] sm:$0xf] %v280_v14  ;;  %v284_v16 = vld [vmem:[%s1756_s14 + $0x140] sm:$0xf]  ;;  %v286_v17 = vld [vmem:[%s1756_s14 + $0x154] sm:$0xf] }
  0x23   : > { %283 = vst [vmem:[%s1761_s15 + $0x3c] sm:$0xf] %v282_v15  ;;  %285 = vst [vmem:[%s1761_s15 + $0x40] sm:$0xf] %v284_v16  ;;  %v288_v18 = vld [vmem:[%s1756_s14 + $0x168] sm:$0xf] }
  0x24   : > { %287 = vst [vmem:[%s1761_s15 + $0x44] sm:$0xf] %v286_v17  ;;  %v290_v19 = vld [vmem:[%s1756_s14 + $0x17c] sm:$0xf]  ;;  %v292_v20 = vld [vmem:[%s1756_s14 + $0x190] sm:$0xf] }
  0x25   : > { %289 = vst [vmem:[%s1761_s15 + $0x48] sm:$0xf] %v288_v18  ;;  %291 = vst [vmem:[%s1761_s15 + $0x4c] sm:$0xf] %v290_v19  ;;  %v294_v21 = vld [vmem:[%s1756_s14 + $0x1a4] sm:$0xf] }
  0x26   : > { %293 = vst [vmem:[%s1761_s15 + $0x50] sm:$0xf] %v292_v20  ;;  %v296_v22 = vld [vmem:[%s1756_s14 + $0x1b8] sm:$0xf]  ;;  %v298_v23 = vld [vmem:[%s1756_s14 + $0x1cc] sm:$0xf] }
  0x27   : > { %295 = vst [vmem:[%s1761_s15 + $0x54] sm:$0xf] %v294_v21  ;;  %297 = vst [vmem:[%s1761_s15 + $0x58] sm:$0xf] %v296_v22  ;;  %v300_v24 = vld [vmem:[%s1756_s14 + $0x1e0] sm:$0xf] }
  0x28   : > { %299 = vst [vmem:[%s1761_s15 + $0x5c] sm:$0xf] %v298_v23  ;;  %v302_v25 = vld [vmem:[%s1756_s14 + $0x1f4] sm:$0xf]  ;;  %v304_v26 = vld [vmem:[%s1756_s14 + $0x208] sm:$0xf] }
  0x29   : > { %301 = vst [vmem:[%s1761_s15 + $0x60] sm:$0xf] %v300_v24  ;;  %303 = vst [vmem:[%s1761_s15 + $0x64] sm:$0xf] %v302_v25  ;;  %v306_v27 = vld [vmem:[%s1756_s14 + $0x21c] sm:$0xf] }
  0x2a   : > { %305 = vst [vmem:[%s1761_s15 + $0x68] sm:$0xf] %v304_v26  ;;  %v308_v28 = vld [vmem:[%s1756_s14 + $0x230] sm:$0xf]  ;;  %v310_v29 = vld [vmem:[%s1756_s14 + $0x244] sm:$0xf] }
  0x2b   : > { %307 = vst [vmem:[%s1761_s15 + $0x6c] sm:$0xf] %v306_v27  ;;  %309 = vst [vmem:[%s1761_s15 + $0x70] sm:$0xf] %v308_v28  ;;  %v312_v30 = vld [vmem:[%s1756_s14 + $0x258] sm:$0xf] }
  0x2c   : > { %311 = vst [vmem:[%s1761_s15 + $0x74] sm:$0xf] %v310_v29  ;;  %v314_v31 = vld [vmem:[%s1756_s14 + $0x26c] sm:$0xf]  ;;  %313 = vst [vmem:[%s1761_s15 + $0x78] sm:$0xf] %v312_v30 }
  0x2d   : > { %315 = vst [vmem:[%s1761_s15 + $0x7c] sm:$0xf] %v314_v31 }
  0x2e PF: > { %p1401_p7 = scmp.ge.s32.totalorder %s1663_s24, 1  ;;  %p425_p8 = scmp.lt.s32.totalorder %s1663_s24, 11 }
  0x30   : > { %p426_p9 = pnand %p1401_p7, %p425_p8 }
  0x31   : > { %s432_s16 = sand.u32 (!%p426_p9), 1, %s1639_s18   ;;  %s1403_s17 = sshll.u32 (!%p426_p9), %s1647_s20, 4 }
  0x32   : > { %429 = sbr.rel (%p426_p9) target bundleno = 379 (0x17b), region = 77  ;;  %s1402_s27 = sshll.u32 (!%p426_p9), %s432_s16, 7 }
  0x33   : > { %p486_p10 = scmp.lt.s32.totalorder (!%p426_p9), %s1403_s17, 79  ;;  %s1405_s28 = sshll.u32 (!%p426_p9), %s1651_s21, 5 }
  0x34   : > { %p501_p11 = scmp.lt.s32.totalorder (!%p426_p9), %s1405_s28, 63  ;;  %s1844_s21 = scalar_lea.vmem (!%p426_p9), [#allocation3], %s1402_s27 }
  0x35   : > { %p1409_p12 = scmp.ne.s32.totalorder (!%p426_p9), %s1647_s20, 0 }
  0x39   : > { %s2146_s17 = smov (!%p486_p10, %s1403_s17), 79  ;;  %s2148_s28 = smov (!%p501_p11, %s1405_s28), 63 }
  0x3a   : > { %s1404_s29 = sshll.u32 %s2146_s17, 2  ;;  %s1406_s9 = sshll.u32 %s2148_s28, 3  ;;  %vm523_vm0 = vcmask (!%p1409_p12), 523264   ;;  %v1665_v32 = vmov (!%p1409_p12), 0.0  }
  0x3b   : > { %s1832_s8 = scalar_lea.vmem %s2128_s1, %s1404_s29  ;;  %s1837_s12 = scalar_lea.vmem %s2131_s4, %s1406_s9  ;;  %524 = vst.msk [vmem:[#allocation2] sm:$0xff] (!%p1409_p12), %vm523_vm0, %v1665_v32  ;;  %525 = vst.msk [vmem:[#allocation2 + $0x8] sm:$0xff] (!%p1409_p12), %vm523_vm0, %v1665_v32 }
  0x3c   : > { %s1842_s14 = scalar_lea.vmem %s2132_s5, %s1406_s9  ;;  %522 = sbr.rel (%p1409_p12) target bundleno = 75 (0x4b), region = 85  ;;  %526 = vst.msk [vmem:[#allocation2 + $0x10] sm:$0xff] (!%p1409_p12), %vm523_vm0, %v1665_v32  ;;  %527 = vst.msk [vmem:[#allocation2 + $0x18] sm:$0xff] (!%p1409_p12), %vm523_vm0, %v1665_v32 }
  0x3d   : > { %528 = vst.msk [vmem:[#allocation2 + $0x20] sm:$0xff] (!%p1409_p12), %vm523_vm0, %v1665_v32  ;;  %529 = vst.msk [vmem:[#allocation2 + $0x28] sm:$0xff] (!%p1409_p12), %vm523_vm0, %v1665_v32 }
  0x3e   : > { %530 = vst.msk [vmem:[#allocation2 + $0x30] sm:$0xff] (!%p1409_p12), %vm523_vm0, %v1665_v32  ;;  %531 = vst.msk [vmem:[#allocation2 + $0x38] sm:$0xff] (!%p1409_p12), %vm523_vm0, %v1665_v32 }
  0x3f   : > { %532 = vst.msk [vmem:[#allocation2 + $0x40] sm:$0xff] (!%p1409_p12), %vm523_vm0, %v1665_v32  ;;  %533 = vst.msk [vmem:[#allocation2 + $0x48] sm:$0xff] (!%p1409_p12), %vm523_vm0, %v1665_v32 }
  0x40   : > { %534 = vst.msk [vmem:[#allocation2 + $0x50] sm:$0xff] (!%p1409_p12), %vm523_vm0, %v1665_v32  ;;  %535 = vst.msk [vmem:[#allocation2 + $0x58] sm:$0xff] (!%p1409_p12), %vm523_vm0, %v1665_v32 }
  0x41   : > { %536 = vst.msk [vmem:[#allocation2 + $0x60] sm:$0xff] (!%p1409_p12), %vm523_vm0, %v1665_v32  ;;  %537 = vst.msk [vmem:[#allocation2 + $0x68] sm:$0xff] (!%p1409_p12), %vm523_vm0, %v1665_v32 }
  0x42   : > { %538 = vst.msk [vmem:[#allocation2 + $0x70] sm:$0xff] (!%p1409_p12), %vm523_vm0, %v1665_v32  ;;  %539 = vst.msk [vmem:[#allocation2 + $0x78] sm:$0xff] (!%p1409_p12), %vm523_vm0, %v1665_v32 }
  0x43   : > { %540 = vst.msk [vmem:[#allocation2 + $0x80] sm:$0xff] %vm523_vm0, %v1665_v32  ;;  %541 = vst.msk [vmem:[#allocation2 + $0x88] sm:$0xff] %vm523_vm0, %v1665_v32 }
  0x44   : > { %542 = vst.msk [vmem:[#allocation2 + $0x90] sm:$0xff] %vm523_vm0, %v1665_v32  ;;  %543 = vst.msk [vmem:[#allocation2 + $0x98] sm:$0xff] %vm523_vm0, %v1665_v32 }
  0x45   : > { %544 = vst.msk [vmem:[#allocation2 + $0xa0] sm:$0xff] %vm523_vm0, %v1665_v32  ;;  %545 = vst.msk [vmem:[#allocation2 + $0xa8] sm:$0xff] %vm523_vm0, %v1665_v32 }
  0x46   : > { %546 = vst.msk [vmem:[#allocation2 + $0xb0] sm:$0xff] %vm523_vm0, %v1665_v32  ;;  %547 = vst.msk [vmem:[#allocation2 + $0xb8] sm:$0xff] %vm523_vm0, %v1665_v32 }
  0x47   : > { %548 = vst.msk [vmem:[#allocation2 + $0xc0] sm:$0xff] %vm523_vm0, %v1665_v32  ;;  %549 = vst.msk [vmem:[#allocation2 + $0xc8] sm:$0xff] %vm523_vm0, %v1665_v32 }
  0x48   : > { %550 = vst.msk [vmem:[#allocation2 + $0xd0] sm:$0xff] %vm523_vm0, %v1665_v32  ;;  %551 = vst.msk [vmem:[#allocation2 + $0xd8] sm:$0xff] %vm523_vm0, %v1665_v32 }
  0x49   : > { %552 = vst.msk [vmem:[#allocation2 + $0xe0] sm:$0xff] %vm523_vm0, %v1665_v32  ;;  %553 = vst.msk [vmem:[#allocation2 + $0xe8] sm:$0xff] %vm523_vm0, %v1665_v32 }
  0x4a   : > { %554 = vst.msk [vmem:[#allocation2 + $0xf0] sm:$0xff] %vm523_vm0, %v1665_v32  ;;  %555 = vst.msk [vmem:[#allocation2 + $0xf8] sm:$0xff] %vm523_vm0, %v1665_v32 }
  0x4b PF: > { %v1585_v33 = vld [vmem:[%s1832_s8] sm:$0xff]   ;;  %v1586_v34 = vld [vmem:[%s1832_s8 + $0x8] sm:$0xff]   ;;  %v1587_v35 = vld [vmem:[%s1832_s8 + $0x10] sm:$0xff]   ;;  %vm973_vm1 = vcmask 523264   ;;  %p1434_p13 = scmp.ne.s32.totalorder %s1647_s20, 4 }
  0x4c   : > { %1463 = vmatprep.subr.bf16.mxu0 %v1585_v33  ;;  %1511 = vmatprep.subr.bf16.mxu1 %v1585_v33  ;;  %v1588_v36 = vld [vmem:[%s1832_s8 + $0x18] sm:$0xff]   ;;  %v1593_v37 = vld [vmem:[%s1844_s21] sm:$0xff]   ;;  %v1590_v40 = vld [vmem:[%s1832_s8 + $0x28] sm:$0xff]  }
  0x4d   : > { %1464 = vmatpush3.bf16.msra.mxu0 %v1585_v33  ;;  %1519 = vmatpush3.bf16.msra.mxu1 %v1585_v33  ;;  %v1594_v38 = vld [vmem:[%s1844_s21 + $0x40] sm:$0xff]   ;;  %v1591_v41 = vld [vmem:[%s1832_s8 + $0x30] sm:$0xff]   ;;  %v1592_v42 = vld [vmem:[%s1832_s8 + $0x38] sm:$0xff]  }
  0x4e   : > { %1465 = vmatprep.subr.bf16.mxu0 %v1586_v34  ;;  %1512 = vmatprep.subr.bf16.mxu1 %v1586_v34  ;;  %v1589_v39 = vld [vmem:[%s1832_s8 + $0x20] sm:$0xff]   ;;  %v1595_v43 = vld [vmem:[%s1844_s21 + $0x8] sm:$0xff]   ;;  %v1597_v45 = vld [vmem:[%s1844_s21 + $0x10] sm:$0xff]  }
  0x4f   : > { %1479 = vmatprep.mubr.bf16.mxu0 %v1593_v37  ;;  %1495 = vmatprep.mubr.bf16.mxu1 %v1594_v38  ;;  %v1596_v44 = vld [vmem:[%s1844_s21 + $0x48] sm:$0xff]   ;;  %v1598_v46 = vld [vmem:[%s1844_s21 + $0x50] sm:$0xff]   ;;  %v1599_v47 = vld [vmem:[%s1844_s21 + $0x18] sm:$0xff]  }
  0x50   : > { %v1600_v48 = vld [vmem:[%s1844_s21 + $0x58] sm:$0xff]   ;;  %v1601_v49 = vld [vmem:[%s1844_s21 + $0x20] sm:$0xff]   ;;  %v1603_v51 = vld [vmem:[%s1844_s21 + $0x28] sm:$0xff]  }
  0x51   : > { %1466 = vmatpush3.bf16.msra.mxu0 %v1586_v34  ;;  %1520 = vmatpush3.bf16.msra.mxu1 %v1586_v34  ;;  %v1602_v50 = vld [vmem:[%s1844_s21 + $0x60] sm:$0xff]   ;;  %v1604_v52 = vld [vmem:[%s1844_s21 + $0x68] sm:$0xff]   ;;  %v1605_v53 = vld [vmem:[%s1844_s21 + $0x30] sm:$0xff]  }
  0x52   : > { %1467 = vmatprep.subr.bf16.mxu0 %v1587_v35  ;;  %1513 = vmatprep.subr.bf16.mxu1 %v1587_v35  ;;  %v1606_v54 = vld [vmem:[%s1844_s21 + $0x70] sm:$0xff]   ;;  %v1607_v55 = vld [vmem:[%s1844_s21 + $0x38] sm:$0xff]   ;;  %v556_v59 = vld [vmem:[#allocation2] sm:$0xff] }
  0x53   : > { %v1608_v56 = vld [vmem:[%s1844_s21 + $0x78] sm:$0xff]   ;;  %v558_v57 = vld [vmem:[#allocation2 + $0x10] sm:$0xff]  ;;  %v572_v60 = vld [vmem:[#allocation2 + $0x80] sm:$0xff] }
  0x54   : > { %v574_v58 = vld [vmem:[#allocation2 + $0x90] sm:$0xff]  ;;  %v559_v63 = vld [vmem:[#allocation2 + $0x18] sm:$0xff]  ;;  %v557_v5 = vld [vmem:[#allocation2 + $0x8] sm:$0xff] }
  0x55   : > { %1468 = vmatpush3.bf16.msra.mxu0 %v1587_v35  ;;  %1521 = vmatpush3.bf16.msra.mxu1 %v1587_v35  ;;  %v575_v0 = vld [vmem:[#allocation2 + $0x98] sm:$0xff]  ;;  %v573_v6 = vld [vmem:[#allocation2 + $0x88] sm:$0xff]  ;;  %v562_v17 = vld [vmem:[#allocation2 + $0x30] sm:$0xff] }
  0x56   : > { %1469 = vmatprep.subr.bf16.mxu0 %v1588_v36  ;;  %1514 = vmatprep.subr.bf16.mxu1 %v1588_v36  ;;  %v578_v18 = vld [vmem:[#allocation2 + $0xb0] sm:$0xff]  ;;  %v560_v19 = vld [vmem:[#allocation2 + $0x20] sm:$0xff]  ;;  %v563_v23 = vld [vmem:[#allocation2 + $0x38] sm:$0xff] }
  0x57   : > { %v576_v20 = vld [vmem:[#allocation2 + $0xa0] sm:$0xff]  ;;  %v579_v24 = vld [vmem:[#allocation2 + $0xb8] sm:$0xff]  ;;  %v561_v29 = vld [vmem:[#allocation2 + $0x28] sm:$0xff] }
  0x58   : > { %v577_v30 = vld [vmem:[#allocation2 + $0xa8] sm:$0xff] }
  0x59   : > { %1470 = vmatpush3.bf16.msra.mxu0 %v1588_v36  ;;  %1522 = vmatpush3.bf16.msra.mxu1 %v1588_v36 }
  0x5a   : > { %1471 = vmatprep.subr.bf16.mxu0 %v1589_v39  ;;  %1515 = vmatprep.subr.bf16.mxu1 %v1589_v39 }
  0x5d   : > { %1472 = vmatpush3.bf16.msra.mxu0 %v1589_v39  ;;  %1523 = vmatpush3.bf16.msra.mxu1 %v1589_v39 }
  0x5e   : > { %1473 = vmatprep.subr.bf16.mxu0 %v1590_v40  ;;  %1516 = vmatprep.subr.bf16.mxu1 %v1590_v40 }
  0x61   : > { %1474 = vmatpush3.bf16.msra.mxu0 %v1590_v40  ;;  %1524 = vmatpush3.bf16.msra.mxu1 %v1590_v40 }
  0x62   : > { %1475 = vmatprep.subr.bf16.mxu0 %v1591_v41  ;;  %1517 = vmatprep.subr.bf16.mxu1 %v1591_v41 }
  0x65   : > { %1476 = vmatpush3.bf16.msra.mxu0 %v1591_v41  ;;  %1525 = vmatpush3.bf16.msra.mxu1 %v1591_v41  ;;  %v566_v41 = vld [vmem:[#allocation2 + $0x50] sm:$0xff] }
  0x66   : > { %1477 = vmatprep.subr.bf16.mxu0 %v1592_v42  ;;  %1518 = vmatprep.subr.bf16.mxu1 %v1592_v42 }
  0x69   : > { %1478 = vmatpush3.bf16.msra.mxu0 %v1592_v42  ;;  %1526 = vmatpush3.bf16.msra.mxu1 %v1592_v42  ;;  %v582_v42 = vld [vmem:[#allocation2 + $0xd0] sm:$0xff] }
  0x6c   : > { %1480 = vmatmul.mubr.bf16.vlgmr.msra.gmra.mrb[0].mxu0 %v1595_v43  ;;  %1496 = vmatmul.mubr.bf16.vlgmr.msra.gmra.mrb[0].mxu1 %v1596_v44  ;;  %v564_v43 = vld [vmem:[#allocation2 + $0x40] sm:$0xff] }
  0x6d   : > { %1483 = vmatprep.mubr.bf16.mxu0 %v1597_v45  ;;  %1499 = vmatprep.mubr.bf16.mxu1 %v1598_v46  ;;  %v580_v44 = vld [vmem:[#allocation2 + $0xc0] sm:$0xff] }
  0x74   : > { %1484 = vmatmul.mubr.bf16.gmra.mrb[4].mxu0 %v1599_v47  ;;  %1500 = vmatmul.mubr.bf16.gmra.mrb[4].mxu1 %v1600_v48  ;;  %v567_v47 = vld [vmem:[#allocation2 + $0x58] sm:$0xff] }
  0x75   : > { %1487 = vmatprep.mubr.bf16.mxu0 %v1601_v49  ;;  %1503 = vmatprep.mubr.bf16.mxu1 %v1602_v50  ;;  %v583_v48 = vld [vmem:[#allocation2 + $0xd8] sm:$0xff] }
  0x7c   : > { %1488 = vmatmul.mubr.bf16.gmra.mrb[8].mxu0 %v1603_v51  ;;  %1504 = vmatmul.mubr.bf16.gmra.mrb[8].mxu1 %v1604_v52 }
  0x7d   : > { %1491 = vmatprep.mubr.bf16.mxu0 %v1605_v53  ;;  %1507 = vmatprep.mubr.bf16.mxu1 %v1606_v54  ;;  %v565_v53 = vld [vmem:[#allocation2 + $0x48] sm:$0xff] }
  0x7e   : > { %v581_v54 = vld [vmem:[#allocation2 + $0xc8] sm:$0xff] }
  0x84   : > { %1492 = vmatmul.mubr.bf16.gmra.mrb[12].mxu0 %v1607_v55  ;;  %1508 = vmatmul.mubr.bf16.gmra.mrb[12].mxu1 %v1608_v56 }
 0x13f   : > { %v1481_v61 = vpop.f32.mrb[0].mxu0  ;;  %v1497_v62 = vpop.f32.mrb[0].mxu1 }
 0x140   : > { %v943_v1 = vadd.f32 %v1481_v61, %v558_v57  ;;  %v959_v2 = vadd.f32 %v1497_v62, %v574_v58  ;;  %v814_v3 = vpop.f32.mrb[1].mxu0  ;;  %v878_v4 = vpop.f32.mrb[1].mxu1 }
 0x141   : > { %v941_v7 = vadd.f32 %v814_v3, %v556_v59  ;;  %v957_v8 = vadd.f32 %v878_v4, %v572_v60  ;;  %v1482_v9 = vpop.f32.mrb[2].mxu0  ;;  %v1498_v10 = vpop.f32.mrb[2].mxu1  ;;  %v568_v3 = vld [vmem:[#allocation2 + $0x60] sm:$0xff] }
 0x142   : > { %976 = vst.msk [vmem:[#allocation2 + $0x10] sm:$0xff] %vm973_vm1, %v943_v1  ;;  %992 = vst.msk [vmem:[#allocation2 + $0x90] sm:$0xff] %vm973_vm1, %v959_v2  ;;  %v944_v11 = vadd.f32 %v1482_v9, %v559_v63  ;;  %v960_v12 = vadd.f32 %v1498_v10, %v575_v0  ;;  %v817_v13 = vpop.f32.mrb[3].mxu0  ;;  %v881_v14 = vpop.f32.mrb[3].mxu1  ;;  %v570_v1 = vld [vmem:[#allocation2 + $0x70] sm:$0xff]  ;;  %v584_v4 = vld [vmem:[#allocation2 + $0xe0] sm:$0xff] }
 0x143   : > { %974 = vst.msk [vmem:[#allocation2] sm:$0xff] %vm973_vm1, %v941_v7  ;;  %990 = vst.msk [vmem:[#allocation2 + $0x80] sm:$0xff] %vm973_vm1, %v957_v8  ;;  %v942_v15 = vadd.f32 %v817_v13, %v557_v5  ;;  %v958_v16 = vadd.f32 %v881_v14, %v573_v6  ;;  %v586_v2 = vld [vmem:[#allocation2 + $0xf0] sm:$0xff]  ;;  %v571_v7 = vld [vmem:[#allocation2 + $0x78] sm:$0xff] }
 0x144   : > { %977 = vst.msk [vmem:[#allocation2 + $0x18] sm:$0xff] %vm973_vm1, %v944_v11  ;;  %993 = vst.msk [vmem:[#allocation2 + $0x98] sm:$0xff] %vm973_vm1, %v960_v12  ;;  %v587_v8 = vld [vmem:[#allocation2 + $0xf8] sm:$0xff]  ;;  %v569_v13 = vld [vmem:[#allocation2 + $0x68] sm:$0xff] }
 0x145   : > { %975 = vst.msk [vmem:[#allocation2 + $0x8] sm:$0xff] %vm973_vm1, %v942_v15  ;;  %991 = vst.msk [vmem:[#allocation2 + $0x88] sm:$0xff] %vm973_vm1, %v958_v16  ;;  %v585_v14 = vld [vmem:[#allocation2 + $0xe8] sm:$0xff] }
 0x147   : > { %v1485_v21 = vpop.f32.mrb[4].mxu0  ;;  %v1501_v22 = vpop.f32.mrb[4].mxu1 }
 0x148   : > { %v947_v25 = vadd.f32 %v1485_v21, %v562_v17  ;;  %v963_v26 = vadd.f32 %v1501_v22, %v578_v18  ;;  %v830_v27 = vpop.f32.mrb[5].mxu0  ;;  %v894_v28 = vpop.f32.mrb[5].mxu1 }
 0x149   : > { %v945_v31 = vadd.f32 %v830_v27, %v560_v19  ;;  %v961_v32 = vadd.f32 %v894_v28, %v576_v20  ;;  %v1486_v33 = vpop.f32.mrb[6].mxu0  ;;  %v1502_v34 = vpop.f32.mrb[6].mxu1  ;;  %v1944_v27 = vld [vmem:[%s2130_s3] ss:$0 sm:$0xff] (!%p1434_p13) }
 0x14a   : > { %980 = vst.msk [vmem:[#allocation2 + $0x30] sm:$0xff] %vm973_vm1, %v947_v25  ;;  %996 = vst.msk [vmem:[#allocation2 + $0xb0] sm:$0xff] %vm973_vm1, %v963_v26  ;;  %v948_v35 = vadd.f32 %v1486_v33, %v563_v23  ;;  %v964_v36 = vadd.f32 %v1502_v34, %v579_v24  ;;  %v833_v37 = vpop.f32.mrb[7].mxu0  ;;  %v897_v38 = vpop.f32.mrb[7].mxu1  ;;  %v1010_v25 = vld [vmem:[#allocation2] sm:$0xff] (!%p1434_p13) }
 0x14b   : > { %978 = vst.msk [vmem:[#allocation2 + $0x20] sm:$0xff] %vm973_vm1, %v945_v31  ;;  %994 = vst.msk [vmem:[#allocation2 + $0xa0] sm:$0xff] %vm973_vm1, %v961_v32  ;;  %v946_v39 = vadd.f32 %v833_v37, %v561_v29  ;;  %v962_v40 = vadd.f32 %v897_v38, %v577_v30  ;;  %v1939_v26 = vld [vmem:[%s2129_s2] ss:$0 sm:$0xff] (!%p1434_p13)  ;;  %v1012_v32 = vld [vmem:[#allocation2 + $0x10] sm:$0xff] (!%p1434_p13) }
 0x14c   : > { %981 = vst.msk [vmem:[#allocation2 + $0x38] sm:$0xff] %vm973_vm1, %v948_v35  ;;  %997 = vst.msk [vmem:[#allocation2 + $0xb8] sm:$0xff] %vm973_vm1, %v964_v36  ;;  %v1049_v28 = vmul.f32 (!%p1434_p13), %v1939_v26, %v1010_v25  ;;  %v1011_v29 = vld [vmem:[#allocation2 + $0x8] sm:$0xff] (!%p1434_p13)  ;;  %v1120_v30 = vld [vmem:[%s1837_s12] sm:$0xff] (!%p1434_p13)  ;;  %v1051_v36 = vmul.f32 (!%p1434_p13), %v1939_v26, %v1012_v32 }
 0x14d   : > { %979 = vst.msk [vmem:[#allocation2 + $0x28] sm:$0xff] %vm973_vm1, %v946_v39  ;;  %995 = vst.msk [vmem:[#allocation2 + $0xa8] sm:$0xff] %vm973_vm1, %v962_v40  ;;  %v1050_v31 = vmul.f32 (!%p1434_p13), %v1939_v26, %v1011_v29  ;;  %v1013_v33 = vld [vmem:[#allocation2 + $0x18] sm:$0xff] (!%p1434_p13)  ;;  %v1121_v35 = vld [vmem:[%s1837_s12 + $0x8] sm:$0xff] (!%p1434_p13) }
 0x14e   : > { %v1088_v34 = vadd.f32 (!%p1434_p13), %v1944_v27, %v1049_v28  ;;  %v1122_v37 = vld [vmem:[%s1837_s12 + $0x10] sm:$0xff] (!%p1434_p13)  ;;  %v1052_v38 = vmul.f32 (!%p1434_p13), %v1939_v26, %v1013_v33 }
 0x14f   : > { %v1489_v45 = vpop.f32.mrb[8].mxu0  ;;  %v1505_v46 = vpop.f32.mrb[8].mxu1  ;;  %v1089_v40 = vadd.f32 (!%p1434_p13), %v1944_v27, %v1050_v31  ;;  %v1130_v29 = vld [vmem:[%s1837_s12 + $0x50] sm:$0xff] (!%p1434_p13) }
 0x150   : > { %v951_v49 = vadd.f32 %v1489_v45, %v566_v41  ;;  %v967_v50 = vadd.f32 %v1505_v46, %v582_v42  ;;  %v846_v51 = vpop.f32.mrb[9].mxu0  ;;  %v910_v52 = vpop.f32.mrb[9].mxu1  ;;  %v1123_v41 = vld [vmem:[%s1837_s12 + $0x18] sm:$0xff] (!%p1434_p13)  ;;  %v1152_v45 = vadd.f32 (!%p1434_p13), %v1120_v30, %v1088_v34  ;;  %v1090_v46 = vadd.f32 (!%p1434_p13), %v1944_v27, %v1051_v36 }
 0x151   : > { %v949_v55 = vadd.f32 %v846_v51, %v564_v43  ;;  %v965_v56 = vadd.f32 %v910_v52, %v580_v44  ;;  %v1490_v57 = vpop.f32.mrb[10].mxu0  ;;  %v1506_v58 = vpop.f32.mrb[10].mxu1  ;;  %v1016_v44 = vld [vmem:[#allocation2 + $0x30] sm:$0xff] (!%p1434_p13)  ;;  %v1153_v51 = vadd.f32 (!%p1434_p13), %v1121_v35, %v1089_v40  ;;  %v1131_v30 = vld [vmem:[%s1837_s12 + $0x58] sm:$0xff] (!%p1434_p13)  ;;  %v1132_v35 = vld [vmem:[%s1837_s12 + $0x60] sm:$0xff] (!%p1434_p13) }
 0x152   : > { %984 = vst.msk [vmem:[#allocation2 + $0x50] sm:$0xff] %vm973_vm1, %v951_v49  ;;  %1000 = vst.msk [vmem:[#allocation2 + $0xd0] sm:$0xff] %vm973_vm1, %v967_v50  ;;  %v952_v59 = vadd.f32 %v1490_v57, %v567_v47  ;;  %v968_v60 = vadd.f32 %v1506_v58, %v583_v48  ;;  %v849_v61 = vpop.f32.mrb[11].mxu0  ;;  %v913_v62 = vpop.f32.mrb[11].mxu1  ;;  %v1014_v39 = vld [vmem:[#allocation2 + $0x20] sm:$0xff] (!%p1434_p13)  ;;  %v1091_v47 = vadd.f32 (!%p1434_p13), %v1944_v27, %v1052_v38  ;;  %v1184_v57 = vmax.f32 (!%p1434_p13), %v1152_v45, 0.0 }
 0x153   : > { %982 = vst.msk [vmem:[#allocation2 + $0x40] sm:$0xff] %vm973_vm1, %v949_v55  ;;  %998 = vst.msk [vmem:[#allocation2 + $0xc0] sm:$0xff] %vm973_vm1, %v965_v56  ;;  %v950_v63 = vadd.f32 %v849_v61, %v565_v53  ;;  %v966_v0 = vadd.f32 %v913_v62, %v581_v54  ;;  %v1053_v42 = vmul.f32 (!%p1434_p13), %v1939_v26, %v1014_v39  ;;  %v1124_v48 = vld [vmem:[%s1837_s12 + $0x20] sm:$0xff] (!%p1434_p13)  ;;  %v1017_v50 = vld [vmem:[#allocation2 + $0x38] sm:$0xff] (!%p1434_p13) }
 0x154   : > { %985 = vst.msk [vmem:[#allocation2 + $0x58] sm:$0xff] %vm973_vm1, %v952_v59  ;;  %1001 = vst.msk [vmem:[#allocation2 + $0xd8] sm:$0xff] %vm973_vm1, %v968_v60  ;;  %v1015_v43 = vld [vmem:[#allocation2 + $0x28] sm:$0xff] (!%p1434_p13)  ;;  %v1055_v54 = vmul.f32 (!%p1434_p13), %v1939_v26, %v1016_v44  ;;  %v1056_v55 = vmul.f32 (!%p1434_p13), %v1939_v26, %v1017_v50  ;;  %v1154_v58 = vadd.f32 (!%p1434_p13), %v1122_v37, %v1090_v46  ;;  %v1126_v61 = vld [vmem:[%s1837_s12 + $0x30] sm:$0xff] (!%p1434_p13) }
 0x155   : > { %983 = vst.msk [vmem:[#allocation2 + $0x48] sm:$0xff] %vm973_vm1, %v950_v63  ;;  %999 = vst.msk [vmem:[#allocation2 + $0xc8] sm:$0xff] %vm973_vm1, %v966_v0  ;;  %v1054_v49 = vmul.f32 (!%p1434_p13), %v1939_v26, %v1015_v43  ;;  %v1092_v52 = vadd.f32 (!%p1434_p13), %v1944_v27, %v1053_v42  ;;  %v1125_v53 = vld [vmem:[%s1837_s12 + $0x28] sm:$0xff] (!%p1434_p13)  ;;  %v1155_v59 = vadd.f32 (!%p1434_p13), %v1123_v41, %v1091_v47  ;;  %v1127_v62 = vld [vmem:[%s1837_s12 + $0x38] sm:$0xff] (!%p1434_p13)  ;;  %v1185_v0 = vmax.f32 (!%p1434_p13), %v1153_v51, 0.0 }
 0x156   : > { %1216 = vst.msk [vmem:[%s1842_s14] sm:$0xff] (!%p1434_p13), %vm973_vm1, %v1184_v57  ;;  %v1133_v39 = vld [vmem:[%s1837_s12 + $0x68] sm:$0xff] (!%p1434_p13)  ;;  %v1026_v42 = vld [vmem:[#allocation2 + $0x80] sm:$0xff] (!%p1434_p13)  ;;  %v1134_v47 = vld [vmem:[%s1837_s12 + $0x70] sm:$0xff] (!%p1434_p13) }
 0x157   : > { %v1493_v5 = vpop.f32.mrb[12].mxu0  ;;  %v1509_v6 = vpop.f32.mrb[12].mxu1  ;;  %1009 = sbr.rel (%p1434_p13) target bundleno = 379 (0x17b), region = 89  ;;  %v1093_v60 = vadd.f32 (!%p1434_p13), %v1944_v27, %v1054_v49  ;;  %1217 = vst.msk [vmem:[%s1842_s14 + $0x8] sm:$0xff] (!%p1434_p13), %vm973_vm1, %v1185_v0  ;;  %v1027_v49 = vld [vmem:[#allocation2 + $0x88] sm:$0xff] (!%p1434_p13)  ;;  %v1136_v0 = vld [vmem:[%s1837_s12 + $0x80] sm:$0xff] (!%p1434_p13) }
 0x158   : > { %v955_v9 = vadd.f32 %v1493_v5, %v570_v1  ;;  %v971_v10 = vadd.f32 %v1509_v6, %v586_v2  ;;  %v862_v11 = vpop.f32.mrb[13].mxu0  ;;  %v926_v12 = vpop.f32.mrb[13].mxu1  ;;  %v1156_v1 = vadd.f32 (!%p1434_p13), %v1124_v48, %v1092_v52  ;;  %v1094_v2 = vadd.f32 (!%p1434_p13), %v1944_v27, %v1055_v54  ;;  %v1135_v48 = vld [vmem:[%s1837_s12 + $0x78] sm:$0xff] (!%p1434_p13)  ;;  %v1028_v54 = vld [vmem:[#allocation2 + $0x90] sm:$0xff] (!%p1434_p13) }
 0x159   : > { %v953_v15 = vadd.f32 %v862_v11, %v568_v3  ;;  %v969_v16 = vadd.f32 %v926_v12, %v584_v4  ;;  %v1494_v17 = vpop.f32.mrb[14].mxu0  ;;  %v1510_v18 = vpop.f32.mrb[14].mxu1  ;;  %v1095_v3 = vadd.f32 (!%p1434_p13), %v1944_v27, %v1056_v55  ;;  %v1020_v4 = vld [vmem:[#allocation2 + $0x50] sm:$0xff] (!%p1434_p13)  ;;  %v1186_v6 = vmax.f32 (!%p1434_p13), %v1154_v58, 0.0  ;;  %v1029_v55 = vld [vmem:[#allocation2 + $0x98] sm:$0xff] (!%p1434_p13) }
 0x15a   : > { %988 = vst.msk [vmem:[#allocation2 + $0x70] sm:$0xff] %vm973_vm1, %v955_v9  ;;  %1004 = vst.msk [vmem:[#allocation2 + $0xf0] sm:$0xff] %vm973_vm1, %v971_v10  ;;  %v956_v19 = vadd.f32 %v1494_v17, %v571_v7  ;;  %v972_v20 = vadd.f32 %v1510_v18, %v587_v8  ;;  %v865_v21 = vpop.f32.mrb[15].mxu0  ;;  %v929_v22 = vpop.f32.mrb[15].mxu1  ;;  %v1018_v56 = vld [vmem:[#allocation2 + $0x40] sm:$0xff] (!%p1434_p13)  ;;  %v1187_v7 = vmax.f32 (!%p1434_p13), %v1155_v59, 0.0  ;;  %v1157_v8 = vadd.f32 (!%p1434_p13), %v1125_v53, %v1093_v60 }
 0x15b   : > { %986 = vst.msk [vmem:[#allocation2 + $0x60] sm:$0xff] %vm973_vm1, %v953_v15  ;;  %1002 = vst.msk [vmem:[#allocation2 + $0xe0] sm:$0xff] %vm973_vm1, %v969_v16  ;;  %v954_v23 = vadd.f32 %v865_v21, %v569_v13  ;;  %v970_v24 = vadd.f32 %v929_v22, %v585_v14  ;;  %v1021_v5 = vld [vmem:[#allocation2 + $0x58] sm:$0xff] (!%p1434_p13)  ;;  %v1057_v9 = vmul.f32 (!%p1434_p13), %v1939_v26, %v1018_v56  ;;  %v1188_v11 = vmax.f32 (!%p1434_p13), %v1156_v1, 0.0  ;;  %v1128_v14 = vld [vmem:[%s1837_s12 + $0x40] sm:$0xff] (!%p1434_p13) }
 0x15c   : > { %989 = vst.msk [vmem:[#allocation2 + $0x78] sm:$0xff] %vm973_vm1, %v956_v19  ;;  %1005 = vst.msk [vmem:[#allocation2 + $0xf8] sm:$0xff] %vm973_vm1, %v972_v20  ;;  %v1019_v63 = vld [vmem:[#allocation2 + $0x48] sm:$0xff] (!%p1434_p13)  ;;  %v1158_v12 = vadd.f32 (!%p1434_p13), %v1126_v61, %v1094_v2  ;;  %v1159_v13 = vadd.f32 (!%p1434_p13), %v1127_v62, %v1095_v3  ;;  %v1189_v17 = vmax.f32 (!%p1434_p13), %v1157_v8, 0.0  ;;  %v1059_v20 = vmul.f32 (!%p1434_p13), %v1939_v26, %v1020_v4  ;;  %v1030_v60 = vld [vmem:[#allocation2 + $0xa0] sm:$0xff] (!%p1434_p13) }
 0x15d   : > { %987 = vst.msk [vmem:[#allocation2 + $0x68] sm:$0xff] %vm973_vm1, %v954_v23  ;;  %1003 = vst.msk [vmem:[#allocation2 + $0xe8] sm:$0xff] %vm973_vm1, %v970_v24  ;;  %v1058_v15 = vmul.f32 (!%p1434_p13), %v1939_v26, %v1019_v63  ;;  %v1096_v18 = vadd.f32 (!%p1434_p13), %v1944_v27, %v1057_v9  ;;  %v1129_v19 = vld [vmem:[%s1837_s12 + $0x48] sm:$0xff] (!%p1434_p13)  ;;  %v1060_v21 = vmul.f32 (!%p1434_p13), %v1939_v26, %v1021_v5  ;;  %v1032_v8 = vld [vmem:[#allocation2 + $0xb0] sm:$0xff] (!%p1434_p13) }
 0x15e   : > { %1218 = vst.msk [vmem:[%s1842_s14 + $0x10] sm:$0xff] %vm973_vm1, %v1186_v6  ;;  %1219 = vst.msk [vmem:[%s1842_s14 + $0x18] sm:$0xff] %vm973_vm1, %v1187_v7  ;;  %v1190_v24 = vmax.f32 %v1158_v12, 0.0  ;;  %v1191_v25 = vmax.f32 %v1159_v13, 0.0  ;;  %v1098_v33 = vadd.f32 %v1944_v27, %v1059_v20  ;;  %v1065_v59 = vmul.f32 %v1939_v26, %v1026_v42  ;;  %v1031_v2 = vld [vmem:[#allocation2 + $0xa8] sm:$0xff]  ;;  %v1033_v9 = vld [vmem:[#allocation2 + $0xb8] sm:$0xff] }
 0x15f   : > { %1220 = vst.msk [vmem:[%s1842_s14 + $0x20] sm:$0xff] %vm973_vm1, %v1188_v11  ;;  %v1097_v28 = vadd.f32 %v1944_v27, %v1058_v15  ;;  %1221 = vst.msk [vmem:[%s1842_s14 + $0x28] sm:$0xff] %vm973_vm1, %v1189_v17  ;;  %v1160_v32 = vadd.f32 %v1128_v14, %v1096_v18  ;;  %v1099_v34 = vadd.f32 %v1944_v27, %v1060_v21  ;;  %v1137_v5 = vld [vmem:[%s1837_s12 + $0x88] sm:$0xff]  ;;  %v1138_v13 = vld [vmem:[%s1837_s12 + $0x90] sm:$0xff] }
 0x160   : > { %1222 = vst.msk [vmem:[%s1842_s14 + $0x30] sm:$0xff] %vm973_vm1, %v1190_v24  ;;  %1223 = vst.msk [vmem:[%s1842_s14 + $0x38] sm:$0xff] %vm973_vm1, %v1191_v25  ;;  %v1162_v44 = vadd.f32 %v1130_v29, %v1098_v33  ;;  %v1066_v1 = vmul.f32 %v1939_v26, %v1027_v49  ;;  %v1104_v4 = vadd.f32 %v1944_v27, %v1065_v59  ;;  %v1139_v14 = vld [vmem:[%s1837_s12 + $0x98] sm:$0xff]  ;;  %v1142_v33 = vld [vmem:[%s1837_s12 + $0xb0] sm:$0xff] }
 0x161   : > { %v1024_v22 = vld [vmem:[#allocation2 + $0x70] sm:$0xff]  ;;  %v1161_v37 = vadd.f32 %v1129_v19, %v1097_v28  ;;  %v1192_v43 = vmax.f32 %v1160_v32, 0.0  ;;  %v1163_v45 = vadd.f32 %v1131_v30, %v1099_v34  ;;  %v1067_v6 = vmul.f32 %v1939_v26, %v1028_v54  ;;  %v1140_v19 = vld [vmem:[%s1837_s12 + $0xa0] sm:$0xff]  ;;  %v1143_v34 = vld [vmem:[%s1837_s12 + $0xb8] sm:$0xff] }
 0x162   : > { %v1022_v10 = vld [vmem:[#allocation2 + $0x60] sm:$0xff]  ;;  %v1063_v40 = vmul.f32 %v1939_v26, %v1024_v22  ;;  %v1194_v56 = vmax.f32 %v1162_v44, 0.0  ;;  %v1068_v7 = vmul.f32 %v1939_v26, %v1029_v55  ;;  %v1105_v12 = vadd.f32 %v1944_v27, %v1066_v1  ;;  %v1145_v55 = vld [vmem:[%s1837_s12 + $0xc8] sm:$0xff] }
 0x163   : > { %v1025_v23 = vld [vmem:[#allocation2 + $0x78] sm:$0xff]  ;;  %v1061_v31 = vmul.f32 %v1939_v26, %v1022_v10  ;;  %v1193_v50 = vmax.f32 %v1161_v37, 0.0  ;;  %1224 = vst.msk [vmem:[%s1842_s14 + $0x40] sm:$0xff] %vm973_vm1, %v1192_v43  ;;  %v1195_v57 = vmax.f32 %v1163_v45, 0.0  ;;  %v1069_v15 = vmul.f32 %v1939_v26, %v1030_v60  ;;  %v1034_v28 = vld [vmem:[#allocation2 + $0xc0] sm:$0xff] }
 0x164   : > { %v1023_v16 = vld [vmem:[#allocation2 + $0x68] sm:$0xff]  ;;  %v1064_v41 = vmul.f32 %v1939_v26, %v1025_v23  ;;  %v1102_v52 = vadd.f32 %v1944_v27, %v1063_v40  ;;  %1226 = vst.msk [vmem:[%s1842_s14 + $0x50] sm:$0xff] %vm973_vm1, %v1194_v56  ;;  %v1106_v17 = vadd.f32 %v1944_v27, %v1067_v6  ;;  %v1107_v18 = vadd.f32 %v1944_v27, %v1068_v7  ;;  %v1036_v40 = vld [vmem:[#allocation2 + $0xd0] sm:$0xff]  ;;  %v1041_v59 = vld [vmem:[#allocation2 + $0xf8] sm:$0xff] }
 0x165   : > { %v1062_v36 = vmul.f32 %v1939_v26, %v1023_v16  ;;  %v1100_v38 = vadd.f32 %v1944_v27, %v1061_v31  ;;  %1225 = vst.msk [vmem:[%s1842_s14 + $0x48] sm:$0xff] %vm973_vm1, %v1193_v50  ;;  %1227 = vst.msk [vmem:[%s1842_s14 + $0x58] sm:$0xff] %vm973_vm1, %v1195_v57  ;;  %v1168_v16 = vadd.f32 %v1136_v0, %v1104_v4  ;;  %v1141_v23 = vld [vmem:[%s1837_s12 + $0xa8] sm:$0xff]  ;;  %v1144_v50 = vld [vmem:[%s1837_s12 + $0xc0] sm:$0xff] }
 0x166   : > { %v1103_v53 = vadd.f32 %v1944_v27, %v1064_v41  ;;  %v1166_v62 = vadd.f32 %v1134_v47, %v1102_v52  ;;  %v1070_v20 = vmul.f32 %v1939_v26, %v1031_v2  ;;  %v1169_v21 = vadd.f32 %v1137_v5, %v1105_v12  ;;  %v1037_v41 = vld [vmem:[#allocation2 + $0xd8] sm:$0xff]  ;;  %v1039_v52 = vld [vmem:[#allocation2 + $0xe8] sm:$0xff]  ;;  %v1148_v5 = vld [vmem:[%s1837_s12 + $0xe0] sm:$0xff] }
 0x167   : > { %v1101_v46 = vadd.f32 %v1944_v27, %v1062_v36  ;;  %v1164_v51 = vadd.f32 %v1132_v35, %v1100_v38  ;;  %v1108_v22 = vadd.f32 %v1944_v27, %v1069_v15  ;;  %v1071_v24 = vmul.f32 %v1939_v26, %v1032_v8  ;;  %v1035_v35 = vld [vmem:[#allocation2 + $0xc8] sm:$0xff]  ;;  %v1147_v0 = vld [vmem:[%s1837_s12 + $0xd8] sm:$0xff] }
 0x168   : > { %v1167_v63 = vadd.f32 %v1135_v48, %v1103_v53  ;;  %v1198_v10 = vmax.f32 %v1166_v62, 0.0  ;;  %v1072_v25 = vmul.f32 %v1939_v26, %v1033_v9  ;;  %v1200_v29 = vmax.f32 %v1168_v16, 0.0  ;;  %v1149_v9 = vld [vmem:[%s1837_s12 + $0xe8] sm:$0xff]  ;;  %v1150_v16 = vld [vmem:[%s1837_s12 + $0xf0] sm:$0xff] }
 0x169   : > { %v1165_v58 = vadd.f32 %v1133_v39, %v1101_v46  ;;  %v1196_v61 = vmax.f32 %v1164_v51, 0.0  ;;  %v1170_v30 = vadd.f32 %v1138_v13, %v1106_v17  ;;  %v1171_v31 = vadd.f32 %v1139_v14, %v1107_v18  ;;  %v1038_v46 = vld [vmem:[#allocation2 + $0xe0] sm:$0xff]  ;;  %v1151_v17 = vld [vmem:[%s1837_s12 + $0xf8] sm:$0xff] }
 0x16a   : > { %v1199_v11 = vmax.f32 %v1167_v63, 0.0  ;;  %1230 = vst.msk [vmem:[%s1842_s14 + $0x70] sm:$0xff] %vm973_vm1, %v1198_v10  ;;  %v1109_v32 = vadd.f32 %v1944_v27, %v1070_v20  ;;  %v1201_v36 = vmax.f32 %v1169_v21, 0.0  ;;  %v1172_v37 = vadd.f32 %v1140_v19, %v1108_v22  ;;  %1232 = vst.msk [vmem:[%s1842_s14 + $0x80] sm:$0xff] %vm973_vm1, %v1200_v29  ;;  %v1146_v63 = vld [vmem:[%s1837_s12 + $0xd0] sm:$0xff] }
 0x16b   : > { %v1197_v3 = vmax.f32 %v1165_v58, 0.0  ;;  %1228 = vst.msk [vmem:[%s1842_s14 + $0x60] sm:$0xff] %vm973_vm1, %v1196_v61  ;;  %v1110_v38 = vadd.f32 %v1944_v27, %v1071_v24  ;;  %v1111_v39 = vadd.f32 %v1944_v27, %v1072_v25  ;;  %v1202_v42 = vmax.f32 %v1170_v30, 0.0  ;;  %v1040_v58 = vld [vmem:[#allocation2 + $0xf0] sm:$0xff] }
 0x16c   : > { %1231 = vst.msk [vmem:[%s1842_s14 + $0x78] sm:$0xff] %vm973_vm1, %v1199_v11  ;;  %v1203_v43 = vmax.f32 %v1171_v31, 0.0  ;;  %v1173_v44 = vadd.f32 %v1141_v23, %v1109_v32  ;;  %v1073_v45 = vmul.f32 %v1939_v26, %v1034_v28  ;;  %1233 = vst.msk [vmem:[%s1842_s14 + $0x88] sm:$0xff] %vm973_vm1, %v1201_v36  ;;  %v1204_v47 = vmax.f32 %v1172_v37, 0.0 }
 0x16d   : > { %1229 = vst.msk [vmem:[%s1842_s14 + $0x68] sm:$0xff] %vm973_vm1, %v1197_v3  ;;  %v1174_v48 = vadd.f32 %v1142_v33, %v1110_v38  ;;  %v1175_v49 = vadd.f32 %v1143_v34, %v1111_v39  ;;  %v1074_v51 = vmul.f32 %v1939_v26, %v1035_v35  ;;  %1234 = vst.msk [vmem:[%s1842_s14 + $0x90] sm:$0xff] %vm973_vm1, %v1202_v42 }
 0x16e   : > { %1235 = vst.msk [vmem:[%s1842_s14 + $0x98] sm:$0xff] %vm973_vm1, %v1203_v43  ;;  %v1205_v53 = vmax.f32 %v1173_v44, 0.0  ;;  %v1112_v54 = vadd.f32 %v1944_v27, %v1073_v45  ;;  %v1075_v56 = vmul.f32 %v1939_v26, %v1036_v40  ;;  %v1076_v57 = vmul.f32 %v1939_v26, %v1037_v41  ;;  %1236 = vst.msk [vmem:[%s1842_s14 + $0xa0] sm:$0xff] %vm973_vm1, %v1204_v47 }
 0x16f   : > { %v1206_v60 = vmax.f32 %v1174_v48, 0.0  ;;  %v1207_v61 = vmax.f32 %v1175_v49, 0.0  ;;  %v1113_v62 = vadd.f32 %v1944_v27, %v1074_v51  ;;  %v1077_v1 = vmul.f32 %v1939_v26, %v1038_v46 }
 0x170   : > { %1237 = vst.msk [vmem:[%s1842_s14 + $0xa8] sm:$0xff] %vm973_vm1, %v1205_v53  ;;  %v1176_v2 = vadd.f32 %v1144_v50, %v1112_v54  ;;  %v1114_v3 = vadd.f32 %v1944_v27, %v1075_v56  ;;  %v1115_v4 = vadd.f32 %v1944_v27, %v1076_v57  ;;  %v1078_v6 = vmul.f32 %v1939_v26, %v1039_v52 }
 0x171   : > { %1238 = vst.msk [vmem:[%s1842_s14 + $0xb0] sm:$0xff] %vm973_vm1, %v1206_v60  ;;  %1239 = vst.msk [vmem:[%s1842_s14 + $0xb8] sm:$0xff] %vm973_vm1, %v1207_v61  ;;  %v1177_v7 = vadd.f32 %v1145_v55, %v1113_v62  ;;  %v1116_v8 = vadd.f32 %v1944_v27, %v1077_v1  ;;  %v1079_v10 = vmul.f32 %v1939_v26, %v1040_v58 }
 0x172   : > { %v1080_v11 = vmul.f32 %v1939_v26, %v1041_v59  ;;  %v1208_v12 = vmax.f32 %v1176_v2, 0.0  ;;  %v1178_v13 = vadd.f32 %v1146_v63, %v1114_v3  ;;  %v1179_v14 = vadd.f32 %v1147_v0, %v1115_v4 }
 0x173   : > { %v1117_v15 = vadd.f32 %v1944_v27, %v1078_v6  ;;  %v1209_v18 = vmax.f32 %v1177_v7, 0.0  ;;  %v1180_v19 = vadd.f32 %v1148_v5, %v1116_v8  ;;  %v1118_v20 = vadd.f32 %v1944_v27, %v1079_v10 }
 0x174   : > { %v1119_v21 = vadd.f32 %v1944_v27, %v1080_v11  ;;  %1240 = vst.msk [vmem:[%s1842_s14 + $0xc0] sm:$0xff] %vm973_vm1, %v1208_v12  ;;  %v1210_v26 = vmax.f32 %v1178_v13, 0.0  ;;  %v1211_v22 = vmax.f32 %v1179_v14, 0.0 }
 0x175   : > { %v1181_v23 = vadd.f32 %v1149_v9, %v1117_v15  ;;  %1241 = vst.msk [vmem:[%s1842_s14 + $0xc8] sm:$0xff] %vm973_vm1, %v1209_v18  ;;  %v1212_v24 = vmax.f32 %v1180_v19, 0.0  ;;  %v1182_v25 = vadd.f32 %v1150_v16, %v1118_v20 }
 0x176   : > { %v1183_v28 = vadd.f32 %v1151_v17, %v1119_v21  ;;  %1242 = vst.msk [vmem:[%s1842_s14 + $0xd0] sm:$0xff] %vm973_vm1, %v1210_v26  ;;  %1243 = vst.msk [vmem:[%s1842_s14 + $0xd8] sm:$0xff] %vm973_vm1, %v1211_v22 }
 0x177   : > { %v1213_v29 = vmax.f32 %v1181_v23, 0.0  ;;  %1244 = vst.msk [vmem:[%s1842_s14 + $0xe0] sm:$0xff] %vm973_vm1, %v1212_v24  ;;  %v1214_v27 = vmax.f32 %v1182_v25, 0.0 }
 0x178   : > { %v1215_v30 = vmax.f32 %v1183_v28, 0.0 }
 0x179   : > { %1245 = vst.msk [vmem:[%s1842_s14 + $0xe8] sm:$0xff] %vm973_vm1, %v1213_v29  ;;  %1246 = vst.msk [vmem:[%s1842_s14 + $0xf0] sm:$0xff] %vm973_vm1, %v1214_v27 }
 0x17a   : > { %1247 = vst.msk [vmem:[%s1842_s14 + $0xf8] sm:$0xff] %vm973_vm1, %v1215_v30 }
 0x17b PF: > { %s15_s24 = sadd.s32 1, %s1663_s24   ;;  %s2133_s18 = smov %s1643_s19 }
 0x17c   : > { %p12_p0 = scmp.ge.s32.totalorder %s15_s24, 12   ;;  %s2134_s19 = smov %s1747_s6 }
 0x17d   : > { %s2135_s20 = smov %s1655_s22  ;;  %s2136_s21 = smov %s1659_s23 }
 0x17e   : > { %s2137_s22 = smov %s2140_s25  ;;  %s2138_s23 = smov %s2144_s26 }
 0x17f   :  { %14 = sbr.rel (!%p12_p0) target bundleno = 4 (0x4), region = 136 }

// kernel: resnet_forward.27
= control target key start
LH: loop header
LB: loop body
LE: loop exit
PB: predicated region body
PF: predicated region fallthrough
CT: control target
= control target key end

     0   :  { %s1130_s15 = smov 0   ;;  %s1132_s16 = smov 0   ;;  %s1307_s0 = inlined_call_operand.vmem [shape: bf16[128,640], index: 0, kind: input, shape index: {}]   ;;  %s1308_s1 = inlined_call_operand.vmem [shape: bf16[640,128], index: 1, kind: input, shape index: {}]   ;;  %s1309_s2 = inlined_call_operand.vmem [shape: f32[1,128], index: 2, kind: input, shape index: {}]   ;;  %s1310_s3 = inlined_call_operand.vmem [shape: f32[1,128], index: 3, kind: input, shape index: {}]   ;;  %s1311_s4 = inlined_call_operand.vmem [shape: f32[128,128], index: 4, kind: output, shape index: {}]  }
   0x1   :  { %s1134_s17 = smov 0   ;;  %s1136_s18 = smov 0  }
   0x2   :  { %s1138_s19 = smov 0  }
   0x3 LB: > { %s26_s20 = sadd.s32 1, %s1098_s18  ;;  %p49_p1 = scmp.ne.s32.totalorder %s1090_s16, %s1086_s15  ;;  %s1102_s19 = sphi %s1138_s19, %s14_s19   ;;  %s1098_s18 = sphi %s1136_s18, %s1315_s18   ;;  %s1094_s17 = sphi %s1134_s17, %s1314_s17   ;;  %s1090_s16 = sphi %s1132_s16, %s1313_s16   ;;  %s1086_s15 = sphi %s1130_s15, %s1312_s15  }
   0x4   : > { %p27_p0 = scmp.ge.s32.totalorder %s26_s20, 5  ;;  %p50_p2 = scmp.eq.s32.totalorder %s1102_s19, 0 }
   0x5   : > { %s42_s22 = sadd.s32 1, %s1090_s16  ;;  %p912_p5 = scmp.ge.s32.totalorder %s1102_s19, 5 }
   0x6   : > { %s1317_s20 = smov (%p27_p0, %s26_s20), 0  ;;  %p51_p3 = por %p50_p2, %p49_p1 }
   0x7   : > { %s38_s21 = ssub.s32 %s1098_s18, %s1317_s20  ;;  %195 = sbr.rel (%p912_p5) target bundleno = 28 (0x1c), region = 24 }
   0x8   : > { %p40_p4 = scmp.eq.s32.totalorder %s38_s21, 0 }
   0xa   : > { %s1165_s23 = scalar_select %p40_p4, %s1090_s16, %s42_s22  }
   0xe   : > { %198 = sbr.rel (!%p51_p3) target bundleno = 28 (0x1c), region = 28  ;;  %s200_s24 = sand.u32 (%p51_p3), 1, %s1090_s16  }
   0xf   : > { %s914_s25 = sshll.u32 (%p51_p3), %s1098_s18, 2  ;;  %s913_s26 = sshll.u32 (%p51_p3), %s200_s24, 6 }
  0x10   : > { %s1173_s29 = scalar_lea.vmem (%p51_p3), %s1307_s0, %s914_s25  ;;  %s202_s30 = scalar_lea.vmem (%p51_p3), [#allocation3], %s913_s26 }
  0x11   : > { %v223_v0 = vld [vmem:[%s1173_s29] sm:$0xf] (%p51_p3)  ;;  %v225_v1 = vld [vmem:[%s1173_s29 + $0x14] sm:$0xf] (%p51_p3)  ;;  %v227_v2 = vld [vmem:[%s1173_s29 + $0x28] sm:$0xf] (%p51_p3) }
  0x12   : > { %224 = vst [vmem:[%s202_s30] sm:$0xf] (%p51_p3), %v223_v0  ;;  %226 = vst [vmem:[%s202_s30 + $0x4] sm:$0xf] (%p51_p3), %v225_v1  ;;  %v229_v3 = vld [vmem:[%s1173_s29 + $0x3c] sm:$0xf] (%p51_p3) }
  0x13   : > { %v231_v4 = vld [vmem:[%s1173_s29 + $0x50] sm:$0xf] (%p51_p3)  ;;  %228 = vst [vmem:[%s202_s30 + $0x8] sm:$0xf] (%p51_p3), %v227_v2  ;;  %230 = vst [vmem:[%s202_s30 + $0xc] sm:$0xf] (%p51_p3), %v229_v3 }
  0x14   : > { %232 = vst [vmem:[%s202_s30 + $0x10] sm:$0xf] (%p51_p3), %v231_v4  ;;  %v233_v5 = vld [vmem:[%s1173_s29 + $0x64] sm:$0xf] (%p51_p3)  ;;  %v235_v6 = vld [vmem:[%s1173_s29 + $0x78] sm:$0xf] (%p51_p3) }
  0x15   : > { %v237_v7 = vld [vmem:[%s1173_s29 + $0x8c] sm:$0xf]  ;;  %234 = vst [vmem:[%s202_s30 + $0x14] sm:$0xf] %v233_v5  ;;  %236 = vst [vmem:[%s202_s30 + $0x18] sm:$0xf] %v235_v6 }
  0x16   : > { %238 = vst [vmem:[%s202_s30 + $0x1c] sm:$0xf] %v237_v7  ;;  %v239_v8 = vld [vmem:[%s1173_s29 + $0xa0] sm:$0xf]  ;;  %v241_v9 = vld [vmem:[%s1173_s29 + $0xb4] sm:$0xf] }
  0x17   : > { %v243_v10 = vld [vmem:[%s1173_s29 + $0xc8] sm:$0xf]  ;;  %240 = vst [vmem:[%s202_s30 + $0x20] sm:$0xf] %v239_v8  ;;  %242 = vst [vmem:[%s202_s30 + $0x24] sm:$0xf] %v241_v9 }
  0x18   : > { %244 = vst [vmem:[%s202_s30 + $0x28] sm:$0xf] %v243_v10  ;;  %v245_v11 = vld [vmem:[%s1173_s29 + $0xdc] sm:$0xf]  ;;  %v247_v12 = vld [vmem:[%s1173_s29 + $0xf0] sm:$0xf] }
  0x19   : > { %v249_v13 = vld [vmem:[%s1173_s29 + $0x104] sm:$0xf]  ;;  %246 = vst [vmem:[%s202_s30 + $0x2c] sm:$0xf] %v245_v11  ;;  %248 = vst [vmem:[%s202_s30 + $0x30] sm:$0xf] %v247_v12 }
  0x1a   : > { %250 = vst [vmem:[%s202_s30 + $0x34] sm:$0xf] %v249_v13  ;;  %v251_v14 = vld [vmem:[%s1173_s29 + $0x118] sm:$0xf]  ;;  %v253_v15 = vld [vmem:[%s1173_s29 + $0x12c] sm:$0xf] }
  0x1b   : > { %252 = vst [vmem:[%s202_s30 + $0x38] sm:$0xf] %v251_v14  ;;  %254 = vst [vmem:[%s202_s30 + $0x3c] sm:$0xf] %v253_v15 }
  0x1c PF: > { %p915_p6 = scmp.ge.s32.totalorder %s1102_s19, 1  ;;  %p320_p7 = scmp.lt.s32.totalorder %s1102_s19, 6 }
  0x1e   : > { %p321_p8 = pnand %p915_p6, %p320_p7 }
  0x1f   : > { %s327_s5 = sand.u32 (!%p321_p8), 1, %s1086_s15   ;;  %s917_s6 = sshll.u32 (!%p321_p8), %s1094_s17, 4 }
  0x20   : > { %324 = sbr.rel (%p321_p8) target bundleno = 323 (0x143), region = 73  ;;  %s916_s7 = sshll.u32 (!%p321_p8), %s327_s5, 6 }
  0x21   : > { %p371_p9 = scmp.lt.s32.totalorder (!%p321_p8), %s917_s6, 79  ;;  %s1200_s12 = scalar_lea.vmem (!%p321_p8), [#allocation3], %s916_s7 }
  0x22   : > { %p919_p10 = scmp.ne.s32.totalorder (!%p321_p8), %s1094_s17, 0 }
  0x27   : > { %s1319_s6 = smov (!%p371_p9, %s917_s6), 79  ;;  %398 = sbr.rel (%p919_p10) target bundleno = 49 (0x31), region = 81 }
  0x28   : > { %s918_s8 = sshll.u32 %s1319_s6, 2  ;;  %v1104_v16 = vmov (!%p919_p10), 0.0  }
  0x29   : > { %s1198_s11 = scalar_lea.vmem %s1308_s1, %s918_s8  ;;  %399 = vst [vmem:[#allocation2] sm:$0xff] (!%p919_p10), %v1104_v16  ;;  %400 = vst [vmem:[#allocation2 + $0x8] sm:$0xff] (!%p919_p10), %v1104_v16 }
  0x2a   : > { %401 = vst [vmem:[#allocation2 + $0x10] sm:$0xff] (!%p919_p10), %v1104_v16  ;;  %402 = vst [vmem:[#allocation2 + $0x18] sm:$0xff] (!%p919_p10), %v1104_v16 }
  0x2b   : > { %403 = vst [vmem:[#allocation2 + $0x20] sm:$0xff] (!%p919_p10), %v1104_v16  ;;  %404 = vst [vmem:[#allocation2 + $0x28] sm:$0xff] (!%p919_p10), %v1104_v16 }
  0x2c   : > { %405 = vst [vmem:[#allocation2 + $0x30] sm:$0xff] (!%p919_p10), %v1104_v16  ;;  %406 = vst [vmem:[#allocation2 + $0x38] sm:$0xff] (!%p919_p10), %v1104_v16 }
  0x2d   : > { %407 = vst [vmem:[#allocation2 + $0x40] sm:$0xff] (!%p919_p10), %v1104_v16  ;;  %408 = vst [vmem:[#allocation2 + $0x48] sm:$0xff] (!%p919_p10), %v1104_v16 }
  0x2e   : > { %409 = vst [vmem:[#allocation2 + $0x50] sm:$0xff] %v1104_v16  ;;  %410 = vst [vmem:[#allocation2 + $0x58] sm:$0xff] %v1104_v16 }
  0x2f   : > { %411 = vst [vmem:[#allocation2 + $0x60] sm:$0xff] %v1104_v16  ;;  %412 = vst [vmem:[#allocation2 + $0x68] sm:$0xff] %v1104_v16 }
  0x30   : > { %413 = vst [vmem:[#allocation2 + $0x70] sm:$0xff] %v1104_v16  ;;  %414 = vst [vmem:[#allocation2 + $0x78] sm:$0xff] %v1104_v16 }
  0x31 PF: > { %v1048_v17 = vld [vmem:[%s1198_s11] sm:$0xff]   ;;  %v1049_v18 = vld [vmem:[%s1198_s11 + $0x8] sm:$0xff]   ;;  %v1050_v19 = vld [vmem:[%s1198_s11 + $0x10] sm:$0xff]   ;;  %p936_p11 = scmp.ne.s32.totalorder %s1094_s17, 4 }
  0x32   : > { %959 = vmatprep.subr.bf16.mxu0 %v1048_v17  ;;  %991 = vmatprep.subr.bf16.mxu1 %v1048_v17  ;;  %v1051_v20 = vld [vmem:[%s1198_s11 + $0x18] sm:$0xff]   ;;  %v1056_v21 = vld [vmem:[%s1200_s12] sm:$0xff]   ;;  %v1053_v24 = vld [vmem:[%s1198_s11 + $0x28] sm:$0xff]  }
  0x33   : > { %960 = vmatpush3.bf16.msra.mxu0 %v1048_v17  ;;  %999 = vmatpush3.bf16.msra.mxu1 %v1048_v17  ;;  %v1057_v22 = vld [vmem:[%s1200_s12 + $0x20] sm:$0xff]   ;;  %v1054_v25 = vld [vmem:[%s1198_s11 + $0x30] sm:$0xff]   ;;  %v1055_v26 = vld [vmem:[%s1198_s11 + $0x38] sm:$0xff]  }
  0x34   : > { %961 = vmatprep.subr.bf16.mxu0 %v1049_v18  ;;  %992 = vmatprep.subr.bf16.mxu1 %v1049_v18  ;;  %v1052_v23 = vld [vmem:[%s1198_s11 + $0x20] sm:$0xff]   ;;  %v1058_v27 = vld [vmem:[%s1200_s12 + $0x8] sm:$0xff]   ;;  %v1060_v29 = vld [vmem:[%s1200_s12 + $0x10] sm:$0xff]  }
  0x35   : > { %975 = vmatprep.mubr.bf16.mxu0 %v1056_v21  ;;  %983 = vmatprep.mubr.bf16.mxu1 %v1057_v22  ;;  %v1059_v28 = vld [vmem:[%s1200_s12 + $0x28] sm:$0xff]   ;;  %v1061_v30 = vld [vmem:[%s1200_s12 + $0x30] sm:$0xff]   ;;  %v1062_v31 = vld [vmem:[%s1200_s12 + $0x18] sm:$0xff]  }
  0x36   : > { %v1063_v32 = vld [vmem:[%s1200_s12 + $0x38] sm:$0xff]   ;;  %v417_v33 = vld [vmem:[#allocation2 + $0x10] sm:$0xff]  ;;  %v415_v35 = vld [vmem:[#allocation2] sm:$0xff] }
  0x37   : > { %962 = vmatpush3.bf16.msra.mxu0 %v1049_v18  ;;  %1000 = vmatpush3.bf16.msra.mxu1 %v1049_v18  ;;  %v425_v34 = vld [vmem:[#allocation2 + $0x50] sm:$0xff]  ;;  %v423_v36 = vld [vmem:[#allocation2 + $0x40] sm:$0xff]  ;;  %v418_v39 = vld [vmem:[#allocation2 + $0x18] sm:$0xff] }
  0x38   : > { %963 = vmatprep.subr.bf16.mxu0 %v1050_v19  ;;  %993 = vmatprep.subr.bf16.mxu1 %v1050_v19  ;;  %v426_v40 = vld [vmem:[#allocation2 + $0x58] sm:$0xff]  ;;  %v416_v45 = vld [vmem:[#allocation2 + $0x8] sm:$0xff]  ;;  %v421_v57 = vld [vmem:[#allocation2 + $0x30] sm:$0xff] }
  0x39   : > { %v424_v46 = vld [vmem:[#allocation2 + $0x48] sm:$0xff]  ;;  %v429_v58 = vld [vmem:[#allocation2 + $0x70] sm:$0xff]  ;;  %v419_v59 = vld [vmem:[#allocation2 + $0x20] sm:$0xff] }
  0x3a   : > { %v427_v60 = vld [vmem:[#allocation2 + $0x60] sm:$0xff]  ;;  %v422_v63 = vld [vmem:[#allocation2 + $0x38] sm:$0xff]  ;;  %v420_v5 = vld [vmem:[#allocation2 + $0x28] sm:$0xff] }
  0x3b   : > { %964 = vmatpush3.bf16.msra.mxu0 %v1050_v19  ;;  %1001 = vmatpush3.bf16.msra.mxu1 %v1050_v19  ;;  %v430_v0 = vld [vmem:[#allocation2 + $0x78] sm:$0xff]  ;;  %v428_v6 = vld [vmem:[#allocation2 + $0x68] sm:$0xff]  ;;  %v937_v18 = vld [vmem:[%s1309_s2] ss:$0 sm:$0xff] (!%p936_p11) }
  0x3c   : > { %965 = vmatprep.subr.bf16.mxu0 %v1051_v20  ;;  %994 = vmatprep.subr.bf16.mxu1 %v1051_v20  ;;  %v1226_v19 = vld [vmem:[%s1310_s3] ss:$0 sm:$0xff] (!%p936_p11) }
  0x3f   : > { %966 = vmatpush3.bf16.msra.mxu0 %v1051_v20  ;;  %1002 = vmatpush3.bf16.msra.mxu1 %v1051_v20 }
  0x40   : > { %967 = vmatprep.subr.bf16.mxu0 %v1052_v23  ;;  %995 = vmatprep.subr.bf16.mxu1 %v1052_v23 }
  0x43   : > { %968 = vmatpush3.bf16.msra.mxu0 %v1052_v23  ;;  %1003 = vmatpush3.bf16.msra.mxu1 %v1052_v23 }
  0x44   : > { %969 = vmatprep.subr.bf16.mxu0 %v1053_v24  ;;  %996 = vmatprep.subr.bf16.mxu1 %v1053_v24 }
  0x47   : > { %970 = vmatpush3.bf16.msra.mxu0 %v1053_v24  ;;  %1004 = vmatpush3.bf16.msra.mxu1 %v1053_v24 }
  0x48   : > { %971 = vmatprep.subr.bf16.mxu0 %v1054_v25  ;;  %997 = vmatprep.subr.bf16.mxu1 %v1054_v25 }
  0x4b   : > { %972 = vmatpush3.bf16.msra.mxu0 %v1054_v25  ;;  %1005 = vmatpush3.bf16.msra.mxu1 %v1054_v25 }
  0x4c   : > { %973 = vmatprep.subr.bf16.mxu0 %v1055_v26  ;;  %998 = vmatprep.subr.bf16.mxu1 %v1055_v26 }
  0x4f   : > { %974 = vmatpush3.bf16.msra.mxu0 %v1055_v26  ;;  %1006 = vmatpush3.bf16.msra.mxu1 %v1055_v26 }
  0x52   : > { %976 = vmatmul.mubr.bf16.vlgmr.msra.gmra.mrb[0].mxu0 %v1058_v27  ;;  %984 = vmatmul.mubr.bf16.vlgmr.msra.gmra.mrb[0].mxu1 %v1059_v28 }
  0x53   : > { %979 = vmatprep.mubr.bf16.mxu0 %v1060_v29  ;;  %987 = vmatprep.mubr.bf16.mxu1 %v1061_v30 }
  0x5a   : > { %980 = vmatmul.mubr.bf16.gmra.mrb[4].mxu0 %v1062_v31  ;;  %988 = vmatmul.mubr.bf16.gmra.mrb[4].mxu1 %v1063_v32 }
 0x125   : > { %v977_v37 = vpop.f32.mrb[0].mxu0  ;;  %v985_v38 = vpop.f32.mrb[0].mxu1 }
 0x126   : > { %v658_v41 = vadd.f32 %v977_v37, %v417_v33  ;;  %v666_v42 = vadd.f32 %v985_v38, %v425_v34  ;;  %v593_v43 = vpop.f32.mrb[1].mxu0  ;;  %v625_v44 = vpop.f32.mrb[1].mxu1 }
 0x127   : > { %v656_v47 = vadd.f32 %v593_v43, %v415_v35  ;;  %v664_v48 = vadd.f32 %v625_v44, %v423_v36  ;;  %v978_v49 = vpop.f32.mrb[2].mxu0  ;;  %v986_v50 = vpop.f32.mrb[2].mxu1 }
 0x128   : > { %674 = vst [vmem:[#allocation2 + $0x10] sm:$0xff] %v658_v41  ;;  %682 = vst [vmem:[#allocation2 + $0x50] sm:$0xff] %v666_v42  ;;  %v659_v51 = vadd.f32 %v978_v49, %v418_v39  ;;  %v667_v52 = vadd.f32 %v986_v50, %v426_v40  ;;  %v596_v53 = vpop.f32.mrb[3].mxu0  ;;  %v628_v54 = vpop.f32.mrb[3].mxu1 }
 0x129   : > { %672 = vst [vmem:[#allocation2] sm:$0xff] %v656_v47  ;;  %680 = vst [vmem:[#allocation2 + $0x40] sm:$0xff] %v664_v48  ;;  %v657_v55 = vadd.f32 %v596_v53, %v416_v45  ;;  %v665_v56 = vadd.f32 %v628_v54, %v424_v46 }
 0x12a   : > { %675 = vst [vmem:[#allocation2 + $0x18] sm:$0xff] %v659_v51  ;;  %683 = vst [vmem:[#allocation2 + $0x58] sm:$0xff] %v667_v52 }
 0x12b   : > { %673 = vst [vmem:[#allocation2 + $0x8] sm:$0xff] %v657_v55  ;;  %681 = vst [vmem:[#allocation2 + $0x48] sm:$0xff] %v665_v56 }
 0x12d   : > { %v981_v61 = vpop.f32.mrb[4].mxu0  ;;  %v989_v62 = vpop.f32.mrb[4].mxu1  ;;  %691 = sbr.rel (%p936_p11) target bundleno = 323 (0x143), region = 85 }
 0x12e   : > { %v662_v1 = vadd.f32 %v981_v61, %v421_v57  ;;  %v670_v2 = vadd.f32 %v989_v62, %v429_v58  ;;  %v609_v3 = vpop.f32.mrb[5].mxu0  ;;  %v641_v4 = vpop.f32.mrb[5].mxu1 }
 0x12f   : > { %v660_v7 = vadd.f32 %v609_v3, %v419_v59  ;;  %v668_v8 = vadd.f32 %v641_v4, %v427_v60  ;;  %v982_v9 = vpop.f32.mrb[6].mxu0  ;;  %v990_v10 = vpop.f32.mrb[6].mxu1  ;;  %v694_v22 = vld [vmem:[#allocation2 + $0x10] sm:$0xff] (!%p936_p11) }
 0x130   : > { %678 = vst [vmem:[#allocation2 + $0x30] sm:$0xff] %v662_v1  ;;  %686 = vst [vmem:[#allocation2 + $0x70] sm:$0xff] %v670_v2  ;;  %v663_v11 = vadd.f32 %v982_v9, %v422_v63  ;;  %v671_v12 = vadd.f32 %v990_v10, %v430_v0  ;;  %v612_v13 = vpop.f32.mrb[7].mxu0  ;;  %v644_v14 = vpop.f32.mrb[7].mxu1  ;;  %v692_v17 = vld [vmem:[#allocation2] sm:$0xff] (!%p936_p11)  ;;  %v717_v25 = vmul.f32 (!%p936_p11), %v937_v18, %v694_v22  ;;  %v702_v45 = vld [vmem:[#allocation2 + $0x50] sm:$0xff] (!%p936_p11) }
 0x131   : > { %676 = vst [vmem:[#allocation2 + $0x20] sm:$0xff] %v660_v7  ;;  %684 = vst [vmem:[#allocation2 + $0x60] sm:$0xff] %v668_v8  ;;  %v661_v15 = vadd.f32 %v612_v13, %v420_v5  ;;  %v669_v16 = vadd.f32 %v644_v14, %v428_v6  ;;  %v715_v20 = vmul.f32 (!%p936_p11), %v937_v18, %v692_v17  ;;  %v695_v23 = vld [vmem:[#allocation2 + $0x18] sm:$0xff] (!%p936_p11)  ;;  %v700_v39 = vld [vmem:[#allocation2 + $0x40] sm:$0xff] (!%p936_p11) }
 0x132   : > { %679 = vst [vmem:[#allocation2 + $0x38] sm:$0xff] %v663_v11  ;;  %687 = vst [vmem:[#allocation2 + $0x78] sm:$0xff] %v671_v12  ;;  %v693_v21 = vld [vmem:[#allocation2 + $0x8] sm:$0xff] (!%p936_p11)  ;;  %v718_v26 = vmul.f32 (!%p936_p11), %v937_v18, %v695_v23  ;;  %v740_v36 = vadd.f32 (!%p936_p11), %v1226_v19, %v717_v25  ;;  %v703_v46 = vld [vmem:[#allocation2 + $0x58] sm:$0xff] (!%p936_p11)  ;;  %v723_v57 = vmul.f32 (!%p936_p11), %v937_v18, %v700_v39 }
 0x133   : > { %677 = vst [vmem:[#allocation2 + $0x28] sm:$0xff] %v661_v15  ;;  %685 = vst [vmem:[#allocation2 + $0x68] sm:$0xff] %v669_v16  ;;  %v716_v24 = vmul.f32 (!%p936_p11), %v937_v18, %v693_v21  ;;  %v738_v30 = vadd.f32 (!%p936_p11), %v1226_v19, %v715_v20  ;;  %v701_v44 = vld [vmem:[#allocation2 + $0x48] sm:$0xff] (!%p936_p11)  ;;  %v725_v61 = vmul.f32 (!%p936_p11), %v937_v18, %v702_v45 }
 0x134   : > { %v741_v37 = vadd.f32 %v1226_v19, %v718_v26  ;;  %v756_v48 = vmax.f32 %v740_v36, 0.0  ;;  %v724_v60 = vmul.f32 %v937_v18, %v701_v44  ;;  %v726_v62 = vmul.f32 %v937_v18, %v703_v46 }
 0x135   : > { %v739_v35 = vadd.f32 %v1226_v19, %v716_v24  ;;  %v754_v40 = vmax.f32 %v738_v30, 0.0  ;;  %v746_v63 = vadd.f32 %v1226_v19, %v723_v57  ;;  %v748_v4 = vadd.f32 %v1226_v19, %v725_v61 }
 0x136   : > { %v757_v49 = vmax.f32 %v741_v37, 0.0  ;;  %772 = vst [vmem:[%s1311_s4 + $0x10] sm:$0xff] %v756_v48  ;;  %v747_v3 = vadd.f32 %v1226_v19, %v724_v60  ;;  %v749_v5 = vadd.f32 %v1226_v19, %v726_v62 }
 0x137   : > { %v698_v29 = vld [vmem:[#allocation2 + $0x30] sm:$0xff]  ;;  %v755_v47 = vmax.f32 %v739_v35, 0.0  ;;  %770 = vst [vmem:[%s1311_s4] sm:$0xff] %v754_v40  ;;  %v762_v7 = vmax.f32 %v746_v63, 0.0  ;;  %v764_v12 = vmax.f32 %v748_v4, 0.0 }
 0x138   : > { %v696_v27 = vld [vmem:[#allocation2 + $0x20] sm:$0xff]  ;;  %v721_v33 = vmul.f32 %v937_v18, %v698_v29  ;;  %v706_v53 = vld [vmem:[#allocation2 + $0x70] sm:$0xff]  ;;  %773 = vst [vmem:[%s1311_s4 + $0x18] sm:$0xff] %v757_v49  ;;  %v763_v11 = vmax.f32 %v747_v3, 0.0  ;;  %v765_v13 = vmax.f32 %v749_v5, 0.0 }
 0x139   : > { %v719_v31 = vmul.f32 %v937_v18, %v696_v27  ;;  %v699_v34 = vld [vmem:[#allocation2 + $0x38] sm:$0xff]  ;;  %v704_v51 = vld [vmem:[#allocation2 + $0x60] sm:$0xff]  ;;  %771 = vst [vmem:[%s1311_s4 + $0x8] sm:$0xff] %v755_v47  ;;  %v729_v2 = vmul.f32 %v937_v18, %v706_v53  ;;  %778 = vst [vmem:[%s1311_s4 + $0x40] sm:$0xff] %v762_v7 }
 0x13a   : > { %v697_v28 = vld [vmem:[#allocation2 + $0x28] sm:$0xff]  ;;  %v722_v38 = vmul.f32 %v937_v18, %v699_v34  ;;  %v744_v43 = vadd.f32 %v1226_v19, %v721_v33  ;;  %v707_v58 = vld [vmem:[#allocation2 + $0x78] sm:$0xff]  ;;  %v727_v0 = vmul.f32 %v937_v18, %v704_v51  ;;  %779 = vst [vmem:[%s1311_s4 + $0x48] sm:$0xff] %v763_v11  ;;  %780 = vst [vmem:[%s1311_s4 + $0x50] sm:$0xff] %v764_v12 }
 0x13b   : > { %v720_v32 = vmul.f32 %v937_v18, %v697_v28  ;;  %v742_v41 = vadd.f32 %v1226_v19, %v719_v31  ;;  %v705_v52 = vld [vmem:[#allocation2 + $0x68] sm:$0xff]  ;;  %v730_v6 = vmul.f32 %v937_v18, %v707_v58  ;;  %v752_v10 = vadd.f32 %v1226_v19, %v729_v2  ;;  %781 = vst [vmem:[%s1311_s4 + $0x58] sm:$0xff] %v765_v13 }
 0x13c   : > { %v745_v50 = vadd.f32 %v1226_v19, %v722_v38  ;;  %v760_v56 = vmax.f32 %v744_v43, 0.0  ;;  %v728_v1 = vmul.f32 %v937_v18, %v705_v52  ;;  %v750_v8 = vadd.f32 %v1226_v19, %v727_v0 }
 0x13d   : > { %v743_v42 = vadd.f32 %v1226_v19, %v720_v32  ;;  %v758_v54 = vmax.f32 %v742_v41, 0.0  ;;  %v753_v14 = vadd.f32 %v1226_v19, %v730_v6  ;;  %v768_v17 = vmax.f32 %v752_v10, 0.0 }
 0x13e   : > { %v761_v59 = vmax.f32 %v745_v50, 0.0  ;;  %776 = vst [vmem:[%s1311_s4 + $0x30] sm:$0xff] %v760_v56  ;;  %v751_v9 = vadd.f32 %v1226_v19, %v728_v1  ;;  %v766_v15 = vmax.f32 %v750_v8, 0.0 }
 0x13f   : > { %v759_v55 = vmax.f32 %v743_v42, 0.0  ;;  %774 = vst [vmem:[%s1311_s4 + $0x20] sm:$0xff] %v758_v54  ;;  %v769_v18 = vmax.f32 %v753_v14, 0.0  ;;  %784 = vst [vmem:[%s1311_s4 + $0x70] sm:$0xff] %v768_v17 }
 0x140   : > { %777 = vst [vmem:[%s1311_s4 + $0x38] sm:$0xff] %v761_v59  ;;  %v767_v16 = vmax.f32 %v751_v9, 0.0  ;;  %782 = vst [vmem:[%s1311_s4 + $0x60] sm:$0xff] %v766_v15 }
 0x141   : > { %775 = vst [vmem:[%s1311_s4 + $0x28] sm:$0xff] %v759_v55  ;;  %785 = vst [vmem:[%s1311_s4 + $0x78] sm:$0xff] %v769_v18 }
 0x142   : > { %783 = vst [vmem:[%s1311_s4 + $0x68] sm:$0xff] %v767_v16 }
 0x143 PF: > { %s14_s19 = sadd.s32 1, %s1102_s19   ;;  %s1312_s15 = smov %s1090_s16 }
 0x144   : > { %p11_p12 = scmp.ge.s32.totalorder %s14_s19, 7   ;;  %s1313_s16 = smov %s1165_s23 }
 0x145   : > { %s1314_s17 = smov %s1098_s18  ;;  %s1315_s18 = smov %s1317_s20 }
 0x146   :  { %13 = sbr.rel (!%p11_p12) target bundleno = 3 (0x3), region = 129 }

// kernel: resnet_forward.28
= control target key start
LH: loop header
LB: loop body
LE: loop exit
PB: predicated region body
PF: predicated region fallthrough
CT: control target
= control target key end

     0   :  { %s1246_s18 = smov 0   ;;  %s1248_s19 = smov 0   ;;  %s1489_s0 = inlined_call_operand.vmem [shape: bf16[128,1152], index: 0, kind: input, shape index: {}]   ;;  %s1490_s1 = inlined_call_operand.vmem [shape: bf16[1152,128], index: 1, kind: input, shape index: {}]   ;;  %s1491_s2 = inlined_call_operand.vmem [shape: f32[1,128], index: 2, kind: input, shape index: {}]   ;;  %s1492_s3 = inlined_call_operand.vmem [shape: f32[1,128], index: 3, kind: input, shape index: {}]   ;;  %s1493_s4 = inlined_call_operand.vmem [shape: f32[128,128], index: 4, kind: input, shape index: {}]   ;;  %s1494_s5 = inlined_call_operand.vmem [shape: f32[128,128], index: 5, kind: output, shape index: {}]  }
   0x1   :  { %s1250_s20 = smov 0   ;;  %s1252_s21 = smov 0  }
   0x2   :  { %s1254_s22 = smov 0  }
   0x3 LB: > { %s27_s23 = sadd.s32 1, %s1209_s21  ;;  %p50_p1 = scmp.ne.s32.totalorder %s1201_s19, %s1197_s18  ;;  %s1213_s22 = sphi %s1254_s22, %s15_s22   ;;  %s1209_s21 = sphi %s1252_s21, %s1498_s21   ;;  %s1205_s20 = sphi %s1250_s20, %s1497_s20   ;;  %s1201_s19 = sphi %s1248_s19, %s1496_s19   ;;  %s1197_s18 = sphi %s1246_s18, %s1495_s18  }
   0x4   : > { %p28_p0 = scmp.ge.s32.totalorder %s27_s23, 9  ;;  %p51_p2 = scmp.eq.s32.totalorder %s1213_s22, 0 }
   0x5   : > { %s43_s25 = sadd.s32 1, %s1201_s19  ;;  %p1023_p5 = scmp.ge.s32.totalorder %s1213_s22, 9 }
   0x6   : > { %s1500_s23 = smov (%p28_p0, %s27_s23), 0  ;;  %p52_p3 = por %p51_p2, %p50_p1 }
   0x7   : > { %s39_s24 = ssub.s32 %s1209_s21, %s1500_s23  ;;  %236 = sbr.rel (%p1023_p5) target bundleno = 28 (0x1c), region = 28 }
   0x8   : > { %p41_p4 = scmp.eq.s32.totalorder %s39_s24, 0 }
   0xa   : > { %s1281_s26 = scalar_select %p41_p4, %s1201_s19, %s43_s25  }
   0xe   : > { %239 = sbr.rel (!%p52_p3) target bundleno = 28 (0x1c), region = 32  ;;  %s241_s27 = sand.u32 (%p52_p3), 1, %s1201_s19  }
   0xf   : > { %s1025_s28 = sshll.u32 (%p52_p3), %s1209_s21, 2  ;;  %s1024_s29 = sshll.u32 (%p52_p3), %s241_s27, 6 }
  0x10   : > { %s1289_s7 = scalar_lea.vmem (%p52_p3), %s1489_s0, %s1025_s28  ;;  %s243_s8 = scalar_lea.vmem (%p52_p3), [#allocation3], %s1024_s29 }
  0x11   : > { %v264_v0 = vld [vmem:[%s1289_s7] sm:$0xf] (%p52_p3)  ;;  %v266_v1 = vld [vmem:[%s1289_s7 + $0x24] sm:$0xf] (%p52_p3)  ;;  %v268_v2 = vld [vmem:[%s1289_s7 + $0x48] sm:$0xf] (%p52_p3) }
  0x12   : > { %265 = vst [vmem:[%s243_s8] sm:$0xf] (%p52_p3), %v264_v0  ;;  %267 = vst [vmem:[%s243_s8 + $0x4] sm:$0xf] (%p52_p3), %v266_v1  ;;  %v270_v3 = vld [vmem:[%s1289_s7 + $0x6c] sm:$0xf] (%p52_p3) }
  0x13   : > { %v272_v4 = vld [vmem:[%s1289_s7 + $0x90] sm:$0xf] (%p52_p3)  ;;  %269 = vst [vmem:[%s243_s8 + $0x8] sm:$0xf] (%p52_p3), %v268_v2  ;;  %271 = vst [vmem:[%s243_s8 + $0xc] sm:$0xf] (%p52_p3), %v270_v3 }
  0x14   : > { %273 = vst [vmem:[%s243_s8 + $0x10] sm:$0xf] (%p52_p3), %v272_v4  ;;  %v274_v5 = vld [vmem:[%s1289_s7 + $0xb4] sm:$0xf] (%p52_p3)  ;;  %v276_v6 = vld [vmem:[%s1289_s7 + $0xd8] sm:$0xf] (%p52_p3) }
  0x15   : > { %v278_v7 = vld [vmem:[%s1289_s7 + $0xfc] sm:$0xf]  ;;  %275 = vst [vmem:[%s243_s8 + $0x14] sm:$0xf] %v274_v5  ;;  %277 = vst [vmem:[%s243_s8 + $0x18] sm:$0xf] %v276_v6 }
  0x16   : > { %279 = vst [vmem:[%s243_s8 + $0x1c] sm:$0xf] %v278_v7  ;;  %v280_v8 = vld [vmem:[%s1289_s7 + $0x120] sm:$0xf]  ;;  %v282_v9 = vld [vmem:[%s1289_s7 + $0x144] sm:$0xf] }
  0x17   : > { %v284_v10 = vld [vmem:[%s1289_s7 + $0x168] sm:$0xf]  ;;  %281 = vst [vmem:[%s243_s8 + $0x20] sm:$0xf] %v280_v8  ;;  %283 = vst [vmem:[%s243_s8 + $0x24] sm:$0xf] %v282_v9 }
  0x18   : > { %285 = vst [vmem:[%s243_s8 + $0x28] sm:$0xf] %v284_v10  ;;  %v286_v11 = vld [vmem:[%s1289_s7 + $0x18c] sm:$0xf]  ;;  %v288_v12 = vld [vmem:[%s1289_s7 + $0x1b0] sm:$0xf] }
  0x19   : > { %v290_v13 = vld [vmem:[%s1289_s7 + $0x1d4] sm:$0xf]  ;;  %287 = vst [vmem:[%s243_s8 + $0x2c] sm:$0xf] %v286_v11  ;;  %289 = vst [vmem:[%s243_s8 + $0x30] sm:$0xf] %v288_v12 }
  0x1a   : > { %291 = vst [vmem:[%s243_s8 + $0x34] sm:$0xf] %v290_v13  ;;  %v292_v14 = vld [vmem:[%s1289_s7 + $0x1f8] sm:$0xf]  ;;  %v294_v15 = vld [vmem:[%s1289_s7 + $0x21c] sm:$0xf] }
  0x1b   : > { %293 = vst [vmem:[%s243_s8 + $0x38] sm:$0xf] %v292_v14  ;;  %295 = vst [vmem:[%s243_s8 + $0x3c] sm:$0xf] %v294_v15 }
  0x1c PF: > { %p1026_p6 = scmp.ge.s32.totalorder %s1213_s22, 1  ;;  %p361_p7 = scmp.lt.s32.totalorder %s1213_s22, 10 }
  0x1e   : > { %p362_p8 = pnand %p1026_p6, %p361_p7 }
  0x1f   : > { %s368_s9 = sand.u32 (!%p362_p8), 1, %s1197_s18   ;;  %s1028_s10 = sshll.u32 (!%p362_p8), %s1205_s20, 4 }
  0x20   : > { %365 = sbr.rel (%p362_p8) target bundleno = 326 (0x146), region = 77  ;;  %s1027_s11 = sshll.u32 (!%p362_p8), %s368_s9, 6 }
  0x21   : > { %p422_p9 = scmp.lt.s32.totalorder (!%p362_p8), %s1028_s10, 143  ;;  %s1316_s16 = scalar_lea.vmem (!%p362_p8), [#allocation3], %s1027_s11 }
  0x22   : > { %p1030_p10 = scmp.ne.s32.totalorder (!%p362_p8), %s1205_s20, 0 }
  0x27   : > { %s1502_s10 = smov (!%p422_p9, %s1028_s10), 143  ;;  %458 = sbr.rel (%p1030_p10) target bundleno = 49 (0x31), region = 85 }
  0x28   : > { %s1029_s12 = sshll.u32 %s1502_s10, 2  ;;  %v1215_v16 = vmov (!%p1030_p10), 0.0  }
  0x29   : > { %s1314_s15 = scalar_lea.vmem %s1490_s1, %s1029_s12  ;;  %459 = vst [vmem:[#allocation2] sm:$0xff] (!%p1030_p10), %v1215_v16  ;;  %460 = vst [vmem:[#allocation2 + $0x8] sm:$0xff] (!%p1030_p10), %v1215_v16 }
  0x2a   : > { %461 = vst [vmem:[#allocation2 + $0x10] sm:$0xff] (!%p1030_p10), %v1215_v16  ;;  %462 = vst [vmem:[#allocation2 + $0x18] sm:$0xff] (!%p1030_p10), %v1215_v16 }
  0x2b   : > { %463 = vst [vmem:[#allocation2 + $0x20] sm:$0xff] (!%p1030_p10), %v1215_v16  ;;  %464 = vst [vmem:[#allocation2 + $0x28] sm:$0xff] (!%p1030_p10), %v1215_v16 }
  0x2c   : > { %465 = vst [vmem:[#allocation2 + $0x30] sm:$0xff] (!%p1030_p10), %v1215_v16  ;;  %466 = vst [vmem:[#allocation2 + $0x38] sm:$0xff] (!%p1030_p10), %v1215_v16 }
  0x2d   : > { %467 = vst [vmem:[#allocation2 + $0x40] sm:$0xff] (!%p1030_p10), %v1215_v16  ;;  %468 = vst [vmem:[#allocation2 + $0x48] sm:$0xff] (!%p1030_p10), %v1215_v16 }
  0x2e   : > { %469 = vst [vmem:[#allocation2 + $0x50] sm:$0xff] %v1215_v16  ;;  %470 = vst [vmem:[#allocation2 + $0x58] sm:$0xff] %v1215_v16 }
  0x2f   : > { %471 = vst [vmem:[#allocation2 + $0x60] sm:$0xff] %v1215_v16  ;;  %472 = vst [vmem:[#allocation2 + $0x68] sm:$0xff] %v1215_v16 }
  0x30   : > { %473 = vst [vmem:[#allocation2 + $0x70] sm:$0xff] %v1215_v16  ;;  %474 = vst [vmem:[#allocation2 + $0x78] sm:$0xff] %v1215_v16 }
  0x31 PF: > { %v1159_v17 = vld [vmem:[%s1314_s15] sm:$0xff]   ;;  %v1160_v18 = vld [vmem:[%s1314_s15 + $0x8] sm:$0xff]   ;;  %v1161_v19 = vld [vmem:[%s1314_s15 + $0x10] sm:$0xff]   ;;  %p1047_p11 = scmp.ne.s32.totalorder %s1205_s20, 8 }
  0x32   : > { %1070 = vmatprep.subr.bf16.mxu0 %v1159_v17  ;;  %1102 = vmatprep.subr.bf16.mxu1 %v1159_v17  ;;  %v1162_v20 = vld [vmem:[%s1314_s15 + $0x18] sm:$0xff]   ;;  %v1167_v21 = vld [vmem:[%s1316_s16] sm:$0xff]   ;;  %v1164_v24 = vld [vmem:[%s1314_s15 + $0x28] sm:$0xff]  }
  0x33   : > { %1071 = vmatpush3.bf16.msra.mxu0 %v1159_v17  ;;  %1110 = vmatpush3.bf16.msra.mxu1 %v1159_v17  ;;  %v1168_v22 = vld [vmem:[%s1316_s16 + $0x20] sm:$0xff]   ;;  %v1165_v25 = vld [vmem:[%s1314_s15 + $0x30] sm:$0xff]   ;;  %v1166_v26 = vld [vmem:[%s1314_s15 + $0x38] sm:$0xff]  }
  0x34   : > { %1072 = vmatprep.subr.bf16.mxu0 %v1160_v18  ;;  %1103 = vmatprep.subr.bf16.mxu1 %v1160_v18  ;;  %v1163_v23 = vld [vmem:[%s1314_s15 + $0x20] sm:$0xff]   ;;  %v1169_v27 = vld [vmem:[%s1316_s16 + $0x8] sm:$0xff]   ;;  %v1171_v29 = vld [vmem:[%s1316_s16 + $0x10] sm:$0xff]  }
  0x35   : > { %1086 = vmatprep.mubr.bf16.mxu0 %v1167_v21  ;;  %1094 = vmatprep.mubr.bf16.mxu1 %v1168_v22  ;;  %v1170_v28 = vld [vmem:[%s1316_s16 + $0x28] sm:$0xff]   ;;  %v1172_v30 = vld [vmem:[%s1316_s16 + $0x30] sm:$0xff]   ;;  %v1173_v31 = vld [vmem:[%s1316_s16 + $0x18] sm:$0xff]  }
  0x36   : > { %v1174_v32 = vld [vmem:[%s1316_s16 + $0x38] sm:$0xff]   ;;  %v477_v33 = vld [vmem:[#allocation2 + $0x10] sm:$0xff]  ;;  %v475_v35 = vld [vmem:[#allocation2] sm:$0xff] }
  0x37   : > { %1073 = vmatpush3.bf16.msra.mxu0 %v1160_v18  ;;  %1111 = vmatpush3.bf16.msra.mxu1 %v1160_v18  ;;  %v485_v34 = vld [vmem:[#allocation2 + $0x50] sm:$0xff]  ;;  %v483_v36 = vld [vmem:[#allocation2 + $0x40] sm:$0xff]  ;;  %v478_v39 = vld [vmem:[#allocation2 + $0x18] sm:$0xff] }
  0x38   : > { %1074 = vmatprep.subr.bf16.mxu0 %v1161_v19  ;;  %1104 = vmatprep.subr.bf16.mxu1 %v1161_v19  ;;  %v486_v40 = vld [vmem:[#allocation2 + $0x58] sm:$0xff]  ;;  %v476_v45 = vld [vmem:[#allocation2 + $0x8] sm:$0xff]  ;;  %v481_v57 = vld [vmem:[#allocation2 + $0x30] sm:$0xff] }
  0x39   : > { %v484_v46 = vld [vmem:[#allocation2 + $0x48] sm:$0xff]  ;;  %v489_v58 = vld [vmem:[#allocation2 + $0x70] sm:$0xff]  ;;  %v479_v59 = vld [vmem:[#allocation2 + $0x20] sm:$0xff] }
  0x3a   : > { %v487_v60 = vld [vmem:[#allocation2 + $0x60] sm:$0xff]  ;;  %v482_v63 = vld [vmem:[#allocation2 + $0x38] sm:$0xff]  ;;  %v480_v5 = vld [vmem:[#allocation2 + $0x28] sm:$0xff] }
  0x3b   : > { %1075 = vmatpush3.bf16.msra.mxu0 %v1161_v19  ;;  %1112 = vmatpush3.bf16.msra.mxu1 %v1161_v19  ;;  %v490_v0 = vld [vmem:[#allocation2 + $0x78] sm:$0xff]  ;;  %v488_v6 = vld [vmem:[#allocation2 + $0x68] sm:$0xff]  ;;  %v1339_v18 = vld [vmem:[%s1491_s2] ss:$0 sm:$0xff] (!%p1047_p11) }
  0x3c   : > { %1076 = vmatprep.subr.bf16.mxu0 %v1162_v20  ;;  %1105 = vmatprep.subr.bf16.mxu1 %v1162_v20  ;;  %v1344_v19 = vld [vmem:[%s1492_s3] ss:$0 sm:$0xff] (!%p1047_p11) }
  0x3d   : > { %v814_v22 = vld [vmem:[%s1493_s4] sm:$0xff] (!%p1047_p11) }
  0x3f   : > { %1077 = vmatpush3.bf16.msra.mxu0 %v1162_v20  ;;  %1113 = vmatpush3.bf16.msra.mxu1 %v1162_v20 }
  0x40   : > { %1078 = vmatprep.subr.bf16.mxu0 %v1163_v23  ;;  %1106 = vmatprep.subr.bf16.mxu1 %v1163_v23 }
  0x43   : > { %1079 = vmatpush3.bf16.msra.mxu0 %v1163_v23  ;;  %1114 = vmatpush3.bf16.msra.mxu1 %v1163_v23 }
  0x44   : > { %1080 = vmatprep.subr.bf16.mxu0 %v1164_v24  ;;  %1107 = vmatprep.subr.bf16.mxu1 %v1164_v24 }
  0x47   : > { %1081 = vmatpush3.bf16.msra.mxu0 %v1164_v24  ;;  %1115 = vmatpush3.bf16.msra.mxu1 %v1164_v24 }
  0x48   : > { %1082 = vmatprep.subr.bf16.mxu0 %v1165_v25  ;;  %1108 = vmatprep.subr.bf16.mxu1 %v1165_v25 }
  0x4b   : > { %1083 = vmatpush3.bf16.msra.mxu0 %v1165_v25  ;;  %1116 = vmatpush3.bf16.msra.mxu1 %v1165_v25 }
  0x4c   : > { %1084 = vmatprep.subr.bf16.mxu0 %v1166_v26  ;;  %1109 = vmatprep.subr.bf16.mxu1 %v1166_v26 }
  0x4f   : > { %1085 = vmatpush3.bf16.msra.mxu0 %v1166_v26  ;;  %1117 = vmatpush3.bf16.msra.mxu1 %v1166_v26 }
  0x52   : > { %1087 = vmatmul.mubr.bf16.vlgmr.msra.gmra.mrb[0].mxu0 %v1169_v27  ;;  %1095 = vmatmul.mubr.bf16.vlgmr.msra.gmra.mrb[0].mxu1 %v1170_v28  ;;  %v815_v27 = vld [vmem:[%s1493_s4 + $0x8] sm:$0xff] (!%p1047_p11) }
  0x53   : > { %1090 = vmatprep.mubr.bf16.mxu0 %v1171_v29  ;;  %1098 = vmatprep.mubr.bf16.mxu1 %v1172_v30  ;;  %v816_v29 = vld [vmem:[%s1493_s4 + $0x10] sm:$0xff] (!%p1047_p11) }
  0x5a   : > { %1091 = vmatmul.mubr.bf16.gmra.mrb[4].mxu0 %v1173_v31  ;;  %1099 = vmatmul.mubr.bf16.gmra.mrb[4].mxu1 %v1174_v32 }
 0x125   : > { %v1088_v37 = vpop.f32.mrb[0].mxu0  ;;  %v1096_v38 = vpop.f32.mrb[0].mxu1 }
 0x126   : > { %v718_v41 = vadd.f32 %v1088_v37, %v477_v33  ;;  %v726_v42 = vadd.f32 %v1096_v38, %v485_v34  ;;  %v653_v43 = vpop.f32.mrb[1].mxu0  ;;  %v685_v44 = vpop.f32.mrb[1].mxu1  ;;  %v817_v33 = vld [vmem:[%s1493_s4 + $0x18] sm:$0xff] (!%p1047_p11) }
 0x127   : > { %v716_v47 = vadd.f32 %v653_v43, %v475_v35  ;;  %v724_v48 = vadd.f32 %v685_v44, %v483_v36  ;;  %v1089_v49 = vpop.f32.mrb[2].mxu0  ;;  %v1097_v50 = vpop.f32.mrb[2].mxu1 }
 0x128   : > { %734 = vst [vmem:[#allocation2 + $0x10] sm:$0xff] %v718_v41  ;;  %742 = vst [vmem:[#allocation2 + $0x50] sm:$0xff] %v726_v42  ;;  %v719_v51 = vadd.f32 %v1089_v49, %v478_v39  ;;  %v727_v52 = vadd.f32 %v1097_v50, %v486_v40  ;;  %v656_v53 = vpop.f32.mrb[3].mxu0  ;;  %v688_v54 = vpop.f32.mrb[3].mxu1  ;;  %v818_v40 = vld [vmem:[%s1493_s4 + $0x20] sm:$0xff] (!%p1047_p11) }
 0x129   : > { %732 = vst [vmem:[#allocation2] sm:$0xff] %v716_v47  ;;  %740 = vst [vmem:[#allocation2 + $0x40] sm:$0xff] %v724_v48  ;;  %v717_v55 = vadd.f32 %v656_v53, %v476_v45  ;;  %v725_v56 = vadd.f32 %v688_v54, %v484_v46  ;;  %v819_v45 = vld [vmem:[%s1493_s4 + $0x28] sm:$0xff] (!%p1047_p11)  ;;  %v820_v53 = vld [vmem:[%s1493_s4 + $0x30] sm:$0xff] (!%p1047_p11) }
 0x12a   : > { %735 = vst [vmem:[#allocation2 + $0x18] sm:$0xff] %v719_v51  ;;  %743 = vst [vmem:[#allocation2 + $0x58] sm:$0xff] %v727_v52  ;;  %v821_v54 = vld [vmem:[%s1493_s4 + $0x38] sm:$0xff] (!%p1047_p11) }
 0x12b   : > { %733 = vst [vmem:[#allocation2 + $0x8] sm:$0xff] %v717_v55  ;;  %741 = vst [vmem:[#allocation2 + $0x48] sm:$0xff] %v725_v56 }
 0x12d   : > { %v1092_v61 = vpop.f32.mrb[4].mxu0  ;;  %v1100_v62 = vpop.f32.mrb[4].mxu1  ;;  %751 = sbr.rel (%p1047_p11) target bundleno = 326 (0x146), region = 89 }
 0x12e   : > { %v722_v1 = vadd.f32 %v1092_v61, %v481_v57  ;;  %v730_v2 = vadd.f32 %v1100_v62, %v489_v58  ;;  %v669_v3 = vpop.f32.mrb[5].mxu0  ;;  %v701_v4 = vpop.f32.mrb[5].mxu1 }
 0x12f   : > { %v720_v7 = vadd.f32 %v669_v3, %v479_v59  ;;  %v728_v8 = vadd.f32 %v701_v4, %v487_v60  ;;  %v1093_v9 = vpop.f32.mrb[6].mxu0  ;;  %v1101_v10 = vpop.f32.mrb[6].mxu1  ;;  %v754_v24 = vld [vmem:[#allocation2 + $0x10] sm:$0xff] (!%p1047_p11) }
 0x130   : > { %738 = vst [vmem:[#allocation2 + $0x30] sm:$0xff] %v722_v1  ;;  %746 = vst [vmem:[#allocation2 + $0x70] sm:$0xff] %v730_v2  ;;  %v723_v11 = vadd.f32 %v1093_v9, %v482_v63  ;;  %v731_v12 = vadd.f32 %v1101_v10, %v490_v0  ;;  %v672_v13 = vpop.f32.mrb[7].mxu0  ;;  %v704_v14 = vpop.f32.mrb[7].mxu1  ;;  %v752_v17 = vld [vmem:[#allocation2] sm:$0xff] (!%p1047_p11)  ;;  %v777_v28 = vmul.f32 (!%p1047_p11), %v1339_v18, %v754_v24  ;;  %v762_v60 = vld [vmem:[#allocation2 + $0x50] sm:$0xff] (!%p1047_p11) }
 0x131   : > { %736 = vst [vmem:[#allocation2 + $0x20] sm:$0xff] %v720_v7  ;;  %744 = vst [vmem:[#allocation2 + $0x60] sm:$0xff] %v728_v8  ;;  %v721_v15 = vadd.f32 %v672_v13, %v480_v5  ;;  %v729_v16 = vadd.f32 %v704_v14, %v488_v6  ;;  %v775_v20 = vmul.f32 (!%p1047_p11), %v1339_v18, %v752_v17  ;;  %v755_v25 = vld [vmem:[#allocation2 + $0x18] sm:$0xff] (!%p1047_p11)  ;;  %v760_v48 = vld [vmem:[#allocation2 + $0x40] sm:$0xff] (!%p1047_p11) }
 0x132   : > { %739 = vst [vmem:[#allocation2 + $0x38] sm:$0xff] %v723_v11  ;;  %747 = vst [vmem:[#allocation2 + $0x78] sm:$0xff] %v731_v12  ;;  %v753_v21 = vld [vmem:[#allocation2 + $0x8] sm:$0xff] (!%p1047_p11)  ;;  %v778_v30 = vmul.f32 (!%p1047_p11), %v1339_v18, %v755_v25  ;;  %v800_v38 = vadd.f32 (!%p1047_p11), %v1344_v19, %v777_v28  ;;  %v763_v61 = vld [vmem:[#allocation2 + $0x58] sm:$0xff] (!%p1047_p11)  ;;  %v783_v1 = vmul.f32 (!%p1047_p11), %v1339_v18, %v760_v48 }
 0x133   : > { %737 = vst [vmem:[#allocation2 + $0x28] sm:$0xff] %v721_v15  ;;  %745 = vst [vmem:[#allocation2 + $0x68] sm:$0xff] %v729_v16  ;;  %v776_v23 = vmul.f32 (!%p1047_p11), %v1339_v18, %v753_v21  ;;  %v798_v26 = vadd.f32 (!%p1047_p11), %v1344_v19, %v775_v20  ;;  %v761_v55 = vld [vmem:[#allocation2 + $0x48] sm:$0xff] (!%p1047_p11)  ;;  %v822_v6 = vld [vmem:[%s1493_s4 + $0x40] sm:$0xff] (!%p1047_p11)  ;;  %v785_v12 = vmul.f32 (!%p1047_p11), %v1339_v18, %v762_v60 }
 0x134   : > { %v801_v39 = vadd.f32 %v1344_v19, %v778_v30  ;;  %v832_v50 = vadd.f32 %v816_v29, %v800_v38  ;;  %v784_v7 = vmul.f32 %v1339_v18, %v761_v55  ;;  %v806_v10 = vadd.f32 %v1344_v19, %v783_v1  ;;  %v823_v11 = vld [vmem:[%s1493_s4 + $0x48] sm:$0xff]  ;;  %v824_v21 = vld [vmem:[%s1493_s4 + $0x50] sm:$0xff] }
 0x135   : > { %v799_v32 = vadd.f32 %v1344_v19, %v776_v23  ;;  %v830_v37 = vadd.f32 %v814_v22, %v798_v26  ;;  %v786_v13 = vmul.f32 %v1339_v18, %v763_v61  ;;  %v825_v22 = vld [vmem:[%s1493_s4 + $0x58] sm:$0xff]  ;;  %v808_v25 = vadd.f32 %v1344_v19, %v785_v12  ;;  %v828_v38 = vld [vmem:[%s1493_s4 + $0x70] sm:$0xff] }
 0x136   : > { %v833_v51 = vadd.f32 %v817_v33, %v801_v39  ;;  %v848_v62 = vmax.f32 %v832_v50, 0.0  ;;  %v807_v20 = vadd.f32 %v1344_v19, %v784_v7  ;;  %v838_v24 = vadd.f32 %v822_v6, %v806_v10  ;;  %v829_v39 = vld [vmem:[%s1493_s4 + $0x78] sm:$0xff] }
 0x137   : > { %v758_v36 = vld [vmem:[#allocation2 + $0x30] sm:$0xff]  ;;  %v831_v43 = vadd.f32 %v815_v27, %v799_v32  ;;  %v846_v49 = vmax.f32 %v830_v37, 0.0  ;;  %v809_v26 = vadd.f32 %v1344_v19, %v786_v13  ;;  %v826_v27 = vld [vmem:[%s1493_s4 + $0x60] sm:$0xff] }
 0x138   : > { %v756_v31 = vld [vmem:[#allocation2 + $0x20] sm:$0xff]  ;;  %v781_v46 = vmul.f32 %v1339_v18, %v758_v36  ;;  %v849_v63 = vmax.f32 %v833_v51, 0.0  ;;  %864 = vst [vmem:[%s1494_s5 + $0x10] sm:$0xff] %v848_v62  ;;  %v766_v14 = vld [vmem:[#allocation2 + $0x70] sm:$0xff]  ;;  %v839_v29 = vadd.f32 %v823_v11, %v807_v20 }
 0x139   : > { %v779_v34 = vmul.f32 %v1339_v18, %v756_v31  ;;  %v759_v42 = vld [vmem:[#allocation2 + $0x38] sm:$0xff]  ;;  %v847_v56 = vmax.f32 %v831_v43, 0.0  ;;  %862 = vst [vmem:[%s1494_s5] sm:$0xff] %v846_v49  ;;  %v764_v2 = vld [vmem:[#allocation2 + $0x60] sm:$0xff]  ;;  %v827_v31 = vld [vmem:[%s1493_s4 + $0x68] sm:$0xff]  ;;  %v789_v32 = vmul.f32 %v1339_v18, %v766_v14  ;;  %v841_v36 = vadd.f32 %v825_v22, %v809_v26 }
 0x13a   : > { %v757_v35 = vld [vmem:[#allocation2 + $0x28] sm:$0xff]  ;;  %v782_v47 = vmul.f32 %v1339_v18, %v759_v42  ;;  %v804_v58 = vadd.f32 %v1344_v19, %v781_v46  ;;  %865 = vst [vmem:[%s1494_s5 + $0x18] sm:$0xff] %v849_v63  ;;  %v767_v15 = vld [vmem:[#allocation2 + $0x78] sm:$0xff]  ;;  %v787_v23 = vmul.f32 %v1339_v18, %v764_v2 }
 0x13b   : > { %v780_v41 = vmul.f32 %v1339_v18, %v757_v35  ;;  %v802_v44 = vadd.f32 %v1344_v19, %v779_v34  ;;  %863 = vst [vmem:[%s1494_s5 + $0x8] sm:$0xff] %v847_v56  ;;  %v765_v8 = vld [vmem:[#allocation2 + $0x68] sm:$0xff]  ;;  %v790_v33 = vmul.f32 %v1339_v18, %v767_v15  ;;  %v854_v34 = vmax.f32 %v838_v24, 0.0 }
 0x13c   : > { %v805_v59 = vadd.f32 %v1344_v19, %v782_v47  ;;  %v836_v4 = vadd.f32 %v820_v53, %v804_v58  ;;  %v788_v28 = vmul.f32 %v1339_v18, %v765_v8  ;;  %v810_v30 = vadd.f32 %v1344_v19, %v787_v23 }
 0x13d   : > { %v803_v52 = vadd.f32 %v1344_v19, %v780_v41  ;;  %v834_v57 = vadd.f32 %v818_v40, %v802_v44  ;;  %v840_v35 = vadd.f32 %v824_v21, %v808_v25  ;;  %v855_v40 = vmax.f32 %v839_v29, 0.0  ;;  %870 = vst [vmem:[%s1494_s5 + $0x40] sm:$0xff] %v854_v34 }
 0x13e   : > { %v837_v5 = vadd.f32 %v821_v54, %v805_v59  ;;  %v852_v16 = vmax.f32 %v836_v4, 0.0  ;;  %v811_v37 = vadd.f32 %v1344_v19, %v788_v28  ;;  %v842_v41 = vadd.f32 %v826_v27, %v810_v30 }
 0x13f   : > { %v835_v0 = vadd.f32 %v819_v45, %v803_v52  ;;  %v850_v3 = vmax.f32 %v834_v57, 0.0  ;;  %v812_v42 = vadd.f32 %v1344_v19, %v789_v32  ;;  %v813_v43 = vadd.f32 %v1344_v19, %v790_v33  ;;  %871 = vst [vmem:[%s1494_s5 + $0x48] sm:$0xff] %v855_v40 }
 0x140   : > { %v853_v17 = vmax.f32 %v837_v5, 0.0  ;;  %868 = vst [vmem:[%s1494_s5 + $0x30] sm:$0xff] %v852_v16  ;;  %v856_v18 = vmax.f32 %v840_v35, 0.0  ;;  %v857_v44 = vmax.f32 %v841_v36, 0.0  ;;  %v843_v45 = vadd.f32 %v827_v31, %v811_v37 }
 0x141   : > { %v851_v9 = vmax.f32 %v835_v0, 0.0  ;;  %866 = vst [vmem:[%s1494_s5 + $0x20] sm:$0xff] %v850_v3  ;;  %v858_v46 = vmax.f32 %v842_v41, 0.0  ;;  %v844_v47 = vadd.f32 %v828_v38, %v812_v42  ;;  %v845_v48 = vadd.f32 %v829_v39, %v813_v43 }
 0x142   : > { %869 = vst [vmem:[%s1494_s5 + $0x38] sm:$0xff] %v853_v17  ;;  %872 = vst [vmem:[%s1494_s5 + $0x50] sm:$0xff] %v856_v18  ;;  %v859_v19 = vmax.f32 %v843_v45, 0.0 }
 0x143   : > { %867 = vst [vmem:[%s1494_s5 + $0x28] sm:$0xff] %v851_v9  ;;  %873 = vst [vmem:[%s1494_s5 + $0x58] sm:$0xff] %v857_v44  ;;  %v860_v49 = vmax.f32 %v844_v47, 0.0  ;;  %v861_v50 = vmax.f32 %v845_v48, 0.0 }
 0x144   : > { %874 = vst [vmem:[%s1494_s5 + $0x60] sm:$0xff] %v858_v46  ;;  %875 = vst [vmem:[%s1494_s5 + $0x68] sm:$0xff] %v859_v19 }
 0x145   : > { %876 = vst [vmem:[%s1494_s5 + $0x70] sm:$0xff] %v860_v49  ;;  %877 = vst [vmem:[%s1494_s5 + $0x78] sm:$0xff] %v861_v50 }
 0x146 PF: > { %s15_s22 = sadd.s32 1, %s1213_s22   ;;  %s1495_s18 = smov %s1201_s19 }
 0x147   : > { %p12_p12 = scmp.ge.s32.totalorder %s15_s22, 11   ;;  %s1496_s19 = smov %s1281_s26 }
 0x148   : > { %s1497_s20 = smov %s1209_s21  ;;  %s1498_s21 = smov %s1500_s23 }
 0x149   :  { %14 = sbr.rel (!%p12_p12) target bundleno = 3 (0x3), region = 136 }

// kernel: resnet_forward.26
= control target key start
LH: loop header
LB: loop body
LE: loop exit
PB: predicated region body
PF: predicated region fallthrough
CT: control target
= control target key end

     0   :  { %s621_s1 = inlined_call_operand.vmem [shape: bf16[128,128], index: 1, kind: input, shape index: {}]   ;;  %s622_s0 = inlined_call_operand.vmem [shape: bf16[128,128], index: 0, kind: input, shape index: {}]   ;;  %s623_s2 = inlined_call_operand.vmem [shape: f32[1,128], index: 2, kind: input, shape index: {}]   ;;  %s624_s3 = inlined_call_operand.vmem [shape: f32[1,128], index: 3, kind: input, shape index: {}]   ;;  %s625_s4 = inlined_call_operand.vmem [shape: f32[128,128], index: 4, kind: output, shape index: {}]  }
   0x1   :  { %v478_v0 = vld [vmem:[%s621_s1] sm:$0xff]   ;;  %v479_v1 = vld [vmem:[%s621_s1 + $0x8] sm:$0xff]   ;;  %v480_v2 = vld [vmem:[%s621_s1 + $0x10] sm:$0xff]  }
   0x2   :  { %430 = vmatprep.subr.bf16.mxu0 %v478_v0  ;;  %462 = vmatprep.subr.bf16.mxu1 %v478_v0  ;;  %v481_v3 = vld [vmem:[%s621_s1 + $0x18] sm:$0xff]   ;;  %v486_v4 = vld [vmem:[%s622_s0] sm:$0xff]   ;;  %v483_v7 = vld [vmem:[%s621_s1 + $0x28] sm:$0xff]  }
   0x3   :  { %431 = vmatpush3.bf16.msra.mxu0 %v478_v0  ;;  %470 = vmatpush3.bf16.msra.mxu1 %v478_v0  ;;  %v487_v5 = vld [vmem:[%s622_s0 + $0x20] sm:$0xff]   ;;  %v484_v8 = vld [vmem:[%s621_s1 + $0x30] sm:$0xff]   ;;  %v485_v9 = vld [vmem:[%s621_s1 + $0x38] sm:$0xff]  }
   0x4   :  { %432 = vmatprep.subr.bf16.mxu0 %v479_v1  ;;  %463 = vmatprep.subr.bf16.mxu1 %v479_v1  ;;  %v482_v6 = vld [vmem:[%s621_s1 + $0x20] sm:$0xff]   ;;  %v488_v10 = vld [vmem:[%s622_s0 + $0x8] sm:$0xff]   ;;  %v490_v12 = vld [vmem:[%s622_s0 + $0x10] sm:$0xff]  }
   0x5   :  { %446 = vmatprep.mubr.bf16.mxu0 %v486_v4  ;;  %454 = vmatprep.mubr.bf16.mxu1 %v487_v5  ;;  %v489_v11 = vld [vmem:[%s622_s0 + $0x28] sm:$0xff]   ;;  %v491_v13 = vld [vmem:[%s622_s0 + $0x30] sm:$0xff]   ;;  %v492_v14 = vld [vmem:[%s622_s0 + $0x18] sm:$0xff]  }
   0x6   :  { %v493_v15 = vld [vmem:[%s622_s0 + $0x38] sm:$0xff]   ;;  %v412_v16 = vld [vmem:[%s623_s2] ss:$0 sm:$0xff] }
   0x7   :  { %433 = vmatpush3.bf16.msra.mxu0 %v479_v1  ;;  %471 = vmatpush3.bf16.msra.mxu1 %v479_v1  ;;  %v413_v18 = vld [vmem:[%s624_s3] ss:$0 sm:$0xff] }
   0x8   :  { %434 = vmatprep.subr.bf16.mxu0 %v480_v2  ;;  %464 = vmatprep.subr.bf16.mxu1 %v480_v2 }
   0xb   :  { %435 = vmatpush3.bf16.msra.mxu0 %v480_v2  ;;  %472 = vmatpush3.bf16.msra.mxu1 %v480_v2 }
   0xc   :  { %436 = vmatprep.subr.bf16.mxu0 %v481_v3  ;;  %465 = vmatprep.subr.bf16.mxu1 %v481_v3 }
   0xf   :  { %437 = vmatpush3.bf16.msra.mxu0 %v481_v3  ;;  %473 = vmatpush3.bf16.msra.mxu1 %v481_v3 }
  0x10   :  { %438 = vmatprep.subr.bf16.mxu0 %v482_v6  ;;  %466 = vmatprep.subr.bf16.mxu1 %v482_v6 }
  0x13   :  { %439 = vmatpush3.bf16.msra.mxu0 %v482_v6  ;;  %474 = vmatpush3.bf16.msra.mxu1 %v482_v6 }
  0x14   :  { %440 = vmatprep.subr.bf16.mxu0 %v483_v7  ;;  %467 = vmatprep.subr.bf16.mxu1 %v483_v7 }
  0x17   :  { %441 = vmatpush3.bf16.msra.mxu0 %v483_v7  ;;  %475 = vmatpush3.bf16.msra.mxu1 %v483_v7 }
  0x18   :  { %442 = vmatprep.subr.bf16.mxu0 %v484_v8  ;;  %468 = vmatprep.subr.bf16.mxu1 %v484_v8 }
  0x1b   :  { %443 = vmatpush3.bf16.msra.mxu0 %v484_v8  ;;  %476 = vmatpush3.bf16.msra.mxu1 %v484_v8 }
  0x1c   :  { %444 = vmatprep.subr.bf16.mxu0 %v485_v9  ;;  %469 = vmatprep.subr.bf16.mxu1 %v485_v9 }
  0x1f   :  { %445 = vmatpush3.bf16.msra.mxu0 %v485_v9  ;;  %477 = vmatpush3.bf16.msra.mxu1 %v485_v9 }
  0x22   :  { %447 = vmatmul.mubr.bf16.vlgmr.msra.gmra.mrb[0].mxu0 %v488_v10  ;;  %455 = vmatmul.mubr.bf16.vlgmr.msra.gmra.mrb[0].mxu1 %v489_v11 }
  0x23   :  { %450 = vmatprep.mubr.bf16.mxu0 %v490_v12  ;;  %458 = vmatprep.mubr.bf16.mxu1 %v491_v13 }
  0x2a   :  { %451 = vmatmul.mubr.bf16.gmra.mrb[4].mxu0 %v492_v14  ;;  %459 = vmatmul.mubr.bf16.gmra.mrb[4].mxu1 %v493_v15 }
  0xf5   :  { %v448_v17 = vpop.f32.mrb[0].mxu0  ;;  %v456_v19 = vpop.f32.mrb[0].mxu1 }
  0xf6   :  { %v339_v20 = vmul.f32 %v448_v17, %v412_v16  ;;  %v347_v21 = vmul.f32 %v456_v19, %v412_v16  ;;  %v216_v22 = vpop.f32.mrb[1].mxu0  ;;  %v248_v23 = vpop.f32.mrb[1].mxu1 }
  0xf7   :  { %v337_v24 = vmul.f32 %v412_v16, %v216_v22  ;;  %v345_v25 = vmul.f32 %v412_v16, %v248_v23  ;;  %v449_v26 = vpop.f32.mrb[2].mxu0  ;;  %v457_v27 = vpop.f32.mrb[2].mxu1 }
  0xf8   :  { %v362_v28 = vadd.f32 %v413_v18, %v339_v20  ;;  %v370_v29 = vadd.f32 %v413_v18, %v347_v21  ;;  %v340_v30 = vmul.f32 %v449_v26, %v412_v16  ;;  %v348_v31 = vmul.f32 %v457_v27, %v412_v16  ;;  %v219_v32 = vpop.f32.mrb[3].mxu0  ;;  %v251_v33 = vpop.f32.mrb[3].mxu1 }
  0xf9   :  { %v360_v34 = vadd.f32 %v413_v18, %v337_v24  ;;  %v368_v35 = vadd.f32 %v413_v18, %v345_v25  ;;  %v338_v36 = vmul.f32 %v412_v16, %v219_v32  ;;  %v346_v37 = vmul.f32 %v412_v16, %v251_v33 }
  0xfa   :  { %378 = vst [vmem:[%s625_s4 + $0x10] sm:$0xff] %v362_v28  ;;  %386 = vst [vmem:[%s625_s4 + $0x50] sm:$0xff] %v370_v29  ;;  %v363_v38 = vadd.f32 %v413_v18, %v340_v30  ;;  %v371_v39 = vadd.f32 %v413_v18, %v348_v31 }
  0xfb   :  { %376 = vst [vmem:[%s625_s4] sm:$0xff] %v360_v34  ;;  %384 = vst [vmem:[%s625_s4 + $0x40] sm:$0xff] %v368_v35  ;;  %v361_v40 = vadd.f32 %v413_v18, %v338_v36  ;;  %v369_v41 = vadd.f32 %v413_v18, %v346_v37 }
  0xfc   :  { %379 = vst [vmem:[%s625_s4 + $0x18] sm:$0xff] %v363_v38  ;;  %387 = vst [vmem:[%s625_s4 + $0x58] sm:$0xff] %v371_v39 }
  0xfd   :  { %377 = vst [vmem:[%s625_s4 + $0x8] sm:$0xff] %v361_v40  ;;  %385 = vst [vmem:[%s625_s4 + $0x48] sm:$0xff] %v369_v41  ;;  %v452_v42 = vpop.f32.mrb[4].mxu0  ;;  %v460_v43 = vpop.f32.mrb[4].mxu1 }
  0xfe   :  { %v343_v44 = vmul.f32 %v452_v42, %v412_v16  ;;  %v351_v45 = vmul.f32 %v460_v43, %v412_v16  ;;  %v232_v46 = vpop.f32.mrb[5].mxu0  ;;  %v264_v47 = vpop.f32.mrb[5].mxu1 }
  0xff   :  { %v341_v48 = vmul.f32 %v412_v16, %v232_v46  ;;  %v349_v49 = vmul.f32 %v412_v16, %v264_v47  ;;  %v453_v50 = vpop.f32.mrb[6].mxu0  ;;  %v461_v51 = vpop.f32.mrb[6].mxu1 }
 0x100   :  { %v366_v52 = vadd.f32 %v413_v18, %v343_v44  ;;  %v374_v53 = vadd.f32 %v413_v18, %v351_v45  ;;  %v344_v54 = vmul.f32 %v453_v50, %v412_v16  ;;  %v352_v55 = vmul.f32 %v461_v51, %v412_v16  ;;  %v235_v56 = vpop.f32.mrb[7].mxu0  ;;  %v267_v57 = vpop.f32.mrb[7].mxu1 }
 0x101   :  { %v364_v58 = vadd.f32 %v413_v18, %v341_v48  ;;  %v372_v59 = vadd.f32 %v413_v18, %v349_v49  ;;  %v342_v60 = vmul.f32 %v412_v16, %v235_v56  ;;  %v350_v61 = vmul.f32 %v412_v16, %v267_v57 }
 0x102   :  { %382 = vst [vmem:[%s625_s4 + $0x30] sm:$0xff] %v366_v52  ;;  %390 = vst [vmem:[%s625_s4 + $0x70] sm:$0xff] %v374_v53  ;;  %v367_v62 = vadd.f32 %v413_v18, %v344_v54  ;;  %v375_v63 = vadd.f32 %v413_v18, %v352_v55 }
 0x103   :  { %380 = vst [vmem:[%s625_s4 + $0x20] sm:$0xff] %v364_v58  ;;  %388 = vst [vmem:[%s625_s4 + $0x60] sm:$0xff] %v372_v59  ;;  %v365_v0 = vadd.f32 %v413_v18, %v342_v60  ;;  %v373_v1 = vadd.f32 %v413_v18, %v350_v61 }
 0x104   :  { %383 = vst [vmem:[%s625_s4 + $0x38] sm:$0xff] %v367_v62  ;;  %391 = vst [vmem:[%s625_s4 + $0x78] sm:$0xff] %v375_v63 }
 0x105   :  { %381 = vst [vmem:[%s625_s4 + $0x28] sm:$0xff] %v365_v0  ;;  %389 = vst [vmem:[%s625_s4 + $0x68] sm:$0xff] %v373_v1 }

// kernel: resnet_forward.29
= control target key start
LH: loop header
LB: loop body
LE: loop exit
PB: predicated region body
PF: predicated region fallthrough
CT: control target
= control target key end

     0   :  { %s1130_s15 = smov 0   ;;  %s1132_s16 = smov 0   ;;  %s1307_s0 = inlined_call_operand.vmem [shape: bf16[128,1152], index: 0, kind: input, shape index: {}]   ;;  %s1308_s1 = inlined_call_operand.vmem [shape: bf16[1152,128], index: 1, kind: input, shape index: {}]   ;;  %s1309_s2 = inlined_call_operand.vmem [shape: f32[1,128], index: 2, kind: input, shape index: {}]   ;;  %s1310_s3 = inlined_call_operand.vmem [shape: f32[1,128], index: 3, kind: input, shape index: {}]   ;;  %s1311_s4 = inlined_call_operand.vmem [shape: f32[128,128], index: 4, kind: output, shape index: {}]  }
   0x1   :  { %s1134_s17 = smov 0   ;;  %s1136_s18 = smov 0  }
   0x2   :  { %s1138_s19 = smov 0  }
   0x3 LB: > { %s26_s20 = sadd.s32 1, %s1098_s18  ;;  %p49_p1 = scmp.ne.s32.totalorder %s1090_s16, %s1086_s15  ;;  %s1102_s19 = sphi %s1138_s19, %s14_s19   ;;  %s1098_s18 = sphi %s1136_s18, %s1315_s18   ;;  %s1094_s17 = sphi %s1134_s17, %s1314_s17   ;;  %s1090_s16 = sphi %s1132_s16, %s1313_s16   ;;  %s1086_s15 = sphi %s1130_s15, %s1312_s15  }
   0x4   : > { %p27_p0 = scmp.ge.s32.totalorder %s26_s20, 9  ;;  %p50_p2 = scmp.eq.s32.totalorder %s1102_s19, 0 }
   0x5   : > { %s42_s22 = sadd.s32 1, %s1090_s16  ;;  %p912_p5 = scmp.ge.s32.totalorder %s1102_s19, 9 }
   0x6   : > { %s1317_s20 = smov (%p27_p0, %s26_s20), 0  ;;  %p51_p3 = por %p50_p2, %p49_p1 }
   0x7   : > { %s38_s21 = ssub.s32 %s1098_s18, %s1317_s20  ;;  %195 = sbr.rel (%p912_p5) target bundleno = 28 (0x1c), region = 24 }
   0x8   : > { %p40_p4 = scmp.eq.s32.totalorder %s38_s21, 0 }
   0xa   : > { %s1165_s23 = scalar_select %p40_p4, %s1090_s16, %s42_s22  }
   0xe   : > { %198 = sbr.rel (!%p51_p3) target bundleno = 28 (0x1c), region = 28  ;;  %s200_s24 = sand.u32 (%p51_p3), 1, %s1090_s16  }
   0xf   : > { %s914_s25 = sshll.u32 (%p51_p3), %s1098_s18, 2  ;;  %s913_s26 = sshll.u32 (%p51_p3), %s200_s24, 6 }
  0x10   : > { %s1173_s29 = scalar_lea.vmem (%p51_p3), %s1307_s0, %s914_s25  ;;  %s202_s30 = scalar_lea.vmem (%p51_p3), [#allocation3], %s913_s26 }
  0x11   : > { %v223_v0 = vld [vmem:[%s1173_s29] sm:$0xf] (%p51_p3)  ;;  %v225_v1 = vld [vmem:[%s1173_s29 + $0x24] sm:$0xf] (%p51_p3)  ;;  %v227_v2 = vld [vmem:[%s1173_s29 + $0x48] sm:$0xf] (%p51_p3) }
  0x12   : > { %224 = vst [vmem:[%s202_s30] sm:$0xf] (%p51_p3), %v223_v0  ;;  %226 = vst [vmem:[%s202_s30 + $0x4] sm:$0xf] (%p51_p3), %v225_v1  ;;  %v229_v3 = vld [vmem:[%s1173_s29 + $0x6c] sm:$0xf] (%p51_p3) }
  0x13   : > { %v231_v4 = vld [vmem:[%s1173_s29 + $0x90] sm:$0xf] (%p51_p3)  ;;  %228 = vst [vmem:[%s202_s30 + $0x8] sm:$0xf] (%p51_p3), %v227_v2  ;;  %230 = vst [vmem:[%s202_s30 + $0xc] sm:$0xf] (%p51_p3), %v229_v3 }
  0x14   : > { %232 = vst [vmem:[%s202_s30 + $0x10] sm:$0xf] (%p51_p3), %v231_v4  ;;  %v233_v5 = vld [vmem:[%s1173_s29 + $0xb4] sm:$0xf] (%p51_p3)  ;;  %v235_v6 = vld [vmem:[%s1173_s29 + $0xd8] sm:$0xf] (%p51_p3) }
  0x15   : > { %v237_v7 = vld [vmem:[%s1173_s29 + $0xfc] sm:$0xf]  ;;  %234 = vst [vmem:[%s202_s30 + $0x14] sm:$0xf] %v233_v5  ;;  %236 = vst [vmem:[%s202_s30 + $0x18] sm:$0xf] %v235_v6 }
  0x16   : > { %238 = vst [vmem:[%s202_s30 + $0x1c] sm:$0xf] %v237_v7  ;;  %v239_v8 = vld [vmem:[%s1173_s29 + $0x120] sm:$0xf]  ;;  %v241_v9 = vld [vmem:[%s1173_s29 + $0x144] sm:$0xf] }
  0x17   : > { %v243_v10 = vld [vmem:[%s1173_s29 + $0x168] sm:$0xf]  ;;  %240 = vst [vmem:[%s202_s30 + $0x20] sm:$0xf] %v239_v8  ;;  %242 = vst [vmem:[%s202_s30 + $0x24] sm:$0xf] %v241_v9 }
  0x18   : > { %244 = vst [vmem:[%s202_s30 + $0x28] sm:$0xf] %v243_v10  ;;  %v245_v11 = vld [vmem:[%s1173_s29 + $0x18c] sm:$0xf]  ;;  %v247_v12 = vld [vmem:[%s1173_s29 + $0x1b0] sm:$0xf] }
  0x19   : > { %v249_v13 = vld [vmem:[%s1173_s29 + $0x1d4] sm:$0xf]  ;;  %246 = vst [vmem:[%s202_s30 + $0x2c] sm:$0xf] %v245_v11  ;;  %248 = vst [vmem:[%s202_s30 + $0x30] sm:$0xf] %v247_v12 }
  0x1a   : > { %250 = vst [vmem:[%s202_s30 + $0x34] sm:$0xf] %v249_v13  ;;  %v251_v14 = vld [vmem:[%s1173_s29 + $0x1f8] sm:$0xf]  ;;  %v253_v15 = vld [vmem:[%s1173_s29 + $0x21c] sm:$0xf] }
  0x1b   : > { %252 = vst [vmem:[%s202_s30 + $0x38] sm:$0xf] %v251_v14  ;;  %254 = vst [vmem:[%s202_s30 + $0x3c] sm:$0xf] %v253_v15 }
  0x1c PF: > { %p915_p6 = scmp.ge.s32.totalorder %s1102_s19, 1  ;;  %p320_p7 = scmp.lt.s32.totalorder %s1102_s19, 10 }
  0x1e   : > { %p321_p8 = pnand %p915_p6, %p320_p7 }
  0x1f   : > { %s327_s5 = sand.u32 (!%p321_p8), 1, %s1086_s15   ;;  %s917_s6 = sshll.u32 (!%p321_p8), %s1094_s17, 4 }
  0x20   : > { %324 = sbr.rel (%p321_p8) target bundleno = 323 (0x143), region = 73  ;;  %s916_s7 = sshll.u32 (!%p321_p8), %s327_s5, 6 }
  0x21   : > { %p371_p9 = scmp.lt.s32.totalorder (!%p321_p8), %s917_s6, 143  ;;  %s1200_s12 = scalar_lea.vmem (!%p321_p8), [#allocation3], %s916_s7 }
  0x22   : > { %p919_p10 = scmp.ne.s32.totalorder (!%p321_p8), %s1094_s17, 0 }
  0x27   : > { %s1319_s6 = smov (!%p371_p9, %s917_s6), 143  ;;  %398 = sbr.rel (%p919_p10) target bundleno = 49 (0x31), region = 81 }
  0x28   : > { %s918_s8 = sshll.u32 %s1319_s6, 2  ;;  %v1104_v16 = vmov (!%p919_p10), 0.0  }
  0x29   : > { %s1198_s11 = scalar_lea.vmem %s1308_s1, %s918_s8  ;;  %399 = vst [vmem:[#allocation2] sm:$0xff] (!%p919_p10), %v1104_v16  ;;  %400 = vst [vmem:[#allocation2 + $0x8] sm:$0xff] (!%p919_p10), %v1104_v16 }
  0x2a   : > { %401 = vst [vmem:[#allocation2 + $0x10] sm:$0xff] (!%p919_p10), %v1104_v16  ;;  %402 = vst [vmem:[#allocation2 + $0x18] sm:$0xff] (!%p919_p10), %v1104_v16 }
  0x2b   : > { %403 = vst [vmem:[#allocation2 + $0x20] sm:$0xff] (!%p919_p10), %v1104_v16  ;;  %404 = vst [vmem:[#allocation2 + $0x28] sm:$0xff] (!%p919_p10), %v1104_v16 }
  0x2c   : > { %405 = vst [vmem:[#allocation2 + $0x30] sm:$0xff] (!%p919_p10), %v1104_v16  ;;  %406 = vst [vmem:[#allocation2 + $0x38] sm:$0xff] (!%p919_p10), %v1104_v16 }
  0x2d   : > { %407 = vst [vmem:[#allocation2 + $0x40] sm:$0xff] (!%p919_p10), %v1104_v16  ;;  %408 = vst [vmem:[#allocation2 + $0x48] sm:$0xff] (!%p919_p10), %v1104_v16 }
  0x2e   : > { %409 = vst [vmem:[#allocation2 + $0x50] sm:$0xff] %v1104_v16  ;;  %410 = vst [vmem:[#allocation2 + $0x58] sm:$0xff] %v1104_v16 }
  0x2f   : > { %411 = vst [vmem:[#allocation2 + $0x60] sm:$0xff] %v1104_v16  ;;  %412 = vst [vmem:[#allocation2 + $0x68] sm:$0xff] %v1104_v16 }
  0x30   : > { %413 = vst [vmem:[#allocation2 + $0x70] sm:$0xff] %v1104_v16  ;;  %414 = vst [vmem:[#allocation2 + $0x78] sm:$0xff] %v1104_v16 }
  0x31 PF: > { %v1048_v17 = vld [vmem:[%s1198_s11] sm:$0xff]   ;;  %v1049_v18 = vld [vmem:[%s1198_s11 + $0x8] sm:$0xff]   ;;  %v1050_v19 = vld [vmem:[%s1198_s11 + $0x10] sm:$0xff]   ;;  %p936_p11 = scmp.ne.s32.totalorder %s1094_s17, 8 }
  0x32   : > { %959 = vmatprep.subr.bf16.mxu0 %v1048_v17  ;;  %991 = vmatprep.subr.bf16.mxu1 %v1048_v17  ;;  %v1051_v20 = vld [vmem:[%s1198_s11 + $0x18] sm:$0xff]   ;;  %v1056_v21 = vld [vmem:[%s1200_s12] sm:$0xff]   ;;  %v1053_v24 = vld [vmem:[%s1198_s11 + $0x28] sm:$0xff]  }
  0x33   : > { %960 = vmatpush3.bf16.msra.mxu0 %v1048_v17  ;;  %999 = vmatpush3.bf16.msra.mxu1 %v1048_v17  ;;  %v1057_v22 = vld [vmem:[%s1200_s12 + $0x20] sm:$0xff]   ;;  %v1054_v25 = vld [vmem:[%s1198_s11 + $0x30] sm:$0xff]   ;;  %v1055_v26 = vld [vmem:[%s1198_s11 + $0x38] sm:$0xff]  }
  0x34   : > { %961 = vmatprep.subr.bf16.mxu0 %v1049_v18  ;;  %992 = vmatprep.subr.bf16.mxu1 %v1049_v18  ;;  %v1052_v23 = vld [vmem:[%s1198_s11 + $0x20] sm:$0xff]   ;;  %v1058_v27 = vld [vmem:[%s1200_s12 + $0x8] sm:$0xff]   ;;  %v1060_v29 = vld [vmem:[%s1200_s12 + $0x10] sm:$0xff]  }
  0x35   : > { %975 = vmatprep.mubr.bf16.mxu0 %v1056_v21  ;;  %983 = vmatprep.mubr.bf16.mxu1 %v1057_v22  ;;  %v1059_v28 = vld [vmem:[%s1200_s12 + $0x28] sm:$0xff]   ;;  %v1061_v30 = vld [vmem:[%s1200_s12 + $0x30] sm:$0xff]   ;;  %v1062_v31 = vld [vmem:[%s1200_s12 + $0x18] sm:$0xff]  }
  0x36   : > { %v1063_v32 = vld [vmem:[%s1200_s12 + $0x38] sm:$0xff]   ;;  %v417_v33 = vld [vmem:[#allocation2 + $0x10] sm:$0xff]  ;;  %v415_v35 = vld [vmem:[#allocation2] sm:$0xff] }
  0x37   : > { %962 = vmatpush3.bf16.msra.mxu0 %v1049_v18  ;;  %1000 = vmatpush3.bf16.msra.mxu1 %v1049_v18  ;;  %v425_v34 = vld [vmem:[#allocation2 + $0x50] sm:$0xff]  ;;  %v423_v36 = vld [vmem:[#allocation2 + $0x40] sm:$0xff]  ;;  %v418_v39 = vld [vmem:[#allocation2 + $0x18] sm:$0xff] }
  0x38   : > { %963 = vmatprep.subr.bf16.mxu0 %v1050_v19  ;;  %993 = vmatprep.subr.bf16.mxu1 %v1050_v19  ;;  %v426_v40 = vld [vmem:[#allocation2 + $0x58] sm:$0xff]  ;;  %v416_v45 = vld [vmem:[#allocation2 + $0x8] sm:$0xff]  ;;  %v421_v57 = vld [vmem:[#allocation2 + $0x30] sm:$0xff] }
  0x39   : > { %v424_v46 = vld [vmem:[#allocation2 + $0x48] sm:$0xff]  ;;  %v429_v58 = vld [vmem:[#allocation2 + $0x70] sm:$0xff]  ;;  %v419_v59 = vld [vmem:[#allocation2 + $0x20] sm:$0xff] }
  0x3a   : > { %v427_v60 = vld [vmem:[#allocation2 + $0x60] sm:$0xff]  ;;  %v422_v63 = vld [vmem:[#allocation2 + $0x38] sm:$0xff]  ;;  %v420_v5 = vld [vmem:[#allocation2 + $0x28] sm:$0xff] }
  0x3b   : > { %964 = vmatpush3.bf16.msra.mxu0 %v1050_v19  ;;  %1001 = vmatpush3.bf16.msra.mxu1 %v1050_v19  ;;  %v430_v0 = vld [vmem:[#allocation2 + $0x78] sm:$0xff]  ;;  %v428_v6 = vld [vmem:[#allocation2 + $0x68] sm:$0xff]  ;;  %v937_v18 = vld [vmem:[%s1309_s2] ss:$0 sm:$0xff] (!%p936_p11) }
  0x3c   : > { %965 = vmatprep.subr.bf16.mxu0 %v1051_v20  ;;  %994 = vmatprep.subr.bf16.mxu1 %v1051_v20  ;;  %v1226_v19 = vld [vmem:[%s1310_s3] ss:$0 sm:$0xff] (!%p936_p11) }
  0x3f   : > { %966 = vmatpush3.bf16.msra.mxu0 %v1051_v20  ;;  %1002 = vmatpush3.bf16.msra.mxu1 %v1051_v20 }
  0x40   : > { %967 = vmatprep.subr.bf16.mxu0 %v1052_v23  ;;  %995 = vmatprep.subr.bf16.mxu1 %v1052_v23 }
  0x43   : > { %968 = vmatpush3.bf16.msra.mxu0 %v1052_v23  ;;  %1003 = vmatpush3.bf16.msra.mxu1 %v1052_v23 }
  0x44   : > { %969 = vmatprep.subr.bf16.mxu0 %v1053_v24  ;;  %996 = vmatprep.subr.bf16.mxu1 %v1053_v24 }
  0x47   : > { %970 = vmatpush3.bf16.msra.mxu0 %v1053_v24  ;;  %1004 = vmatpush3.bf16.msra.mxu1 %v1053_v24 }
  0x48   : > { %971 = vmatprep.subr.bf16.mxu0 %v1054_v25  ;;  %997 = vmatprep.subr.bf16.mxu1 %v1054_v25 }
  0x4b   : > { %972 = vmatpush3.bf16.msra.mxu0 %v1054_v25  ;;  %1005 = vmatpush3.bf16.msra.mxu1 %v1054_v25 }
  0x4c   : > { %973 = vmatprep.subr.bf16.mxu0 %v1055_v26  ;;  %998 = vmatprep.subr.bf16.mxu1 %v1055_v26 }
  0x4f   : > { %974 = vmatpush3.bf16.msra.mxu0 %v1055_v26  ;;  %1006 = vmatpush3.bf16.msra.mxu1 %v1055_v26 }
  0x52   : > { %976 = vmatmul.mubr.bf16.vlgmr.msra.gmra.mrb[0].mxu0 %v1058_v27  ;;  %984 = vmatmul.mubr.bf16.vlgmr.msra.gmra.mrb[0].mxu1 %v1059_v28 }
  0x53   : > { %979 = vmatprep.mubr.bf16.mxu0 %v1060_v29  ;;  %987 = vmatprep.mubr.bf16.mxu1 %v1061_v30 }
  0x5a   : > { %980 = vmatmul.mubr.bf16.gmra.mrb[4].mxu0 %v1062_v31  ;;  %988 = vmatmul.mubr.bf16.gmra.mrb[4].mxu1 %v1063_v32 }
 0x125   : > { %v977_v37 = vpop.f32.mrb[0].mxu0  ;;  %v985_v38 = vpop.f32.mrb[0].mxu1 }
 0x126   : > { %v658_v41 = vadd.f32 %v977_v37, %v417_v33  ;;  %v666_v42 = vadd.f32 %v985_v38, %v425_v34  ;;  %v593_v43 = vpop.f32.mrb[1].mxu0  ;;  %v625_v44 = vpop.f32.mrb[1].mxu1 }
 0x127   : > { %v656_v47 = vadd.f32 %v593_v43, %v415_v35  ;;  %v664_v48 = vadd.f32 %v625_v44, %v423_v36  ;;  %v978_v49 = vpop.f32.mrb[2].mxu0  ;;  %v986_v50 = vpop.f32.mrb[2].mxu1 }
 0x128   : > { %674 = vst [vmem:[#allocation2 + $0x10] sm:$0xff] %v658_v41  ;;  %682 = vst [vmem:[#allocation2 + $0x50] sm:$0xff] %v666_v42  ;;  %v659_v51 = vadd.f32 %v978_v49, %v418_v39  ;;  %v667_v52 = vadd.f32 %v986_v50, %v426_v40  ;;  %v596_v53 = vpop.f32.mrb[3].mxu0  ;;  %v628_v54 = vpop.f32.mrb[3].mxu1 }
 0x129   : > { %672 = vst [vmem:[#allocation2] sm:$0xff] %v656_v47  ;;  %680 = vst [vmem:[#allocation2 + $0x40] sm:$0xff] %v664_v48  ;;  %v657_v55 = vadd.f32 %v596_v53, %v416_v45  ;;  %v665_v56 = vadd.f32 %v628_v54, %v424_v46 }
 0x12a   : > { %675 = vst [vmem:[#allocation2 + $0x18] sm:$0xff] %v659_v51  ;;  %683 = vst [vmem:[#allocation2 + $0x58] sm:$0xff] %v667_v52 }
 0x12b   : > { %673 = vst [vmem:[#allocation2 + $0x8] sm:$0xff] %v657_v55  ;;  %681 = vst [vmem:[#allocation2 + $0x48] sm:$0xff] %v665_v56 }
 0x12d   : > { %v981_v61 = vpop.f32.mrb[4].mxu0  ;;  %v989_v62 = vpop.f32.mrb[4].mxu1  ;;  %691 = sbr.rel (%p936_p11) target bundleno = 323 (0x143), region = 85 }
 0x12e   : > { %v662_v1 = vadd.f32 %v981_v61, %v421_v57  ;;  %v670_v2 = vadd.f32 %v989_v62, %v429_v58  ;;  %v609_v3 = vpop.f32.mrb[5].mxu0  ;;  %v641_v4 = vpop.f32.mrb[5].mxu1 }
 0x12f   : > { %v660_v7 = vadd.f32 %v609_v3, %v419_v59  ;;  %v668_v8 = vadd.f32 %v641_v4, %v427_v60  ;;  %v982_v9 = vpop.f32.mrb[6].mxu0  ;;  %v990_v10 = vpop.f32.mrb[6].mxu1  ;;  %v694_v22 = vld [vmem:[#allocation2 + $0x10] sm:$0xff] (!%p936_p11) }
 0x130   : > { %678 = vst [vmem:[#allocation2 + $0x30] sm:$0xff] %v662_v1  ;;  %686 = vst [vmem:[#allocation2 + $0x70] sm:$0xff] %v670_v2  ;;  %v663_v11 = vadd.f32 %v982_v9, %v422_v63  ;;  %v671_v12 = vadd.f32 %v990_v10, %v430_v0  ;;  %v612_v13 = vpop.f32.mrb[7].mxu0  ;;  %v644_v14 = vpop.f32.mrb[7].mxu1  ;;  %v692_v17 = vld [vmem:[#allocation2] sm:$0xff] (!%p936_p11)  ;;  %v717_v25 = vmul.f32 (!%p936_p11), %v937_v18, %v694_v22  ;;  %v702_v45 = vld [vmem:[#allocation2 + $0x50] sm:$0xff] (!%p936_p11) }
 0x131   : > { %676 = vst [vmem:[#allocation2 + $0x20] sm:$0xff] %v660_v7  ;;  %684 = vst [vmem:[#allocation2 + $0x60] sm:$0xff] %v668_v8  ;;  %v661_v15 = vadd.f32 %v612_v13, %v420_v5  ;;  %v669_v16 = vadd.f32 %v644_v14, %v428_v6  ;;  %v715_v20 = vmul.f32 (!%p936_p11), %v937_v18, %v692_v17  ;;  %v695_v23 = vld [vmem:[#allocation2 + $0x18] sm:$0xff] (!%p936_p11)  ;;  %v700_v39 = vld [vmem:[#allocation2 + $0x40] sm:$0xff] (!%p936_p11) }
 0x132   : > { %679 = vst [vmem:[#allocation2 + $0x38] sm:$0xff] %v663_v11  ;;  %687 = vst [vmem:[#allocation2 + $0x78] sm:$0xff] %v671_v12  ;;  %v693_v21 = vld [vmem:[#allocation2 + $0x8] sm:$0xff] (!%p936_p11)  ;;  %v718_v26 = vmul.f32 (!%p936_p11), %v937_v18, %v695_v23  ;;  %v740_v36 = vadd.f32 (!%p936_p11), %v1226_v19, %v717_v25  ;;  %v703_v46 = vld [vmem:[#allocation2 + $0x58] sm:$0xff] (!%p936_p11)  ;;  %v723_v57 = vmul.f32 (!%p936_p11), %v937_v18, %v700_v39 }
 0x133   : > { %677 = vst [vmem:[#allocation2 + $0x28] sm:$0xff] %v661_v15  ;;  %685 = vst [vmem:[#allocation2 + $0x68] sm:$0xff] %v669_v16  ;;  %v716_v24 = vmul.f32 (!%p936_p11), %v937_v18, %v693_v21  ;;  %v738_v30 = vadd.f32 (!%p936_p11), %v1226_v19, %v715_v20  ;;  %v701_v44 = vld [vmem:[#allocation2 + $0x48] sm:$0xff] (!%p936_p11)  ;;  %v725_v61 = vmul.f32 (!%p936_p11), %v937_v18, %v702_v45 }
 0x134   : > { %v741_v37 = vadd.f32 %v1226_v19, %v718_v26  ;;  %v756_v48 = vmax.f32 %v740_v36, 0.0  ;;  %v724_v60 = vmul.f32 %v937_v18, %v701_v44  ;;  %v726_v62 = vmul.f32 %v937_v18, %v703_v46 }
 0x135   : > { %v739_v35 = vadd.f32 %v1226_v19, %v716_v24  ;;  %v754_v40 = vmax.f32 %v738_v30, 0.0  ;;  %v746_v63 = vadd.f32 %v1226_v19, %v723_v57  ;;  %v748_v4 = vadd.f32 %v1226_v19, %v725_v61 }
 0x136   : > { %v757_v49 = vmax.f32 %v741_v37, 0.0  ;;  %772 = vst [vmem:[%s1311_s4 + $0x10] sm:$0xff] %v756_v48  ;;  %v747_v3 = vadd.f32 %v1226_v19, %v724_v60  ;;  %v749_v5 = vadd.f32 %v1226_v19, %v726_v62 }
 0x137   : > { %v698_v29 = vld [vmem:[#allocation2 + $0x30] sm:$0xff]  ;;  %v755_v47 = vmax.f32 %v739_v35, 0.0  ;;  %770 = vst [vmem:[%s1311_s4] sm:$0xff] %v754_v40  ;;  %v762_v7 = vmax.f32 %v746_v63, 0.0  ;;  %v764_v12 = vmax.f32 %v748_v4, 0.0 }
 0x138   : > { %v696_v27 = vld [vmem:[#allocation2 + $0x20] sm:$0xff]  ;;  %v721_v33 = vmul.f32 %v937_v18, %v698_v29  ;;  %v706_v53 = vld [vmem:[#allocation2 + $0x70] sm:$0xff]  ;;  %773 = vst [vmem:[%s1311_s4 + $0x18] sm:$0xff] %v757_v49  ;;  %v763_v11 = vmax.f32 %v747_v3, 0.0  ;;  %v765_v13 = vmax.f32 %v749_v5, 0.0 }
 0x139   : > { %v719_v31 = vmul.f32 %v937_v18, %v696_v27  ;;  %v699_v34 = vld [vmem:[#allocation2 + $0x38] sm:$0xff]  ;;  %v704_v51 = vld [vmem:[#allocation2 + $0x60] sm:$0xff]  ;;  %771 = vst [vmem:[%s1311_s4 + $0x8] sm:$0xff] %v755_v47  ;;  %v729_v2 = vmul.f32 %v937_v18, %v706_v53  ;;  %778 = vst [vmem:[%s1311_s4 + $0x40] sm:$0xff] %v762_v7 }
 0x13a   : > { %v697_v28 = vld [vmem:[#allocation2 + $0x28] sm:$0xff]  ;;  %v722_v38 = vmul.f32 %v937_v18, %v699_v34  ;;  %v744_v43 = vadd.f32 %v1226_v19, %v721_v33  ;;  %v707_v58 = vld [vmem:[#allocation2 + $0x78] sm:$0xff]  ;;  %v727_v0 = vmul.f32 %v937_v18, %v704_v51  ;;  %779 = vst [vmem:[%s1311_s4 + $0x48] sm:$0xff] %v763_v11  ;;  %780 = vst [vmem:[%s1311_s4 + $0x50] sm:$0xff] %v764_v12 }
 0x13b   : > { %v720_v32 = vmul.f32 %v937_v18, %v697_v28  ;;  %v742_v41 = vadd.f32 %v1226_v19, %v719_v31  ;;  %v705_v52 = vld [vmem:[#allocation2 + $0x68] sm:$0xff]  ;;  %v730_v6 = vmul.f32 %v937_v18, %v707_v58  ;;  %v752_v10 = vadd.f32 %v1226_v19, %v729_v2  ;;  %781 = vst [vmem:[%s1311_s4 + $0x58] sm:$0xff] %v765_v13 }
 0x13c   : > { %v745_v50 = vadd.f32 %v1226_v19, %v722_v38  ;;  %v760_v56 = vmax.f32 %v744_v43, 0.0  ;;  %v728_v1 = vmul.f32 %v937_v18, %v705_v52  ;;  %v750_v8 = vadd.f32 %v1226_v19, %v727_v0 }
 0x13d   : > { %v743_v42 = vadd.f32 %v1226_v19, %v720_v32  ;;  %v758_v54 = vmax.f32 %v742_v41, 0.0  ;;  %v753_v14 = vadd.f32 %v1226_v19, %v730_v6  ;;  %v768_v17 = vmax.f32 %v752_v10, 0.0 }
 0x13e   : > { %v761_v59 = vmax.f32 %v745_v50, 0.0  ;;  %776 = vst [vmem:[%s1311_s4 + $0x30] sm:$0xff] %v760_v56  ;;  %v751_v9 = vadd.f32 %v1226_v19, %v728_v1  ;;  %v766_v15 = vmax.f32 %v750_v8, 0.0 }
 0x13f   : > { %v759_v55 = vmax.f32 %v743_v42, 0.0  ;;  %774 = vst [vmem:[%s1311_s4 + $0x20] sm:$0xff] %v758_v54  ;;  %v769_v18 = vmax.f32 %v753_v14, 0.0  ;;  %784 = vst [vmem:[%s1311_s4 + $0x70] sm:$0xff] %v768_v17 }
 0x140   : > { %777 = vst [vmem:[%s1311_s4 + $0x38] sm:$0xff] %v761_v59  ;;  %v767_v16 = vmax.f32 %v751_v9, 0.0  ;;  %782 = vst [vmem:[%s1311_s4 + $0x60] sm:$0xff] %v766_v15 }
 0x141   : > { %775 = vst [vmem:[%s1311_s4 + $0x28] sm:$0xff] %v759_v55  ;;  %785 = vst [vmem:[%s1311_s4 + $0x78] sm:$0xff] %v769_v18 }
 0x142   : > { %783 = vst [vmem:[%s1311_s4 + $0x68] sm:$0xff] %v767_v16 }
 0x143 PF: > { %s14_s19 = sadd.s32 1, %s1102_s19   ;;  %s1312_s15 = smov %s1090_s16 }
 0x144   : > { %p11_p12 = scmp.ge.s32.totalorder %s14_s19, 11   ;;  %s1313_s16 = smov %s1165_s23 }
 0x145   : > { %s1314_s17 = smov %s1098_s18  ;;  %s1315_s18 = smov %s1317_s20 }
 0x146   :  { %13 = sbr.rel (!%p11_p12) target bundleno = 3 (0x3), region = 129 }

// kernel: resnet_forward.32
= control target key start
LH: loop header
LB: loop body
LE: loop exit
PB: predicated region body
PF: predicated region fallthrough
CT: control target
= control target key end

     0   :  { %s961_s15 = smov 0   ;;  %s963_s16 = smov 0   ;;  %s1083_s0 = inlined_call_operand.vmem [shape: bf16[32,1152], index: 0, kind: input, shape index: {}]   ;;  %s1084_s1 = inlined_call_operand.vmem [shape: bf16[1152,256], index: 1, kind: input, shape index: {}]   ;;  %s1085_s2 = inlined_call_operand.vmem [shape: f32[1,256], index: 2, kind: input, shape index: {}]   ;;  %s1086_s3 = inlined_call_operand.vmem [shape: f32[1,256], index: 3, kind: input, shape index: {}]   ;;  %s1087_s4 = inlined_call_operand.vmem [shape: f32[32,256], index: 4, kind: output, shape index: {}]  }
   0x1   :  { %s965_s17 = smov 0   ;;  %s967_s18 = smov 0  }
   0x2   :  { %s969_s19 = smov 0  }
   0x3 LB: > { %s26_s20 = sadd.s32 1, %s928_s18  ;;  %p49_p1 = scmp.ne.s32.totalorder %s920_s16, %s916_s15  ;;  %s932_s19 = sphi %s969_s19, %s14_s19   ;;  %s928_s18 = sphi %s967_s18, %s1091_s18   ;;  %s924_s17 = sphi %s965_s17, %s1090_s17   ;;  %s920_s16 = sphi %s963_s16, %s1089_s16   ;;  %s916_s15 = sphi %s961_s15, %s1088_s15  }
   0x4   : > { %p27_p0 = scmp.ge.s32.totalorder %s26_s20, 9  ;;  %p50_p2 = scmp.eq.s32.totalorder %s932_s19, 0 }
   0x5   : > { %s42_s22 = sadd.s32 1, %s920_s16  ;;  %p777_p5 = scmp.ge.s32.totalorder %s932_s19, 9 }
   0x6   : > { %s1093_s20 = smov (%p27_p0, %s26_s20), 0  ;;  %p51_p3 = por %p50_p2, %p49_p1 }
   0x7   : > { %s38_s21 = ssub.s32 %s928_s18, %s1093_s20  ;;  %199 = sbr.rel (%p777_p5) target bundleno = 21 (0x15), region = 24 }
   0x8   : > { %p40_p4 = scmp.eq.s32.totalorder %s38_s21, 0 }
   0xa   : > { %s996_s23 = scalar_select %p40_p4, %s920_s16, %s42_s22  }
   0xe   : > { %202 = sbr.rel (!%p51_p3) target bundleno = 21 (0x15), region = 28  ;;  %s204_s24 = sand.u32 (%p51_p3), 1, %s920_s16  }
   0xf   : > { %s779_s25 = sshll.u32 (%p51_p3), %s928_s18, 2  ;;  %s778_s26 = sshll.u32 (%p51_p3), %s204_s24, 4 }
  0x10   : > { %s211_s29 = scalar_lea.vmem (%p51_p3), %s1083_s0, %s779_s25  ;;  %s206_s30 = scalar_lea.vmem (%p51_p3), [#allocation3], %s778_s26 }
  0x11   : > { %v227_v0 = vld [vmem:[%s211_s29] sm:$0xf] (%p51_p3)  ;;  %v229_v1 = vld [vmem:[%s211_s29 + $0x24] sm:$0xf] (%p51_p3)  ;;  %v231_v2 = vld [vmem:[%s211_s29 + $0x48] sm:$0xf] (%p51_p3) }
  0x12   : > { %228 = vst [vmem:[%s206_s30] sm:$0xf] (%p51_p3), %v227_v0  ;;  %230 = vst [vmem:[%s206_s30 + $0x4] sm:$0xf] (%p51_p3), %v229_v1  ;;  %v233_v3 = vld [vmem:[%s211_s29 + $0x6c] sm:$0xf] (%p51_p3) }
  0x13   : > { %232 = vst [vmem:[%s206_s30 + $0x8] sm:$0xf] (%p51_p3), %v231_v2  ;;  %234 = vst [vmem:[%s206_s30 + $0xc] sm:$0xf] (%p51_p3), %v233_v3 }
  0x15 PF: > { %p780_p6 = scmp.ge.s32.totalorder %s932_s19, 1  ;;  %p279_p7 = scmp.lt.s32.totalorder %s932_s19, 10 }
  0x17   : > { %p280_p8 = pnand %p780_p6, %p279_p7 }
  0x18   : > { %s286_s5 = sand.u32 (!%p280_p8), 1, %s916_s15   ;;  %s782_s6 = sshll.u32 (!%p280_p8), %s924_s17, 4 }
  0x19   : > { %283 = sbr.rel (%p280_p8) target bundleno = 306 (0x132), region = 73  ;;  %s1008_s7 = sshll.u32 (!%p280_p8), %s286_s5, 4 }
  0x1a   : > { %p337_p9 = scmp.lt.s32.totalorder (!%p280_p8), %s782_s6, 143  ;;  %s288_s12 = scalar_lea.vmem (!%p280_p8), [#allocation3], %s1008_s7 }
  0x1b   : > { %p785_p10 = scmp.ne.s32.totalorder (!%p280_p8), %s924_s17, 0 }
  0x20   : > { %s1095_s6 = smov (!%p337_p9, %s782_s6), 143  ;;  %373 = sbr.rel (%p785_p10) target bundleno = 39 (0x27), region = 81 }
  0x21   : > { %s809_s8 = sshll.u32 %s1095_s6, 3  ;;  %v934_v4 = vmov (!%p785_p10), 0.0  }
  0x22   : > { %s1013_s11 = scalar_lea.vmem %s1084_s1, %s809_s8  ;;  %374 = vst [vmem:[#allocation2] sm:$0xff] (!%p785_p10), %v934_v4  ;;  %375 = vst [vmem:[#allocation2 + $0x8] sm:$0xff] (!%p785_p10), %v934_v4 }
  0x23   : > { %376 = vst [vmem:[#allocation2 + $0x10] sm:$0xff] (!%p785_p10), %v934_v4  ;;  %377 = vst [vmem:[#allocation2 + $0x18] sm:$0xff] (!%p785_p10), %v934_v4 }
  0x24   : > { %378 = vst [vmem:[#allocation2 + $0x20] sm:$0xff] (!%p785_p10), %v934_v4  ;;  %379 = vst [vmem:[#allocation2 + $0x28] sm:$0xff] (!%p785_p10), %v934_v4 }
  0x25   : > { %380 = vst [vmem:[#allocation2 + $0x30] sm:$0xff] (!%p785_p10), %v934_v4  ;;  %381 = vst [vmem:[#allocation2 + $0x38] sm:$0xff] (!%p785_p10), %v934_v4 }
  0x27 PF: > { %v868_v5 = vld [vmem:[%s1013_s11 + $0x4] ss:$8 sps:$4 sm:$0xff]   ;;  %v870_v6 = vld [vmem:[%s1013_s11] ss:$8 sps:$4 sm:$0xff]   ;;  %v935_v7 = vmov 0   ;;  %p804_p11 = scmp.ne.s32.totalorder %s924_s17, 8 }
  0x28   : > { %534 = vmatprep.mubr.bf16.mxu0 %v935_v7  ;;  %544 = vmatprep.mubr.bf16.mxu1 %v935_v7  ;;  %v871_v8 = vld [vmem:[%s1013_s11 + $0x14] ss:$8 sps:$4 sm:$0xff]   ;;  %v873_v9 = vld [vmem:[%s1013_s11 + $0x10] ss:$8 sps:$4 sm:$0xff]   ;;  %v874_v10 = vld [vmem:[%s1013_s11 + $0x24] ss:$8 sps:$4 sm:$0xff]   ;;  %v585_v48 = vlaneseq (!%p804_p11) }
  0x29   : > { %502 = vmatprep.subr.bf16.mxu0 %v868_v5  ;;  %810 = vmatprep.subr.bf16.mxu1 %v868_v5  ;;  %v876_v11 = vld [vmem:[%s1013_s11 + $0x20] ss:$8 sps:$4 sm:$0xff]   ;;  %v877_v12 = vld [vmem:[%s1013_s11 + $0x34] ss:$8 sps:$4 sm:$0xff]   ;;  %v879_v13 = vld [vmem:[%s1013_s11 + $0x30] ss:$8 sps:$4 sm:$0xff]  }
  0x2a   : > { %503 = vmatpush1.bf16.msra.mxu0 %v870_v6  ;;  %818 = vmatpush1.bf16.msra.mxu1 %v870_v6  ;;  %v880_v14 = vld [vmem:[%s1013_s11 + $0x44] ss:$8 sps:$4 sm:$0xff]   ;;  %v882_v15 = vld [vmem:[%s1013_s11 + $0x40] ss:$8 sps:$4 sm:$0xff]   ;;  %v883_v16 = vld [vmem:[%s1013_s11 + $0x54] ss:$8 sps:$4 sm:$0xff]  }
  0x2b   : > { %504 = vmatprep.subr.bf16.mxu0 %v871_v8  ;;  %811 = vmatprep.subr.bf16.mxu1 %v871_v8  ;;  %v885_v17 = vld [vmem:[%s1013_s11 + $0x50] ss:$8 sps:$4 sm:$0xff]   ;;  %v886_v18 = vld [vmem:[%s1013_s11 + $0x64] ss:$8 sps:$4 sm:$0xff]   ;;  %v888_v19 = vld [vmem:[%s1013_s11 + $0x60] ss:$8 sps:$4 sm:$0xff]  }
  0x2c   : > { %v889_v20 = vld [vmem:[%s1013_s11 + $0x74] ss:$8 sps:$4 sm:$0xff]   ;;  %v891_v21 = vld [vmem:[%s1013_s11 + $0x70] ss:$8 sps:$4 sm:$0xff]   ;;  %v382_v24 = vld [vmem:[#allocation2] sm:$0xff]  ;;  %v586_v49 = vshrl.u32 (!%p804_p11), %v585_v48, 7 }
  0x2d   : > { %v892_v22 = vld [vmem:[%s288_s12] sm:$0xff]   ;;  %v893_v23 = vld [vmem:[%s288_s12 + $0x8] sm:$0xff]  }
  0x2e   : > { %505 = vmatpush1.bf16.msra.mxu0 %v873_v9  ;;  %819 = vmatpush1.bf16.msra.mxu1 %v873_v9  ;;  %v386_v25 = vld [vmem:[#allocation2 + $0x20] sm:$0xff]  ;;  %v383_v26 = vld [vmem:[#allocation2 + $0x8] sm:$0xff]  ;;  %v384_v30 = vld [vmem:[#allocation2 + $0x10] sm:$0xff]  ;;  %v587_v53 = vsub.s32 (!%p804_p11), 0, %v586_v49  ;;  %v591_v55 = vsub.s32 (!%p804_p11), 1, %v586_v49 }
  0x2f   : > { %506 = vmatprep.subr.bf16.mxu0 %v874_v10  ;;  %812 = vmatprep.subr.bf16.mxu1 %v874_v10  ;;  %v387_v27 = vld [vmem:[#allocation2 + $0x28] sm:$0xff]  ;;  %v388_v31 = vld [vmem:[#allocation2 + $0x30] sm:$0xff]  ;;  %v385_v36 = vld [vmem:[#allocation2 + $0x18] sm:$0xff] }
  0x30   : > { %v389_v37 = vld [vmem:[#allocation2 + $0x38] sm:$0xff]  ;;  %v583_v50 = vld [vmem:[%s1085_s2] sm:$0x3] (!%p804_p11) }
  0x31   : > { %v603_v51 = vld [vmem:[%s1086_s3] sm:$0x3] (!%p804_p11)  ;;  %v588_v59 = vrot.slane (!%p804_p11), %v583_v50, %v587_v53  ;;  %v592_v61 = vrot.slane (!%p804_p11), %v583_v50, %v591_v55 }
  0x32   : > { %507 = vmatpush1.bf16.msra.mxu0 %v876_v11  ;;  %820 = vmatpush1.bf16.msra.mxu1 %v876_v11  ;;  %v608_v60 = vrot.slane (!%p804_p11), %v603_v51, %v587_v53  ;;  %v612_v62 = vrot.slane (!%p804_p11), %v603_v51, %v591_v55 }
  0x33   : > { %508 = vmatprep.subr.bf16.mxu0 %v877_v12  ;;  %813 = vmatprep.subr.bf16.mxu1 %v877_v12 }
  0x36   : > { %509 = vmatpush1.bf16.msra.mxu0 %v879_v13  ;;  %821 = vmatpush1.bf16.msra.mxu1 %v879_v13 }
  0x37   : > { %510 = vmatprep.subr.bf16.mxu0 %v880_v14  ;;  %814 = vmatprep.subr.bf16.mxu1 %v880_v14 }
  0x3a   : > { %511 = vmatpush1.bf16.msra.mxu0 %v882_v15  ;;  %822 = vmatpush1.bf16.msra.mxu1 %v882_v15 }
  0x3b   : > { %512 = vmatprep.subr.bf16.mxu0 %v883_v16  ;;  %815 = vmatprep.subr.bf16.mxu1 %v883_v16 }
  0x3e   : > { %513 = vmatpush1.bf16.msra.mxu0 %v885_v17  ;;  %823 = vmatpush1.bf16.msra.mxu1 %v885_v17 }
  0x3f   : > { %514 = vmatprep.subr.bf16.mxu0 %v886_v18  ;;  %816 = vmatprep.subr.bf16.mxu1 %v886_v18 }
  0x42   : > { %515 = vmatpush1.bf16.msra.mxu0 %v888_v19  ;;  %824 = vmatpush1.bf16.msra.mxu1 %v888_v19 }
  0x43   : > { %516 = vmatprep.subr.bf16.mxu0 %v889_v20  ;;  %817 = vmatprep.subr.bf16.mxu1 %v889_v20 }
  0x46   : > { %517 = vmatpush1.bf16.msra.mxu0 %v891_v21  ;;  %825 = vmatpush1.bf16.msra.mxu1 %v891_v21 }
  0x49   : > { %535 = vmatmul.mubr.bf16.vlgmr.msra.gmra.mrb[0].mxu0 %v892_v22  ;;  %545 = vmatmul.mubr.bf16.vlgmr.msra.gmra.mrb[0].mxu1 %v893_v23 }
 0x11c   : > { %v536_v28 = vpop.f32.mrb[0].mxu0  ;;  %v546_v29 = vpop.f32.mrb[0].mxu1  ;;  %574 = sbr.rel (%p804_p11) target bundleno = 306 (0x132), region = 85 }
 0x11d   : > { %v555_v32 = vadd.f32 %v536_v28, %v382_v24  ;;  %v559_v33 = vadd.f32 %v546_v29, %v386_v25  ;;  %v538_v34 = vpop.f32.mrb[1].mxu0  ;;  %v548_v35 = vpop.f32.mrb[1].mxu1 }
 0x11e   : > { %v556_v38 = vadd.f32 %v538_v34, %v383_v26  ;;  %v560_v39 = vadd.f32 %v548_v35, %v387_v27  ;;  %v540_v40 = vpop.f32.mrb[2].mxu0  ;;  %v550_v41 = vpop.f32.mrb[2].mxu1 }
 0x11f   : > { %563 = vst [vmem:[#allocation2] sm:$0xff] %v555_v32  ;;  %567 = vst [vmem:[#allocation2 + $0x20] sm:$0xff] %v559_v33  ;;  %v557_v42 = vadd.f32 %v540_v40, %v384_v30  ;;  %v561_v43 = vadd.f32 %v550_v41, %v388_v31  ;;  %v542_v44 = vpop.f32.mrb[3].mxu0  ;;  %v552_v45 = vpop.f32.mrb[3].mxu1 }
 0x120   : > { %564 = vst [vmem:[#allocation2 + $0x8] sm:$0xff] %v556_v38  ;;  %568 = vst [vmem:[#allocation2 + $0x28] sm:$0xff] %v560_v39  ;;  %v558_v46 = vadd.f32 %v542_v44, %v385_v36  ;;  %v562_v47 = vadd.f32 %v552_v45, %v389_v37 }
 0x121   : > { %565 = vst [vmem:[#allocation2 + $0x10] sm:$0xff] %v557_v42  ;;  %569 = vst [vmem:[#allocation2 + $0x30] sm:$0xff] %v561_v43 }
 0x122   : > { %566 = vst [vmem:[#allocation2 + $0x18] sm:$0xff] %v558_v46  ;;  %570 = vst [vmem:[#allocation2 + $0x38] sm:$0xff] %v562_v47 }
 0x126   : > { %v575_v52 = vld [vmem:[#allocation2] sm:$0xff] }
 0x127   : > { %v576_v54 = vld [vmem:[#allocation2 + $0x8] sm:$0xff]  ;;  %v579_v58 = vld [vmem:[#allocation2 + $0x20] sm:$0xff]  ;;  %v595_v2 = vmul.f32 %v588_v59, %v575_v52 }
 0x128   : > { %v577_v56 = vld [vmem:[#allocation2 + $0x10] sm:$0xff]  ;;  %v580_v63 = vld [vmem:[#allocation2 + $0x28] sm:$0xff]  ;;  %v596_v3 = vmul.f32 %v592_v61, %v576_v54  ;;  %v599_v6 = vmul.f32 %v588_v59, %v579_v58 }
 0x129   : > { %v578_v57 = vld [vmem:[#allocation2 + $0x18] sm:$0xff]  ;;  %v581_v0 = vld [vmem:[#allocation2 + $0x30] sm:$0xff]  ;;  %v597_v4 = vmul.f32 %v588_v59, %v577_v56  ;;  %v600_v7 = vmul.f32 %v592_v61, %v580_v63  ;;  %v615_v10 = vadd.f32 %v608_v60, %v595_v2 }
 0x12a   : > { %v582_v1 = vld [vmem:[#allocation2 + $0x38] sm:$0xff]  ;;  %v598_v5 = vmul.f32 %v592_v61, %v578_v57  ;;  %v601_v8 = vmul.f32 %v588_v59, %v581_v0  ;;  %v616_v11 = vadd.f32 %v612_v62, %v596_v3  ;;  %v619_v14 = vadd.f32 %v608_v60, %v599_v6 }
 0x12b   : > { %v602_v9 = vmul.f32 %v592_v61, %v582_v1  ;;  %v617_v12 = vadd.f32 %v608_v60, %v597_v4  ;;  %v620_v15 = vadd.f32 %v612_v62, %v600_v7  ;;  %v623_v18 = vmax.f32 %v615_v10, 0.0 }
 0x12c   : > { %v618_v13 = vadd.f32 %v612_v62, %v598_v5  ;;  %v621_v16 = vadd.f32 %v608_v60, %v601_v8  ;;  %v624_v19 = vmax.f32 %v616_v11, 0.0  ;;  %v627_v22 = vmax.f32 %v619_v14, 0.0 }
 0x12d   : > { %v622_v17 = vadd.f32 %v612_v62, %v602_v9  ;;  %v625_v20 = vmax.f32 %v617_v12, 0.0  ;;  %v628_v23 = vmax.f32 %v620_v15, 0.0  ;;  %631 = vst [vmem:[%s1087_s4] sm:$0xff] %v623_v18 }
 0x12e   : > { %v626_v21 = vmax.f32 %v618_v13, 0.0  ;;  %v629_v24 = vmax.f32 %v621_v16, 0.0  ;;  %632 = vst [vmem:[%s1087_s4 + $0x8] sm:$0xff] %v624_v19  ;;  %635 = vst [vmem:[%s1087_s4 + $0x20] sm:$0xff] %v627_v22 }
 0x12f   : > { %v630_v25 = vmax.f32 %v622_v17, 0.0  ;;  %633 = vst [vmem:[%s1087_s4 + $0x10] sm:$0xff] %v625_v20  ;;  %636 = vst [vmem:[%s1087_s4 + $0x28] sm:$0xff] %v628_v23 }
 0x130   : > { %634 = vst [vmem:[%s1087_s4 + $0x18] sm:$0xff] %v626_v21  ;;  %637 = vst [vmem:[%s1087_s4 + $0x30] sm:$0xff] %v629_v24 }
 0x131   : > { %638 = vst [vmem:[%s1087_s4 + $0x38] sm:$0xff] %v630_v25 }
 0x132 PF: > { %s14_s19 = sadd.s32 1, %s932_s19   ;;  %s1088_s15 = smov %s920_s16 }
 0x133   : > { %p11_p12 = scmp.ge.s32.totalorder %s14_s19, 11   ;;  %s1089_s16 = smov %s996_s23 }
 0x134   : > { %s1090_s17 = smov %s928_s18  ;;  %s1091_s18 = smov %s1093_s20 }
 0x135   :  { %13 = sbr.rel (!%p11_p12) target bundleno = 3 (0x3), region = 129 }

// kernel: resnet_forward.31
= control target key start
LH: loop header
LB: loop body
LE: loop exit
PB: predicated region body
PF: predicated region fallthrough
CT: control target
= control target key end

     0   :  { %v343_v1 = vmov 0   ;;  %v232_v19 = vlaneseq  ;;  %s453_s1 = inlined_call_operand.vmem [shape: bf16[128,256], index: 1, kind: input, shape index: {}]   ;;  %s454_s0 = inlined_call_operand.vmem [shape: bf16[32,128], index: 0, kind: input, shape index: {}]   ;;  %s455_s2 = inlined_call_operand.vmem [shape: f32[1,256], index: 2, kind: input, shape index: {}]   ;;  %s456_s3 = inlined_call_operand.vmem [shape: f32[1,256], index: 3, kind: input, shape index: {}]   ;;  %s457_s4 = inlined_call_operand.vmem [shape: f32[32,256], index: 4, kind: output, shape index: {}]  }
   0x1   :  { %v317_v0 = vld [vmem:[%s453_s1 + $0x4] ss:$8 sps:$4 sm:$0xff]   ;;  %182 = vmatprep.mubr.bf16.mxu0 %v343_v1  ;;  %192 = vmatprep.mubr.bf16.mxu1 %v343_v1  ;;  %v319_v2 = vld [vmem:[%s453_s1] ss:$8 sps:$4 sm:$0xff]   ;;  %v320_v3 = vld [vmem:[%s453_s1 + $0x14] ss:$8 sps:$4 sm:$0xff]  }
   0x2   :  { %150 = vmatprep.subr.bf16.mxu0 %v317_v0  ;;  %300 = vmatprep.subr.bf16.mxu1 %v317_v0  ;;  %v322_v4 = vld [vmem:[%s453_s1 + $0x10] ss:$8 sps:$4 sm:$0xff]   ;;  %v323_v5 = vld [vmem:[%s453_s1 + $0x24] ss:$8 sps:$4 sm:$0xff]   ;;  %v325_v6 = vld [vmem:[%s453_s1 + $0x20] ss:$8 sps:$4 sm:$0xff]  }
   0x3   :  { %151 = vmatpush1.bf16.msra.mxu0 %v319_v2  ;;  %308 = vmatpush1.bf16.msra.mxu1 %v319_v2  ;;  %v326_v7 = vld [vmem:[%s453_s1 + $0x34] ss:$8 sps:$4 sm:$0xff]   ;;  %v328_v8 = vld [vmem:[%s453_s1 + $0x30] ss:$8 sps:$4 sm:$0xff]   ;;  %v329_v9 = vld [vmem:[%s453_s1 + $0x44] ss:$8 sps:$4 sm:$0xff]  }
   0x4   :  { %152 = vmatprep.subr.bf16.mxu0 %v320_v3  ;;  %301 = vmatprep.subr.bf16.mxu1 %v320_v3  ;;  %v331_v10 = vld [vmem:[%s453_s1 + $0x40] ss:$8 sps:$4 sm:$0xff]   ;;  %v332_v11 = vld [vmem:[%s453_s1 + $0x54] ss:$8 sps:$4 sm:$0xff]   ;;  %v334_v12 = vld [vmem:[%s453_s1 + $0x50] ss:$8 sps:$4 sm:$0xff]  }
   0x5   :  { %v335_v13 = vld [vmem:[%s453_s1 + $0x64] ss:$8 sps:$4 sm:$0xff]   ;;  %v337_v14 = vld [vmem:[%s453_s1 + $0x60] ss:$8 sps:$4 sm:$0xff]   ;;  %v338_v15 = vld [vmem:[%s453_s1 + $0x74] ss:$8 sps:$4 sm:$0xff]  }
   0x6   :  { %v340_v16 = vld [vmem:[%s453_s1 + $0x70] ss:$8 sps:$4 sm:$0xff]   ;;  %v341_v17 = vld [vmem:[%s454_s0] sm:$0xff]   ;;  %v342_v18 = vld [vmem:[%s454_s0 + $0x8] sm:$0xff]   ;;  %v233_v20 = vshrl.u32 %v232_v19, 7 }
   0x7   :  { %153 = vmatpush1.bf16.msra.mxu0 %v322_v4  ;;  %309 = vmatpush1.bf16.msra.mxu1 %v322_v4  ;;  %v230_v22 = vld [vmem:[%s455_s2] sm:$0x3] }
   0x8   :  { %154 = vmatprep.subr.bf16.mxu0 %v323_v5  ;;  %302 = vmatprep.subr.bf16.mxu1 %v323_v5  ;;  %v234_v21 = vsub.s32 0, %v233_v20  ;;  %v238_v23 = vsub.s32 1, %v233_v20  ;;  %v250_v24 = vld [vmem:[%s456_s3] sm:$0x3] }
   0xa   :  { %v235_v25 = vrot.slane %v230_v22, %v234_v21  ;;  %v239_v26 = vrot.slane %v230_v22, %v238_v23  ;;  %v255_v27 = vrot.slane %v250_v24, %v234_v21  ;;  %v259_v30 = vrot.slane %v250_v24, %v238_v23 }
   0xb   :  { %155 = vmatpush1.bf16.msra.mxu0 %v325_v6  ;;  %310 = vmatpush1.bf16.msra.mxu1 %v325_v6 }
   0xc   :  { %156 = vmatprep.subr.bf16.mxu0 %v326_v7  ;;  %303 = vmatprep.subr.bf16.mxu1 %v326_v7 }
   0xf   :  { %157 = vmatpush1.bf16.msra.mxu0 %v328_v8  ;;  %311 = vmatpush1.bf16.msra.mxu1 %v328_v8 }
  0x10   :  { %158 = vmatprep.subr.bf16.mxu0 %v329_v9  ;;  %304 = vmatprep.subr.bf16.mxu1 %v329_v9 }
  0x13   :  { %159 = vmatpush1.bf16.msra.mxu0 %v331_v10  ;;  %312 = vmatpush1.bf16.msra.mxu1 %v331_v10 }
  0x14   :  { %160 = vmatprep.subr.bf16.mxu0 %v332_v11  ;;  %305 = vmatprep.subr.bf16.mxu1 %v332_v11 }
  0x17   :  { %161 = vmatpush1.bf16.msra.mxu0 %v334_v12  ;;  %313 = vmatpush1.bf16.msra.mxu1 %v334_v12 }
  0x18   :  { %162 = vmatprep.subr.bf16.mxu0 %v335_v13  ;;  %306 = vmatprep.subr.bf16.mxu1 %v335_v13 }
  0x1b   :  { %163 = vmatpush1.bf16.msra.mxu0 %v337_v14  ;;  %314 = vmatpush1.bf16.msra.mxu1 %v337_v14 }
  0x1c   :  { %164 = vmatprep.subr.bf16.mxu0 %v338_v15  ;;  %307 = vmatprep.subr.bf16.mxu1 %v338_v15 }
  0x1f   :  { %165 = vmatpush1.bf16.msra.mxu0 %v340_v16  ;;  %315 = vmatpush1.bf16.msra.mxu1 %v340_v16 }
  0x22   :  { %183 = vmatmul.mubr.bf16.vlgmr.msra.gmra.mrb[0].mxu0 %v341_v17  ;;  %193 = vmatmul.mubr.bf16.vlgmr.msra.gmra.mrb[0].mxu1 %v342_v18 }
  0xf5   :  { %v184_v28 = vpop.f32.mrb[0].mxu0  ;;  %v194_v29 = vpop.f32.mrb[0].mxu1 }
  0xf6   :  { %v242_v31 = vmul.f32 %v235_v25, %v184_v28  ;;  %v246_v32 = vmul.f32 %v235_v25, %v194_v29  ;;  %v186_v33 = vpop.f32.mrb[1].mxu0  ;;  %v196_v34 = vpop.f32.mrb[1].mxu1 }
  0xf7   :  { %v243_v35 = vmul.f32 %v239_v26, %v186_v33  ;;  %v247_v36 = vmul.f32 %v239_v26, %v196_v34  ;;  %v188_v37 = vpop.f32.mrb[2].mxu0  ;;  %v198_v38 = vpop.f32.mrb[2].mxu1 }
  0xf8   :  { %v262_v39 = vadd.f32 %v255_v27, %v242_v31  ;;  %v266_v40 = vadd.f32 %v255_v27, %v246_v32  ;;  %v244_v41 = vmul.f32 %v235_v25, %v188_v37  ;;  %v248_v42 = vmul.f32 %v235_v25, %v198_v38  ;;  %v190_v43 = vpop.f32.mrb[3].mxu0  ;;  %v200_v44 = vpop.f32.mrb[3].mxu1 }
  0xf9   :  { %v263_v45 = vadd.f32 %v259_v30, %v243_v35  ;;  %v267_v46 = vadd.f32 %v259_v30, %v247_v36  ;;  %v245_v47 = vmul.f32 %v239_v26, %v190_v43  ;;  %v249_v48 = vmul.f32 %v239_v26, %v200_v44 }
  0xfa   :  { %270 = vst [vmem:[%s457_s4] sm:$0xff] %v262_v39  ;;  %274 = vst [vmem:[%s457_s4 + $0x20] sm:$0xff] %v266_v40  ;;  %v264_v49 = vadd.f32 %v255_v27, %v244_v41  ;;  %v268_v50 = vadd.f32 %v255_v27, %v248_v42 }
  0xfb   :  { %271 = vst [vmem:[%s457_s4 + $0x8] sm:$0xff] %v263_v45  ;;  %275 = vst [vmem:[%s457_s4 + $0x28] sm:$0xff] %v267_v46  ;;  %v265_v51 = vadd.f32 %v259_v30, %v245_v47  ;;  %v269_v52 = vadd.f32 %v259_v30, %v249_v48 }
  0xfc   :  { %272 = vst [vmem:[%s457_s4 + $0x10] sm:$0xff] %v264_v49  ;;  %276 = vst [vmem:[%s457_s4 + $0x30] sm:$0xff] %v268_v50 }
  0xfd   :  { %273 = vst [vmem:[%s457_s4 + $0x18] sm:$0xff] %v265_v51  ;;  %277 = vst [vmem:[%s457_s4 + $0x38] sm:$0xff] %v269_v52 }

// kernel: resnet_forward.33
= control target key start
LH: loop header
LB: loop body
LE: loop exit
PB: predicated region body
PF: predicated region fallthrough
CT: control target
= control target key end

     0   :  { %s1233_s18 = smov 0   ;;  %s1235_s19 = smov 0   ;;  %s1394_s0 = inlined_call_operand.vmem [shape: bf16[32,2304], index: 0, kind: input, shape index: {}]   ;;  %s1395_s1 = inlined_call_operand.vmem [shape: bf16[2304,256], index: 1, kind: input, shape index: {}]   ;;  %s1396_s2 = inlined_call_operand.vmem [shape: f32[1,256], index: 2, kind: input, shape index: {}]   ;;  %s1397_s3 = inlined_call_operand.vmem [shape: f32[1,256], index: 3, kind: input, shape index: {}]   ;;  %s1398_s4 = inlined_call_operand.vmem [shape: f32[32,256], index: 4, kind: input, shape index: {}]   ;;  %s1399_s5 = inlined_call_operand.vmem [shape: f32[32,256], index: 5, kind: output, shape index: {}]  }
   0x1   :  { %s1237_s20 = smov 0   ;;  %s1239_s21 = smov 0  }
   0x2   :  { %s1241_s22 = smov 0  }
   0x3 LB: > { %s27_s23 = sadd.s32 1, %s1196_s21  ;;  %p50_p1 = scmp.ne.s32.totalorder %s1188_s19, %s1184_s18  ;;  %s1200_s22 = sphi %s1241_s22, %s15_s22   ;;  %s1196_s21 = sphi %s1239_s21, %s1403_s21   ;;  %s1192_s20 = sphi %s1237_s20, %s1402_s20   ;;  %s1188_s19 = sphi %s1235_s19, %s1401_s19   ;;  %s1184_s18 = sphi %s1233_s18, %s1400_s18  }
   0x4   : > { %p28_p0 = scmp.ge.s32.totalorder %s27_s23, 9  ;;  %p51_p2 = scmp.eq.s32.totalorder %s1200_s22, 0 }
   0x5   : > { %s43_s25 = sadd.s32 1, %s1188_s19  ;;  %p982_p5 = scmp.ge.s32.totalorder %s1200_s22, 9 }
   0x6   : > { %s1405_s23 = smov (%p28_p0, %s27_s23), 0  ;;  %p52_p3 = por %p51_p2, %p50_p1 }
   0x7   : > { %s39_s24 = ssub.s32 %s1196_s21, %s1405_s23  ;;  %243 = sbr.rel (%p982_p5) target bundleno = 21 (0x15), region = 28 }
   0x8   : > { %p41_p4 = scmp.eq.s32.totalorder %s39_s24, 0 }
   0xa   : > { %s1268_s26 = scalar_select %p41_p4, %s1188_s19, %s43_s25  }
   0xe   : > { %246 = sbr.rel (!%p52_p3) target bundleno = 21 (0x15), region = 32  ;;  %s248_s27 = sand.u32 (%p52_p3), 1, %s1188_s19  }
   0xf   : > { %s1033_s28 = sshll.u32 (%p52_p3), %s1196_s21, 3  ;;  %s983_s29 = sshll.u32 (%p52_p3), %s248_s27, 5 }
  0x10   : > { %s256_s7 = scalar_lea.vmem (%p52_p3), %s1394_s0, %s1033_s28  ;;  %s250_s8 = scalar_lea.vmem (%p52_p3), [#allocation3], %s983_s29 }
  0x11   : > { %v290_v0 = vld [vmem:[%s256_s7] sm:$0xff] (%p52_p3)  ;;  %v292_v1 = vld [vmem:[%s256_s7 + $0x48] sm:$0xff] (%p52_p3)  ;;  %v294_v2 = vld [vmem:[%s256_s7 + $0x90] sm:$0xff] (%p52_p3) }
  0x12   : > { %291 = vst [vmem:[%s250_s8] sm:$0xff] (%p52_p3), %v290_v0  ;;  %293 = vst [vmem:[%s250_s8 + $0x8] sm:$0xff] (%p52_p3), %v292_v1  ;;  %v296_v3 = vld [vmem:[%s256_s7 + $0xd8] sm:$0xff] (%p52_p3) }
  0x13   : > { %295 = vst [vmem:[%s250_s8 + $0x10] sm:$0xff] (%p52_p3), %v294_v2  ;;  %297 = vst [vmem:[%s250_s8 + $0x18] sm:$0xff] (%p52_p3), %v296_v3 }
  0x15 PF: > { %p986_p6 = scmp.ge.s32.totalorder %s1200_s22, 1  ;;  %p317_p7 = scmp.lt.s32.totalorder %s1200_s22, 10 }
  0x17   : > { %p318_p8 = pnand %p986_p6, %p317_p7 }
  0x18   : > { %s324_s9 = sand.u32 (!%p318_p8), 1, %s1184_s18   ;;  %s988_s10 = sshll.u32 (!%p318_p8), %s1192_s20, 5 }
  0x19   : > { %321 = sbr.rel (%p318_p8) target bundleno = 339 (0x153), region = 74  ;;  %s987_s11 = sshll.u32 (!%p318_p8), %s324_s9, 5 }
  0x1a   : > { %p388_p9 = scmp.lt.s32.totalorder (!%p318_p8), %s988_s10, 287  ;;  %s1285_s16 = scalar_lea.vmem (!%p318_p8), [#allocation3], %s987_s11 }
  0x1b   : > { %p991_p10 = scmp.ne.s32.totalorder (!%p318_p8), %s1192_s20, 0 }
  0x20   : > { %s1407_s10 = smov (!%p388_p9, %s988_s10), 287  ;;  %435 = sbr.rel (%p991_p10) target bundleno = 39 (0x27), region = 82 }
  0x21   : > { %s1034_s12 = sshll.u32 %s1407_s10, 3  ;;  %v1202_v4 = vmov (!%p991_p10), 0.0  }
  0x22   : > { %s1283_s15 = scalar_lea.vmem %s1395_s1, %s1034_s12  ;;  %436 = vst [vmem:[#allocation2] sm:$0xff] (!%p991_p10), %v1202_v4  ;;  %437 = vst [vmem:[#allocation2 + $0x8] sm:$0xff] (!%p991_p10), %v1202_v4 }
  0x23   : > { %438 = vst [vmem:[#allocation2 + $0x10] sm:$0xff] (!%p991_p10), %v1202_v4  ;;  %439 = vst [vmem:[#allocation2 + $0x18] sm:$0xff] (!%p991_p10), %v1202_v4 }
  0x24   : > { %440 = vst [vmem:[#allocation2 + $0x20] sm:$0xff] (!%p991_p10), %v1202_v4  ;;  %441 = vst [vmem:[#allocation2 + $0x28] sm:$0xff] (!%p991_p10), %v1202_v4 }
  0x25   : > { %442 = vst [vmem:[#allocation2 + $0x30] sm:$0xff] (!%p991_p10), %v1202_v4  ;;  %443 = vst [vmem:[#allocation2 + $0x38] sm:$0xff] (!%p991_p10), %v1202_v4 }
  0x27 PF: > { %v1108_v5 = vld [vmem:[%s1283_s15 + $0x4] ss:$8 sps:$4 sm:$0xff]   ;;  %v1110_v6 = vld [vmem:[%s1283_s15] ss:$8 sps:$4 sm:$0xff]   ;;  %v1111_v7 = vld [vmem:[%s1283_s15 + $0x14] ss:$8 sps:$4 sm:$0xff]  }
  0x28   : > { %668 = vmatprep.subr.bf16.mxu0 %v1108_v5  ;;  %1035 = vmatprep.subr.bf16.mxu1 %v1108_v5  ;;  %v1113_v8 = vld [vmem:[%s1283_s15 + $0x10] ss:$8 sps:$4 sm:$0xff]   ;;  %v1114_v9 = vld [vmem:[%s1283_s15 + $0x24] ss:$8 sps:$4 sm:$0xff]   ;;  %v1116_v10 = vld [vmem:[%s1283_s15 + $0x20] ss:$8 sps:$4 sm:$0xff]  }
  0x29   : > { %669 = vmatpush1.bf16.msra.mxu0 %v1110_v6  ;;  %1051 = vmatpush1.bf16.msra.mxu1 %v1110_v6  ;;  %v1117_v11 = vld [vmem:[%s1283_s15 + $0x34] ss:$8 sps:$4 sm:$0xff]   ;;  %v1119_v12 = vld [vmem:[%s1283_s15 + $0x30] ss:$8 sps:$4 sm:$0xff]   ;;  %v1120_v13 = vld [vmem:[%s1283_s15 + $0x44] ss:$8 sps:$4 sm:$0xff]  }
  0x2a   : > { %670 = vmatprep.subr.bf16.mxu0 %v1111_v7  ;;  %1036 = vmatprep.subr.bf16.mxu1 %v1111_v7  ;;  %v1122_v14 = vld [vmem:[%s1283_s15 + $0x40] ss:$8 sps:$4 sm:$0xff]   ;;  %v1123_v15 = vld [vmem:[%s1283_s15 + $0x54] ss:$8 sps:$4 sm:$0xff]   ;;  %v1125_v16 = vld [vmem:[%s1283_s15 + $0x50] ss:$8 sps:$4 sm:$0xff]  }
  0x2b   : > { %v1126_v17 = vld [vmem:[%s1283_s15 + $0x64] ss:$8 sps:$4 sm:$0xff]   ;;  %v1128_v19 = vld [vmem:[%s1283_s15 + $0x60] ss:$8 sps:$4 sm:$0xff]   ;;  %v1161_v20 = vld [vmem:[%s1285_s16 + $0x14] ss:$8 sps:$4 sm:$0xff]  }
  0x2c   : > { %v1158_v18 = vld [vmem:[%s1285_s16 + $0x4] ss:$8 sps:$4 sm:$0xff]   ;;  %v1129_v21 = vld [vmem:[%s1283_s15 + $0x74] ss:$8 sps:$4 sm:$0xff]   ;;  %710 = vmatprep.mubr.bf16.mxu1 %v1161_v20  ;;  %v1131_v22 = vld [vmem:[%s1283_s15 + $0x70] ss:$8 sps:$4 sm:$0xff]  }
  0x2d   : > { %671 = vmatpush1.bf16.msra.mxu0 %v1113_v8  ;;  %1052 = vmatpush1.bf16.msra.mxu1 %v1113_v8  ;;  %v1132_v23 = vld [vmem:[%s1283_s15 + $0x84] ss:$8 sps:$4 sm:$0xff]   ;;  %v1134_v24 = vld [vmem:[%s1283_s15 + $0x80] ss:$8 sps:$4 sm:$0xff]   ;;  %v1135_v25 = vld [vmem:[%s1283_s15 + $0x94] ss:$8 sps:$4 sm:$0xff]  }
  0x2e   : > { %672 = vmatprep.subr.bf16.mxu0 %v1114_v9  ;;  %1037 = vmatprep.subr.bf16.mxu1 %v1114_v9  ;;  %v1137_v26 = vld [vmem:[%s1283_s15 + $0x90] ss:$8 sps:$4 sm:$0xff]   ;;  %v1138_v27 = vld [vmem:[%s1283_s15 + $0xa4] ss:$8 sps:$4 sm:$0xff]   ;;  %v1140_v28 = vld [vmem:[%s1283_s15 + $0xa0] ss:$8 sps:$4 sm:$0xff]  }
  0x2f   : > { %700 = vmatprep.mubr.bf16.mxu0 %v1158_v18  ;;  %v1141_v29 = vld [vmem:[%s1283_s15 + $0xb4] ss:$8 sps:$4 sm:$0xff]   ;;  %v1143_v30 = vld [vmem:[%s1283_s15 + $0xb0] ss:$8 sps:$4 sm:$0xff]   ;;  %v1144_v31 = vld [vmem:[%s1283_s15 + $0xc4] ss:$8 sps:$4 sm:$0xff]  }
  0x30   : > { %v1146_v32 = vld [vmem:[%s1283_s15 + $0xc0] ss:$8 sps:$4 sm:$0xff]   ;;  %v1147_v33 = vld [vmem:[%s1283_s15 + $0xd4] ss:$8 sps:$4 sm:$0xff]   ;;  %v1149_v34 = vld [vmem:[%s1283_s15 + $0xd0] ss:$8 sps:$4 sm:$0xff]  }
  0x31   : > { %673 = vmatpush1.bf16.msra.mxu0 %v1116_v10  ;;  %1053 = vmatpush1.bf16.msra.mxu1 %v1116_v10  ;;  %v1150_v35 = vld [vmem:[%s1283_s15 + $0xe4] ss:$8 sps:$4 sm:$0xff]   ;;  %v1152_v36 = vld [vmem:[%s1283_s15 + $0xe0] ss:$8 sps:$4 sm:$0xff]   ;;  %v1153_v37 = vld [vmem:[%s1283_s15 + $0xf4] ss:$8 sps:$4 sm:$0xff]  }
  0x32   : > { %674 = vmatprep.subr.bf16.mxu0 %v1117_v11  ;;  %1038 = vmatprep.subr.bf16.mxu1 %v1117_v11  ;;  %v1155_v38 = vld [vmem:[%s1283_s15 + $0xf0] ss:$8 sps:$4 sm:$0xff]   ;;  %v1156_v39 = vld [vmem:[%s1285_s16] ss:$8 sps:$4 sm:$0xff]   ;;  %p1028_p11 = scmp.ne.s32.totalorder %s1192_s20, 8 }
  0x33   : > { %v1159_v40 = vld [vmem:[%s1285_s16 + $0x10] ss:$8 sps:$4 sm:$0xff]   ;;  %v444_v41 = vld [vmem:[#allocation2] sm:$0xff]  ;;  %v445_v43 = vld [vmem:[#allocation2 + $0x8] sm:$0xff]  ;;  %v751_v1 = vlaneseq (!%p1028_p11) }
  0x34   : > { %v448_v42 = vld [vmem:[#allocation2 + $0x20] sm:$0xff]  ;;  %v449_v44 = vld [vmem:[#allocation2 + $0x28] sm:$0xff]  ;;  %v446_v47 = vld [vmem:[#allocation2 + $0x10] sm:$0xff] }
  0x35   : > { %675 = vmatpush1.bf16.msra.mxu0 %v1119_v12  ;;  %1054 = vmatpush1.bf16.msra.mxu1 %v1119_v12  ;;  %v450_v48 = vld [vmem:[#allocation2 + $0x30] sm:$0xff]  ;;  %v447_v53 = vld [vmem:[#allocation2 + $0x18] sm:$0xff]  ;;  %v752_v2 = vshrl.u32 (!%p1028_p11), %v751_v1, 7  ;;  %v749_v3 = vld [vmem:[%s1396_s2] sm:$0x3] (!%p1028_p11) }
  0x36   : > { %676 = vmatprep.subr.bf16.mxu0 %v1120_v13  ;;  %1039 = vmatprep.subr.bf16.mxu1 %v1120_v13  ;;  %v451_v54 = vld [vmem:[#allocation2 + $0x38] sm:$0xff]  ;;  %v769_v4 = vld [vmem:[%s1397_s3] sm:$0x3] (!%p1028_p11) }
  0x37   : > { %v753_v6 = vsub.s32 (!%p1028_p11), 0, %v752_v2  ;;  %v757_v8 = vsub.s32 (!%p1028_p11), 1, %v752_v2  ;;  %v789_v20 = vld [vmem:[%s1398_s4] sm:$0xff] (!%p1028_p11) }
  0x39   : > { %677 = vmatpush1.bf16.msra.mxu0 %v1122_v14  ;;  %1055 = vmatpush1.bf16.msra.mxu1 %v1122_v14  ;;  %v754_v12 = vrot.slane (!%p1028_p11), %v749_v3, %v753_v6  ;;  %v774_v13 = vrot.slane (!%p1028_p11), %v769_v4, %v753_v6  ;;  %v758_v14 = vrot.slane (!%p1028_p11), %v749_v3, %v757_v8 }
  0x3a   : > { %678 = vmatprep.subr.bf16.mxu0 %v1123_v15  ;;  %1040 = vmatprep.subr.bf16.mxu1 %v1123_v15  ;;  %v778_v15 = vrot.slane (!%p1028_p11), %v769_v4, %v757_v8 }
  0x3d   : > { %679 = vmatpush1.bf16.msra.mxu0 %v1125_v16  ;;  %1056 = vmatpush1.bf16.msra.mxu1 %v1125_v16 }
  0x3e   : > { %680 = vmatprep.subr.bf16.mxu0 %v1126_v17  ;;  %1041 = vmatprep.subr.bf16.mxu1 %v1126_v17 }
  0x41   : > { %681 = vmatpush1.bf16.msra.mxu0 %v1128_v19  ;;  %1057 = vmatpush1.bf16.msra.mxu1 %v1128_v19 }
  0x42   : > { %682 = vmatprep.subr.bf16.mxu0 %v1129_v21  ;;  %1042 = vmatprep.subr.bf16.mxu1 %v1129_v21 }
  0x45   : > { %683 = vmatpush1.bf16.msra.mxu0 %v1131_v22  ;;  %1058 = vmatpush1.bf16.msra.mxu1 %v1131_v22  ;;  %v790_v22 = vld [vmem:[%s1398_s4 + $0x8] sm:$0xff] (!%p1028_p11) }
  0x46   : > { %684 = vmatprep.subr.bf16.mxu0 %v1132_v23  ;;  %1043 = vmatprep.subr.bf16.mxu1 %v1132_v23 }
  0x49   : > { %685 = vmatpush1.bf16.msra.mxu0 %v1134_v24  ;;  %1059 = vmatpush1.bf16.msra.mxu1 %v1134_v24 }
  0x4a   : > { %686 = vmatprep.subr.bf16.mxu0 %v1135_v25  ;;  %1044 = vmatprep.subr.bf16.mxu1 %v1135_v25  ;;  %v791_v25 = vld [vmem:[%s1398_s4 + $0x10] sm:$0xff] (!%p1028_p11) }
  0x4d   : > { %687 = vmatpush1.bf16.msra.mxu0 %v1137_v26  ;;  %1060 = vmatpush1.bf16.msra.mxu1 %v1137_v26  ;;  %v792_v26 = vld [vmem:[%s1398_s4 + $0x18] sm:$0xff] (!%p1028_p11) }
  0x4e   : > { %688 = vmatprep.subr.bf16.mxu0 %v1138_v27  ;;  %1045 = vmatprep.subr.bf16.mxu1 %v1138_v27 }
  0x51   : > { %689 = vmatpush1.bf16.msra.mxu0 %v1140_v28  ;;  %1061 = vmatpush1.bf16.msra.mxu1 %v1140_v28  ;;  %v793_v28 = vld [vmem:[%s1398_s4 + $0x20] sm:$0xff] (!%p1028_p11) }
  0x52   : > { %690 = vmatprep.subr.bf16.mxu0 %v1141_v29  ;;  %1046 = vmatprep.subr.bf16.mxu1 %v1141_v29 }
  0x55   : > { %691 = vmatpush1.bf16.msra.mxu0 %v1143_v30  ;;  %1062 = vmatpush1.bf16.msra.mxu1 %v1143_v30 }
  0x56   : > { %692 = vmatprep.subr.bf16.mxu0 %v1144_v31  ;;  %1047 = vmatprep.subr.bf16.mxu1 %v1144_v31 }
  0x59   : > { %693 = vmatpush1.bf16.msra.mxu0 %v1146_v32  ;;  %1063 = vmatpush1.bf16.msra.mxu1 %v1146_v32 }
  0x5a   : > { %694 = vmatprep.subr.bf16.mxu0 %v1147_v33  ;;  %1048 = vmatprep.subr.bf16.mxu1 %v1147_v33 }
  0x5d   : > { %695 = vmatpush1.bf16.msra.mxu0 %v1149_v34  ;;  %1064 = vmatpush1.bf16.msra.mxu1 %v1149_v34 }
  0x5e   : > { %696 = vmatprep.subr.bf16.mxu0 %v1150_v35  ;;  %1049 = vmatprep.subr.bf16.mxu1 %v1150_v35 }
  0x61   : > { %697 = vmatpush1.bf16.msra.mxu0 %v1152_v36  ;;  %1065 = vmatpush1.bf16.msra.mxu1 %v1152_v36  ;;  %v794_v36 = vld [vmem:[%s1398_s4 + $0x28] sm:$0xff] (!%p1028_p11) }
  0x62   : > { %698 = vmatprep.subr.bf16.mxu0 %v1153_v37  ;;  %1050 = vmatprep.subr.bf16.mxu1 %v1153_v37  ;;  %v795_v37 = vld [vmem:[%s1398_s4 + $0x30] sm:$0xff] (!%p1028_p11) }
  0x65   : > { %699 = vmatpush1.bf16.msra.mxu0 %v1155_v38  ;;  %1066 = vmatpush1.bf16.msra.mxu1 %v1155_v38  ;;  %v796_v38 = vld [vmem:[%s1398_s4 + $0x38] sm:$0xff] (!%p1028_p11) }
  0x68   : > { %701 = vmatmul.mubr.bf16.vlgmr.msra.gmra.mrb[0].mxu0 %v1156_v39  ;;  %711 = vmatmul.mubr.bf16.vlgmr.msra.gmra.mrb[0].mxu1 %v1159_v40 }
 0x13b   : > { %v702_v45 = vpop.f32.mrb[0].mxu0  ;;  %v712_v46 = vpop.f32.mrb[0].mxu1  ;;  %740 = sbr.rel (%p1028_p11) target bundleno = 339 (0x153), region = 86 }
 0x13c   : > { %v721_v49 = vadd.f32 %v702_v45, %v444_v41  ;;  %v725_v50 = vadd.f32 %v712_v46, %v448_v42  ;;  %v704_v51 = vpop.f32.mrb[1].mxu0  ;;  %v714_v52 = vpop.f32.mrb[1].mxu1 }
 0x13d   : > { %v722_v55 = vadd.f32 %v704_v51, %v445_v43  ;;  %v726_v56 = vadd.f32 %v714_v52, %v449_v44  ;;  %v706_v57 = vpop.f32.mrb[2].mxu0  ;;  %v716_v58 = vpop.f32.mrb[2].mxu1 }
 0x13e   : > { %729 = vst [vmem:[#allocation2] sm:$0xff] %v721_v49  ;;  %733 = vst [vmem:[#allocation2 + $0x20] sm:$0xff] %v725_v50  ;;  %v723_v59 = vadd.f32 %v706_v57, %v446_v47  ;;  %v727_v60 = vadd.f32 %v716_v58, %v450_v48  ;;  %v708_v61 = vpop.f32.mrb[3].mxu0  ;;  %v718_v62 = vpop.f32.mrb[3].mxu1 }
 0x13f   : > { %730 = vst [vmem:[#allocation2 + $0x8] sm:$0xff] %v722_v55  ;;  %734 = vst [vmem:[#allocation2 + $0x28] sm:$0xff] %v726_v56  ;;  %v724_v63 = vadd.f32 %v708_v61, %v447_v53  ;;  %v728_v0 = vadd.f32 %v718_v62, %v451_v54 }
 0x140   : > { %731 = vst [vmem:[#allocation2 + $0x10] sm:$0xff] %v723_v59  ;;  %735 = vst [vmem:[#allocation2 + $0x30] sm:$0xff] %v727_v60 }
 0x141   : > { %732 = vst [vmem:[#allocation2 + $0x18] sm:$0xff] %v724_v63  ;;  %736 = vst [vmem:[#allocation2 + $0x38] sm:$0xff] %v728_v0 }
 0x145   : > { %v741_v5 = vld [vmem:[#allocation2] sm:$0xff] }
 0x146   : > { %v742_v7 = vld [vmem:[#allocation2 + $0x8] sm:$0xff]  ;;  %v745_v11 = vld [vmem:[#allocation2 + $0x20] sm:$0xff]  ;;  %v761_v19 = vmul.f32 %v754_v12, %v741_v5 }
 0x147   : > { %v743_v9 = vld [vmem:[#allocation2 + $0x10] sm:$0xff]  ;;  %v746_v16 = vld [vmem:[#allocation2 + $0x28] sm:$0xff]  ;;  %v762_v21 = vmul.f32 %v758_v14, %v742_v7  ;;  %v765_v27 = vmul.f32 %v754_v12, %v745_v11 }
 0x148   : > { %v744_v10 = vld [vmem:[#allocation2 + $0x18] sm:$0xff]  ;;  %v747_v17 = vld [vmem:[#allocation2 + $0x30] sm:$0xff]  ;;  %v763_v23 = vmul.f32 %v754_v12, %v743_v9  ;;  %v766_v29 = vmul.f32 %v758_v14, %v746_v16  ;;  %v781_v32 = vadd.f32 %v774_v13, %v761_v19 }
 0x149   : > { %v748_v18 = vld [vmem:[#allocation2 + $0x38] sm:$0xff]  ;;  %v764_v24 = vmul.f32 %v758_v14, %v744_v10  ;;  %v767_v30 = vmul.f32 %v754_v12, %v747_v17  ;;  %v782_v33 = vadd.f32 %v778_v15, %v762_v21  ;;  %v785_v39 = vadd.f32 %v774_v13, %v765_v27 }
 0x14a   : > { %v768_v31 = vmul.f32 %v758_v14, %v748_v18  ;;  %v783_v34 = vadd.f32 %v774_v13, %v763_v23  ;;  %v786_v40 = vadd.f32 %v778_v15, %v766_v29  ;;  %v797_v43 = vadd.f32 %v789_v20, %v781_v32 }
 0x14b   : > { %v784_v35 = vadd.f32 %v778_v15, %v764_v24  ;;  %v787_v41 = vadd.f32 %v774_v13, %v767_v30  ;;  %v798_v44 = vadd.f32 %v790_v22, %v782_v33  ;;  %v801_v47 = vadd.f32 %v793_v28, %v785_v39 }
 0x14c   : > { %v788_v42 = vadd.f32 %v778_v15, %v768_v31  ;;  %v799_v45 = vadd.f32 %v791_v25, %v783_v34  ;;  %v802_v48 = vadd.f32 %v794_v36, %v786_v40  ;;  %v805_v51 = vmax.f32 %v797_v43, 0.0 }
 0x14d   : > { %v800_v46 = vadd.f32 %v792_v26, %v784_v35  ;;  %v803_v49 = vadd.f32 %v795_v37, %v787_v41  ;;  %v806_v52 = vmax.f32 %v798_v44, 0.0  ;;  %v809_v55 = vmax.f32 %v801_v47, 0.0 }
 0x14e   : > { %v804_v50 = vadd.f32 %v796_v38, %v788_v42  ;;  %v807_v53 = vmax.f32 %v799_v45, 0.0  ;;  %v810_v56 = vmax.f32 %v802_v48, 0.0  ;;  %813 = vst [vmem:[%s1399_s5] sm:$0xff] %v805_v51 }
 0x14f   : > { %v808_v54 = vmax.f32 %v800_v46, 0.0  ;;  %v811_v57 = vmax.f32 %v803_v49, 0.0  ;;  %814 = vst [vmem:[%s1399_s5 + $0x8] sm:$0xff] %v806_v52  ;;  %817 = vst [vmem:[%s1399_s5 + $0x20] sm:$0xff] %v809_v55 }
 0x150   : > { %v812_v58 = vmax.f32 %v804_v50, 0.0  ;;  %815 = vst [vmem:[%s1399_s5 + $0x10] sm:$0xff] %v807_v53  ;;  %818 = vst [vmem:[%s1399_s5 + $0x28] sm:$0xff] %v810_v56 }
 0x151   : > { %816 = vst [vmem:[%s1399_s5 + $0x18] sm:$0xff] %v808_v54  ;;  %819 = vst [vmem:[%s1399_s5 + $0x30] sm:$0xff] %v811_v57 }
 0x152   : > { %820 = vst [vmem:[%s1399_s5 + $0x38] sm:$0xff] %v812_v58 }
 0x153 PF: > { %s15_s22 = sadd.s32 1, %s1200_s22   ;;  %s1400_s18 = smov %s1188_s19 }
 0x154   : > { %p12_p12 = scmp.ge.s32.totalorder %s15_s22, 11   ;;  %s1401_s19 = smov %s1268_s26 }
 0x155   : > { %s1402_s20 = smov %s1196_s21  ;;  %s1403_s21 = smov %s1405_s23 }
 0x156   :  { %14 = sbr.rel (!%p12_p12) target bundleno = 3 (0x3), region = 133 }

// kernel: resnet_forward.34
= control target key start
LH: loop header
LB: loop body
LE: loop exit
PB: predicated region body
PF: predicated region fallthrough
CT: control target
= control target key end

     0   :  { %s1122_s15 = smov 0   ;;  %s1124_s16 = smov 0   ;;  %s1259_s0 = inlined_call_operand.vmem [shape: bf16[32,2304], index: 0, kind: input, shape index: {}]   ;;  %s1260_s1 = inlined_call_operand.vmem [shape: bf16[2304,256], index: 1, kind: input, shape index: {}]   ;;  %s1261_s2 = inlined_call_operand.vmem [shape: f32[1,256], index: 2, kind: input, shape index: {}]   ;;  %s1262_s3 = inlined_call_operand.vmem [shape: f32[1,256], index: 3, kind: input, shape index: {}]   ;;  %s1263_s4 = inlined_call_operand.vmem [shape: f32[32,256], index: 4, kind: output, shape index: {}]  }
   0x1   :  { %s1126_s17 = smov 0   ;;  %s1128_s18 = smov 0  }
   0x2   :  { %s1130_s19 = smov 0  }
   0x3 LB: > { %s26_s20 = sadd.s32 1, %s1090_s18  ;;  %p49_p1 = scmp.ne.s32.totalorder %s1082_s16, %s1078_s15  ;;  %s1094_s19 = sphi %s1130_s19, %s14_s19   ;;  %s1090_s18 = sphi %s1128_s18, %s1267_s18   ;;  %s1086_s17 = sphi %s1126_s17, %s1266_s17   ;;  %s1082_s16 = sphi %s1124_s16, %s1265_s16   ;;  %s1078_s15 = sphi %s1122_s15, %s1264_s15  }
   0x4   : > { %p27_p0 = scmp.ge.s32.totalorder %s26_s20, 9  ;;  %p50_p2 = scmp.eq.s32.totalorder %s1094_s19, 0 }
   0x5   : > { %s42_s22 = sadd.s32 1, %s1082_s16  ;;  %p876_p5 = scmp.ge.s32.totalorder %s1094_s19, 9 }
   0x6   : > { %s1269_s20 = smov (%p27_p0, %s26_s20), 0  ;;  %p51_p3 = por %p50_p2, %p49_p1 }
   0x7   : > { %s38_s21 = ssub.s32 %s1090_s18, %s1269_s20  ;;  %199 = sbr.rel (%p876_p5) target bundleno = 21 (0x15), region = 24 }
   0x8   : > { %p40_p4 = scmp.eq.s32.totalorder %s38_s21, 0 }
   0xa   : > { %s1157_s23 = scalar_select %p40_p4, %s1082_s16, %s42_s22  }
   0xe   : > { %202 = sbr.rel (!%p51_p3) target bundleno = 21 (0x15), region = 28  ;;  %s204_s24 = sand.u32 (%p51_p3), 1, %s1082_s16  }
   0xf   : > { %s927_s25 = sshll.u32 (%p51_p3), %s1090_s18, 3  ;;  %s877_s26 = sshll.u32 (%p51_p3), %s204_s24, 5 }
  0x10   : > { %s212_s29 = scalar_lea.vmem (%p51_p3), %s1259_s0, %s927_s25  ;;  %s206_s30 = scalar_lea.vmem (%p51_p3), [#allocation3], %s877_s26 }
  0x11   : > { %v246_v0 = vld [vmem:[%s212_s29] sm:$0xff] (%p51_p3)  ;;  %v248_v1 = vld [vmem:[%s212_s29 + $0x48] sm:$0xff] (%p51_p3)  ;;  %v250_v2 = vld [vmem:[%s212_s29 + $0x90] sm:$0xff] (%p51_p3) }
  0x12   : > { %247 = vst [vmem:[%s206_s30] sm:$0xff] (%p51_p3), %v246_v0  ;;  %249 = vst [vmem:[%s206_s30 + $0x8] sm:$0xff] (%p51_p3), %v248_v1  ;;  %v252_v3 = vld [vmem:[%s212_s29 + $0xd8] sm:$0xff] (%p51_p3) }
  0x13   : > { %251 = vst [vmem:[%s206_s30 + $0x10] sm:$0xff] (%p51_p3), %v250_v2  ;;  %253 = vst [vmem:[%s206_s30 + $0x18] sm:$0xff] (%p51_p3), %v252_v3 }
  0x15 PF: > { %p880_p6 = scmp.ge.s32.totalorder %s1094_s19, 1  ;;  %p273_p7 = scmp.lt.s32.totalorder %s1094_s19, 10 }
  0x17   : > { %p274_p8 = pnand %p880_p6, %p273_p7 }
  0x18   : > { %s280_s5 = sand.u32 (!%p274_p8), 1, %s1078_s15   ;;  %s882_s6 = sshll.u32 (!%p274_p8), %s1086_s17, 5 }
  0x19   : > { %277 = sbr.rel (%p274_p8) target bundleno = 337 (0x151), region = 70  ;;  %s881_s7 = sshll.u32 (!%p274_p8), %s280_s5, 5 }
  0x1a   : > { %p332_p9 = scmp.lt.s32.totalorder (!%p274_p8), %s882_s6, 287  ;;  %s1174_s12 = scalar_lea.vmem (!%p274_p8), [#allocation3], %s881_s7 }
  0x1b   : > { %p885_p10 = scmp.ne.s32.totalorder (!%p274_p8), %s1086_s17, 0 }
  0x20   : > { %s1271_s6 = smov (!%p332_p9, %s882_s6), 287  ;;  %367 = sbr.rel (%p885_p10) target bundleno = 39 (0x27), region = 78 }
  0x21   : > { %s928_s8 = sshll.u32 %s1271_s6, 3  ;;  %v1096_v4 = vmov (!%p885_p10), 0.0  }
  0x22   : > { %s1172_s11 = scalar_lea.vmem %s1260_s1, %s928_s8  ;;  %368 = vst [vmem:[#allocation2] sm:$0xff] (!%p885_p10), %v1096_v4  ;;  %369 = vst [vmem:[#allocation2 + $0x8] sm:$0xff] (!%p885_p10), %v1096_v4 }
  0x23   : > { %370 = vst [vmem:[#allocation2 + $0x10] sm:$0xff] (!%p885_p10), %v1096_v4  ;;  %371 = vst [vmem:[#allocation2 + $0x18] sm:$0xff] (!%p885_p10), %v1096_v4 }
  0x24   : > { %372 = vst [vmem:[#allocation2 + $0x20] sm:$0xff] (!%p885_p10), %v1096_v4  ;;  %373 = vst [vmem:[#allocation2 + $0x28] sm:$0xff] (!%p885_p10), %v1096_v4 }
  0x25   : > { %374 = vst [vmem:[#allocation2 + $0x30] sm:$0xff] (!%p885_p10), %v1096_v4  ;;  %375 = vst [vmem:[#allocation2 + $0x38] sm:$0xff] (!%p885_p10), %v1096_v4 }
  0x27 PF: > { %v1002_v5 = vld [vmem:[%s1172_s11 + $0x4] ss:$8 sps:$4 sm:$0xff]   ;;  %v1004_v6 = vld [vmem:[%s1172_s11] ss:$8 sps:$4 sm:$0xff]   ;;  %v1005_v7 = vld [vmem:[%s1172_s11 + $0x14] ss:$8 sps:$4 sm:$0xff]  }
  0x28   : > { %600 = vmatprep.subr.bf16.mxu0 %v1002_v5  ;;  %929 = vmatprep.subr.bf16.mxu1 %v1002_v5  ;;  %v1007_v8 = vld [vmem:[%s1172_s11 + $0x10] ss:$8 sps:$4 sm:$0xff]   ;;  %v1008_v9 = vld [vmem:[%s1172_s11 + $0x24] ss:$8 sps:$4 sm:$0xff]   ;;  %v1010_v10 = vld [vmem:[%s1172_s11 + $0x20] ss:$8 sps:$4 sm:$0xff]  }
  0x29   : > { %601 = vmatpush1.bf16.msra.mxu0 %v1004_v6  ;;  %945 = vmatpush1.bf16.msra.mxu1 %v1004_v6  ;;  %v1011_v11 = vld [vmem:[%s1172_s11 + $0x34] ss:$8 sps:$4 sm:$0xff]   ;;  %v1013_v12 = vld [vmem:[%s1172_s11 + $0x30] ss:$8 sps:$4 sm:$0xff]   ;;  %v1014_v13 = vld [vmem:[%s1172_s11 + $0x44] ss:$8 sps:$4 sm:$0xff]  }
  0x2a   : > { %602 = vmatprep.subr.bf16.mxu0 %v1005_v7  ;;  %930 = vmatprep.subr.bf16.mxu1 %v1005_v7  ;;  %v1016_v14 = vld [vmem:[%s1172_s11 + $0x40] ss:$8 sps:$4 sm:$0xff]   ;;  %v1017_v15 = vld [vmem:[%s1172_s11 + $0x54] ss:$8 sps:$4 sm:$0xff]   ;;  %v1019_v16 = vld [vmem:[%s1172_s11 + $0x50] ss:$8 sps:$4 sm:$0xff]  }
  0x2b   : > { %v1020_v17 = vld [vmem:[%s1172_s11 + $0x64] ss:$8 sps:$4 sm:$0xff]   ;;  %v1022_v19 = vld [vmem:[%s1172_s11 + $0x60] ss:$8 sps:$4 sm:$0xff]   ;;  %v1055_v20 = vld [vmem:[%s1174_s12 + $0x14] ss:$8 sps:$4 sm:$0xff]  }
  0x2c   : > { %v1052_v18 = vld [vmem:[%s1174_s12 + $0x4] ss:$8 sps:$4 sm:$0xff]   ;;  %v1023_v21 = vld [vmem:[%s1172_s11 + $0x74] ss:$8 sps:$4 sm:$0xff]   ;;  %642 = vmatprep.mubr.bf16.mxu1 %v1055_v20  ;;  %v1025_v22 = vld [vmem:[%s1172_s11 + $0x70] ss:$8 sps:$4 sm:$0xff]  }
  0x2d   : > { %603 = vmatpush1.bf16.msra.mxu0 %v1007_v8  ;;  %946 = vmatpush1.bf16.msra.mxu1 %v1007_v8  ;;  %v1026_v23 = vld [vmem:[%s1172_s11 + $0x84] ss:$8 sps:$4 sm:$0xff]   ;;  %v1028_v24 = vld [vmem:[%s1172_s11 + $0x80] ss:$8 sps:$4 sm:$0xff]   ;;  %v1029_v25 = vld [vmem:[%s1172_s11 + $0x94] ss:$8 sps:$4 sm:$0xff]  }
  0x2e   : > { %604 = vmatprep.subr.bf16.mxu0 %v1008_v9  ;;  %931 = vmatprep.subr.bf16.mxu1 %v1008_v9  ;;  %v1031_v26 = vld [vmem:[%s1172_s11 + $0x90] ss:$8 sps:$4 sm:$0xff]   ;;  %v1032_v27 = vld [vmem:[%s1172_s11 + $0xa4] ss:$8 sps:$4 sm:$0xff]   ;;  %v1034_v28 = vld [vmem:[%s1172_s11 + $0xa0] ss:$8 sps:$4 sm:$0xff]  }
  0x2f   : > { %632 = vmatprep.mubr.bf16.mxu0 %v1052_v18  ;;  %v1035_v29 = vld [vmem:[%s1172_s11 + $0xb4] ss:$8 sps:$4 sm:$0xff]   ;;  %v1037_v30 = vld [vmem:[%s1172_s11 + $0xb0] ss:$8 sps:$4 sm:$0xff]   ;;  %v1038_v31 = vld [vmem:[%s1172_s11 + $0xc4] ss:$8 sps:$4 sm:$0xff]  }
  0x30   : > { %v1040_v32 = vld [vmem:[%s1172_s11 + $0xc0] ss:$8 sps:$4 sm:$0xff]   ;;  %v1041_v33 = vld [vmem:[%s1172_s11 + $0xd4] ss:$8 sps:$4 sm:$0xff]   ;;  %v1043_v34 = vld [vmem:[%s1172_s11 + $0xd0] ss:$8 sps:$4 sm:$0xff]  }
  0x31   : > { %605 = vmatpush1.bf16.msra.mxu0 %v1010_v10  ;;  %947 = vmatpush1.bf16.msra.mxu1 %v1010_v10  ;;  %v1044_v35 = vld [vmem:[%s1172_s11 + $0xe4] ss:$8 sps:$4 sm:$0xff]   ;;  %v1046_v36 = vld [vmem:[%s1172_s11 + $0xe0] ss:$8 sps:$4 sm:$0xff]   ;;  %v1047_v37 = vld [vmem:[%s1172_s11 + $0xf4] ss:$8 sps:$4 sm:$0xff]  }
  0x32   : > { %606 = vmatprep.subr.bf16.mxu0 %v1011_v11  ;;  %932 = vmatprep.subr.bf16.mxu1 %v1011_v11  ;;  %v1049_v38 = vld [vmem:[%s1172_s11 + $0xf0] ss:$8 sps:$4 sm:$0xff]   ;;  %v1050_v39 = vld [vmem:[%s1174_s12] ss:$8 sps:$4 sm:$0xff]   ;;  %p922_p11 = scmp.ne.s32.totalorder %s1086_s17, 8 }
  0x33   : > { %v1053_v40 = vld [vmem:[%s1174_s12 + $0x10] ss:$8 sps:$4 sm:$0xff]   ;;  %v376_v41 = vld [vmem:[#allocation2] sm:$0xff]  ;;  %v377_v43 = vld [vmem:[#allocation2 + $0x8] sm:$0xff]  ;;  %v683_v1 = vlaneseq (!%p922_p11) }
  0x34   : > { %v380_v42 = vld [vmem:[#allocation2 + $0x20] sm:$0xff]  ;;  %v381_v44 = vld [vmem:[#allocation2 + $0x28] sm:$0xff]  ;;  %v378_v47 = vld [vmem:[#allocation2 + $0x10] sm:$0xff] }
  0x35   : > { %607 = vmatpush1.bf16.msra.mxu0 %v1013_v12  ;;  %948 = vmatpush1.bf16.msra.mxu1 %v1013_v12  ;;  %v382_v48 = vld [vmem:[#allocation2 + $0x30] sm:$0xff]  ;;  %v379_v53 = vld [vmem:[#allocation2 + $0x18] sm:$0xff]  ;;  %v684_v2 = vshrl.u32 (!%p922_p11), %v683_v1, 7  ;;  %v681_v3 = vld [vmem:[%s1261_s2] sm:$0x3] (!%p922_p11) }
  0x36   : > { %608 = vmatprep.subr.bf16.mxu0 %v1014_v13  ;;  %933 = vmatprep.subr.bf16.mxu1 %v1014_v13  ;;  %v383_v54 = vld [vmem:[#allocation2 + $0x38] sm:$0xff]  ;;  %v701_v4 = vld [vmem:[%s1262_s3] sm:$0x3] (!%p922_p11) }
  0x37   : > { %v685_v6 = vsub.s32 (!%p922_p11), 0, %v684_v2  ;;  %v689_v8 = vsub.s32 (!%p922_p11), 1, %v684_v2 }
  0x39   : > { %609 = vmatpush1.bf16.msra.mxu0 %v1016_v14  ;;  %949 = vmatpush1.bf16.msra.mxu1 %v1016_v14  ;;  %v686_v12 = vrot.slane (!%p922_p11), %v681_v3, %v685_v6  ;;  %v706_v13 = vrot.slane (!%p922_p11), %v701_v4, %v685_v6  ;;  %v690_v14 = vrot.slane (!%p922_p11), %v681_v3, %v689_v8 }
  0x3a   : > { %610 = vmatprep.subr.bf16.mxu0 %v1017_v15  ;;  %934 = vmatprep.subr.bf16.mxu1 %v1017_v15  ;;  %v710_v15 = vrot.slane (!%p922_p11), %v701_v4, %v689_v8 }
  0x3d   : > { %611 = vmatpush1.bf16.msra.mxu0 %v1019_v16  ;;  %950 = vmatpush1.bf16.msra.mxu1 %v1019_v16 }
  0x3e   : > { %612 = vmatprep.subr.bf16.mxu0 %v1020_v17  ;;  %935 = vmatprep.subr.bf16.mxu1 %v1020_v17 }
  0x41   : > { %613 = vmatpush1.bf16.msra.mxu0 %v1022_v19  ;;  %951 = vmatpush1.bf16.msra.mxu1 %v1022_v19 }
  0x42   : > { %614 = vmatprep.subr.bf16.mxu0 %v1023_v21  ;;  %936 = vmatprep.subr.bf16.mxu1 %v1023_v21 }
  0x45   : > { %615 = vmatpush1.bf16.msra.mxu0 %v1025_v22  ;;  %952 = vmatpush1.bf16.msra.mxu1 %v1025_v22 }
  0x46   : > { %616 = vmatprep.subr.bf16.mxu0 %v1026_v23  ;;  %937 = vmatprep.subr.bf16.mxu1 %v1026_v23 }
  0x49   : > { %617 = vmatpush1.bf16.msra.mxu0 %v1028_v24  ;;  %953 = vmatpush1.bf16.msra.mxu1 %v1028_v24 }
  0x4a   : > { %618 = vmatprep.subr.bf16.mxu0 %v1029_v25  ;;  %938 = vmatprep.subr.bf16.mxu1 %v1029_v25 }
  0x4d   : > { %619 = vmatpush1.bf16.msra.mxu0 %v1031_v26  ;;  %954 = vmatpush1.bf16.msra.mxu1 %v1031_v26 }
  0x4e   : > { %620 = vmatprep.subr.bf16.mxu0 %v1032_v27  ;;  %939 = vmatprep.subr.bf16.mxu1 %v1032_v27 }
  0x51   : > { %621 = vmatpush1.bf16.msra.mxu0 %v1034_v28  ;;  %955 = vmatpush1.bf16.msra.mxu1 %v1034_v28 }
  0x52   : > { %622 = vmatprep.subr.bf16.mxu0 %v1035_v29  ;;  %940 = vmatprep.subr.bf16.mxu1 %v1035_v29 }
  0x55   : > { %623 = vmatpush1.bf16.msra.mxu0 %v1037_v30  ;;  %956 = vmatpush1.bf16.msra.mxu1 %v1037_v30 }
  0x56   : > { %624 = vmatprep.subr.bf16.mxu0 %v1038_v31  ;;  %941 = vmatprep.subr.bf16.mxu1 %v1038_v31 }
  0x59   : > { %625 = vmatpush1.bf16.msra.mxu0 %v1040_v32  ;;  %957 = vmatpush1.bf16.msra.mxu1 %v1040_v32 }
  0x5a   : > { %626 = vmatprep.subr.bf16.mxu0 %v1041_v33  ;;  %942 = vmatprep.subr.bf16.mxu1 %v1041_v33 }
  0x5d   : > { %627 = vmatpush1.bf16.msra.mxu0 %v1043_v34  ;;  %958 = vmatpush1.bf16.msra.mxu1 %v1043_v34 }
  0x5e   : > { %628 = vmatprep.subr.bf16.mxu0 %v1044_v35  ;;  %943 = vmatprep.subr.bf16.mxu1 %v1044_v35 }
  0x61   : > { %629 = vmatpush1.bf16.msra.mxu0 %v1046_v36  ;;  %959 = vmatpush1.bf16.msra.mxu1 %v1046_v36 }
  0x62   : > { %630 = vmatprep.subr.bf16.mxu0 %v1047_v37  ;;  %944 = vmatprep.subr.bf16.mxu1 %v1047_v37 }
  0x65   : > { %631 = vmatpush1.bf16.msra.mxu0 %v1049_v38  ;;  %960 = vmatpush1.bf16.msra.mxu1 %v1049_v38 }
  0x68   : > { %633 = vmatmul.mubr.bf16.vlgmr.msra.gmra.mrb[0].mxu0 %v1050_v39  ;;  %643 = vmatmul.mubr.bf16.vlgmr.msra.gmra.mrb[0].mxu1 %v1053_v40 }
 0x13b   : > { %v634_v45 = vpop.f32.mrb[0].mxu0  ;;  %v644_v46 = vpop.f32.mrb[0].mxu1  ;;  %672 = sbr.rel (%p922_p11) target bundleno = 337 (0x151), region = 82 }
 0x13c   : > { %v653_v49 = vadd.f32 %v634_v45, %v376_v41  ;;  %v657_v50 = vadd.f32 %v644_v46, %v380_v42  ;;  %v636_v51 = vpop.f32.mrb[1].mxu0  ;;  %v646_v52 = vpop.f32.mrb[1].mxu1 }
 0x13d   : > { %v654_v55 = vadd.f32 %v636_v51, %v377_v43  ;;  %v658_v56 = vadd.f32 %v646_v52, %v381_v44  ;;  %v638_v57 = vpop.f32.mrb[2].mxu0  ;;  %v648_v58 = vpop.f32.mrb[2].mxu1 }
 0x13e   : > { %661 = vst [vmem:[#allocation2] sm:$0xff] %v653_v49  ;;  %665 = vst [vmem:[#allocation2 + $0x20] sm:$0xff] %v657_v50  ;;  %v655_v59 = vadd.f32 %v638_v57, %v378_v47  ;;  %v659_v60 = vadd.f32 %v648_v58, %v382_v48  ;;  %v640_v61 = vpop.f32.mrb[3].mxu0  ;;  %v650_v62 = vpop.f32.mrb[3].mxu1 }
 0x13f   : > { %662 = vst [vmem:[#allocation2 + $0x8] sm:$0xff] %v654_v55  ;;  %666 = vst [vmem:[#allocation2 + $0x28] sm:$0xff] %v658_v56  ;;  %v656_v63 = vadd.f32 %v640_v61, %v379_v53  ;;  %v660_v0 = vadd.f32 %v650_v62, %v383_v54 }
 0x140   : > { %663 = vst [vmem:[#allocation2 + $0x10] sm:$0xff] %v655_v59  ;;  %667 = vst [vmem:[#allocation2 + $0x30] sm:$0xff] %v659_v60 }
 0x141   : > { %664 = vst [vmem:[#allocation2 + $0x18] sm:$0xff] %v656_v63  ;;  %668 = vst [vmem:[#allocation2 + $0x38] sm:$0xff] %v660_v0 }
 0x145   : > { %v673_v5 = vld [vmem:[#allocation2] sm:$0xff] }
 0x146   : > { %v674_v7 = vld [vmem:[#allocation2 + $0x8] sm:$0xff]  ;;  %v677_v11 = vld [vmem:[#allocation2 + $0x20] sm:$0xff]  ;;  %v693_v19 = vmul.f32 %v686_v12, %v673_v5 }
 0x147   : > { %v675_v9 = vld [vmem:[#allocation2 + $0x10] sm:$0xff]  ;;  %v678_v16 = vld [vmem:[#allocation2 + $0x28] sm:$0xff]  ;;  %v694_v20 = vmul.f32 %v690_v14, %v674_v7  ;;  %v697_v23 = vmul.f32 %v686_v12, %v677_v11 }
 0x148   : > { %v676_v10 = vld [vmem:[#allocation2 + $0x18] sm:$0xff]  ;;  %v679_v17 = vld [vmem:[#allocation2 + $0x30] sm:$0xff]  ;;  %v695_v21 = vmul.f32 %v686_v12, %v675_v9  ;;  %v698_v24 = vmul.f32 %v690_v14, %v678_v16  ;;  %v713_v27 = vadd.f32 %v706_v13, %v693_v19 }
 0x149   : > { %v680_v18 = vld [vmem:[#allocation2 + $0x38] sm:$0xff]  ;;  %v696_v22 = vmul.f32 %v690_v14, %v676_v10  ;;  %v699_v25 = vmul.f32 %v686_v12, %v679_v17  ;;  %v714_v28 = vadd.f32 %v710_v15, %v694_v20  ;;  %v717_v31 = vadd.f32 %v706_v13, %v697_v23 }
 0x14a   : > { %v700_v26 = vmul.f32 %v690_v14, %v680_v18  ;;  %v715_v29 = vadd.f32 %v706_v13, %v695_v21  ;;  %v718_v32 = vadd.f32 %v710_v15, %v698_v24  ;;  %v721_v35 = vmax.f32 %v713_v27, 0.0 }
 0x14b   : > { %v716_v30 = vadd.f32 %v710_v15, %v696_v22  ;;  %v719_v33 = vadd.f32 %v706_v13, %v699_v25  ;;  %v722_v36 = vmax.f32 %v714_v28, 0.0  ;;  %v725_v39 = vmax.f32 %v717_v31, 0.0 }
 0x14c   : > { %v720_v34 = vadd.f32 %v710_v15, %v700_v26  ;;  %v723_v37 = vmax.f32 %v715_v29, 0.0  ;;  %v726_v40 = vmax.f32 %v718_v32, 0.0  ;;  %729 = vst [vmem:[%s1263_s4] sm:$0xff] %v721_v35 }
 0x14d   : > { %v724_v38 = vmax.f32 %v716_v30, 0.0  ;;  %v727_v41 = vmax.f32 %v719_v33, 0.0  ;;  %730 = vst [vmem:[%s1263_s4 + $0x8] sm:$0xff] %v722_v36  ;;  %733 = vst [vmem:[%s1263_s4 + $0x20] sm:$0xff] %v725_v39 }
 0x14e   : > { %v728_v42 = vmax.f32 %v720_v34, 0.0  ;;  %731 = vst [vmem:[%s1263_s4 + $0x10] sm:$0xff] %v723_v37  ;;  %734 = vst [vmem:[%s1263_s4 + $0x28] sm:$0xff] %v726_v40 }
 0x14f   : > { %732 = vst [vmem:[%s1263_s4 + $0x18] sm:$0xff] %v724_v38  ;;  %735 = vst [vmem:[%s1263_s4 + $0x30] sm:$0xff] %v727_v41 }
 0x150   : > { %736 = vst [vmem:[%s1263_s4 + $0x38] sm:$0xff] %v728_v42 }
 0x151 PF: > { %s14_s19 = sadd.s32 1, %s1094_s19   ;;  %s1264_s15 = smov %s1082_s16 }
 0x152   : > { %p11_p12 = scmp.ge.s32.totalorder %s14_s19, 11   ;;  %s1265_s16 = smov %s1157_s23 }
 0x153   : > { %s1266_s17 = smov %s1090_s18  ;;  %s1267_s18 = smov %s1269_s20 }
 0x154   :  { %13 = sbr.rel (!%p11_p12) target bundleno = 3 (0x3), region = 126 }

// kernel: resnet_forward.37
= control target key start
LH: loop header
LB: loop body
LE: loop exit
PB: predicated region body
PF: predicated region fallthrough
CT: control target
= control target key end

     0   :  { %s1136_s15 = smov 0   ;;  %s1138_s16 = smov 0   ;;  %s1360_s0 = inlined_call_operand.vmem [shape: bf16[8,2304], index: 0, kind: input, shape index: {}]   ;;  %s1361_s1 = inlined_call_operand.vmem [shape: bf16[2304,512], index: 1, kind: input, shape index: {}]   ;;  %s1362_s2 = inlined_call_operand.vmem [shape: f32[1,512], index: 2, kind: input, shape index: {}]   ;;  %s1363_s3 = inlined_call_operand.vmem [shape: f32[1,512], index: 3, kind: input, shape index: {}]   ;;  %s1364_s4 = inlined_call_operand.vmem [shape: f32[8,512], index: 4, kind: output, shape index: {}]  }
   0x1   :  { %s1140_s17 = smov 0   ;;  %s1142_s18 = smov 0  }
   0x2   :  { %s1144_s19 = smov 0   ;;  %s1146_s20 = smov 0  }
   0x3   :  { %s1148_s21 = smov 0  }
   0x4 LB: > { %s26_s22 = sadd.s32 1, %s1100_s19  ;;  %s29_s23 = sadd.s32 1, %s1104_s20  ;;  %s1108_s21 = sphi %s1148_s21, %s14_s21   ;;  %s1104_s20 = sphi %s1146_s20, %s1370_s20   ;;  %s1100_s19 = sphi %s1144_s19, %s1369_s19   ;;  %s1096_s18 = sphi %s1142_s18, %s1368_s18   ;;  %s1092_s17 = sphi %s1140_s17, %s1367_s17   ;;  %s1088_s16 = sphi %s1138_s16, %s1366_s16   ;;  %s1084_s15 = sphi %s1136_s15, %s1365_s15  }
   0x5   : > { %p27_p0 = scmp.ge.s32.totalorder %s26_s22, 9  ;;  %p77_p1 = scmp.ne.s32.totalorder %s1088_s16, %s1084_s15 }
   0x6   : > { %p78_p2 = scmp.eq.s32.totalorder %s1108_s21, 0  ;;  %s70_s27 = sadd.s32 1, %s1088_s16 }
   0x7   : > { %s1372_s22 = smov (%p27_p0, %s26_s22), 0  ;;  %s1374_s23 = smov (!%p27_p0, %s29_s23), %s1104_s20 }
   0x8   : > { %p79_p3 = por %p78_p2, %p77_p1  ;;  %p31_p4 = scmp.ge.s32.totalorder %s1374_s23, 2 }
   0x9   : > { %s65_s24 = ssub.s32 %s1100_s19, %s1372_s22  ;;  %p894_p6 = scmp.ge.s32.totalorder %s1108_s21, 18 }
   0xa   : > { %s1376_s23 = smov (%p31_p4, %s1374_s23), 0 }
   0xb   : > { %s66_s25 = ssub.s32 %s1104_s20, %s1376_s23  ;;  %183 = sbr.rel (%p894_p6) target bundleno = 41 (0x29), region = 16 }
   0xc   : > { %s67_s26 = sor.u32 %s66_s25, %s65_s24 }
   0xd   : > { %p68_p5 = scmp.eq.s32.totalorder %s67_s26, 0 }
   0xf   : > { %s1187_s28 = scalar_select %p68_p5, %s1088_s16, %s70_s27  }
  0x12   : > { %199 = sbr.rel (!%p79_p3) target bundleno = 41 (0x29), region = 24  ;;  %s201_s29 = sand.u32 (%p79_p3), 1, %s1088_s16  }
  0x13   : > { %s897_s30 = sshll.u32 (%p79_p3), %s1104_s20, 1  ;;  %s895_s5 = sshll.u32 (%p79_p3), %s201_s29, 8 }
  0x14   : > { %s946_s6 = sshll.u32 (%p79_p3), %s1100_s19, 7  ;;  %s1201_s12 = scalar_lea.vmem (%p79_p3), [#allocation3], %s895_s5 }
  0x15   : > { %s207_s7 = sadd.s32 (%p79_p3), %s946_s6, %s897_s30 }
  0x16   : > { %s899_s8 = sshll.u32 (%p79_p3), %s207_s7, 2 }
  0x17   : > { %s1196_s11 = scalar_lea.vmem (%p79_p3), %s1361_s1, %s899_s8 }
  0x18   : > { %v299_v0 = vld [vmem:[%s1196_s11] sm:$0xff] (%p79_p3)  ;;  %v301_v1 = vld [vmem:[%s1196_s11 + $0x10] sm:$0xff] (%p79_p3) }
  0x19   : > { %v303_v2 = vld [vmem:[%s1196_s11 + $0x20] sm:$0xff]  ;;  %300 = vst [vmem:[%s1201_s12] sm:$0xff] %v299_v0  ;;  %302 = vst [vmem:[%s1201_s12 + $0x8] sm:$0xff] %v301_v1  ;;  %v305_v3 = vld [vmem:[%s1196_s11 + $0x30] sm:$0xff] }
  0x1a   : > { %304 = vst [vmem:[%s1201_s12 + $0x10] sm:$0xff] %v303_v2  ;;  %v307_v4 = vld [vmem:[%s1196_s11 + $0x40] sm:$0xff]  ;;  %v309_v5 = vld [vmem:[%s1196_s11 + $0x50] sm:$0xff]  ;;  %306 = vst [vmem:[%s1201_s12 + $0x18] sm:$0xff] %v305_v3 }
  0x1b   : > { %308 = vst [vmem:[%s1201_s12 + $0x20] sm:$0xff] %v307_v4  ;;  %310 = vst [vmem:[%s1201_s12 + $0x28] sm:$0xff] %v309_v5  ;;  %v311_v6 = vld [vmem:[%s1196_s11 + $0x60] sm:$0xff]  ;;  %v313_v7 = vld [vmem:[%s1196_s11 + $0x70] sm:$0xff] }
  0x1c   : > { %v315_v8 = vld [vmem:[%s1196_s11 + $0x80] sm:$0xff]  ;;  %312 = vst [vmem:[%s1201_s12 + $0x30] sm:$0xff] %v311_v6  ;;  %314 = vst [vmem:[%s1201_s12 + $0x38] sm:$0xff] %v313_v7  ;;  %v317_v9 = vld [vmem:[%s1196_s11 + $0x90] sm:$0xff] }
  0x1d   : > { %316 = vst [vmem:[%s1201_s12 + $0x40] sm:$0xff] %v315_v8  ;;  %v319_v10 = vld [vmem:[%s1196_s11 + $0xa0] sm:$0xff]  ;;  %v321_v11 = vld [vmem:[%s1196_s11 + $0xb0] sm:$0xff]  ;;  %318 = vst [vmem:[%s1201_s12 + $0x48] sm:$0xff] %v317_v9 }
  0x1e   : > { %320 = vst [vmem:[%s1201_s12 + $0x50] sm:$0xff] %v319_v10  ;;  %322 = vst [vmem:[%s1201_s12 + $0x58] sm:$0xff] %v321_v11  ;;  %v323_v12 = vld [vmem:[%s1196_s11 + $0xc0] sm:$0xff]  ;;  %v325_v13 = vld [vmem:[%s1196_s11 + $0xd0] sm:$0xff] }
  0x1f   : > { %v327_v14 = vld [vmem:[%s1196_s11 + $0xe0] sm:$0xff]  ;;  %324 = vst [vmem:[%s1201_s12 + $0x60] sm:$0xff] %v323_v12  ;;  %326 = vst [vmem:[%s1201_s12 + $0x68] sm:$0xff] %v325_v13  ;;  %v329_v15 = vld [vmem:[%s1196_s11 + $0xf0] sm:$0xff] }
  0x20   : > { %328 = vst [vmem:[%s1201_s12 + $0x70] sm:$0xff] %v327_v14  ;;  %v331_v16 = vld [vmem:[%s1196_s11 + $0x100] sm:$0xff]  ;;  %v333_v17 = vld [vmem:[%s1196_s11 + $0x110] sm:$0xff]  ;;  %330 = vst [vmem:[%s1201_s12 + $0x78] sm:$0xff] %v329_v15 }
  0x21   : > { %332 = vst [vmem:[%s1201_s12 + $0x80] sm:$0xff] %v331_v16  ;;  %334 = vst [vmem:[%s1201_s12 + $0x88] sm:$0xff] %v333_v17  ;;  %v335_v18 = vld [vmem:[%s1196_s11 + $0x120] sm:$0xff]  ;;  %v337_v19 = vld [vmem:[%s1196_s11 + $0x130] sm:$0xff] }
  0x22   : > { %v339_v20 = vld [vmem:[%s1196_s11 + $0x140] sm:$0xff]  ;;  %336 = vst [vmem:[%s1201_s12 + $0x90] sm:$0xff] %v335_v18  ;;  %338 = vst [vmem:[%s1201_s12 + $0x98] sm:$0xff] %v337_v19  ;;  %v341_v21 = vld [vmem:[%s1196_s11 + $0x150] sm:$0xff] }
  0x23   : > { %340 = vst [vmem:[%s1201_s12 + $0xa0] sm:$0xff] %v339_v20  ;;  %v343_v22 = vld [vmem:[%s1196_s11 + $0x160] sm:$0xff]  ;;  %v345_v23 = vld [vmem:[%s1196_s11 + $0x170] sm:$0xff]  ;;  %342 = vst [vmem:[%s1201_s12 + $0xa8] sm:$0xff] %v341_v21 }
  0x24   : > { %344 = vst [vmem:[%s1201_s12 + $0xb0] sm:$0xff] %v343_v22  ;;  %346 = vst [vmem:[%s1201_s12 + $0xb8] sm:$0xff] %v345_v23  ;;  %v347_v24 = vld [vmem:[%s1196_s11 + $0x180] sm:$0xff]  ;;  %v349_v25 = vld [vmem:[%s1196_s11 + $0x190] sm:$0xff] }
  0x25   : > { %v351_v26 = vld [vmem:[%s1196_s11 + $0x1a0] sm:$0xff]  ;;  %348 = vst [vmem:[%s1201_s12 + $0xc0] sm:$0xff] %v347_v24  ;;  %350 = vst [vmem:[%s1201_s12 + $0xc8] sm:$0xff] %v349_v25  ;;  %v353_v27 = vld [vmem:[%s1196_s11 + $0x1b0] sm:$0xff] }
  0x26   : > { %352 = vst [vmem:[%s1201_s12 + $0xd0] sm:$0xff] %v351_v26  ;;  %v355_v28 = vld [vmem:[%s1196_s11 + $0x1c0] sm:$0xff]  ;;  %v357_v29 = vld [vmem:[%s1196_s11 + $0x1d0] sm:$0xff]  ;;  %354 = vst [vmem:[%s1201_s12 + $0xd8] sm:$0xff] %v353_v27 }
  0x27   : > { %356 = vst [vmem:[%s1201_s12 + $0xe0] sm:$0xff] %v355_v28  ;;  %358 = vst [vmem:[%s1201_s12 + $0xe8] sm:$0xff] %v357_v29  ;;  %v359_v30 = vld [vmem:[%s1196_s11 + $0x1e0] sm:$0xff]  ;;  %v361_v31 = vld [vmem:[%s1196_s11 + $0x1f0] sm:$0xff] }
  0x28   : > { %360 = vst [vmem:[%s1201_s12 + $0xf0] sm:$0xff] %v359_v30  ;;  %362 = vst [vmem:[%s1201_s12 + $0xf8] sm:$0xff] %v361_v31 }
  0x29 PF: > { %p900_p7 = scmp.ge.s32.totalorder %s1108_s21, 1  ;;  %p383_p8 = scmp.lt.s32.totalorder %s1108_s21, 19 }
  0x2b   : > { %p384_p9 = pnand %p900_p7, %p383_p8 }
  0x2c   : > { %s390_s13 = sand.u32 (!%p384_p9), 1, %s1084_s15   ;;  %s902_s14 = sshll.u32 (!%p384_p9), %s1092_s17, 1 }
  0x2d   : > { %387 = sbr.rel (%p384_p9) target bundleno = 357 (0x165), region = 70  ;;  %s901_s24 = sshll.u32 (!%p384_p9), %s390_s13, 8 }
  0x2e   : > { %p439_p10 = scmp.lt.s32.totalorder (!%p384_p9), %s902_s14, 17  ;;  %s904_s25 = sshll.u32 (!%p384_p9), %s1096_s18, 1 }
  0x2f   : > { %p449_p11 = scmp.lt.s32.totalorder (!%p384_p9), %s904_s25, 3  ;;  %s1290_s13 = scalar_lea.vmem (!%p384_p9), [#allocation3], %s901_s24 }
  0x30   : > { %p908_p12 = scmp.ne.s32.totalorder (!%p384_p9), %s1092_s17, 0 }
  0x34   : > { %s1378_s14 = smov (!%p439_p10, %s902_s14), 17  ;;  %s1380_s25 = smov (!%p449_p11, %s904_s25), 3 }
  0x35   : > { %s903_s26 = sshll.u32 %s1378_s14, 2  ;;  %s451_s15 = scalar_lea.vmem %s1362_s2, %s1380_s25  ;;  %v1110_v32 = vmov (!%p908_p12), 0.0  }
  0x36   : > { %s1272_s30 = scalar_lea.vmem %s1360_s0, %s903_s26  ;;  %s456_s18 = scalar_lea.vmem %s1363_s3, %s1380_s25  ;;  %472 = vst [vmem:[#allocation2] sm:$0xff] (!%p908_p12), %v1110_v32  ;;  %473 = vst [vmem:[#allocation2 + $0x8] sm:$0xff] (!%p908_p12), %v1110_v32 }
  0x37   : > { %s907_s9 = sshll.u32 %s1380_s25, 3  ;;  %471 = sbr.rel (%p908_p12) target bundleno = 62 (0x3e), region = 78 }
  0x38   : > { %s1288_s12 = scalar_lea.vmem %s1364_s4, %s907_s9 }
  0x3e PF: > { %v1004_v33 = vld [vmem:[%s1290_s13 + $0x4] ss:$8 sps:$4 sm:$0xff]   ;;  %v1006_v34 = vld [vmem:[%s1290_s13] ss:$8 sps:$4 sm:$0xff]   ;;  %v1007_v35 = vld [vmem:[%s1290_s13 + $0x14] ss:$8 sps:$4 sm:$0xff]  }
  0x3f   : > { %676 = vmatprep.subr.bf16.mxu0 %v1004_v33  ;;  %v1009_v36 = vld [vmem:[%s1290_s13 + $0x10] ss:$8 sps:$4 sm:$0xff]   ;;  %v1010_v37 = vld [vmem:[%s1290_s13 + $0x24] ss:$8 sps:$4 sm:$0xff]   ;;  %v1012_v38 = vld [vmem:[%s1290_s13 + $0x20] ss:$8 sps:$4 sm:$0xff]  }
  0x40   : > { %677 = vmatpush1.bf16.msra.mxu0 %v1006_v34  ;;  %v1013_v39 = vld [vmem:[%s1290_s13 + $0x34] ss:$8 sps:$4 sm:$0xff]   ;;  %v1015_v40 = vld [vmem:[%s1290_s13 + $0x30] ss:$8 sps:$4 sm:$0xff]   ;;  %v1016_v41 = vld [vmem:[%s1290_s13 + $0x44] ss:$8 sps:$4 sm:$0xff]  }
  0x41   : > { %678 = vmatprep.subr.bf16.mxu0 %v1007_v35  ;;  %v1018_v42 = vld [vmem:[%s1290_s13 + $0x40] ss:$8 sps:$4 sm:$0xff]   ;;  %v1019_v43 = vld [vmem:[%s1290_s13 + $0x54] ss:$8 sps:$4 sm:$0xff]   ;;  %v1021_v44 = vld [vmem:[%s1290_s13 + $0x50] ss:$8 sps:$4 sm:$0xff]  }
  0x42   : > { %v1022_v45 = vld [vmem:[%s1290_s13 + $0x64] ss:$8 sps:$4 sm:$0xff]   ;;  %v476_v46 = vld [vmem:[%s1272_s30] sm:$0xff]  ;;  %v1024_v48 = vld [vmem:[%s1290_s13 + $0x60] ss:$8 sps:$4 sm:$0xff]   ;;  %p943_p13 = scmp.ne.s32.totalorder %s1092_s17, 8 }
  0x43   : > { %v910_v47 = vcombine.high %v476_v46, %v476_v46  ;;  %v1025_v49 = vld [vmem:[%s1290_s13 + $0x74] ss:$8 sps:$4 sm:$0xff]   ;;  %v1027_v50 = vld [vmem:[%s1290_s13 + $0x70] ss:$8 sps:$4 sm:$0xff]   ;;  %v1028_v51 = vld [vmem:[%s1290_s13 + $0x84] ss:$8 sps:$4 sm:$0xff]   ;;  %v909_v3 = vcombine.low %v476_v46, %v476_v46  ;;  %v729_v12 = vlaneseq (!%p943_p13) }
  0x44   : > { %679 = vmatpush1.bf16.msra.mxu0 %v1009_v36  ;;  %v1030_v52 = vld [vmem:[%s1290_s13 + $0x80] ss:$8 sps:$4 sm:$0xff]   ;;  %v1031_v53 = vld [vmem:[%s1290_s13 + $0x94] ss:$8 sps:$4 sm:$0xff]   ;;  %v1033_v54 = vld [vmem:[%s1290_s13 + $0x90] ss:$8 sps:$4 sm:$0xff]  }
  0x45   : > { %680 = vmatprep.subr.bf16.mxu0 %v1010_v37  ;;  %708 = vmatprep.mubr.bf16.mxu0 %v910_v47  ;;  %v1034_v55 = vld [vmem:[%s1290_s13 + $0xa4] ss:$8 sps:$4 sm:$0xff]   ;;  %v1036_v56 = vld [vmem:[%s1290_s13 + $0xa0] ss:$8 sps:$4 sm:$0xff]   ;;  %v1037_v57 = vld [vmem:[%s1290_s13 + $0xb4] ss:$8 sps:$4 sm:$0xff]  }
  0x46   : > { %v1039_v58 = vld [vmem:[%s1290_s13 + $0xb0] ss:$8 sps:$4 sm:$0xff]   ;;  %v1040_v59 = vld [vmem:[%s1290_s13 + $0xc4] ss:$8 sps:$4 sm:$0xff]   ;;  %v1042_v60 = vld [vmem:[%s1290_s13 + $0xc0] ss:$8 sps:$4 sm:$0xff]  }
  0x47   : > { %v1043_v61 = vld [vmem:[%s1290_s13 + $0xd4] ss:$8 sps:$4 sm:$0xff]   ;;  %v1045_v62 = vld [vmem:[%s1290_s13 + $0xd0] ss:$8 sps:$4 sm:$0xff]   ;;  %v1046_v63 = vld [vmem:[%s1290_s13 + $0xe4] ss:$8 sps:$4 sm:$0xff]  }
  0x48   : > { %681 = vmatpush1.bf16.msra.mxu0 %v1012_v38  ;;  %v1048_v0 = vld [vmem:[%s1290_s13 + $0xe0] ss:$8 sps:$4 sm:$0xff]   ;;  %v1049_v1 = vld [vmem:[%s1290_s13 + $0xf4] ss:$8 sps:$4 sm:$0xff]   ;;  %v1051_v2 = vld [vmem:[%s1290_s13 + $0xf0] ss:$8 sps:$4 sm:$0xff]  }
  0x49   : > { %682 = vmatprep.subr.bf16.mxu0 %v1013_v39  ;;  %v474_v4 = vld [vmem:[#allocation2] sm:$0xff]  ;;  %v475_v5 = vld [vmem:[#allocation2 + $0x8] sm:$0xff]  ;;  %v730_v13 = vshrl.u32 (!%p943_p13), %v729_v12, 7 }
  0x4a   : > { %v727_v14 = vld [vmem:[%s451_s15] sm:$0x3] (!%p943_p13) }
  0x4b   : > { %v741_v15 = vld [vmem:[%s456_s18] sm:$0x3] (!%p943_p13)  ;;  %v731_v16 = vsub.s32 (!%p943_p13), 0, %v730_v13  ;;  %v735_v17 = vsub.s32 (!%p943_p13), 1, %v730_v13 }
  0x4c   : > { %683 = vmatpush1.bf16.msra.mxu0 %v1015_v40 }
  0x4d   : > { %684 = vmatprep.subr.bf16.mxu0 %v1016_v41  ;;  %v732_v20 = vrot.slane (!%p943_p13), %v727_v14, %v731_v16  ;;  %v746_v21 = vrot.slane (!%p943_p13), %v741_v15, %v731_v16  ;;  %v736_v22 = vrot.slane (!%p943_p13), %v727_v14, %v735_v17  ;;  %v750_v23 = vrot.slane (!%p943_p13), %v741_v15, %v735_v17 }
  0x50   : > { %685 = vmatpush1.bf16.msra.mxu0 %v1018_v42 }
  0x51   : > { %686 = vmatprep.subr.bf16.mxu0 %v1019_v43 }
  0x54   : > { %687 = vmatpush1.bf16.msra.mxu0 %v1021_v44 }
  0x55   : > { %688 = vmatprep.subr.bf16.mxu0 %v1022_v45 }
  0x58   : > { %689 = vmatpush1.bf16.msra.mxu0 %v1024_v48 }
  0x59   : > { %690 = vmatprep.subr.bf16.mxu0 %v1025_v49 }
  0x5c   : > { %691 = vmatpush1.bf16.msra.mxu0 %v1027_v50 }
  0x5d   : > { %692 = vmatprep.subr.bf16.mxu0 %v1028_v51 }
  0x60   : > { %693 = vmatpush1.bf16.msra.mxu0 %v1030_v52 }
  0x61   : > { %694 = vmatprep.subr.bf16.mxu0 %v1031_v53 }
  0x64   : > { %695 = vmatpush1.bf16.msra.mxu0 %v1033_v54 }
  0x65   : > { %696 = vmatprep.subr.bf16.mxu0 %v1034_v55 }
  0x68   : > { %697 = vmatpush1.bf16.msra.mxu0 %v1036_v56 }
  0x69   : > { %698 = vmatprep.subr.bf16.mxu0 %v1037_v57 }
  0x6c   : > { %699 = vmatpush1.bf16.msra.mxu0 %v1039_v58 }
  0x6d   : > { %700 = vmatprep.subr.bf16.mxu0 %v1040_v59 }
  0x70   : > { %701 = vmatpush1.bf16.msra.mxu0 %v1042_v60 }
  0x71   : > { %702 = vmatprep.subr.bf16.mxu0 %v1043_v61 }
  0x74   : > { %703 = vmatpush1.bf16.msra.mxu0 %v1045_v62 }
  0x75   : > { %704 = vmatprep.subr.bf16.mxu0 %v1046_v63 }
  0x78   : > { %705 = vmatpush1.bf16.msra.mxu0 %v1048_v0 }
  0x79   : > { %706 = vmatprep.subr.bf16.mxu0 %v1049_v1 }
  0x7c   : > { %707 = vmatpush1.bf16.msra.mxu0 %v1051_v2 }
  0x7f   : > { %709 = vmatmul.mubr.bf16.vlgmr.msra.gmra.mrb[0].mxu0 %v909_v3 }
 0x150   : > { %724 = sbr.rel (%p943_p13) target bundleno = 357 (0x165), region = 82 }
 0x152   : > { %v710_v6 = vpop.f32.mrb[0].mxu0 }
 0x153   : > { %v717_v7 = vadd.f32 %v710_v6, %v474_v4  ;;  %v712_v8 = vpop.f32.mrb[1].mxu0 }
 0x154   : > { %v718_v9 = vadd.f32 %v712_v8, %v475_v5  ;;  %v714_v10 = vpop.f32.mrb[2].mxu0 }
 0x155   : > { %719 = vst [vmem:[#allocation2] sm:$0xff] %v717_v7  ;;  %v715_v11 = vpop.f32.mrb[3].mxu0 }
 0x156   : > { %720 = vst [vmem:[#allocation2 + $0x8] sm:$0xff] %v718_v9 }
 0x15c   : > { %v725_v18 = vld [vmem:[#allocation2] sm:$0xff] }
 0x15d   : > { %v726_v19 = vld [vmem:[#allocation2 + $0x8] sm:$0xff]  ;;  %v739_v24 = vmul.f32 %v732_v20, %v725_v18 }
 0x15e   : > { %v740_v25 = vmul.f32 %v736_v22, %v726_v19 }
 0x15f   : > { %v753_v26 = vadd.f32 %v746_v21, %v739_v24 }
 0x160   : > { %v754_v27 = vadd.f32 %v750_v23, %v740_v25 }
 0x161   : > { %v755_v28 = vmax.f32 %v753_v26, 0.0 }
 0x162   : > { %v756_v29 = vmax.f32 %v754_v27, 0.0 }
 0x163   : > { %757 = vst [vmem:[%s1288_s12] sm:$0xff] %v755_v28 }
 0x164   : > { %758 = vst [vmem:[%s1288_s12 + $0x8] sm:$0xff] %v756_v29 }
 0x165 PF: > { %s14_s21 = sadd.s32 1, %s1108_s21   ;;  %s1365_s15 = smov %s1088_s16 }
 0x166   : > { %p11_p0 = scmp.ge.s32.totalorder %s14_s21, 20   ;;  %s1366_s16 = smov %s1187_s28 }
 0x167   : > { %s1367_s17 = smov %s1100_s19  ;;  %s1368_s18 = smov %s1104_s20 }
 0x168   : > { %s1369_s19 = smov %s1372_s22  ;;  %s1370_s20 = smov %s1376_s23 }
 0x169   :  { %13 = sbr.rel (!%p11_p0) target bundleno = 4 (0x4), region = 126 }

// kernel: resnet_forward.36
= control target key start
LH: loop header
LB: loop body
LE: loop exit
PB: predicated region body
PF: predicated region fallthrough
CT: control target
= control target key end

     0   :  { %s1094_s15 = smov 0   ;;  %s1096_s16 = smov 0   ;;  %s1276_s0 = inlined_call_operand.vmem [shape: bf16[8,256], index: 0, kind: input, shape index: {}]   ;;  %s1277_s1 = inlined_call_operand.vmem [shape: bf16[256,512], index: 1, kind: input, shape index: {}]   ;;  %s1278_s2 = inlined_call_operand.vmem [shape: f32[1,512], index: 2, kind: input, shape index: {}]   ;;  %s1279_s3 = inlined_call_operand.vmem [shape: f32[1,512], index: 3, kind: input, shape index: {}]   ;;  %s1280_s4 = inlined_call_operand.vmem [shape: f32[8,512], index: 4, kind: output, shape index: {}]  }
   0x1   :  { %s1098_s17 = smov 0   ;;  %s1100_s18 = smov 0  }
   0x2   :  { %s1102_s19 = smov 0  }
   0x3 LB: > { %s29_s20 = sadd.s32 1, %s1063_s18  ;;  %p77_p1 = scmp.ne.s32.totalorder %s1055_s16, %s1051_s15  ;;  %s1067_s19 = sphi %s1102_s19, %s14_s19   ;;  %s1063_s18 = sphi %s1100_s18, %s1284_s18   ;;  %s1059_s17 = sphi %s1098_s17, %s1283_s17   ;;  %s1055_s16 = sphi %s1096_s16, %s1282_s16   ;;  %s1051_s15 = sphi %s1094_s15, %s1281_s15  }
   0x4   : > { %p31_p0 = scmp.ge.s32.totalorder %s29_s20, 2  ;;  %p78_p2 = scmp.eq.s32.totalorder %s1067_s19, 0 }
   0x5   : > { %s70_s22 = sadd.s32 1, %s1055_s16  ;;  %p892_p5 = scmp.ge.s32.totalorder %s1067_s19, 2 }
   0x6   : > { %s1286_s20 = smov (%p31_p0, %s29_s20), 0  ;;  %p79_p3 = por %p78_p2, %p77_p1 }
   0x7   : > { %s66_s21 = ssub.s32 %s1063_s18, %s1286_s20  ;;  %196 = sbr.rel (%p892_p5) target bundleno = 34 (0x22), region = 20 }
   0x8   : > { %p68_p4 = scmp.eq.s32.totalorder %s66_s21, 0 }
   0xa   : > { %s1129_s23 = scalar_select %p68_p4, %s1055_s16, %s70_s22  }
   0xe   : > { %199 = sbr.rel (!%p79_p3) target bundleno = 34 (0x22), region = 24  ;;  %s201_s24 = sand.u32 (%p79_p3), 1, %s1055_s16  }
   0xf   : > { %s938_s25 = sshll.u32 (%p79_p3), %s1063_s18, 3  ;;  %s893_s26 = sshll.u32 (%p79_p3), %s201_s24, 8 }
  0x10   : > { %s1137_s29 = scalar_lea.vmem (%p79_p3), %s1277_s1, %s938_s25  ;;  %s1142_s30 = scalar_lea.vmem (%p79_p3), [#allocation3], %s893_s26 }
  0x11   : > { %v299_v0 = vld [vmem:[%s1137_s29] sm:$0xff] (%p79_p3)  ;;  %v301_v1 = vld [vmem:[%s1137_s29 + $0x10] sm:$0xff] (%p79_p3) }
  0x12   : > { %v303_v2 = vld [vmem:[%s1137_s29 + $0x20] sm:$0xff] (%p79_p3)  ;;  %300 = vst [vmem:[%s1142_s30] sm:$0xff] (%p79_p3), %v299_v0  ;;  %302 = vst [vmem:[%s1142_s30 + $0x8] sm:$0xff] (%p79_p3), %v301_v1  ;;  %v305_v3 = vld [vmem:[%s1137_s29 + $0x30] sm:$0xff] (%p79_p3) }
  0x13   : > { %304 = vst [vmem:[%s1142_s30 + $0x10] sm:$0xff] (%p79_p3), %v303_v2  ;;  %v307_v4 = vld [vmem:[%s1137_s29 + $0x40] sm:$0xff] (%p79_p3)  ;;  %v309_v5 = vld [vmem:[%s1137_s29 + $0x50] sm:$0xff] (%p79_p3)  ;;  %306 = vst [vmem:[%s1142_s30 + $0x18] sm:$0xff] (%p79_p3), %v305_v3 }
  0x14   : > { %308 = vst [vmem:[%s1142_s30 + $0x20] sm:$0xff] (%p79_p3), %v307_v4  ;;  %310 = vst [vmem:[%s1142_s30 + $0x28] sm:$0xff] (%p79_p3), %v309_v5  ;;  %v311_v6 = vld [vmem:[%s1137_s29 + $0x60] sm:$0xff] (%p79_p3)  ;;  %v313_v7 = vld [vmem:[%s1137_s29 + $0x70] sm:$0xff] (%p79_p3) }
  0x15   : > { %v315_v8 = vld [vmem:[%s1137_s29 + $0x80] sm:$0xff]  ;;  %312 = vst [vmem:[%s1142_s30 + $0x30] sm:$0xff] %v311_v6  ;;  %314 = vst [vmem:[%s1142_s30 + $0x38] sm:$0xff] %v313_v7  ;;  %v317_v9 = vld [vmem:[%s1137_s29 + $0x90] sm:$0xff] }
  0x16   : > { %316 = vst [vmem:[%s1142_s30 + $0x40] sm:$0xff] %v315_v8  ;;  %v319_v10 = vld [vmem:[%s1137_s29 + $0xa0] sm:$0xff]  ;;  %v321_v11 = vld [vmem:[%s1137_s29 + $0xb0] sm:$0xff]  ;;  %318 = vst [vmem:[%s1142_s30 + $0x48] sm:$0xff] %v317_v9 }
  0x17   : > { %320 = vst [vmem:[%s1142_s30 + $0x50] sm:$0xff] %v319_v10  ;;  %322 = vst [vmem:[%s1142_s30 + $0x58] sm:$0xff] %v321_v11  ;;  %v323_v12 = vld [vmem:[%s1137_s29 + $0xc0] sm:$0xff]  ;;  %v325_v13 = vld [vmem:[%s1137_s29 + $0xd0] sm:$0xff] }
  0x18   : > { %v327_v14 = vld [vmem:[%s1137_s29 + $0xe0] sm:$0xff]  ;;  %324 = vst [vmem:[%s1142_s30 + $0x60] sm:$0xff] %v323_v12  ;;  %326 = vst [vmem:[%s1142_s30 + $0x68] sm:$0xff] %v325_v13  ;;  %v329_v15 = vld [vmem:[%s1137_s29 + $0xf0] sm:$0xff] }
  0x19   : > { %328 = vst [vmem:[%s1142_s30 + $0x70] sm:$0xff] %v327_v14  ;;  %v331_v16 = vld [vmem:[%s1137_s29 + $0x100] sm:$0xff]  ;;  %v333_v17 = vld [vmem:[%s1137_s29 + $0x110] sm:$0xff]  ;;  %330 = vst [vmem:[%s1142_s30 + $0x78] sm:$0xff] %v329_v15 }
  0x1a   : > { %332 = vst [vmem:[%s1142_s30 + $0x80] sm:$0xff] %v331_v16  ;;  %334 = vst [vmem:[%s1142_s30 + $0x88] sm:$0xff] %v333_v17  ;;  %v335_v18 = vld [vmem:[%s1137_s29 + $0x120] sm:$0xff]  ;;  %v337_v19 = vld [vmem:[%s1137_s29 + $0x130] sm:$0xff] }
  0x1b   : > { %v339_v20 = vld [vmem:[%s1137_s29 + $0x140] sm:$0xff]  ;;  %336 = vst [vmem:[%s1142_s30 + $0x90] sm:$0xff] %v335_v18  ;;  %338 = vst [vmem:[%s1142_s30 + $0x98] sm:$0xff] %v337_v19  ;;  %v341_v21 = vld [vmem:[%s1137_s29 + $0x150] sm:$0xff] }
  0x1c   : > { %340 = vst [vmem:[%s1142_s30 + $0xa0] sm:$0xff] %v339_v20  ;;  %v343_v22 = vld [vmem:[%s1137_s29 + $0x160] sm:$0xff]  ;;  %v345_v23 = vld [vmem:[%s1137_s29 + $0x170] sm:$0xff]  ;;  %342 = vst [vmem:[%s1142_s30 + $0xa8] sm:$0xff] %v341_v21 }
  0x1d   : > { %344 = vst [vmem:[%s1142_s30 + $0xb0] sm:$0xff] %v343_v22  ;;  %346 = vst [vmem:[%s1142_s30 + $0xb8] sm:$0xff] %v345_v23  ;;  %v347_v24 = vld [vmem:[%s1137_s29 + $0x180] sm:$0xff]  ;;  %v349_v25 = vld [vmem:[%s1137_s29 + $0x190] sm:$0xff] }
  0x1e   : > { %v351_v26 = vld [vmem:[%s1137_s29 + $0x1a0] sm:$0xff]  ;;  %348 = vst [vmem:[%s1142_s30 + $0xc0] sm:$0xff] %v347_v24  ;;  %350 = vst [vmem:[%s1142_s30 + $0xc8] sm:$0xff] %v349_v25  ;;  %v353_v27 = vld [vmem:[%s1137_s29 + $0x1b0] sm:$0xff] }
  0x1f   : > { %352 = vst [vmem:[%s1142_s30 + $0xd0] sm:$0xff] %v351_v26  ;;  %v355_v28 = vld [vmem:[%s1137_s29 + $0x1c0] sm:$0xff]  ;;  %v357_v29 = vld [vmem:[%s1137_s29 + $0x1d0] sm:$0xff]  ;;  %354 = vst [vmem:[%s1142_s30 + $0xd8] sm:$0xff] %v353_v27 }
  0x20   : > { %356 = vst [vmem:[%s1142_s30 + $0xe0] sm:$0xff] %v355_v28  ;;  %358 = vst [vmem:[%s1142_s30 + $0xe8] sm:$0xff] %v357_v29  ;;  %v359_v30 = vld [vmem:[%s1137_s29 + $0x1e0] sm:$0xff]  ;;  %v361_v31 = vld [vmem:[%s1137_s29 + $0x1f0] sm:$0xff] }
  0x21   : > { %360 = vst [vmem:[%s1142_s30 + $0xf0] sm:$0xff] %v359_v30  ;;  %362 = vst [vmem:[%s1142_s30 + $0xf8] sm:$0xff] %v361_v31 }
  0x22 PF: > { %p896_p6 = scmp.ge.s32.totalorder %s1067_s19, 1  ;;  %p383_p7 = scmp.lt.s32.totalorder %s1067_s19, 3 }
  0x24   : > { %p384_p8 = pnand %p896_p6, %p383_p7 }
  0x25   : > { %s390_s5 = sand.u32 (!%p384_p8), 1, %s1051_s15   ;;  %v1211_v32 = vld [vmem:[%s1276_s0] sm:$0xff] (!%p384_p8)  ;;  %s898_s10 = sshll.u32 (!%p384_p8), %s1059_s17, 1  ;;  %v728_v3 = vlaneseq (!%p384_p8) }
  0x26   : > { %387 = sbr.rel (%p384_p8) target bundleno = 323 (0x143), region = 70  ;;  %s897_s8 = sshll.u32 (!%p384_p8), %s390_s5, 8  ;;  %v903_v33 = vcombine.high (!%p384_p8), %v1211_v32, %v1211_v32  ;;  %v902_v2 = vcombine.low (!%p384_p8), %v1211_v32, %v1211_v32 }
  0x27   : > { %s1215_s9 = scalar_lea.vmem (!%p384_p8), [#allocation3], %s897_s8  ;;  %p449_p9 = scmp.lt.s32.totalorder (!%p384_p8), %s898_s10, 3  ;;  %v729_v4 = vshrl.u32 (!%p384_p8), %v728_v3, 7 }
  0x28   : > { %v979_v34 = vld [vmem:[%s1215_s9 + $0x4] ss:$8 sps:$4 sm:$0xff] (!%p384_p8)   ;;  %708 = vmatprep.mubr.bf16.mxu0 (!%p384_p8), %v903_v33  ;;  %v981_v35 = vld [vmem:[%s1215_s9] ss:$8 sps:$4 sm:$0xff] (!%p384_p8)   ;;  %v982_v36 = vld [vmem:[%s1215_s9 + $0x14] ss:$8 sps:$4 sm:$0xff] (!%p384_p8)  }
  0x29   : > { %676 = vmatprep.subr.bf16.mxu0 (!%p384_p8), %v979_v34  ;;  %v984_v37 = vld [vmem:[%s1215_s9 + $0x10] ss:$8 sps:$4 sm:$0xff] (!%p384_p8)   ;;  %v985_v38 = vld [vmem:[%s1215_s9 + $0x24] ss:$8 sps:$4 sm:$0xff] (!%p384_p8)   ;;  %v987_v39 = vld [vmem:[%s1215_s9 + $0x20] ss:$8 sps:$4 sm:$0xff] (!%p384_p8)  }
  0x2a   : > { %677 = vmatpush1.bf16.msra.mxu0 (!%p384_p8), %v981_v35  ;;  %v988_v40 = vld [vmem:[%s1215_s9 + $0x34] ss:$8 sps:$4 sm:$0xff] (!%p384_p8)   ;;  %v990_v41 = vld [vmem:[%s1215_s9 + $0x30] ss:$8 sps:$4 sm:$0xff] (!%p384_p8)   ;;  %v991_v42 = vld [vmem:[%s1215_s9 + $0x44] ss:$8 sps:$4 sm:$0xff] (!%p384_p8)  }
  0x2b   : > { %678 = vmatprep.subr.bf16.mxu0 (!%p384_p8), %v982_v36  ;;  %v993_v43 = vld [vmem:[%s1215_s9 + $0x40] ss:$8 sps:$4 sm:$0xff] (!%p384_p8)   ;;  %v994_v44 = vld [vmem:[%s1215_s9 + $0x54] ss:$8 sps:$4 sm:$0xff] (!%p384_p8)   ;;  %v996_v45 = vld [vmem:[%s1215_s9 + $0x50] ss:$8 sps:$4 sm:$0xff] (!%p384_p8)  }
  0x2c   : > { %v997_v46 = vld [vmem:[%s1215_s9 + $0x64] ss:$8 sps:$4 sm:$0xff] (!%p384_p8)   ;;  %v999_v47 = vld [vmem:[%s1215_s9 + $0x60] ss:$8 sps:$4 sm:$0xff] (!%p384_p8)   ;;  %v1000_v48 = vld [vmem:[%s1215_s9 + $0x74] ss:$8 sps:$4 sm:$0xff] (!%p384_p8)  }
  0x2d   : > { %v1002_v49 = vld [vmem:[%s1215_s9 + $0x70] ss:$8 sps:$4 sm:$0xff]   ;;  %v1003_v50 = vld [vmem:[%s1215_s9 + $0x84] ss:$8 sps:$4 sm:$0xff]   ;;  %v1005_v51 = vld [vmem:[%s1215_s9 + $0x80] ss:$8 sps:$4 sm:$0xff]  }
  0x2e   : > { %679 = vmatpush1.bf16.msra.mxu0 %v984_v37  ;;  %v1006_v52 = vld [vmem:[%s1215_s9 + $0x94] ss:$8 sps:$4 sm:$0xff]   ;;  %v1008_v53 = vld [vmem:[%s1215_s9 + $0x90] ss:$8 sps:$4 sm:$0xff]   ;;  %v1009_v54 = vld [vmem:[%s1215_s9 + $0xa4] ss:$8 sps:$4 sm:$0xff]  }
  0x2f   : > { %680 = vmatprep.subr.bf16.mxu0 %v985_v38  ;;  %v1011_v55 = vld [vmem:[%s1215_s9 + $0xa0] ss:$8 sps:$4 sm:$0xff]   ;;  %v1012_v56 = vld [vmem:[%s1215_s9 + $0xb4] ss:$8 sps:$4 sm:$0xff]   ;;  %v1014_v57 = vld [vmem:[%s1215_s9 + $0xb0] ss:$8 sps:$4 sm:$0xff]  }
  0x30   : > { %v1015_v58 = vld [vmem:[%s1215_s9 + $0xc4] ss:$8 sps:$4 sm:$0xff]   ;;  %v1017_v59 = vld [vmem:[%s1215_s9 + $0xc0] ss:$8 sps:$4 sm:$0xff]   ;;  %v1018_v60 = vld [vmem:[%s1215_s9 + $0xd4] ss:$8 sps:$4 sm:$0xff]  }
  0x31   : > { %v1020_v61 = vld [vmem:[%s1215_s9 + $0xd0] ss:$8 sps:$4 sm:$0xff]   ;;  %v1021_v62 = vld [vmem:[%s1215_s9 + $0xe4] ss:$8 sps:$4 sm:$0xff]   ;;  %v1023_v63 = vld [vmem:[%s1215_s9 + $0xe0] ss:$8 sps:$4 sm:$0xff]  }
  0x32   : > { %681 = vmatpush1.bf16.msra.mxu0 %v987_v39  ;;  %v1024_v0 = vld [vmem:[%s1215_s9 + $0xf4] ss:$8 sps:$4 sm:$0xff]   ;;  %v1026_v1 = vld [vmem:[%s1215_s9 + $0xf0] ss:$8 sps:$4 sm:$0xff]   ;;  %s1288_s10 = smov (!%p449_p9, %s898_s10), 3  ;;  %v730_v5 = vsub.s32 0, %v729_v4 }
  0x33   : > { %682 = vmatprep.subr.bf16.mxu0 %v988_v40  ;;  %s451_s13 = scalar_lea.vmem %s1278_s2, %s1288_s10  ;;  %s456_s21 = scalar_lea.vmem %s1279_s3, %s1288_s10  ;;  %v734_v7 = vsub.s32 1, %v729_v4 }
  0x34   : > { %v726_v6 = vld [vmem:[%s451_s13] sm:$0x3]  ;;  %s901_s22 = sshll.u32 %s1288_s10, 3 }
  0x35   : > { %v740_v8 = vld [vmem:[%s456_s21] sm:$0x3]  ;;  %v731_v9 = vrot.slane %v726_v6, %v730_v5  ;;  %v735_v10 = vrot.slane %v726_v6, %v734_v7  ;;  %s466_s25 = scalar_lea.vmem %s1280_s4, %s901_s22 }
  0x36   : > { %683 = vmatpush1.bf16.msra.mxu0 %v990_v41  ;;  %v745_v11 = vrot.slane %v740_v8, %v730_v5  ;;  %v749_v13 = vrot.slane %v740_v8, %v734_v7 }
  0x37   : > { %684 = vmatprep.subr.bf16.mxu0 %v991_v42 }
  0x3a   : > { %685 = vmatpush1.bf16.msra.mxu0 %v993_v43 }
  0x3b   : > { %686 = vmatprep.subr.bf16.mxu0 %v994_v44 }
  0x3e   : > { %687 = vmatpush1.bf16.msra.mxu0 %v996_v45 }
  0x3f   : > { %688 = vmatprep.subr.bf16.mxu0 %v997_v46 }
  0x42   : > { %689 = vmatpush1.bf16.msra.mxu0 %v999_v47 }
  0x43   : > { %690 = vmatprep.subr.bf16.mxu0 %v1000_v48 }
  0x46   : > { %691 = vmatpush1.bf16.msra.mxu0 %v1002_v49 }
  0x47   : > { %692 = vmatprep.subr.bf16.mxu0 %v1003_v50 }
  0x4a   : > { %693 = vmatpush1.bf16.msra.mxu0 %v1005_v51 }
  0x4b   : > { %694 = vmatprep.subr.bf16.mxu0 %v1006_v52 }
  0x4e   : > { %695 = vmatpush1.bf16.msra.mxu0 %v1008_v53 }
  0x4f   : > { %696 = vmatprep.subr.bf16.mxu0 %v1009_v54 }
  0x52   : > { %697 = vmatpush1.bf16.msra.mxu0 %v1011_v55 }
  0x53   : > { %698 = vmatprep.subr.bf16.mxu0 %v1012_v56 }
  0x56   : > { %699 = vmatpush1.bf16.msra.mxu0 %v1014_v57 }
  0x57   : > { %700 = vmatprep.subr.bf16.mxu0 %v1015_v58 }
  0x5a   : > { %701 = vmatpush1.bf16.msra.mxu0 %v1017_v59 }
  0x5b   : > { %702 = vmatprep.subr.bf16.mxu0 %v1018_v60 }
  0x5e   : > { %703 = vmatpush1.bf16.msra.mxu0 %v1020_v61 }
  0x5f   : > { %704 = vmatprep.subr.bf16.mxu0 %v1021_v62 }
  0x62   : > { %705 = vmatpush1.bf16.msra.mxu0 %v1023_v63 }
  0x63   : > { %706 = vmatprep.subr.bf16.mxu0 %v1024_v0 }
  0x66   : > { %707 = vmatpush1.bf16.msra.mxu0 %v1026_v1 }
  0x69   : > { %709 = vmatmul.mubr.bf16.vlgmr.msra.gmra.mrb[0].mxu0 %v902_v2 }
 0x13c   : > { %v710_v12 = vpop.f32.mrb[0].mxu0 }
 0x13d   : > { %v738_v14 = vmul.f32 %v731_v9, %v710_v12  ;;  %v712_v15 = vpop.f32.mrb[1].mxu0 }
 0x13e   : > { %v739_v16 = vmul.f32 %v735_v10, %v712_v15  ;;  %v714_v17 = vpop.f32.mrb[2].mxu0 }
 0x13f   : > { %v752_v18 = vadd.f32 %v745_v11, %v738_v14  ;;  %v715_v19 = vpop.f32.mrb[3].mxu0 }
 0x140   : > { %v753_v20 = vadd.f32 %v749_v13, %v739_v16 }
 0x141   : > { %754 = vst [vmem:[%s466_s25] sm:$0xff] %v752_v18 }
 0x142   : > { %755 = vst [vmem:[%s466_s25 + $0x8] sm:$0xff] %v753_v20 }
 0x143 PF: > { %s14_s19 = sadd.s32 1, %s1067_s19   ;;  %s1281_s15 = smov %s1055_s16 }
 0x144   : > { %p11_p10 = scmp.ge.s32.totalorder %s14_s19, 4   ;;  %s1282_s16 = smov %s1129_s23 }
 0x145   : > { %s1283_s17 = smov %s1063_s18  ;;  %s1284_s18 = smov %s1286_s20 }
 0x146   :  { %13 = sbr.rel (!%p11_p10) target bundleno = 3 (0x3), region = 126 }

// kernel: resnet_forward.38
= control target key start
LH: loop header
LB: loop body
LE: loop exit
PB: predicated region body
PF: predicated region fallthrough
CT: control target
= control target key end

     0   :  { %s1681_s18 = smov 0   ;;  %s1683_s19 = smov 0   ;;  %s2009_s0 = inlined_call_operand.vmem [shape: bf16[8,4608], index: 0, kind: input, shape index: {}]   ;;  %s2010_s1 = inlined_call_operand.vmem [shape: bf16[4608,512], index: 1, kind: input, shape index: {}]   ;;  %s2011_s2 = inlined_call_operand.vmem [shape: f32[1,512], index: 2, kind: input, shape index: {}]   ;;  %s2012_s3 = inlined_call_operand.vmem [shape: f32[1,512], index: 3, kind: input, shape index: {}]   ;;  %s2013_s4 = inlined_call_operand.vmem [shape: f32[8,512], index: 4, kind: input, shape index: {}]   ;;  %s2014_s5 = inlined_call_operand.vmem [shape: f32[8,512], index: 5, kind: output, shape index: {}]  }
   0x1   :  { %s1685_s20 = smov 0   ;;  %s1687_s21 = smov 0  }
   0x2   :  { %s1689_s22 = smov 0   ;;  %s1691_s23 = smov 0  }
   0x3   :  { %s1693_s24 = smov 0  }
   0x4 LB: > { %s27_s25 = sadd.s32 1, %s1640_s22  ;;  %s30_s26 = sadd.s32 1, %s1644_s23  ;;  %s1648_s24 = sphi %s1693_s24, %s15_s24   ;;  %s1644_s23 = sphi %s1691_s23, %s2020_s23   ;;  %s1640_s22 = sphi %s1689_s22, %s2019_s22   ;;  %s1636_s21 = sphi %s1687_s21, %s2018_s21   ;;  %s1632_s20 = sphi %s1685_s20, %s2017_s20   ;;  %s1628_s19 = sphi %s1683_s19, %s2016_s19   ;;  %s1624_s18 = sphi %s1681_s18, %s2015_s18  }
   0x5   : > { %p28_p0 = scmp.ge.s32.totalorder %s27_s25, 9  ;;  %p78_p1 = scmp.ne.s32.totalorder %s1628_s19, %s1624_s18 }
   0x6   : > { %p79_p2 = scmp.eq.s32.totalorder %s1648_s24, 0  ;;  %s71_s30 = sadd.s32 1, %s1628_s19 }
   0x7   : > { %s2022_s25 = smov (%p28_p0, %s27_s25), 0  ;;  %s2024_s26 = smov (!%p28_p0, %s30_s26), %s1644_s23 }
   0x8   : > { %p80_p3 = por %p79_p2, %p78_p1  ;;  %p32_p4 = scmp.ge.s32.totalorder %s2024_s26, 2 }
   0x9   : > { %s66_s27 = ssub.s32 %s1640_s22, %s2022_s25  ;;  %p1348_p6 = scmp.ge.s32.totalorder %s1648_s24, 18 }
   0xa   : > { %s2026_s26 = smov (%p32_p4, %s2024_s26), 0 }
   0xb   : > { %s67_s28 = ssub.s32 %s1644_s23, %s2026_s26  ;;  %212 = sbr.rel (%p1348_p6) target bundleno = 57 (0x39), region = 16 }
   0xc   : > { %s68_s29 = sor.u32 %s67_s28, %s66_s27 }
   0xd   : > { %p69_p5 = scmp.eq.s32.totalorder %s68_s29, 0 }
   0xf   : > { %s1732_s6 = scalar_select %p69_p5, %s1628_s19, %s71_s30  }
  0x12   : > { %228 = sbr.rel (!%p80_p3) target bundleno = 57 (0x39), region = 24  ;;  %s230_s7 = sand.u32 (%p80_p3), 1, %s1628_s19  }
  0x13   : > { %s1351_s8 = sshll.u32 (%p80_p3), %s1644_s23, 1  ;;  %s1349_s9 = sshll.u32 (%p80_p3), %s230_s7, 9 }
  0x14   : > { %s1436_s10 = sshll.u32 (%p80_p3), %s1640_s22, 8  ;;  %s1746_s16 = scalar_lea.vmem (%p80_p3), [#allocation3], %s1349_s9 }
  0x15   : > { %s236_s11 = sadd.s32 (%p80_p3), %s1436_s10, %s1351_s8 }
  0x16   : > { %s1353_s12 = sshll.u32 (%p80_p3), %s236_s11, 2 }
  0x17   : > { %s1741_s15 = scalar_lea.vmem (%p80_p3), %s2010_s1, %s1353_s12 }
  0x18   : > { %v392_v0 = vld [vmem:[%s1741_s15] sm:$0xff] (%p80_p3)  ;;  %v394_v1 = vld [vmem:[%s1741_s15 + $0x10] sm:$0xff] (%p80_p3) }
  0x19   : > { %v396_v2 = vld [vmem:[%s1741_s15 + $0x20] sm:$0xff]  ;;  %393 = vst [vmem:[%s1746_s16] sm:$0xff] %v392_v0  ;;  %395 = vst [vmem:[%s1746_s16 + $0x8] sm:$0xff] %v394_v1  ;;  %v398_v3 = vld [vmem:[%s1741_s15 + $0x30] sm:$0xff] }
  0x1a   : > { %397 = vst [vmem:[%s1746_s16 + $0x10] sm:$0xff] %v396_v2  ;;  %v400_v4 = vld [vmem:[%s1741_s15 + $0x40] sm:$0xff]  ;;  %v402_v5 = vld [vmem:[%s1741_s15 + $0x50] sm:$0xff]  ;;  %399 = vst [vmem:[%s1746_s16 + $0x18] sm:$0xff] %v398_v3 }
  0x1b   : > { %401 = vst [vmem:[%s1746_s16 + $0x20] sm:$0xff] %v400_v4  ;;  %403 = vst [vmem:[%s1746_s16 + $0x28] sm:$0xff] %v402_v5  ;;  %v404_v6 = vld [vmem:[%s1741_s15 + $0x60] sm:$0xff]  ;;  %v406_v7 = vld [vmem:[%s1741_s15 + $0x70] sm:$0xff] }
  0x1c   : > { %v408_v8 = vld [vmem:[%s1741_s15 + $0x80] sm:$0xff]  ;;  %405 = vst [vmem:[%s1746_s16 + $0x30] sm:$0xff] %v404_v6  ;;  %407 = vst [vmem:[%s1746_s16 + $0x38] sm:$0xff] %v406_v7  ;;  %v410_v9 = vld [vmem:[%s1741_s15 + $0x90] sm:$0xff] }
  0x1d   : > { %409 = vst [vmem:[%s1746_s16 + $0x40] sm:$0xff] %v408_v8  ;;  %v412_v10 = vld [vmem:[%s1741_s15 + $0xa0] sm:$0xff]  ;;  %v414_v11 = vld [vmem:[%s1741_s15 + $0xb0] sm:$0xff]  ;;  %411 = vst [vmem:[%s1746_s16 + $0x48] sm:$0xff] %v410_v9 }
  0x1e   : > { %413 = vst [vmem:[%s1746_s16 + $0x50] sm:$0xff] %v412_v10  ;;  %415 = vst [vmem:[%s1746_s16 + $0x58] sm:$0xff] %v414_v11  ;;  %v416_v12 = vld [vmem:[%s1741_s15 + $0xc0] sm:$0xff]  ;;  %v418_v13 = vld [vmem:[%s1741_s15 + $0xd0] sm:$0xff] }
  0x1f   : > { %v420_v14 = vld [vmem:[%s1741_s15 + $0xe0] sm:$0xff]  ;;  %417 = vst [vmem:[%s1746_s16 + $0x60] sm:$0xff] %v416_v12  ;;  %419 = vst [vmem:[%s1746_s16 + $0x68] sm:$0xff] %v418_v13  ;;  %v422_v15 = vld [vmem:[%s1741_s15 + $0xf0] sm:$0xff] }
  0x20   : > { %421 = vst [vmem:[%s1746_s16 + $0x70] sm:$0xff] %v420_v14  ;;  %v424_v16 = vld [vmem:[%s1741_s15 + $0x100] sm:$0xff]  ;;  %v426_v17 = vld [vmem:[%s1741_s15 + $0x110] sm:$0xff]  ;;  %423 = vst [vmem:[%s1746_s16 + $0x78] sm:$0xff] %v422_v15 }
  0x21   : > { %425 = vst [vmem:[%s1746_s16 + $0x80] sm:$0xff] %v424_v16  ;;  %427 = vst [vmem:[%s1746_s16 + $0x88] sm:$0xff] %v426_v17  ;;  %v428_v18 = vld [vmem:[%s1741_s15 + $0x120] sm:$0xff]  ;;  %v430_v19 = vld [vmem:[%s1741_s15 + $0x130] sm:$0xff] }
  0x22   : > { %v432_v20 = vld [vmem:[%s1741_s15 + $0x140] sm:$0xff]  ;;  %429 = vst [vmem:[%s1746_s16 + $0x90] sm:$0xff] %v428_v18  ;;  %431 = vst [vmem:[%s1746_s16 + $0x98] sm:$0xff] %v430_v19  ;;  %v434_v21 = vld [vmem:[%s1741_s15 + $0x150] sm:$0xff] }
  0x23   : > { %433 = vst [vmem:[%s1746_s16 + $0xa0] sm:$0xff] %v432_v20  ;;  %v436_v22 = vld [vmem:[%s1741_s15 + $0x160] sm:$0xff]  ;;  %v438_v23 = vld [vmem:[%s1741_s15 + $0x170] sm:$0xff]  ;;  %435 = vst [vmem:[%s1746_s16 + $0xa8] sm:$0xff] %v434_v21 }
  0x24   : > { %437 = vst [vmem:[%s1746_s16 + $0xb0] sm:$0xff] %v436_v22  ;;  %439 = vst [vmem:[%s1746_s16 + $0xb8] sm:$0xff] %v438_v23  ;;  %v440_v24 = vld [vmem:[%s1741_s15 + $0x180] sm:$0xff]  ;;  %v442_v25 = vld [vmem:[%s1741_s15 + $0x190] sm:$0xff] }
  0x25   : > { %v444_v26 = vld [vmem:[%s1741_s15 + $0x1a0] sm:$0xff]  ;;  %441 = vst [vmem:[%s1746_s16 + $0xc0] sm:$0xff] %v440_v24  ;;  %443 = vst [vmem:[%s1746_s16 + $0xc8] sm:$0xff] %v442_v25  ;;  %v446_v27 = vld [vmem:[%s1741_s15 + $0x1b0] sm:$0xff] }
  0x26   : > { %445 = vst [vmem:[%s1746_s16 + $0xd0] sm:$0xff] %v444_v26  ;;  %v448_v28 = vld [vmem:[%s1741_s15 + $0x1c0] sm:$0xff]  ;;  %v450_v29 = vld [vmem:[%s1741_s15 + $0x1d0] sm:$0xff]  ;;  %447 = vst [vmem:[%s1746_s16 + $0xd8] sm:$0xff] %v446_v27 }
  0x27   : > { %449 = vst [vmem:[%s1746_s16 + $0xe0] sm:$0xff] %v448_v28  ;;  %451 = vst [vmem:[%s1746_s16 + $0xe8] sm:$0xff] %v450_v29  ;;  %v452_v30 = vld [vmem:[%s1741_s15 + $0x1e0] sm:$0xff]  ;;  %v454_v31 = vld [vmem:[%s1741_s15 + $0x1f0] sm:$0xff] }
  0x28   : > { %v456_v32 = vld [vmem:[%s1741_s15 + $0x200] sm:$0xff]  ;;  %453 = vst [vmem:[%s1746_s16 + $0xf0] sm:$0xff] %v452_v30  ;;  %455 = vst [vmem:[%s1746_s16 + $0xf8] sm:$0xff] %v454_v31  ;;  %v458_v33 = vld [vmem:[%s1741_s15 + $0x210] sm:$0xff] }
  0x29   : > { %457 = vst [vmem:[%s1746_s16 + $0x100] sm:$0xff] %v456_v32  ;;  %v460_v34 = vld [vmem:[%s1741_s15 + $0x220] sm:$0xff]  ;;  %v462_v35 = vld [vmem:[%s1741_s15 + $0x230] sm:$0xff]  ;;  %459 = vst [vmem:[%s1746_s16 + $0x108] sm:$0xff] %v458_v33 }
  0x2a   : > { %461 = vst [vmem:[%s1746_s16 + $0x110] sm:$0xff] %v460_v34  ;;  %463 = vst [vmem:[%s1746_s16 + $0x118] sm:$0xff] %v462_v35  ;;  %v464_v36 = vld [vmem:[%s1741_s15 + $0x240] sm:$0xff]  ;;  %v466_v37 = vld [vmem:[%s1741_s15 + $0x250] sm:$0xff] }
  0x2b   : > { %v468_v38 = vld [vmem:[%s1741_s15 + $0x260] sm:$0xff]  ;;  %465 = vst [vmem:[%s1746_s16 + $0x120] sm:$0xff] %v464_v36  ;;  %467 = vst [vmem:[%s1746_s16 + $0x128] sm:$0xff] %v466_v37  ;;  %v470_v39 = vld [vmem:[%s1741_s15 + $0x270] sm:$0xff] }
  0x2c   : > { %469 = vst [vmem:[%s1746_s16 + $0x130] sm:$0xff] %v468_v38  ;;  %v472_v40 = vld [vmem:[%s1741_s15 + $0x280] sm:$0xff]  ;;  %v474_v41 = vld [vmem:[%s1741_s15 + $0x290] sm:$0xff]  ;;  %471 = vst [vmem:[%s1746_s16 + $0x138] sm:$0xff] %v470_v39 }
  0x2d   : > { %473 = vst [vmem:[%s1746_s16 + $0x140] sm:$0xff] %v472_v40  ;;  %475 = vst [vmem:[%s1746_s16 + $0x148] sm:$0xff] %v474_v41  ;;  %v476_v42 = vld [vmem:[%s1741_s15 + $0x2a0] sm:$0xff]  ;;  %v478_v43 = vld [vmem:[%s1741_s15 + $0x2b0] sm:$0xff] }
  0x2e   : > { %v480_v44 = vld [vmem:[%s1741_s15 + $0x2c0] sm:$0xff]  ;;  %477 = vst [vmem:[%s1746_s16 + $0x150] sm:$0xff] %v476_v42  ;;  %479 = vst [vmem:[%s1746_s16 + $0x158] sm:$0xff] %v478_v43  ;;  %v482_v45 = vld [vmem:[%s1741_s15 + $0x2d0] sm:$0xff] }
  0x2f   : > { %481 = vst [vmem:[%s1746_s16 + $0x160] sm:$0xff] %v480_v44  ;;  %v484_v46 = vld [vmem:[%s1741_s15 + $0x2e0] sm:$0xff]  ;;  %v486_v47 = vld [vmem:[%s1741_s15 + $0x2f0] sm:$0xff]  ;;  %483 = vst [vmem:[%s1746_s16 + $0x168] sm:$0xff] %v482_v45 }
  0x30   : > { %485 = vst [vmem:[%s1746_s16 + $0x170] sm:$0xff] %v484_v46  ;;  %487 = vst [vmem:[%s1746_s16 + $0x178] sm:$0xff] %v486_v47  ;;  %v488_v48 = vld [vmem:[%s1741_s15 + $0x300] sm:$0xff]  ;;  %v490_v49 = vld [vmem:[%s1741_s15 + $0x310] sm:$0xff] }
  0x31   : > { %v492_v50 = vld [vmem:[%s1741_s15 + $0x320] sm:$0xff]  ;;  %489 = vst [vmem:[%s1746_s16 + $0x180] sm:$0xff] %v488_v48  ;;  %491 = vst [vmem:[%s1746_s16 + $0x188] sm:$0xff] %v490_v49  ;;  %v494_v51 = vld [vmem:[%s1741_s15 + $0x330] sm:$0xff] }
  0x32   : > { %493 = vst [vmem:[%s1746_s16 + $0x190] sm:$0xff] %v492_v50  ;;  %v496_v52 = vld [vmem:[%s1741_s15 + $0x340] sm:$0xff]  ;;  %v498_v53 = vld [vmem:[%s1741_s15 + $0x350] sm:$0xff]  ;;  %495 = vst [vmem:[%s1746_s16 + $0x198] sm:$0xff] %v494_v51 }
  0x33   : > { %497 = vst [vmem:[%s1746_s16 + $0x1a0] sm:$0xff] %v496_v52  ;;  %499 = vst [vmem:[%s1746_s16 + $0x1a8] sm:$0xff] %v498_v53  ;;  %v500_v54 = vld [vmem:[%s1741_s15 + $0x360] sm:$0xff]  ;;  %v502_v55 = vld [vmem:[%s1741_s15 + $0x370] sm:$0xff] }
  0x34   : > { %v504_v56 = vld [vmem:[%s1741_s15 + $0x380] sm:$0xff]  ;;  %501 = vst [vmem:[%s1746_s16 + $0x1b0] sm:$0xff] %v500_v54  ;;  %503 = vst [vmem:[%s1746_s16 + $0x1b8] sm:$0xff] %v502_v55  ;;  %v506_v57 = vld [vmem:[%s1741_s15 + $0x390] sm:$0xff] }
  0x35   : > { %505 = vst [vmem:[%s1746_s16 + $0x1c0] sm:$0xff] %v504_v56  ;;  %v508_v58 = vld [vmem:[%s1741_s15 + $0x3a0] sm:$0xff]  ;;  %v510_v59 = vld [vmem:[%s1741_s15 + $0x3b0] sm:$0xff]  ;;  %507 = vst [vmem:[%s1746_s16 + $0x1c8] sm:$0xff] %v506_v57 }
  0x36   : > { %509 = vst [vmem:[%s1746_s16 + $0x1d0] sm:$0xff] %v508_v58  ;;  %511 = vst [vmem:[%s1746_s16 + $0x1d8] sm:$0xff] %v510_v59  ;;  %v512_v60 = vld [vmem:[%s1741_s15 + $0x3c0] sm:$0xff]  ;;  %v514_v61 = vld [vmem:[%s1741_s15 + $0x3d0] sm:$0xff] }
  0x37   : > { %v516_v62 = vld [vmem:[%s1741_s15 + $0x3e0] sm:$0xff]  ;;  %513 = vst [vmem:[%s1746_s16 + $0x1e0] sm:$0xff] %v512_v60  ;;  %515 = vst [vmem:[%s1746_s16 + $0x1e8] sm:$0xff] %v514_v61  ;;  %v518_v63 = vld [vmem:[%s1741_s15 + $0x3f0] sm:$0xff] }
  0x38   : > { %517 = vst [vmem:[%s1746_s16 + $0x1f0] sm:$0xff] %v516_v62  ;;  %519 = vst [vmem:[%s1746_s16 + $0x1f8] sm:$0xff] %v518_v63 }
  0x39 PF: > { %p1354_p7 = scmp.ge.s32.totalorder %s1648_s24, 1  ;;  %p553_p8 = scmp.lt.s32.totalorder %s1648_s24, 19 }
  0x3b   : > { %p554_p9 = pnand %p1354_p7, %p553_p8 }
  0x3c   : > { %s560_s17 = sand.u32 (!%p554_p9), 1, %s1624_s18   ;;  %s1356_s27 = sshll.u32 (!%p554_p9), %s1632_s20, 2 }
  0x3d   : > { %557 = sbr.rel (%p554_p9) target bundleno = 378 (0x17a), region = 74  ;;  %s1355_s28 = sshll.u32 (!%p554_p9), %s560_s17, 9 }
  0x3e   : > { %p620_p10 = scmp.lt.s32.totalorder (!%p554_p9), %s1356_s27, 35  ;;  %s1358_s29 = sshll.u32 (!%p554_p9), %s1636_s21, 1 }
  0x3f   : > { %p630_p11 = scmp.lt.s32.totalorder (!%p554_p9), %s1358_s29, 3  ;;  %s1904_s8 = scalar_lea.vmem (!%p554_p9), [#allocation3], %s1355_s28 }
  0x40   : > { %p1364_p12 = scmp.ne.s32.totalorder (!%p554_p9), %s1632_s20, 0 }
  0x44   : > { %s2028_s27 = smov (!%p620_p10, %s1356_s27), 35  ;;  %s2030_s29 = smov (!%p630_p11, %s1358_s29), 3 }
  0x45   : > { %s1357_s30 = sshll.u32 %s2028_s27, 2  ;;  %s632_s18 = scalar_lea.vmem %s2011_s2, %s2030_s29  ;;  %v1650_v0 = vmov (!%p1364_p12), 0.0  }
  0x46   : > { %s1881_s9 = scalar_lea.vmem %s2009_s0, %s1357_s30  ;;  %s637_s21 = scalar_lea.vmem %s2012_s3, %s2030_s29  ;;  %663 = vst [vmem:[#allocation2] sm:$0xff] (!%p1364_p12), %v1650_v0  ;;  %664 = vst [vmem:[#allocation2 + $0x8] sm:$0xff] (!%p1364_p12), %v1650_v0 }
  0x47   : > { %s1361_s14 = sshll.u32 %s2030_s29, 3  ;;  %662 = sbr.rel (%p1364_p12) target bundleno = 78 (0x4e), region = 82 }
  0x48   : > { %s1897_s17 = scalar_lea.vmem %s2013_s4, %s1361_s14  ;;  %s1902_s7 = scalar_lea.vmem %s2014_s5, %s1361_s14 }
  0x4e PF: > { %v1494_v1 = vld [vmem:[%s1904_s8 + $0x4] ss:$8 sps:$4 sm:$0xff]   ;;  %v1498_v3 = vld [vmem:[%s1904_s8] ss:$8 sps:$4 sm:$0xff]   ;;  %v1500_v5 = vld [vmem:[%s1904_s8 + $0x14] ss:$8 sps:$4 sm:$0xff]  }
  0x4f   : > { %v1496_v2 = vld [vmem:[%s1904_s8 + $0x104] ss:$8 sps:$4 sm:$0xff]   ;;  %1067 = vmatprep.subr.bf16.mxu0 %v1494_v1  ;;  %v1499_v4 = vld [vmem:[%s1904_s8 + $0x100] ss:$8 sps:$4 sm:$0xff]   ;;  %v1502_v6 = vld [vmem:[%s1904_s8 + $0x114] ss:$8 sps:$4 sm:$0xff]  }
  0x50   : > { %1108 = vmatprep.subr.bf16.mxu1 %v1496_v2  ;;  %1068 = vmatpush1.bf16.msra.mxu0 %v1498_v3  ;;  %v1504_v7 = vld [vmem:[%s1904_s8 + $0x10] ss:$8 sps:$4 sm:$0xff]   ;;  %v1506_v9 = vld [vmem:[%s1904_s8 + $0x24] ss:$8 sps:$4 sm:$0xff]   ;;  %v1510_v11 = vld [vmem:[%s1904_s8 + $0x20] ss:$8 sps:$4 sm:$0xff]  }
  0x51   : > { %1109 = vmatpush1.bf16.msra.mxu1 %v1499_v4  ;;  %1069 = vmatprep.subr.bf16.mxu0 %v1500_v5  ;;  %v1505_v8 = vld [vmem:[%s1904_s8 + $0x110] ss:$8 sps:$4 sm:$0xff]   ;;  %v1508_v10 = vld [vmem:[%s1904_s8 + $0x124] ss:$8 sps:$4 sm:$0xff]   ;;  %v1511_v12 = vld [vmem:[%s1904_s8 + $0x120] ss:$8 sps:$4 sm:$0xff]  }
  0x52   : > { %1110 = vmatprep.subr.bf16.mxu1 %v1502_v6  ;;  %v1512_v13 = vld [vmem:[%s1904_s8 + $0x34] ss:$8 sps:$4 sm:$0xff]   ;;  %v1516_v15 = vld [vmem:[%s1904_s8 + $0x30] ss:$8 sps:$4 sm:$0xff]   ;;  %v1518_v17 = vld [vmem:[%s1904_s8 + $0x44] ss:$8 sps:$4 sm:$0xff]  }
  0x53   : > { %v1514_v14 = vld [vmem:[%s1904_s8 + $0x134] ss:$8 sps:$4 sm:$0xff]   ;;  %v1517_v16 = vld [vmem:[%s1904_s8 + $0x130] ss:$8 sps:$4 sm:$0xff]   ;;  %v1520_v18 = vld [vmem:[%s1904_s8 + $0x144] ss:$8 sps:$4 sm:$0xff]  }
  0x54   : > { %1070 = vmatpush1.bf16.msra.mxu0 %v1504_v7  ;;  %v1522_v19 = vld [vmem:[%s1904_s8 + $0x40] ss:$8 sps:$4 sm:$0xff]   ;;  %v1524_v21 = vld [vmem:[%s1904_s8 + $0x54] ss:$8 sps:$4 sm:$0xff]   ;;  %v1528_v23 = vld [vmem:[%s1904_s8 + $0x50] ss:$8 sps:$4 sm:$0xff]  }
  0x55   : > { %1111 = vmatpush1.bf16.msra.mxu1 %v1505_v8  ;;  %1071 = vmatprep.subr.bf16.mxu0 %v1506_v9  ;;  %v1523_v20 = vld [vmem:[%s1904_s8 + $0x140] ss:$8 sps:$4 sm:$0xff]   ;;  %v1526_v22 = vld [vmem:[%s1904_s8 + $0x154] ss:$8 sps:$4 sm:$0xff]   ;;  %v1529_v24 = vld [vmem:[%s1904_s8 + $0x150] ss:$8 sps:$4 sm:$0xff]  }
  0x56   : > { %1112 = vmatprep.subr.bf16.mxu1 %v1508_v10  ;;  %v1530_v25 = vld [vmem:[%s1904_s8 + $0x64] ss:$8 sps:$4 sm:$0xff]   ;;  %v1534_v27 = vld [vmem:[%s1904_s8 + $0x60] ss:$8 sps:$4 sm:$0xff]   ;;  %v1536_v29 = vld [vmem:[%s1904_s8 + $0x74] ss:$8 sps:$4 sm:$0xff]  }
  0x57   : > { %v1532_v26 = vld [vmem:[%s1904_s8 + $0x164] ss:$8 sps:$4 sm:$0xff]   ;;  %v1535_v28 = vld [vmem:[%s1904_s8 + $0x160] ss:$8 sps:$4 sm:$0xff]   ;;  %v1538_v30 = vld [vmem:[%s1904_s8 + $0x174] ss:$8 sps:$4 sm:$0xff]  }
  0x58   : > { %1072 = vmatpush1.bf16.msra.mxu0 %v1510_v11  ;;  %v1540_v31 = vld [vmem:[%s1904_s8 + $0x70] ss:$8 sps:$4 sm:$0xff]   ;;  %v1542_v33 = vld [vmem:[%s1904_s8 + $0x84] ss:$8 sps:$4 sm:$0xff]   ;;  %v1546_v35 = vld [vmem:[%s1904_s8 + $0x80] ss:$8 sps:$4 sm:$0xff]  }
  0x59   : > { %1113 = vmatpush1.bf16.msra.mxu1 %v1511_v12  ;;  %1073 = vmatprep.subr.bf16.mxu0 %v1512_v13  ;;  %v1541_v32 = vld [vmem:[%s1904_s8 + $0x170] ss:$8 sps:$4 sm:$0xff]   ;;  %v1544_v34 = vld [vmem:[%s1904_s8 + $0x184] ss:$8 sps:$4 sm:$0xff]   ;;  %v1547_v36 = vld [vmem:[%s1904_s8 + $0x180] ss:$8 sps:$4 sm:$0xff]  }
  0x5a   : > { %1114 = vmatprep.subr.bf16.mxu1 %v1514_v14  ;;  %v1548_v37 = vld [vmem:[%s1904_s8 + $0x94] ss:$8 sps:$4 sm:$0xff]   ;;  %v1552_v39 = vld [vmem:[%s1904_s8 + $0x90] ss:$8 sps:$4 sm:$0xff]   ;;  %v1554_v41 = vld [vmem:[%s1904_s8 + $0xa4] ss:$8 sps:$4 sm:$0xff]  }
  0x5b   : > { %v1550_v38 = vld [vmem:[%s1904_s8 + $0x194] ss:$8 sps:$4 sm:$0xff]   ;;  %v1553_v40 = vld [vmem:[%s1904_s8 + $0x190] ss:$8 sps:$4 sm:$0xff]   ;;  %v1556_v42 = vld [vmem:[%s1904_s8 + $0x1a4] ss:$8 sps:$4 sm:$0xff]  }
  0x5c   : > { %1074 = vmatpush1.bf16.msra.mxu0 %v1516_v15  ;;  %v1558_v43 = vld [vmem:[%s1904_s8 + $0xa0] ss:$8 sps:$4 sm:$0xff]   ;;  %v1560_v45 = vld [vmem:[%s1904_s8 + $0xb4] ss:$8 sps:$4 sm:$0xff]   ;;  %v1564_v50 = vld [vmem:[%s1904_s8 + $0xb0] ss:$8 sps:$4 sm:$0xff]  }
  0x5d   : > { %1115 = vmatpush1.bf16.msra.mxu1 %v1517_v16  ;;  %1075 = vmatprep.subr.bf16.mxu0 %v1518_v17  ;;  %v1559_v44 = vld [vmem:[%s1904_s8 + $0x1a0] ss:$8 sps:$4 sm:$0xff]   ;;  %v1562_v46 = vld [vmem:[%s1904_s8 + $0x1b4] ss:$8 sps:$4 sm:$0xff]   ;;  %v1565_v51 = vld [vmem:[%s1904_s8 + $0x1b0] ss:$8 sps:$4 sm:$0xff]  }
  0x5e   : > { %1116 = vmatprep.subr.bf16.mxu1 %v1520_v18  ;;  %v667_v47 = vld [vmem:[%s1881_s9] sm:$0xff]  ;;  %v668_v49 = vld [vmem:[%s1881_s9 + $0x8] sm:$0xff]  ;;  %v1566_v53 = vld [vmem:[%s1904_s8 + $0xc4] ss:$8 sps:$4 sm:$0xff]   ;;  %p1433_p13 = scmp.ne.s32.totalorder %s1632_s20, 8 }
  0x5f   : > { %v1366_v48 = vcombine.high %v667_v47, %v667_v47  ;;  %v1368_v52 = vcombine.high %v668_v49, %v668_v49  ;;  %v1568_v54 = vld [vmem:[%s1904_s8 + $0x1c4] ss:$8 sps:$4 sm:$0xff]   ;;  %v1570_v55 = vld [vmem:[%s1904_s8 + $0xc0] ss:$8 sps:$4 sm:$0xff]   ;;  %v1572_v57 = vld [vmem:[%s1904_s8 + $0xd4] ss:$8 sps:$4 sm:$0xff]   ;;  %v1365_v5 = vcombine.low %v667_v47, %v667_v47  ;;  %v1367_v6 = vcombine.low %v668_v49, %v668_v49 }
  0x60   : > { %1076 = vmatpush1.bf16.msra.mxu0 %v1522_v19  ;;  %v1571_v56 = vld [vmem:[%s1904_s8 + $0x1c0] ss:$8 sps:$4 sm:$0xff]   ;;  %v1574_v58 = vld [vmem:[%s1904_s8 + $0x1d4] ss:$8 sps:$4 sm:$0xff]   ;;  %v1576_v59 = vld [vmem:[%s1904_s8 + $0xd0] ss:$8 sps:$4 sm:$0xff]  }
  0x61   : > { %1117 = vmatpush1.bf16.msra.mxu1 %v1523_v20  ;;  %1077 = vmatprep.subr.bf16.mxu0 %v1524_v21  ;;  %v1577_v60 = vld [vmem:[%s1904_s8 + $0x1d0] ss:$8 sps:$4 sm:$0xff]   ;;  %v1578_v61 = vld [vmem:[%s1904_s8 + $0xe4] ss:$8 sps:$4 sm:$0xff]   ;;  %v1582_v63 = vld [vmem:[%s1904_s8 + $0xe0] ss:$8 sps:$4 sm:$0xff]   ;;  %v1161_v21 = vlaneseq (!%p1433_p13) }
  0x62   : > { %1118 = vmatprep.subr.bf16.mxu1 %v1526_v22  ;;  %1099 = vmatprep.mubr.bf16.mxu0 %v1366_v48  ;;  %v1580_v62 = vld [vmem:[%s1904_s8 + $0x1e4] ss:$8 sps:$4 sm:$0xff]   ;;  %v1583_v0 = vld [vmem:[%s1904_s8 + $0x1e0] ss:$8 sps:$4 sm:$0xff]   ;;  %v1584_v1 = vld [vmem:[%s1904_s8 + $0xf4] ss:$8 sps:$4 sm:$0xff]  }
  0x63   : > { %1140 = vmatprep.mubr.bf16.mxu1 %v1368_v52  ;;  %v1586_v2 = vld [vmem:[%s1904_s8 + $0x1f4] ss:$8 sps:$4 sm:$0xff]   ;;  %v1588_v3 = vld [vmem:[%s1904_s8 + $0xf0] ss:$8 sps:$4 sm:$0xff]   ;;  %v1162_v22 = vshrl.u32 (!%p1433_p13), %v1161_v21, 7 }
  0x64   : > { %1078 = vmatpush1.bf16.msra.mxu0 %v1528_v23  ;;  %v1589_v4 = vld [vmem:[%s1904_s8 + $0x1f0] ss:$8 sps:$4 sm:$0xff]  }
  0x65   : > { %1119 = vmatpush1.bf16.msra.mxu1 %v1529_v24  ;;  %1079 = vmatprep.subr.bf16.mxu0 %v1530_v25  ;;  %v665_v8 = vld [vmem:[#allocation2] sm:$0xff]  ;;  %v666_v12 = vld [vmem:[#allocation2 + $0x8] sm:$0xff]  ;;  %v1163_v25 = vsub.s32 (!%p1433_p13), 0, %v1162_v22 }
  0x66   : > { %1120 = vmatprep.subr.bf16.mxu1 %v1532_v26  ;;  %v1159_v23 = vld [vmem:[%s632_s18] sm:$0x3] (!%p1433_p13)  ;;  %v1167_v26 = vsub.s32 (!%p1433_p13), 1, %v1162_v22 }
  0x67   : > { %v1173_v24 = vld [vmem:[%s637_s21] sm:$0x3] (!%p1433_p13) }
  0x68   : > { %1080 = vmatpush1.bf16.msra.mxu0 %v1534_v27 }
  0x69   : > { %1121 = vmatpush1.bf16.msra.mxu1 %v1535_v28  ;;  %1081 = vmatprep.subr.bf16.mxu0 %v1536_v29  ;;  %v1164_v29 = vrot.slane (!%p1433_p13), %v1159_v23, %v1163_v25 }
  0x6a   : > { %1122 = vmatprep.subr.bf16.mxu1 %v1538_v30  ;;  %v1178_v30 = vrot.slane (!%p1433_p13), %v1173_v24, %v1163_v25 }
  0x6c   : > { %1082 = vmatpush1.bf16.msra.mxu0 %v1540_v31  ;;  %v1168_v31 = vrot.slane (!%p1433_p13), %v1159_v23, %v1167_v26 }
  0x6d   : > { %1123 = vmatpush1.bf16.msra.mxu1 %v1541_v32  ;;  %1083 = vmatprep.subr.bf16.mxu0 %v1542_v33  ;;  %v1182_v32 = vrot.slane (!%p1433_p13), %v1173_v24, %v1167_v26 }
  0x6e   : > { %1124 = vmatprep.subr.bf16.mxu1 %v1544_v34 }
  0x70   : > { %1084 = vmatpush1.bf16.msra.mxu0 %v1546_v35  ;;  %v1187_v35 = vld [vmem:[%s1897_s17] sm:$0xff] (!%p1433_p13) }
  0x71   : > { %1125 = vmatpush1.bf16.msra.mxu1 %v1547_v36  ;;  %1085 = vmatprep.subr.bf16.mxu0 %v1548_v37  ;;  %v1188_v36 = vld [vmem:[%s1897_s17 + $0x8] sm:$0xff] (!%p1433_p13) }
  0x72   : > { %1126 = vmatprep.subr.bf16.mxu1 %v1550_v38 }
  0x74   : > { %1086 = vmatpush1.bf16.msra.mxu0 %v1552_v39 }
  0x75   : > { %1127 = vmatpush1.bf16.msra.mxu1 %v1553_v40  ;;  %1087 = vmatprep.subr.bf16.mxu0 %v1554_v41 }
  0x76   : > { %1128 = vmatprep.subr.bf16.mxu1 %v1556_v42 }
  0x78   : > { %1088 = vmatpush1.bf16.msra.mxu0 %v1558_v43 }
  0x79   : > { %1129 = vmatpush1.bf16.msra.mxu1 %v1559_v44  ;;  %1089 = vmatprep.subr.bf16.mxu0 %v1560_v45 }
  0x7a   : > { %1130 = vmatprep.subr.bf16.mxu1 %v1562_v46 }
  0x7c   : > { %1090 = vmatpush1.bf16.msra.mxu0 %v1564_v50 }
  0x7d   : > { %1131 = vmatpush1.bf16.msra.mxu1 %v1565_v51  ;;  %1091 = vmatprep.subr.bf16.mxu0 %v1566_v53 }
  0x7e   : > { %1132 = vmatprep.subr.bf16.mxu1 %v1568_v54 }
  0x80   : > { %1092 = vmatpush1.bf16.msra.mxu0 %v1570_v55 }
  0x81   : > { %1133 = vmatpush1.bf16.msra.mxu1 %v1571_v56  ;;  %1093 = vmatprep.subr.bf16.mxu0 %v1572_v57 }
  0x82   : > { %1134 = vmatprep.subr.bf16.mxu1 %v1574_v58 }
  0x84   : > { %1094 = vmatpush1.bf16.msra.mxu0 %v1576_v59 }
  0x85   : > { %1135 = vmatpush1.bf16.msra.mxu1 %v1577_v60  ;;  %1095 = vmatprep.subr.bf16.mxu0 %v1578_v61 }
  0x86   : > { %1136 = vmatprep.subr.bf16.mxu1 %v1580_v62 }
  0x88   : > { %1096 = vmatpush1.bf16.msra.mxu0 %v1582_v63 }
  0x89   : > { %1137 = vmatpush1.bf16.msra.mxu1 %v1583_v0  ;;  %1097 = vmatprep.subr.bf16.mxu0 %v1584_v1 }
  0x8a   : > { %1138 = vmatprep.subr.bf16.mxu1 %v1586_v2 }
  0x8c   : > { %1098 = vmatpush1.bf16.msra.mxu0 %v1588_v3 }
  0x8d   : > { %1139 = vmatpush1.bf16.msra.mxu1 %v1589_v4 }
  0x8f   : > { %1100 = vmatmul.mubr.bf16.vlgmr.msra.gmra.mrb[0].mxu0 %v1365_v5 }
  0x90   : > { %1141 = vmatmul.mubr.bf16.vlgmr.msra.gmra.mrb[0].mxu1 %v1367_v6 }
 0x162   : > { %v1101_v7 = vpop.f32.mrb[0].mxu0 }
 0x163   : > { %v1142_v9 = vpop.f32.mrb[0].mxu1  ;;  %v1103_v11 = vpop.f32.mrb[1].mxu0  ;;  %1156 = sbr.rel (%p1433_p13) target bundleno = 378 (0x17a), region = 86 }
 0x164   : > { %v1143_v10 = vadd.f32 %v1142_v9, %v1101_v7  ;;  %v1144_v13 = vpop.f32.mrb[1].mxu1  ;;  %v1105_v15 = vpop.f32.mrb[2].mxu0 }
 0x165   : > { %v1145_v14 = vadd.f32 %v1144_v13, %v1103_v11  ;;  %v1146_v16 = vpop.f32.mrb[2].mxu1  ;;  %v1106_v18 = vpop.f32.mrb[3].mxu0 }
 0x166   : > { %v1149_v17 = vadd.f32 %v1143_v10, %v665_v8  ;;  %v1147_v19 = vpop.f32.mrb[3].mxu1 }
 0x167   : > { %v1150_v20 = vadd.f32 %v1145_v14, %v666_v12 }
 0x168   : > { %1151 = vst [vmem:[#allocation2] sm:$0xff] %v1149_v17 }
 0x169   : > { %1152 = vst [vmem:[#allocation2 + $0x8] sm:$0xff] %v1150_v20 }
 0x16f   : > { %v1157_v27 = vld [vmem:[#allocation2] sm:$0xff] }
 0x170   : > { %v1158_v28 = vld [vmem:[#allocation2 + $0x8] sm:$0xff]  ;;  %v1171_v33 = vmul.f32 %v1164_v29, %v1157_v27 }
 0x171   : > { %v1172_v34 = vmul.f32 %v1168_v31, %v1158_v28 }
 0x172   : > { %v1185_v37 = vadd.f32 %v1178_v30, %v1171_v33 }
 0x173   : > { %v1186_v38 = vadd.f32 %v1182_v32, %v1172_v34 }
 0x174   : > { %v1189_v39 = vadd.f32 %v1187_v35, %v1185_v37 }
 0x175   : > { %v1190_v40 = vadd.f32 %v1188_v36, %v1186_v38 }
 0x176   : > { %v1191_v41 = vmax.f32 %v1189_v39, 0.0 }
 0x177   : > { %v1192_v42 = vmax.f32 %v1190_v40, 0.0 }
 0x178   : > { %1193 = vst [vmem:[%s1902_s7] sm:$0xff] %v1191_v41 }
 0x179   : > { %1194 = vst [vmem:[%s1902_s7 + $0x8] sm:$0xff] %v1192_v42 }
 0x17a PF: > { %s15_s24 = sadd.s32 1, %s1648_s24   ;;  %s2015_s18 = smov %s1628_s19 }
 0x17b   : > { %p12_p0 = scmp.ge.s32.totalorder %s15_s24, 20   ;;  %s2016_s19 = smov %s1732_s6 }
 0x17c   : > { %s2017_s20 = smov %s1640_s22  ;;  %s2018_s21 = smov %s1644_s23 }
 0x17d   : > { %s2019_s22 = smov %s2022_s25  ;;  %s2020_s23 = smov %s2026_s26 }
 0x17e   :  { %14 = sbr.rel (!%p12_p0) target bundleno = 4 (0x4), region = 133 }

// kernel: resnet_forward.39
= control target key start
LH: loop header
LB: loop body
LE: loop exit
PB: predicated region body
PF: predicated region fallthrough
CT: control target
= control target key end

     0   :  { %s1589_s15 = smov 0   ;;  %s1591_s16 = smov 0   ;;  %s1910_s0 = inlined_call_operand.vmem [shape: bf16[8,4608], index: 0, kind: input, shape index: {}]   ;;  %s1911_s1 = inlined_call_operand.vmem [shape: bf16[4608,512], index: 1, kind: input, shape index: {}]   ;;  %s1912_s2 = inlined_call_operand.vmem [shape: f32[1,512], index: 2, kind: input, shape index: {}]   ;;  %s1913_s3 = inlined_call_operand.vmem [shape: f32[1,512], index: 3, kind: input, shape index: {}]   ;;  %s1914_s4 = inlined_call_operand.vmem [shape: f32[8,512], index: 4, kind: output, shape index: {}]  }
   0x1   :  { %s1593_s17 = smov 0   ;;  %s1595_s18 = smov 0  }
   0x2   :  { %s1597_s19 = smov 0   ;;  %s1599_s20 = smov 0  }
   0x3   :  { %s1601_s21 = smov 0  }
   0x4 LB: > { %s26_s22 = sadd.s32 1, %s1553_s19  ;;  %s29_s23 = sadd.s32 1, %s1557_s20  ;;  %s1561_s21 = sphi %s1601_s21, %s14_s21   ;;  %s1557_s20 = sphi %s1599_s20, %s1920_s20   ;;  %s1553_s19 = sphi %s1597_s19, %s1919_s19   ;;  %s1549_s18 = sphi %s1595_s18, %s1918_s18   ;;  %s1545_s17 = sphi %s1593_s17, %s1917_s17   ;;  %s1541_s16 = sphi %s1591_s16, %s1916_s16   ;;  %s1537_s15 = sphi %s1589_s15, %s1915_s15  }
   0x5   : > { %p27_p0 = scmp.ge.s32.totalorder %s26_s22, 9  ;;  %p77_p1 = scmp.ne.s32.totalorder %s1541_s16, %s1537_s15 }
   0x6   : > { %p78_p2 = scmp.eq.s32.totalorder %s1561_s21, 0  ;;  %s70_s27 = sadd.s32 1, %s1541_s16 }
   0x7   : > { %s1922_s22 = smov (%p27_p0, %s26_s22), 0  ;;  %s1924_s23 = smov (!%p27_p0, %s29_s23), %s1557_s20 }
   0x8   : > { %p79_p3 = por %p78_p2, %p77_p1  ;;  %p31_p4 = scmp.ge.s32.totalorder %s1924_s23, 2 }
   0x9   : > { %s65_s24 = ssub.s32 %s1553_s19, %s1922_s22  ;;  %p1263_p6 = scmp.ge.s32.totalorder %s1561_s21, 18 }
   0xa   : > { %s1926_s23 = smov (%p31_p4, %s1924_s23), 0 }
   0xb   : > { %s66_s25 = ssub.s32 %s1557_s20, %s1926_s23  ;;  %183 = sbr.rel (%p1263_p6) target bundleno = 57 (0x39), region = 16 }
   0xc   : > { %s67_s26 = sor.u32 %s66_s25, %s65_s24 }
   0xd   : > { %p68_p5 = scmp.eq.s32.totalorder %s67_s26, 0 }
   0xf   : > { %s1640_s28 = scalar_select %p68_p5, %s1541_s16, %s70_s27  }
  0x12   : > { %199 = sbr.rel (!%p79_p3) target bundleno = 57 (0x39), region = 24  ;;  %s201_s29 = sand.u32 (%p79_p3), 1, %s1541_s16  }
  0x13   : > { %s1266_s30 = sshll.u32 (%p79_p3), %s1557_s20, 1  ;;  %s1264_s5 = sshll.u32 (%p79_p3), %s201_s29, 9 }
  0x14   : > { %s1349_s6 = sshll.u32 (%p79_p3), %s1553_s19, 8  ;;  %s1654_s12 = scalar_lea.vmem (%p79_p3), [#allocation3], %s1264_s5 }
  0x15   : > { %s207_s7 = sadd.s32 (%p79_p3), %s1349_s6, %s1266_s30 }
  0x16   : > { %s1268_s8 = sshll.u32 (%p79_p3), %s207_s7, 2 }
  0x17   : > { %s1649_s11 = scalar_lea.vmem (%p79_p3), %s1911_s1, %s1268_s8 }
  0x18   : > { %v363_v0 = vld [vmem:[%s1649_s11] sm:$0xff] (%p79_p3)  ;;  %v365_v1 = vld [vmem:[%s1649_s11 + $0x10] sm:$0xff] (%p79_p3) }
  0x19   : > { %v367_v2 = vld [vmem:[%s1649_s11 + $0x20] sm:$0xff]  ;;  %364 = vst [vmem:[%s1654_s12] sm:$0xff] %v363_v0  ;;  %366 = vst [vmem:[%s1654_s12 + $0x8] sm:$0xff] %v365_v1  ;;  %v369_v3 = vld [vmem:[%s1649_s11 + $0x30] sm:$0xff] }
  0x1a   : > { %368 = vst [vmem:[%s1654_s12 + $0x10] sm:$0xff] %v367_v2  ;;  %v371_v4 = vld [vmem:[%s1649_s11 + $0x40] sm:$0xff]  ;;  %v373_v5 = vld [vmem:[%s1649_s11 + $0x50] sm:$0xff]  ;;  %370 = vst [vmem:[%s1654_s12 + $0x18] sm:$0xff] %v369_v3 }
  0x1b   : > { %372 = vst [vmem:[%s1654_s12 + $0x20] sm:$0xff] %v371_v4  ;;  %374 = vst [vmem:[%s1654_s12 + $0x28] sm:$0xff] %v373_v5  ;;  %v375_v6 = vld [vmem:[%s1649_s11 + $0x60] sm:$0xff]  ;;  %v377_v7 = vld [vmem:[%s1649_s11 + $0x70] sm:$0xff] }
  0x1c   : > { %v379_v8 = vld [vmem:[%s1649_s11 + $0x80] sm:$0xff]  ;;  %376 = vst [vmem:[%s1654_s12 + $0x30] sm:$0xff] %v375_v6  ;;  %378 = vst [vmem:[%s1654_s12 + $0x38] sm:$0xff] %v377_v7  ;;  %v381_v9 = vld [vmem:[%s1649_s11 + $0x90] sm:$0xff] }
  0x1d   : > { %380 = vst [vmem:[%s1654_s12 + $0x40] sm:$0xff] %v379_v8  ;;  %v383_v10 = vld [vmem:[%s1649_s11 + $0xa0] sm:$0xff]  ;;  %v385_v11 = vld [vmem:[%s1649_s11 + $0xb0] sm:$0xff]  ;;  %382 = vst [vmem:[%s1654_s12 + $0x48] sm:$0xff] %v381_v9 }
  0x1e   : > { %384 = vst [vmem:[%s1654_s12 + $0x50] sm:$0xff] %v383_v10  ;;  %386 = vst [vmem:[%s1654_s12 + $0x58] sm:$0xff] %v385_v11  ;;  %v387_v12 = vld [vmem:[%s1649_s11 + $0xc0] sm:$0xff]  ;;  %v389_v13 = vld [vmem:[%s1649_s11 + $0xd0] sm:$0xff] }
  0x1f   : > { %v391_v14 = vld [vmem:[%s1649_s11 + $0xe0] sm:$0xff]  ;;  %388 = vst [vmem:[%s1654_s12 + $0x60] sm:$0xff] %v387_v12  ;;  %390 = vst [vmem:[%s1654_s12 + $0x68] sm:$0xff] %v389_v13  ;;  %v393_v15 = vld [vmem:[%s1649_s11 + $0xf0] sm:$0xff] }
  0x20   : > { %392 = vst [vmem:[%s1654_s12 + $0x70] sm:$0xff] %v391_v14  ;;  %v395_v16 = vld [vmem:[%s1649_s11 + $0x100] sm:$0xff]  ;;  %v397_v17 = vld [vmem:[%s1649_s11 + $0x110] sm:$0xff]  ;;  %394 = vst [vmem:[%s1654_s12 + $0x78] sm:$0xff] %v393_v15 }
  0x21   : > { %396 = vst [vmem:[%s1654_s12 + $0x80] sm:$0xff] %v395_v16  ;;  %398 = vst [vmem:[%s1654_s12 + $0x88] sm:$0xff] %v397_v17  ;;  %v399_v18 = vld [vmem:[%s1649_s11 + $0x120] sm:$0xff]  ;;  %v401_v19 = vld [vmem:[%s1649_s11 + $0x130] sm:$0xff] }
  0x22   : > { %v403_v20 = vld [vmem:[%s1649_s11 + $0x140] sm:$0xff]  ;;  %400 = vst [vmem:[%s1654_s12 + $0x90] sm:$0xff] %v399_v18  ;;  %402 = vst [vmem:[%s1654_s12 + $0x98] sm:$0xff] %v401_v19  ;;  %v405_v21 = vld [vmem:[%s1649_s11 + $0x150] sm:$0xff] }
  0x23   : > { %404 = vst [vmem:[%s1654_s12 + $0xa0] sm:$0xff] %v403_v20  ;;  %v407_v22 = vld [vmem:[%s1649_s11 + $0x160] sm:$0xff]  ;;  %v409_v23 = vld [vmem:[%s1649_s11 + $0x170] sm:$0xff]  ;;  %406 = vst [vmem:[%s1654_s12 + $0xa8] sm:$0xff] %v405_v21 }
  0x24   : > { %408 = vst [vmem:[%s1654_s12 + $0xb0] sm:$0xff] %v407_v22  ;;  %410 = vst [vmem:[%s1654_s12 + $0xb8] sm:$0xff] %v409_v23  ;;  %v411_v24 = vld [vmem:[%s1649_s11 + $0x180] sm:$0xff]  ;;  %v413_v25 = vld [vmem:[%s1649_s11 + $0x190] sm:$0xff] }
  0x25   : > { %v415_v26 = vld [vmem:[%s1649_s11 + $0x1a0] sm:$0xff]  ;;  %412 = vst [vmem:[%s1654_s12 + $0xc0] sm:$0xff] %v411_v24  ;;  %414 = vst [vmem:[%s1654_s12 + $0xc8] sm:$0xff] %v413_v25  ;;  %v417_v27 = vld [vmem:[%s1649_s11 + $0x1b0] sm:$0xff] }
  0x26   : > { %416 = vst [vmem:[%s1654_s12 + $0xd0] sm:$0xff] %v415_v26  ;;  %v419_v28 = vld [vmem:[%s1649_s11 + $0x1c0] sm:$0xff]  ;;  %v421_v29 = vld [vmem:[%s1649_s11 + $0x1d0] sm:$0xff]  ;;  %418 = vst [vmem:[%s1654_s12 + $0xd8] sm:$0xff] %v417_v27 }
  0x27   : > { %420 = vst [vmem:[%s1654_s12 + $0xe0] sm:$0xff] %v419_v28  ;;  %422 = vst [vmem:[%s1654_s12 + $0xe8] sm:$0xff] %v421_v29  ;;  %v423_v30 = vld [vmem:[%s1649_s11 + $0x1e0] sm:$0xff]  ;;  %v425_v31 = vld [vmem:[%s1649_s11 + $0x1f0] sm:$0xff] }
  0x28   : > { %v427_v32 = vld [vmem:[%s1649_s11 + $0x200] sm:$0xff]  ;;  %424 = vst [vmem:[%s1654_s12 + $0xf0] sm:$0xff] %v423_v30  ;;  %426 = vst [vmem:[%s1654_s12 + $0xf8] sm:$0xff] %v425_v31  ;;  %v429_v33 = vld [vmem:[%s1649_s11 + $0x210] sm:$0xff] }
  0x29   : > { %428 = vst [vmem:[%s1654_s12 + $0x100] sm:$0xff] %v427_v32  ;;  %v431_v34 = vld [vmem:[%s1649_s11 + $0x220] sm:$0xff]  ;;  %v433_v35 = vld [vmem:[%s1649_s11 + $0x230] sm:$0xff]  ;;  %430 = vst [vmem:[%s1654_s12 + $0x108] sm:$0xff] %v429_v33 }
  0x2a   : > { %432 = vst [vmem:[%s1654_s12 + $0x110] sm:$0xff] %v431_v34  ;;  %434 = vst [vmem:[%s1654_s12 + $0x118] sm:$0xff] %v433_v35  ;;  %v435_v36 = vld [vmem:[%s1649_s11 + $0x240] sm:$0xff]  ;;  %v437_v37 = vld [vmem:[%s1649_s11 + $0x250] sm:$0xff] }
  0x2b   : > { %v439_v38 = vld [vmem:[%s1649_s11 + $0x260] sm:$0xff]  ;;  %436 = vst [vmem:[%s1654_s12 + $0x120] sm:$0xff] %v435_v36  ;;  %438 = vst [vmem:[%s1654_s12 + $0x128] sm:$0xff] %v437_v37  ;;  %v441_v39 = vld [vmem:[%s1649_s11 + $0x270] sm:$0xff] }
  0x2c   : > { %440 = vst [vmem:[%s1654_s12 + $0x130] sm:$0xff] %v439_v38  ;;  %v443_v40 = vld [vmem:[%s1649_s11 + $0x280] sm:$0xff]  ;;  %v445_v41 = vld [vmem:[%s1649_s11 + $0x290] sm:$0xff]  ;;  %442 = vst [vmem:[%s1654_s12 + $0x138] sm:$0xff] %v441_v39 }
  0x2d   : > { %444 = vst [vmem:[%s1654_s12 + $0x140] sm:$0xff] %v443_v40  ;;  %446 = vst [vmem:[%s1654_s12 + $0x148] sm:$0xff] %v445_v41  ;;  %v447_v42 = vld [vmem:[%s1649_s11 + $0x2a0] sm:$0xff]  ;;  %v449_v43 = vld [vmem:[%s1649_s11 + $0x2b0] sm:$0xff] }
  0x2e   : > { %v451_v44 = vld [vmem:[%s1649_s11 + $0x2c0] sm:$0xff]  ;;  %448 = vst [vmem:[%s1654_s12 + $0x150] sm:$0xff] %v447_v42  ;;  %450 = vst [vmem:[%s1654_s12 + $0x158] sm:$0xff] %v449_v43  ;;  %v453_v45 = vld [vmem:[%s1649_s11 + $0x2d0] sm:$0xff] }
  0x2f   : > { %452 = vst [vmem:[%s1654_s12 + $0x160] sm:$0xff] %v451_v44  ;;  %v455_v46 = vld [vmem:[%s1649_s11 + $0x2e0] sm:$0xff]  ;;  %v457_v47 = vld [vmem:[%s1649_s11 + $0x2f0] sm:$0xff]  ;;  %454 = vst [vmem:[%s1654_s12 + $0x168] sm:$0xff] %v453_v45 }
  0x30   : > { %456 = vst [vmem:[%s1654_s12 + $0x170] sm:$0xff] %v455_v46  ;;  %458 = vst [vmem:[%s1654_s12 + $0x178] sm:$0xff] %v457_v47  ;;  %v459_v48 = vld [vmem:[%s1649_s11 + $0x300] sm:$0xff]  ;;  %v461_v49 = vld [vmem:[%s1649_s11 + $0x310] sm:$0xff] }
  0x31   : > { %v463_v50 = vld [vmem:[%s1649_s11 + $0x320] sm:$0xff]  ;;  %460 = vst [vmem:[%s1654_s12 + $0x180] sm:$0xff] %v459_v48  ;;  %462 = vst [vmem:[%s1654_s12 + $0x188] sm:$0xff] %v461_v49  ;;  %v465_v51 = vld [vmem:[%s1649_s11 + $0x330] sm:$0xff] }
  0x32   : > { %464 = vst [vmem:[%s1654_s12 + $0x190] sm:$0xff] %v463_v50  ;;  %v467_v52 = vld [vmem:[%s1649_s11 + $0x340] sm:$0xff]  ;;  %v469_v53 = vld [vmem:[%s1649_s11 + $0x350] sm:$0xff]  ;;  %466 = vst [vmem:[%s1654_s12 + $0x198] sm:$0xff] %v465_v51 }
  0x33   : > { %468 = vst [vmem:[%s1654_s12 + $0x1a0] sm:$0xff] %v467_v52  ;;  %470 = vst [vmem:[%s1654_s12 + $0x1a8] sm:$0xff] %v469_v53  ;;  %v471_v54 = vld [vmem:[%s1649_s11 + $0x360] sm:$0xff]  ;;  %v473_v55 = vld [vmem:[%s1649_s11 + $0x370] sm:$0xff] }
  0x34   : > { %v475_v56 = vld [vmem:[%s1649_s11 + $0x380] sm:$0xff]  ;;  %472 = vst [vmem:[%s1654_s12 + $0x1b0] sm:$0xff] %v471_v54  ;;  %474 = vst [vmem:[%s1654_s12 + $0x1b8] sm:$0xff] %v473_v55  ;;  %v477_v57 = vld [vmem:[%s1649_s11 + $0x390] sm:$0xff] }
  0x35   : > { %476 = vst [vmem:[%s1654_s12 + $0x1c0] sm:$0xff] %v475_v56  ;;  %v479_v58 = vld [vmem:[%s1649_s11 + $0x3a0] sm:$0xff]  ;;  %v481_v59 = vld [vmem:[%s1649_s11 + $0x3b0] sm:$0xff]  ;;  %478 = vst [vmem:[%s1654_s12 + $0x1c8] sm:$0xff] %v477_v57 }
  0x36   : > { %480 = vst [vmem:[%s1654_s12 + $0x1d0] sm:$0xff] %v479_v58  ;;  %482 = vst [vmem:[%s1654_s12 + $0x1d8] sm:$0xff] %v481_v59  ;;  %v483_v60 = vld [vmem:[%s1649_s11 + $0x3c0] sm:$0xff]  ;;  %v485_v61 = vld [vmem:[%s1649_s11 + $0x3d0] sm:$0xff] }
  0x37   : > { %v487_v62 = vld [vmem:[%s1649_s11 + $0x3e0] sm:$0xff]  ;;  %484 = vst [vmem:[%s1654_s12 + $0x1e0] sm:$0xff] %v483_v60  ;;  %486 = vst [vmem:[%s1654_s12 + $0x1e8] sm:$0xff] %v485_v61  ;;  %v489_v63 = vld [vmem:[%s1649_s11 + $0x3f0] sm:$0xff] }
  0x38   : > { %488 = vst [vmem:[%s1654_s12 + $0x1f0] sm:$0xff] %v487_v62  ;;  %490 = vst [vmem:[%s1654_s12 + $0x1f8] sm:$0xff] %v489_v63 }
  0x39 PF: > { %p1269_p7 = scmp.ge.s32.totalorder %s1561_s21, 1  ;;  %p511_p8 = scmp.lt.s32.totalorder %s1561_s21, 19 }
  0x3b   : > { %p512_p9 = pnand %p1269_p7, %p511_p8 }
  0x3c   : > { %s518_s13 = sand.u32 (!%p512_p9), 1, %s1537_s15   ;;  %s1271_s14 = sshll.u32 (!%p512_p9), %s1545_s17, 2 }
  0x3d   : > { %515 = sbr.rel (%p512_p9) target bundleno = 376 (0x178), region = 70  ;;  %s1270_s24 = sshll.u32 (!%p512_p9), %s518_s13, 9 }
  0x3e   : > { %p567_p10 = scmp.lt.s32.totalorder (!%p512_p9), %s1271_s14, 35  ;;  %s1273_s25 = sshll.u32 (!%p512_p9), %s1549_s18, 1 }
  0x3f   : > { %p577_p11 = scmp.lt.s32.totalorder (!%p512_p9), %s1273_s25, 3  ;;  %s1807_s13 = scalar_lea.vmem (!%p512_p9), [#allocation3], %s1270_s24 }
  0x40   : > { %p1277_p12 = scmp.ne.s32.totalorder (!%p512_p9), %s1545_s17, 0 }
  0x44   : > { %s1928_s14 = smov (!%p567_p10, %s1271_s14), 35  ;;  %s1930_s25 = smov (!%p577_p11, %s1273_s25), 3 }
  0x45   : > { %s1272_s26 = sshll.u32 %s1928_s14, 2  ;;  %s579_s15 = scalar_lea.vmem %s1912_s2, %s1930_s25  ;;  %v1563_v0 = vmov (!%p1277_p12), 0.0  }
  0x46   : > { %s1789_s30 = scalar_lea.vmem %s1910_s0, %s1272_s26  ;;  %s584_s18 = scalar_lea.vmem %s1913_s3, %s1930_s25  ;;  %600 = vst [vmem:[#allocation2] sm:$0xff] (!%p1277_p12), %v1563_v0  ;;  %601 = vst [vmem:[#allocation2 + $0x8] sm:$0xff] (!%p1277_p12), %v1563_v0 }
  0x47   : > { %s1276_s9 = sshll.u32 %s1930_s25, 3  ;;  %599 = sbr.rel (%p1277_p12) target bundleno = 78 (0x4e), region = 78 }
  0x48   : > { %s1805_s12 = scalar_lea.vmem %s1914_s4, %s1276_s9 }
  0x4e PF: > { %v1407_v1 = vld [vmem:[%s1807_s13 + $0x4] ss:$8 sps:$4 sm:$0xff]   ;;  %v1411_v3 = vld [vmem:[%s1807_s13] ss:$8 sps:$4 sm:$0xff]   ;;  %v1413_v5 = vld [vmem:[%s1807_s13 + $0x14] ss:$8 sps:$4 sm:$0xff]  }
  0x4f   : > { %v1409_v2 = vld [vmem:[%s1807_s13 + $0x104] ss:$8 sps:$4 sm:$0xff]   ;;  %1004 = vmatprep.subr.bf16.mxu0 %v1407_v1  ;;  %v1412_v4 = vld [vmem:[%s1807_s13 + $0x100] ss:$8 sps:$4 sm:$0xff]   ;;  %v1415_v6 = vld [vmem:[%s1807_s13 + $0x114] ss:$8 sps:$4 sm:$0xff]  }
  0x50   : > { %1045 = vmatprep.subr.bf16.mxu1 %v1409_v2  ;;  %1005 = vmatpush1.bf16.msra.mxu0 %v1411_v3  ;;  %v1417_v7 = vld [vmem:[%s1807_s13 + $0x10] ss:$8 sps:$4 sm:$0xff]   ;;  %v1419_v9 = vld [vmem:[%s1807_s13 + $0x24] ss:$8 sps:$4 sm:$0xff]   ;;  %v1423_v11 = vld [vmem:[%s1807_s13 + $0x20] ss:$8 sps:$4 sm:$0xff]  }
  0x51   : > { %1046 = vmatpush1.bf16.msra.mxu1 %v1412_v4  ;;  %1006 = vmatprep.subr.bf16.mxu0 %v1413_v5  ;;  %v1418_v8 = vld [vmem:[%s1807_s13 + $0x110] ss:$8 sps:$4 sm:$0xff]   ;;  %v1421_v10 = vld [vmem:[%s1807_s13 + $0x124] ss:$8 sps:$4 sm:$0xff]   ;;  %v1424_v12 = vld [vmem:[%s1807_s13 + $0x120] ss:$8 sps:$4 sm:$0xff]  }
  0x52   : > { %1047 = vmatprep.subr.bf16.mxu1 %v1415_v6  ;;  %v1425_v13 = vld [vmem:[%s1807_s13 + $0x34] ss:$8 sps:$4 sm:$0xff]   ;;  %v1429_v15 = vld [vmem:[%s1807_s13 + $0x30] ss:$8 sps:$4 sm:$0xff]   ;;  %v1431_v17 = vld [vmem:[%s1807_s13 + $0x44] ss:$8 sps:$4 sm:$0xff]  }
  0x53   : > { %v1427_v14 = vld [vmem:[%s1807_s13 + $0x134] ss:$8 sps:$4 sm:$0xff]   ;;  %v1430_v16 = vld [vmem:[%s1807_s13 + $0x130] ss:$8 sps:$4 sm:$0xff]   ;;  %v1433_v18 = vld [vmem:[%s1807_s13 + $0x144] ss:$8 sps:$4 sm:$0xff]  }
  0x54   : > { %1007 = vmatpush1.bf16.msra.mxu0 %v1417_v7  ;;  %v1435_v19 = vld [vmem:[%s1807_s13 + $0x40] ss:$8 sps:$4 sm:$0xff]   ;;  %v1437_v21 = vld [vmem:[%s1807_s13 + $0x54] ss:$8 sps:$4 sm:$0xff]   ;;  %v1441_v23 = vld [vmem:[%s1807_s13 + $0x50] ss:$8 sps:$4 sm:$0xff]  }
  0x55   : > { %1048 = vmatpush1.bf16.msra.mxu1 %v1418_v8  ;;  %1008 = vmatprep.subr.bf16.mxu0 %v1419_v9  ;;  %v1436_v20 = vld [vmem:[%s1807_s13 + $0x140] ss:$8 sps:$4 sm:$0xff]   ;;  %v1439_v22 = vld [vmem:[%s1807_s13 + $0x154] ss:$8 sps:$4 sm:$0xff]   ;;  %v1442_v24 = vld [vmem:[%s1807_s13 + $0x150] ss:$8 sps:$4 sm:$0xff]  }
  0x56   : > { %1049 = vmatprep.subr.bf16.mxu1 %v1421_v10  ;;  %v1443_v25 = vld [vmem:[%s1807_s13 + $0x64] ss:$8 sps:$4 sm:$0xff]   ;;  %v1447_v27 = vld [vmem:[%s1807_s13 + $0x60] ss:$8 sps:$4 sm:$0xff]   ;;  %v1449_v29 = vld [vmem:[%s1807_s13 + $0x74] ss:$8 sps:$4 sm:$0xff]  }
  0x57   : > { %v1445_v26 = vld [vmem:[%s1807_s13 + $0x164] ss:$8 sps:$4 sm:$0xff]   ;;  %v1448_v28 = vld [vmem:[%s1807_s13 + $0x160] ss:$8 sps:$4 sm:$0xff]   ;;  %v1451_v30 = vld [vmem:[%s1807_s13 + $0x174] ss:$8 sps:$4 sm:$0xff]  }
  0x58   : > { %1009 = vmatpush1.bf16.msra.mxu0 %v1423_v11  ;;  %v1453_v31 = vld [vmem:[%s1807_s13 + $0x70] ss:$8 sps:$4 sm:$0xff]   ;;  %v1455_v33 = vld [vmem:[%s1807_s13 + $0x84] ss:$8 sps:$4 sm:$0xff]   ;;  %v1459_v35 = vld [vmem:[%s1807_s13 + $0x80] ss:$8 sps:$4 sm:$0xff]  }
  0x59   : > { %1050 = vmatpush1.bf16.msra.mxu1 %v1424_v12  ;;  %1010 = vmatprep.subr.bf16.mxu0 %v1425_v13  ;;  %v1454_v32 = vld [vmem:[%s1807_s13 + $0x170] ss:$8 sps:$4 sm:$0xff]   ;;  %v1457_v34 = vld [vmem:[%s1807_s13 + $0x184] ss:$8 sps:$4 sm:$0xff]   ;;  %v1460_v36 = vld [vmem:[%s1807_s13 + $0x180] ss:$8 sps:$4 sm:$0xff]  }
  0x5a   : > { %1051 = vmatprep.subr.bf16.mxu1 %v1427_v14  ;;  %v1461_v37 = vld [vmem:[%s1807_s13 + $0x94] ss:$8 sps:$4 sm:$0xff]   ;;  %v1465_v39 = vld [vmem:[%s1807_s13 + $0x90] ss:$8 sps:$4 sm:$0xff]   ;;  %v1467_v41 = vld [vmem:[%s1807_s13 + $0xa4] ss:$8 sps:$4 sm:$0xff]  }
  0x5b   : > { %v1463_v38 = vld [vmem:[%s1807_s13 + $0x194] ss:$8 sps:$4 sm:$0xff]   ;;  %v1466_v40 = vld [vmem:[%s1807_s13 + $0x190] ss:$8 sps:$4 sm:$0xff]   ;;  %v1469_v42 = vld [vmem:[%s1807_s13 + $0x1a4] ss:$8 sps:$4 sm:$0xff]  }
  0x5c   : > { %1011 = vmatpush1.bf16.msra.mxu0 %v1429_v15  ;;  %v1471_v43 = vld [vmem:[%s1807_s13 + $0xa0] ss:$8 sps:$4 sm:$0xff]   ;;  %v1473_v45 = vld [vmem:[%s1807_s13 + $0xb4] ss:$8 sps:$4 sm:$0xff]   ;;  %v1477_v50 = vld [vmem:[%s1807_s13 + $0xb0] ss:$8 sps:$4 sm:$0xff]  }
  0x5d   : > { %1052 = vmatpush1.bf16.msra.mxu1 %v1430_v16  ;;  %1012 = vmatprep.subr.bf16.mxu0 %v1431_v17  ;;  %v1472_v44 = vld [vmem:[%s1807_s13 + $0x1a0] ss:$8 sps:$4 sm:$0xff]   ;;  %v1475_v46 = vld [vmem:[%s1807_s13 + $0x1b4] ss:$8 sps:$4 sm:$0xff]   ;;  %v1478_v51 = vld [vmem:[%s1807_s13 + $0x1b0] ss:$8 sps:$4 sm:$0xff]  }
  0x5e   : > { %1053 = vmatprep.subr.bf16.mxu1 %v1433_v18  ;;  %v604_v47 = vld [vmem:[%s1789_s30] sm:$0xff]  ;;  %v605_v49 = vld [vmem:[%s1789_s30 + $0x8] sm:$0xff]  ;;  %v1479_v53 = vld [vmem:[%s1807_s13 + $0xc4] ss:$8 sps:$4 sm:$0xff]   ;;  %p1346_p13 = scmp.ne.s32.totalorder %s1545_s17, 8 }
  0x5f   : > { %v1279_v48 = vcombine.high %v604_v47, %v604_v47  ;;  %v1281_v52 = vcombine.high %v605_v49, %v605_v49  ;;  %v1481_v54 = vld [vmem:[%s1807_s13 + $0x1c4] ss:$8 sps:$4 sm:$0xff]   ;;  %v1483_v55 = vld [vmem:[%s1807_s13 + $0xc0] ss:$8 sps:$4 sm:$0xff]   ;;  %v1485_v57 = vld [vmem:[%s1807_s13 + $0xd4] ss:$8 sps:$4 sm:$0xff]   ;;  %v1278_v5 = vcombine.low %v604_v47, %v604_v47  ;;  %v1280_v6 = vcombine.low %v605_v49, %v605_v49 }
  0x60   : > { %1013 = vmatpush1.bf16.msra.mxu0 %v1435_v19  ;;  %v1484_v56 = vld [vmem:[%s1807_s13 + $0x1c0] ss:$8 sps:$4 sm:$0xff]   ;;  %v1487_v58 = vld [vmem:[%s1807_s13 + $0x1d4] ss:$8 sps:$4 sm:$0xff]   ;;  %v1489_v59 = vld [vmem:[%s1807_s13 + $0xd0] ss:$8 sps:$4 sm:$0xff]  }
  0x61   : > { %1054 = vmatpush1.bf16.msra.mxu1 %v1436_v20  ;;  %1014 = vmatprep.subr.bf16.mxu0 %v1437_v21  ;;  %v1490_v60 = vld [vmem:[%s1807_s13 + $0x1d0] ss:$8 sps:$4 sm:$0xff]   ;;  %v1491_v61 = vld [vmem:[%s1807_s13 + $0xe4] ss:$8 sps:$4 sm:$0xff]   ;;  %v1495_v63 = vld [vmem:[%s1807_s13 + $0xe0] ss:$8 sps:$4 sm:$0xff]   ;;  %v1098_v21 = vlaneseq (!%p1346_p13) }
  0x62   : > { %1055 = vmatprep.subr.bf16.mxu1 %v1439_v22  ;;  %1036 = vmatprep.mubr.bf16.mxu0 %v1279_v48  ;;  %v1493_v62 = vld [vmem:[%s1807_s13 + $0x1e4] ss:$8 sps:$4 sm:$0xff]   ;;  %v1496_v0 = vld [vmem:[%s1807_s13 + $0x1e0] ss:$8 sps:$4 sm:$0xff]   ;;  %v1497_v1 = vld [vmem:[%s1807_s13 + $0xf4] ss:$8 sps:$4 sm:$0xff]  }
  0x63   : > { %1077 = vmatprep.mubr.bf16.mxu1 %v1281_v52  ;;  %v1499_v2 = vld [vmem:[%s1807_s13 + $0x1f4] ss:$8 sps:$4 sm:$0xff]   ;;  %v1501_v3 = vld [vmem:[%s1807_s13 + $0xf0] ss:$8 sps:$4 sm:$0xff]   ;;  %v1099_v22 = vshrl.u32 (!%p1346_p13), %v1098_v21, 7 }
  0x64   : > { %1015 = vmatpush1.bf16.msra.mxu0 %v1441_v23  ;;  %v1502_v4 = vld [vmem:[%s1807_s13 + $0x1f0] ss:$8 sps:$4 sm:$0xff]  }
  0x65   : > { %1056 = vmatpush1.bf16.msra.mxu1 %v1442_v24  ;;  %1016 = vmatprep.subr.bf16.mxu0 %v1443_v25  ;;  %v602_v8 = vld [vmem:[#allocation2] sm:$0xff]  ;;  %v603_v12 = vld [vmem:[#allocation2 + $0x8] sm:$0xff]  ;;  %v1100_v25 = vsub.s32 (!%p1346_p13), 0, %v1099_v22 }
  0x66   : > { %1057 = vmatprep.subr.bf16.mxu1 %v1445_v26  ;;  %v1096_v23 = vld [vmem:[%s579_s15] sm:$0x3] (!%p1346_p13)  ;;  %v1104_v26 = vsub.s32 (!%p1346_p13), 1, %v1099_v22 }
  0x67   : > { %v1110_v24 = vld [vmem:[%s584_s18] sm:$0x3] (!%p1346_p13) }
  0x68   : > { %1017 = vmatpush1.bf16.msra.mxu0 %v1447_v27 }
  0x69   : > { %1058 = vmatpush1.bf16.msra.mxu1 %v1448_v28  ;;  %1018 = vmatprep.subr.bf16.mxu0 %v1449_v29  ;;  %v1101_v29 = vrot.slane (!%p1346_p13), %v1096_v23, %v1100_v25 }
  0x6a   : > { %1059 = vmatprep.subr.bf16.mxu1 %v1451_v30  ;;  %v1115_v30 = vrot.slane (!%p1346_p13), %v1110_v24, %v1100_v25 }
  0x6c   : > { %1019 = vmatpush1.bf16.msra.mxu0 %v1453_v31  ;;  %v1105_v31 = vrot.slane (!%p1346_p13), %v1096_v23, %v1104_v26 }
  0x6d   : > { %1060 = vmatpush1.bf16.msra.mxu1 %v1454_v32  ;;  %1020 = vmatprep.subr.bf16.mxu0 %v1455_v33  ;;  %v1119_v32 = vrot.slane (!%p1346_p13), %v1110_v24, %v1104_v26 }
  0x6e   : > { %1061 = vmatprep.subr.bf16.mxu1 %v1457_v34 }
  0x70   : > { %1021 = vmatpush1.bf16.msra.mxu0 %v1459_v35 }
  0x71   : > { %1062 = vmatpush1.bf16.msra.mxu1 %v1460_v36  ;;  %1022 = vmatprep.subr.bf16.mxu0 %v1461_v37 }
  0x72   : > { %1063 = vmatprep.subr.bf16.mxu1 %v1463_v38 }
  0x74   : > { %1023 = vmatpush1.bf16.msra.mxu0 %v1465_v39 }
  0x75   : > { %1064 = vmatpush1.bf16.msra.mxu1 %v1466_v40  ;;  %1024 = vmatprep.subr.bf16.mxu0 %v1467_v41 }
  0x76   : > { %1065 = vmatprep.subr.bf16.mxu1 %v1469_v42 }
  0x78   : > { %1025 = vmatpush1.bf16.msra.mxu0 %v1471_v43 }
  0x79   : > { %1066 = vmatpush1.bf16.msra.mxu1 %v1472_v44  ;;  %1026 = vmatprep.subr.bf16.mxu0 %v1473_v45 }
  0x7a   : > { %1067 = vmatprep.subr.bf16.mxu1 %v1475_v46 }
  0x7c   : > { %1027 = vmatpush1.bf16.msra.mxu0 %v1477_v50 }
  0x7d   : > { %1068 = vmatpush1.bf16.msra.mxu1 %v1478_v51  ;;  %1028 = vmatprep.subr.bf16.mxu0 %v1479_v53 }
  0x7e   : > { %1069 = vmatprep.subr.bf16.mxu1 %v1481_v54 }
  0x80   : > { %1029 = vmatpush1.bf16.msra.mxu0 %v1483_v55 }
  0x81   : > { %1070 = vmatpush1.bf16.msra.mxu1 %v1484_v56  ;;  %1030 = vmatprep.subr.bf16.mxu0 %v1485_v57 }
  0x82   : > { %1071 = vmatprep.subr.bf16.mxu1 %v1487_v58 }
  0x84   : > { %1031 = vmatpush1.bf16.msra.mxu0 %v1489_v59 }
  0x85   : > { %1072 = vmatpush1.bf16.msra.mxu1 %v1490_v60  ;;  %1032 = vmatprep.subr.bf16.mxu0 %v1491_v61 }
  0x86   : > { %1073 = vmatprep.subr.bf16.mxu1 %v1493_v62 }
  0x88   : > { %1033 = vmatpush1.bf16.msra.mxu0 %v1495_v63 }
  0x89   : > { %1074 = vmatpush1.bf16.msra.mxu1 %v1496_v0  ;;  %1034 = vmatprep.subr.bf16.mxu0 %v1497_v1 }
  0x8a   : > { %1075 = vmatprep.subr.bf16.mxu1 %v1499_v2 }
  0x8c   : > { %1035 = vmatpush1.bf16.msra.mxu0 %v1501_v3 }
  0x8d   : > { %1076 = vmatpush1.bf16.msra.mxu1 %v1502_v4 }
  0x8f   : > { %1037 = vmatmul.mubr.bf16.vlgmr.msra.gmra.mrb[0].mxu0 %v1278_v5 }
  0x90   : > { %1078 = vmatmul.mubr.bf16.vlgmr.msra.gmra.mrb[0].mxu1 %v1280_v6 }
 0x162   : > { %v1038_v7 = vpop.f32.mrb[0].mxu0 }
 0x163   : > { %v1079_v9 = vpop.f32.mrb[0].mxu1  ;;  %v1040_v11 = vpop.f32.mrb[1].mxu0  ;;  %1093 = sbr.rel (%p1346_p13) target bundleno = 376 (0x178), region = 82 }
 0x164   : > { %v1080_v10 = vadd.f32 %v1079_v9, %v1038_v7  ;;  %v1081_v13 = vpop.f32.mrb[1].mxu1  ;;  %v1042_v15 = vpop.f32.mrb[2].mxu0 }
 0x165   : > { %v1082_v14 = vadd.f32 %v1081_v13, %v1040_v11  ;;  %v1083_v16 = vpop.f32.mrb[2].mxu1  ;;  %v1043_v18 = vpop.f32.mrb[3].mxu0 }
 0x166   : > { %v1086_v17 = vadd.f32 %v1080_v10, %v602_v8  ;;  %v1084_v19 = vpop.f32.mrb[3].mxu1 }
 0x167   : > { %v1087_v20 = vadd.f32 %v1082_v14, %v603_v12 }
 0x168   : > { %1088 = vst [vmem:[#allocation2] sm:$0xff] %v1086_v17 }
 0x169   : > { %1089 = vst [vmem:[#allocation2 + $0x8] sm:$0xff] %v1087_v20 }
 0x16f   : > { %v1094_v27 = vld [vmem:[#allocation2] sm:$0xff] }
 0x170   : > { %v1095_v28 = vld [vmem:[#allocation2 + $0x8] sm:$0xff]  ;;  %v1108_v33 = vmul.f32 %v1101_v29, %v1094_v27 }
 0x171   : > { %v1109_v34 = vmul.f32 %v1105_v31, %v1095_v28 }
 0x172   : > { %v1122_v35 = vadd.f32 %v1115_v30, %v1108_v33 }
 0x173   : > { %v1123_v36 = vadd.f32 %v1119_v32, %v1109_v34 }
 0x174   : > { %v1124_v37 = vmax.f32 %v1122_v35, 0.0 }
 0x175   : > { %v1125_v38 = vmax.f32 %v1123_v36, 0.0 }
 0x176   : > { %1126 = vst [vmem:[%s1805_s12] sm:$0xff] %v1124_v37 }
 0x177   : > { %1127 = vst [vmem:[%s1805_s12 + $0x8] sm:$0xff] %v1125_v38 }
 0x178 PF: > { %s14_s21 = sadd.s32 1, %s1561_s21   ;;  %s1915_s15 = smov %s1541_s16 }
 0x179   : > { %p11_p0 = scmp.ge.s32.totalorder %s14_s21, 20   ;;  %s1916_s16 = smov %s1640_s28 }
 0x17a   : > { %s1917_s17 = smov %s1553_s19  ;;  %s1918_s18 = smov %s1557_s20 }
 0x17b   : > { %s1919_s19 = smov %s1922_s22  ;;  %s1920_s20 = smov %s1926_s23 }
 0x17c   :  { %13 = sbr.rel (!%p11_p0) target bundleno = 4 (0x4), region = 126 }

// kernel: resnet_forward.41
= control target key start
LH: loop header
LB: loop body
LE: loop exit
PB: predicated region body
PF: predicated region fallthrough
CT: control target
= control target key end

     0   :  { %vm25_vm0 = vcmask 1043456   ;;  %v104_v3 = vlaneseq  ;;  %s237_s0 = inlined_call_operand.vmem [shape: f32[2,4,512], index: 0, kind: input, shape index: {}]   ;;  %s238_s1 = inlined_call_operand.hbm [shape: f32[2,512], index: 1, kind: output, shape index: {}]  }
   0x1   :  { %v9_v0 = vld [vmem:[%s237_s0] sm:$0xff]  ;;  %v10_v1 = vld [vmem:[%s237_s0 + $0x8] sm:$0xff]  ;;  %v11_v2 = vld [vmem:[%s237_s0 + $0x10] sm:$0xff] }
   0x2   :  { %v12_v4 = vld [vmem:[%s237_s0 + $0x18] sm:$0xff]  ;;  %v17_v5 = vcombine.high %v9_v0, %v9_v0  ;;  %v18_v6 = vcombine.high %v10_v1, %v10_v1  ;;  %v19_v7 = vcombine.high %v11_v2, %v11_v2  ;;  %v26_v8 = vsel %vm25_vm0, %v9_v0, 0.0 }
   0x3   :  { %6 = vsyncpa [#allocation3], 0  ;;  %v20_v9 = vcombine.high %v12_v4, %v12_v4  ;;  %v27_v10 = vrot.slane %v26_v8, 4  ;;  %v40_v11 = vsel %vm25_vm0, %v10_v1, 0.0  ;;  %v54_v12 = vsel %vm25_vm0, %v11_v2, 0.0  ;;  %s193_s0 = smov [#allocation2]  }
   0x4   :  { %v33_v13 = vsel %vm25_vm0, %v17_v5, 0.0  ;;  %v41_v14 = vrot.slane %v40_v11, 4  ;;  %v47_v15 = vsel %vm25_vm0, %v18_v6, 0.0  ;;  %v55_v16 = vrot.slane %v54_v12, 4  ;;  %s154_s14 = sshll.u32 %s193_s0, 4  ;;  %s155_s14 = int_to_ptr.vmem [resolvable:$true] %s154_s14 }
   0x5   :  { %v28_v17 = vadd.f32 %v27_v10, %v26_v8  ;;  %v34_v18 = vrot.slane %v33_v13, 4  ;;  %v48_v19 = vrot.slane %v47_v15, 4  ;;  %v61_v20 = vsel %vm25_vm0, %v19_v7, 0.0  ;;  %s168_s15 = scalar_lea.vmem %s155_s14, 128  ;;  %p173_p1 = scmp.lt.s32.totalorder %s155_s14, %s155_s14 }
   0x6   :  { %v42_v21 = vadd.f32 %v41_v14, %v40_v11  ;;  %v56_v22 = vadd.f32 %v55_v16, %v54_v12  ;;  %v62_v23 = vrot.slane %v61_v20, 4  ;;  %v68_v24 = vsel %vm25_vm0, %v12_v4, 0.0  ;;  %p169_p0 = scmp.ne.s32.totalorder %s155_s14, %s168_s15  ;;  %p174_p2 = scmp.lt.s32.totalorder %s168_s15, %s168_s15 }
   0x7   :  { %v29_v25 = vrot.slane %v28_v17, 2  ;;  %v35_v26 = vadd.f32 %v34_v18, %v33_v13  ;;  %v49_v27 = vadd.f32 %v48_v19, %v47_v15  ;;  %v69_v28 = vrot.slane %v68_v24, 4 }
   0x8   :  { %v43_v29 = vrot.slane %v42_v21, 2  ;;  %v57_v30 = vrot.slane %v56_v22, 2  ;;  %v63_v31 = vadd.f32 %v62_v23, %v61_v20  ;;  %v75_v32 = vsel %vm25_vm0, %v20_v9, 0.0  ;;  %p175_p3 = por %p174_p2, %p173_p1 }
   0x9   :  { %v30_v33 = vadd.f32 %v29_v25, %v28_v17  ;;  %v36_v34 = vrot.slane %v35_v26, 2  ;;  %v50_v35 = vrot.slane %v49_v27, 2  ;;  %v70_v36 = vadd.f32 %v69_v28, %v68_v24 }
   0xa   :  { %v44_v37 = vadd.f32 %v43_v29, %v42_v21  ;;  %v58_v38 = vadd.f32 %v57_v30, %v56_v22  ;;  %v64_v39 = vrot.slane %v63_v31, 2  ;;  %v76_v40 = vrot.slane %v75_v32, 4  ;;  %p176_p4 = pnand %p175_p3, %p169_p0 }
   0xb   :  { %v31_v41 = vrot.slane %v30_v33, 1  ;;  %v37_v42 = vadd.f32 %v36_v34, %v35_v26  ;;  %v51_v43 = vadd.f32 %v50_v35, %v49_v27  ;;  %v71_v44 = vrot.slane %v70_v36, 2 }
   0xc   :  { %v45_v45 = vrot.slane %v44_v37, 1  ;;  %v59_v46 = vrot.slane %v58_v38, 1  ;;  %v65_v47 = vadd.f32 %v64_v39, %v63_v31  ;;  %v77_v48 = vadd.f32 %v76_v40, %v75_v32 }
   0xd   :  { %v32_v49 = vadd.f32 %v31_v41, %v30_v33  ;;  %v38_v50 = vrot.slane %v37_v42, 1  ;;  %v52_v51 = vrot.slane %v51_v43, 1  ;;  %v72_v52 = vadd.f32 %v71_v44, %v70_v36 }
   0xe   :  { %v46_v53 = vadd.f32 %v45_v45, %v44_v37  ;;  %v60_v54 = vadd.f32 %v59_v46, %v58_v38  ;;  %v66_v55 = vrot.slane %v65_v47, 1  ;;  %v78_v56 = vrot.slane %v77_v48, 2 }
   0xf   :  { %v39_v57 = vadd.f32 %v38_v50, %v37_v42  ;;  %v53_v58 = vadd.f32 %v52_v51, %v51_v43  ;;  %v73_v59 = vrot.slane %v72_v52, 1  ;;  %v83_v60 = vmul.f32 0.25, %v32_v49 }
  0x10   :  { %v67_v61 = vadd.f32 %v66_v55, %v65_v47  ;;  %v79_v62 = vadd.f32 %v78_v56, %v77_v48  ;;  %v85_v63 = vmul.f32 0.25, %v46_v53  ;;  %v87_v0 = vmul.f32 0.25, %v60_v54 }
  0x11   :  { %v74_v1 = vadd.f32 %v73_v59, %v72_v52  ;;  %v84_v2 = vmul.f32 0.25, %v39_v57  ;;  %v86_v4 = vmul.f32 0.25, %v53_v58  ;;  %v192_v5 = vmov 1983009808  }
  0x12   :  { %v102_v6 = vunpack.c.l.s4 %v192_v5  ;;  %v80_v7 = vrot.slane %v79_v62, 1  ;;  %v88_v8 = vmul.f32 0.25, %v67_v61  ;;  %v105_v9 = vshrl.u32 %v104_v3, 7 }
  0x13   :  { %v89_v10 = vmul.f32 0.25, %v74_v1  ;;  %v99_v13 = vcombine.low %v83_v60, %v84_v2  ;;  %v100_v14 = vcombine.low %v85_v63, %v86_v4  ;;  %vm138_vm1 = vcmask 1041409  }
  0x14   :  { %v103_v11 = vunpack.c.0.s8 %v102_v6  ;;  %v81_v12 = vadd.f32 %v80_v7, %v79_v62  ;;  %v116_v15 = vcombine.low %v87_v0, %v88_v8  ;;  %vm140_vm2 = vcmask 1043459  }
  0x15   :  { %vm142_vm3 = vcmask 1045509   ;;  %vm144_vm4 = vcmask 1047559  }
  0x16   :  { %v106_v16 = vsub.s32 %v103_v11, %v105_v9  ;;  %v90_v17 = vmul.f32 0.25, %v81_v12 }
  0x18   :  { %v107_v18 = vrot.slane %v99_v13, %v106_v16  ;;  %v114_v19 = vrot.slane %v100_v14, %v106_v16  ;;  %v117_v20 = vcombine.low %v89_v10, %v90_v17  ;;  %v124_v21 = vrot.slane %v116_v15, %v106_v16 }
  0x1a   :  { %v131_v22 = vrot.slane %v117_v20, %v106_v16  ;;  %v115_v23 = vcombine.low %v107_v18, %v114_v19 }
  0x1c   :  { %v132_v24 = vcombine.low %v124_v21, %v131_v22 }
  0x1e   :  { %v137_v25 = vrot.slane %v132_v24, 7 }
  0x20   :  { %v139_v3 = vsel %vm138_vm1, %v137_v25, %v115_v23 }
  0x21   :  { %v141_v26 = vsel %vm140_vm2, %v137_v25, %v139_v3 }
  0x22   :  { %v143_v27 = vsel %vm142_vm3, %v137_v25, %v141_v26 }
  0x23   :  { %v145_v28 = vsel %vm144_vm4, %v137_v25, %v143_v27 }
  0x24   :  { %147 = vst [vmem:[#allocation2] sm:$0xff] %v145_v28 }
  0x25   :  { %179 = shalt.err (!%p176_p4)
}
  0x26   :  { %s180_s18 = scalar_lea.hbm %s238_s1, 128 }
  0x27   :  { %p181_p5 = scmp.ne.s32.totalorder %s238_s1, %s180_s18  ;;  %p184_p6 = scmp.lt.u32.totalorder %s180_s18, %s238_s1 }
  0x29   :  { %p186_p7 = pnand %p184_p6, %p181_p5 }
  0x2b   :  { %189 = shalt.err (!%p186_p7)
}
  0x2c   :  { %157 = dma.vmem_to_hbm [thread:$0]  %s155_s14, 128, %s238_s1, [#allocation3]  }
  0x2d   :  { %190 = dma.done.wait [#allocation3], 128  }
  0x2e   :  { %191 = vsyncadd [#allocation3], 4294967168 }
  0x2f   :  { %161 = vsyncpa [#allocation3], 1 }

</bundles_post_ra>
